<compile_context>
chip_gen: v5e
topology: v5e:2x2
jax: 0.10.0
libtpu: 0.0.40
codegen_flags: <defaults>
</compile_context>

<pallas_src>
import jax
import jax.numpy as jnp
from jax.experimental import pallas as pl
from jax.experimental.pallas import tpu as pltpu


def _round_up(x: int, m: int) -> int:
    return (x + m - 1) // m * m


# ----------------------------------------------------------------------------
# Fused kernel
# ----------------------------------------------------------------------------
def _mlp6_fused_kernel(x_ref, w1_ref, bias_ref, *rest):
    """rest = (w2_hbm..w7_hbm, out_ref, w2_vmem..w7_vmem, dma_sems).

    x: [Bp, IN] bf16 (VMEM), w1: [IN, 1024] bf16 (VMEM),
    bias: [1, sum(out_dims)] f32 (VMEM), w2..w7: bf16 HBM refs,
    out: [Bp, 128] f32 (lane-dense).
    """
    n_stream = (len(rest) - 2) // 2
    hbm = rest[:n_stream]
    out_ref = rest[n_stream]
    vmem = rest[n_stream + 1: n_stream + 1 + n_stream]
    sems = rest[-1]

    # Kick off every streamed-weight DMA up front so HBM->VMEM transfer of
    # layer i+1 overlaps the matmul/ReLU of layer i.
    for i in range(n_stream):
        pltpu.make_async_copy(hbm[i], vmem[i], sems.at[i]).start()

    # Layer 1 — weight already resident via BlockSpec.
    h = x_ref[...]                                   # bf16
    off = 0
    d = w1_ref.shape[1]
    y = jnp.dot(h, w1_ref[...], preferred_element_type=jnp.float32)  # MXU, f32 acc
    y = y + bias_ref[:, off:off + d]                 # f32 bias add (VPU)
    y = jnp.maximum(y, 0.0)                          # ReLU
    h = y.astype(jnp.bfloat16)
    off += d

    # Layers 2..7 — wait for each layer's weight right before its matmul.
    for i in range(n_stream):
        pltpu.make_async_copy(hbm[i], vmem[i], sems.at[i]).wait()
        d = vmem[i].shape[1]
        y = jnp.dot(h, vmem[i][...], preferred_element_type=jnp.float32)
        y = y + bias_ref[:, off:off + d]
        off += d
        if i < n_stream - 1:                         # no ReLU on the head
            y = jnp.maximum(y, 0.0)
            h = y.astype(jnp.bfloat16)

    out_ref[...] = y.astype(out_ref.dtype)


# ----------------------------------------------------------------------------
# One-time parameter preparation (model-load time, NOT the hot path)
# ----------------------------------------------------------------------------
def prepare_mlp6_params(params, lane_pad: int = 128):
    """Cast weights to bf16 [in, out], zero-pad the head to `lane_pad` output
    lanes, and concatenate all biases into one lane-aligned f32 buffer."""
    num_layers = len(params)
    weights, biases, out_dims = [], [], []
    for i, (w, b) in enumerate(params):
        w = jnp.asarray(w, jnp.float32)
        b = jnp.asarray(b, jnp.float32).reshape(1, -1)
        if i == num_layers - 1:
            pad = _round_up(max(w.shape[1], lane_pad), lane_pad) - w.shape[1]
            if pad:
                w = jnp.pad(w, ((0, 0), (0, pad)))
                b = jnp.pad(b, ((0, 0), (0, pad)))
        weights.append(w.astype(jnp.bfloat16))
        biases.append(b)
        out_dims.append(int(w.shape[1]))
    bias_cat = jnp.concatenate(biases, axis=1)       # [1, sum(out_dims)] f32
    return tuple(weights), bias_cat, tuple(out_dims)


# ----------------------------------------------------------------------------
# Forward pass (hot path)
# ----------------------------------------------------------------------------
def mlp6_forward(x_nchw, prepared, no_classes: int):
    weights, bias_cat, out_dims = prepared
    B = x_nchw.shape[0]
    x = x_nchw.reshape(B, -1)                        # torch.nn.Flatten
    in_feat = x.shape[1]
    assert in_feat == weights[0].shape[0]

    b_pad = _round_up(max(B, 16), 16)                # bf16 sublane pack (16 rows)
    out_pad = out_dims[-1]                           # 128 (pre-padded head)

    # Pre-cast + pre-pad x: full (16, 1024) bf16 lhs tile, no in-kernel cast.
    x_p = jnp.zeros((b_pad, in_feat), jnp.bfloat16).at[:B].set(x.astype(jnp.bfloat16))

    n_stream = len(weights) - 1

    in_specs = [
        pl.BlockSpec(x_p.shape, lambda: (0, 0)),          # x        (VMEM)
        pl.BlockSpec(weights[0].shape, lambda: (0, 0)),   # w1       (VMEM)
        pl.BlockSpec(bias_cat.shape, lambda: (0, 0)),     # biases   (VMEM)
    ] + [pl.BlockSpec(memory_space=pl.ANY) for _ in range(n_stream)]  # w2..w7 (HBM)

    scratch_shapes = [pltpu.VMEM(w.shape, jnp.bfloat16) for w in weights[1:]]
    scratch_shapes.append(pltpu.SemaphoreType.DMA((n_stream,)))

    # Advisory cost estimate for XLA's scheduler (kernel is HBM-bound).
    flops = 2 * b_pad * sum(int(w.shape[0]) * int(w.shape[1]) for w in weights)
    bytes_accessed = (
        int(x_p.size) * 2
        + sum(int(w.size) * 2 for w in weights)
        + int(bias_cat.size) * 4
        + b_pad * out_pad * 4
    )

    out_p = pl.pallas_call(
        _mlp6_fused_kernel,
        out_shape=jax.ShapeDtypeStruct((b_pad, out_pad), jnp.float32),
        in_specs=in_specs,
        out_specs=pl.BlockSpec((b_pad, out_pad), lambda: (0, 0)),
        scratch_shapes=scratch_shapes,
        cost_estimate=pl.CostEstimate(
            flops=flops, transcendentals=0, bytes_accessed=bytes_accessed),
    )(x_p, weights[0], bias_cat, *weights[1:])

    return out_p[:B, :no_classes]                    # logits (no softmax)


# ----------------------------------------------------------------------------
# Deterministic synthetic parameters (mirrors MLP6.__init__)
# ----------------------------------------------------------------------------
def init_mlp6_params(key, input_size: int, no_classes: int):
    dims = [input_size, 1024, 512, 512, 512, 256, 256, no_classes]
    params = []
    for i in range(len(dims) - 1):
        key, kw, kb = jax.random.split(key, 3)
        bound = 1.0 / (dims[i] ** 0.5)               # torch.nn.Linear default scale
        w = jax.random.uniform(kw, (dims[i], dims[i + 1]), jnp.float32,
                               minval=-bound, maxval=bound)
        b = jax.random.uniform(kb, (1, dims[i + 1]), jnp.float32,
                               minval=-bound, maxval=bound)
        params.append((w, b))
    return params


if __name__ == "__main__":
    key = jax.random.PRNGKey(0)
    k_x, k_p = jax.random.split(key)

    # Small shapes consistent with the module: x = [2, 4, 16, 16] -> 1024 feats.
    B, C, H, W = 2, 4, 16, 16
    input_size = C * H * W
    no_classes = 10

    x = jax.random.normal(k_x, (B, C, H, W), dtype=jnp.float32)
    params = init_mlp6_params(k_p, input_size, no_classes)

    # One-time (model-load) weight preparation — OUT of the hot path.
    prepared = prepare_mlp6_params(params)
    prepared = jax.block_until_ready(prepared)

    y = mlp6_forward(x, prepared, no_classes)
    y = jax.block_until_ready(y)
    assert y.shape == (B, no_classes), y.shape

    # Reference A: exact-numerics reference (bf16 weights/activations, f32 acc)
    # -> validates kernel layout / bias slicing / padding tightly.
    h = x.reshape(B, -1).astype(jnp.bfloat16)
    ref_bf16 = None
    for i, (w, b) in enumerate(params):
        ref_bf16 = jnp.dot(h, w.astype(jnp.bfloat16),
                           preferred_element_type=jnp.float32) + b.astype(jnp.float32)
        if i != len(params) - 1:
            ref_bf16 = jnp.maximum(ref_bf16, 0.0)
            h = ref_bf16.astype(jnp.bfloat16)
    assert jnp.allclose(y, ref_bf16, atol=1e-2, rtol=1e-2), (
        float(jnp.max(jnp.abs(y - ref_bf16))))

    # Reference B: true f32 PyTorch-equivalent module -> validates that the
    # deliberate bf16 weight compression stays within a loose tolerance.
    hf = x.reshape(B, -1).astype(jnp.float32)
    ref_f32 = None
    for i, (w, b) in enumerate(params):
        ref_f32 = jnp.dot(hf, w) + b
        if i != len(params) - 1:
            ref_f32 = jnp.maximum(ref_f32, 0.0)
            hf = ref_f32
    assert jnp.allclose(y, ref_f32, atol=5e-2, rtol=5e-2), (
        float(jnp.max(jnp.abs(y - ref_f32))))

    print("KERNEL_OK")
</pallas_src>

<mosaic_0001>
module attributes {stable_mosaic.version = 11 : i64} {
  func.func @_mlp6_fused_kernel(%arg0: memref<16x1024xbf16, #tpu.memory_space<vmem>>, %arg1: memref<1024x1024xbf16, #tpu.memory_space<vmem>>, %arg2: memref<1x3200xf32, #tpu.memory_space<vmem>>, %arg3: memref<1024x512xbf16, #tpu.memory_space<any>>, %arg4: memref<512x512xbf16, #tpu.memory_space<any>>, %arg5: memref<512x512xbf16, #tpu.memory_space<any>>, %arg6: memref<512x256xbf16, #tpu.memory_space<any>>, %arg7: memref<256x256xbf16, #tpu.memory_space<any>>, %arg8: memref<256x128xbf16, #tpu.memory_space<any>>, %arg9: memref<16x128xf32, #tpu.memory_space<vmem>>, %arg10: memref<1024x512xbf16, #tpu.memory_space<vmem>>, %arg11: memref<512x512xbf16, #tpu.memory_space<vmem>>, %arg12: memref<512x512xbf16, #tpu.memory_space<vmem>>, %arg13: memref<512x256xbf16, #tpu.memory_space<vmem>>, %arg14: memref<256x256xbf16, #tpu.memory_space<vmem>>, %arg15: memref<256x128xbf16, #tpu.memory_space<vmem>>, %arg16: memref<6x!tpu.dma_semaphore, #tpu.memory_space<semaphore_mem>>) attributes {dimension_semantics = [], scalar_prefetch = 0 : i64, scratch_operands = 7 : i64, tpu.core_type = #tpu.core_type<tc>} {
    %c0_i32 = arith.constant 0 : i32
    %0 = tpu.memref_slice %arg16[%c0_i32] : memref<6x!tpu.dma_semaphore, #tpu.memory_space<semaphore_mem>> -> memref<1x!tpu.dma_semaphore, #tpu.memory_space<semaphore_mem>>
    %1 = tpu.memref_squeeze %0 : memref<1x!tpu.dma_semaphore, #tpu.memory_space<semaphore_mem>> -> memref<!tpu.dma_semaphore, #tpu.memory_space<semaphore_mem>>
    tpu.enqueue_dma source(%arg3 : memref<1024x512xbf16, #tpu.memory_space<any>>) target(%arg10 : memref<1024x512xbf16, #tpu.memory_space<vmem>>) target_semaphore(%1 : memref<!tpu.dma_semaphore, #tpu.memory_space<semaphore_mem>>)
    %c1_i32 = arith.constant 1 : i32
    %2 = tpu.memref_slice %arg16[%c1_i32] : memref<6x!tpu.dma_semaphore, #tpu.memory_space<semaphore_mem>> -> memref<1x!tpu.dma_semaphore, #tpu.memory_space<semaphore_mem>>
    %3 = tpu.memref_squeeze %2 : memref<1x!tpu.dma_semaphore, #tpu.memory_space<semaphore_mem>> -> memref<!tpu.dma_semaphore, #tpu.memory_space<semaphore_mem>>
    tpu.enqueue_dma source(%arg4 : memref<512x512xbf16, #tpu.memory_space<any>>) target(%arg11 : memref<512x512xbf16, #tpu.memory_space<vmem>>) target_semaphore(%3 : memref<!tpu.dma_semaphore, #tpu.memory_space<semaphore_mem>>)
    %c2_i32 = arith.constant 2 : i32
    %4 = tpu.memref_slice %arg16[%c2_i32] : memref<6x!tpu.dma_semaphore, #tpu.memory_space<semaphore_mem>> -> memref<1x!tpu.dma_semaphore, #tpu.memory_space<semaphore_mem>>
    %5 = tpu.memref_squeeze %4 : memref<1x!tpu.dma_semaphore, #tpu.memory_space<semaphore_mem>> -> memref<!tpu.dma_semaphore, #tpu.memory_space<semaphore_mem>>
    tpu.enqueue_dma source(%arg5 : memref<512x512xbf16, #tpu.memory_space<any>>) target(%arg12 : memref<512x512xbf16, #tpu.memory_space<vmem>>) target_semaphore(%5 : memref<!tpu.dma_semaphore, #tpu.memory_space<semaphore_mem>>)
    %c3_i32 = arith.constant 3 : i32
    %6 = tpu.memref_slice %arg16[%c3_i32] : memref<6x!tpu.dma_semaphore, #tpu.memory_space<semaphore_mem>> -> memref<1x!tpu.dma_semaphore, #tpu.memory_space<semaphore_mem>>
    %7 = tpu.memref_squeeze %6 : memref<1x!tpu.dma_semaphore, #tpu.memory_space<semaphore_mem>> -> memref<!tpu.dma_semaphore, #tpu.memory_space<semaphore_mem>>
    tpu.enqueue_dma source(%arg6 : memref<512x256xbf16, #tpu.memory_space<any>>) target(%arg13 : memref<512x256xbf16, #tpu.memory_space<vmem>>) target_semaphore(%7 : memref<!tpu.dma_semaphore, #tpu.memory_space<semaphore_mem>>)
    %c4_i32 = arith.constant 4 : i32
    %8 = tpu.memref_slice %arg16[%c4_i32] : memref<6x!tpu.dma_semaphore, #tpu.memory_space<semaphore_mem>> -> memref<1x!tpu.dma_semaphore, #tpu.memory_space<semaphore_mem>>
    %9 = tpu.memref_squeeze %8 : memref<1x!tpu.dma_semaphore, #tpu.memory_space<semaphore_mem>> -> memref<!tpu.dma_semaphore, #tpu.memory_space<semaphore_mem>>
    tpu.enqueue_dma source(%arg7 : memref<256x256xbf16, #tpu.memory_space<any>>) target(%arg14 : memref<256x256xbf16, #tpu.memory_space<vmem>>) target_semaphore(%9 : memref<!tpu.dma_semaphore, #tpu.memory_space<semaphore_mem>>)
    %c5_i32 = arith.constant 5 : i32
    %10 = tpu.memref_slice %arg16[%c5_i32] : memref<6x!tpu.dma_semaphore, #tpu.memory_space<semaphore_mem>> -> memref<1x!tpu.dma_semaphore, #tpu.memory_space<semaphore_mem>>
    %11 = tpu.memref_squeeze %10 : memref<1x!tpu.dma_semaphore, #tpu.memory_space<semaphore_mem>> -> memref<!tpu.dma_semaphore, #tpu.memory_space<semaphore_mem>>
    tpu.enqueue_dma source(%arg8 : memref<256x128xbf16, #tpu.memory_space<any>>) target(%arg15 : memref<256x128xbf16, #tpu.memory_space<vmem>>) target_semaphore(%11 : memref<!tpu.dma_semaphore, #tpu.memory_space<semaphore_mem>>)
    %c0 = arith.constant 0 : index
    %c0_0 = arith.constant 0 : index
    %12 = vector.load %arg0[%c0, %c0_0] : memref<16x1024xbf16, #tpu.memory_space<vmem>>, vector<16x1024xbf16>
    %c0_1 = arith.constant 0 : index
    %c0_2 = arith.constant 0 : index
    %13 = vector.load %arg1[%c0_1, %c0_2] : memref<1024x1024xbf16, #tpu.memory_space<vmem>>, vector<1024x1024xbf16>
    %cst = arith.constant dense<0.000000e+00> : vector<16x1024xf32>
    %14 = tpu.matmul %12, %13, %cst {dimension_numbers = #tpu.dot_dimension_numbers<[1], [0], [0], [1], [0, 0, 1, 1], [], []>} : vector<16x1024xbf16>, vector<1024x1024xbf16>, vector<16x1024xf32> -> vector<16x1024xf32>
    %c0_3 = arith.constant 0 : index
    %c0_4 = arith.constant 0 : index
    %15 = vector.load %arg2[%c0_3, %c0_4] : memref<1x3200xf32, #tpu.memory_space<vmem>>, vector<1x1024xf32>
    %16 = vector.broadcast %15 : vector<1x1024xf32> to vector<16x1024xf32>
    %17 = arith.addf %14, %16 : vector<16x1024xf32>
    %cst_5 = arith.constant 0.000000e+00 : f32
    %18 = vector.broadcast %cst_5 : f32 to vector<16x1024xf32>
    %19 = arith.maximumf %17, %18 : vector<16x1024xf32>
    %20 = arith.truncf %19 : vector<16x1024xf32> to vector<16x1024xbf16>
    %c0_i32_6 = arith.constant 0 : i32
    %21 = tpu.memref_slice %arg16[%c0_i32_6] : memref<6x!tpu.dma_semaphore, #tpu.memory_space<semaphore_mem>> -> memref<1x!tpu.dma_semaphore, #tpu.memory_space<semaphore_mem>>
    %22 = tpu.memref_squeeze %21 : memref<1x!tpu.dma_semaphore, #tpu.memory_space<semaphore_mem>> -> memref<!tpu.dma_semaphore, #tpu.memory_space<semaphore_mem>>
    tpu.wait_dma2 semaphore(%22 : memref<!tpu.dma_semaphore, #tpu.memory_space<semaphore_mem>>) src(%arg3 : memref<1024x512xbf16, #tpu.memory_space<any>>) dst(%arg10 : memref<1024x512xbf16, #tpu.memory_space<vmem>>)
    %c0_7 = arith.constant 0 : index
    %c0_8 = arith.constant 0 : index
    %23 = vector.load %arg10[%c0_7, %c0_8] : memref<1024x512xbf16, #tpu.memory_space<vmem>>, vector<1024x512xbf16>
    %cst_9 = arith.constant dense<0.000000e+00> : vector<16x512xf32>
    %24 = tpu.matmul %20, %23, %cst_9 {dimension_numbers = #tpu.dot_dimension_numbers<[1], [0], [0], [1], [0, 0, 1, 1], [], []>} : vector<16x1024xbf16>, vector<1024x512xbf16>, vector<16x512xf32> -> vector<16x512xf32>
    %c0_10 = arith.constant 0 : index
    %c1024 = arith.constant 1024 : index
    %25 = vector.load %arg2[%c0_10, %c1024] : memref<1x3200xf32, #tpu.memory_space<vmem>>, vector<1x512xf32>
    %26 = vector.broadcast %25 : vector<1x512xf32> to vector<16x512xf32>
    %27 = arith.addf %24, %26 : vector<16x512xf32>
    %cst_11 = arith.constant 0.000000e+00 : f32
    %28 = vector.broadcast %cst_11 : f32 to vector<16x512xf32>
    %29 = arith.maximumf %27, %28 : vector<16x512xf32>
    %30 = arith.truncf %29 : vector<16x512xf32> to vector<16x512xbf16>
    %c1_i32_12 = arith.constant 1 : i32
    %31 = tpu.memref_slice %arg16[%c1_i32_12] : memref<6x!tpu.dma_semaphore, #tpu.memory_space<semaphore_mem>> -> memref<1x!tpu.dma_semaphore, #tpu.memory_space<semaphore_mem>>
    %32 = tpu.memref_squeeze %31 : memref<1x!tpu.dma_semaphore, #tpu.memory_space<semaphore_mem>> -> memref<!tpu.dma_semaphore, #tpu.memory_space<semaphore_mem>>
    tpu.wait_dma2 semaphore(%32 : memref<!tpu.dma_semaphore, #tpu.memory_space<semaphore_mem>>) src(%arg4 : memref<512x512xbf16, #tpu.memory_space<any>>) dst(%arg11 : memref<512x512xbf16, #tpu.memory_space<vmem>>)
    %c0_13 = arith.constant 0 : index
    %c0_14 = arith.constant 0 : index
    %33 = vector.load %arg11[%c0_13, %c0_14] : memref<512x512xbf16, #tpu.memory_space<vmem>>, vector<512x512xbf16>
    %cst_15 = arith.constant dense<0.000000e+00> : vector<16x512xf32>
    %34 = tpu.matmul %30, %33, %cst_15 {dimension_numbers = #tpu.dot_dimension_numbers<[1], [0], [0], [1], [0, 0, 1, 1], [], []>} : vector<16x512xbf16>, vector<512x512xbf16>, vector<16x512xf32> -> vector<16x512xf32>
    %c0_16 = arith.constant 0 : index
    %c1536 = arith.constant 1536 : index
    %35 = vector.load %arg2[%c0_16, %c1536] : memref<1x3200xf32, #tpu.memory_space<vmem>>, vector<1x512xf32>
    %36 = vector.broadcast %35 : vector<1x512xf32> to vector<16x512xf32>
    %37 = arith.addf %34, %36 : vector<16x512xf32>
    %cst_17 = arith.constant 0.000000e+00 : f32
    %38 = vector.broadcast %cst_17 : f32 to vector<16x512xf32>
    %39 = arith.maximumf %37, %38 : vector<16x512xf32>
    %40 = arith.truncf %39 : vector<16x512xf32> to vector<16x512xbf16>
    %c2_i32_18 = arith.constant 2 : i32
    %41 = tpu.memref_slice %arg16[%c2_i32_18] : memref<6x!tpu.dma_semaphore, #tpu.memory_space<semaphore_mem>> -> memref<1x!tpu.dma_semaphore, #tpu.memory_space<semaphore_mem>>
    %42 = tpu.memref_squeeze %41 : memref<1x!tpu.dma_semaphore, #tpu.memory_space<semaphore_mem>> -> memref<!tpu.dma_semaphore, #tpu.memory_space<semaphore_mem>>
    tpu.wait_dma2 semaphore(%42 : memref<!tpu.dma_semaphore, #tpu.memory_space<semaphore_mem>>) src(%arg5 : memref<512x512xbf16, #tpu.memory_space<any>>) dst(%arg12 : memref<512x512xbf16, #tpu.memory_space<vmem>>)
    %c0_19 = arith.constant 0 : index
    %c0_20 = arith.constant 0 : index
    %43 = vector.load %arg12[%c0_19, %c0_20] : memref<512x512xbf16, #tpu.memory_space<vmem>>, vector<512x512xbf16>
    %cst_21 = arith.constant dense<0.000000e+00> : vector<16x512xf32>
    %44 = tpu.matmul %40, %43, %cst_21 {dimension_numbers = #tpu.dot_dimension_numbers<[1], [0], [0], [1], [0, 0, 1, 1], [], []>} : vector<16x512xbf16>, vector<512x512xbf16>, vector<16x512xf32> -> vector<16x512xf32>
    %c0_22 = arith.constant 0 : index
    %c2048 = arith.constant 2048 : index
    %45 = vector.load %arg2[%c0_22, %c2048] : memref<1x3200xf32, #tpu.memory_space<vmem>>, vector<1x512xf32>
    %46 = vector.broadcast %45 : vector<1x512xf32> to vector<16x512xf32>
    %47 = arith.addf %44, %46 : vector<16x512xf32>
    %cst_23 = arith.constant 0.000000e+00 : f32
    %48 = vector.broadcast %cst_23 : f32 to vector<16x512xf32>
    %49 = arith.maximumf %47, %48 : vector<16x512xf32>
    %50 = arith.truncf %49 : vector<16x512xf32> to vector<16x512xbf16>
    %c3_i32_24 = arith.constant 3 : i32
    %51 = tpu.memref_slice %arg16[%c3_i32_24] : memref<6x!tpu.dma_semaphore, #tpu.memory_space<semaphore_mem>> -> memref<1x!tpu.dma_semaphore, #tpu.memory_space<semaphore_mem>>
    %52 = tpu.memref_squeeze %51 : memref<1x!tpu.dma_semaphore, #tpu.memory_space<semaphore_mem>> -> memref<!tpu.dma_semaphore, #tpu.memory_space<semaphore_mem>>
    tpu.wait_dma2 semaphore(%52 : memref<!tpu.dma_semaphore, #tpu.memory_space<semaphore_mem>>) src(%arg6 : memref<512x256xbf16, #tpu.memory_space<any>>) dst(%arg13 : memref<512x256xbf16, #tpu.memory_space<vmem>>)
    %c0_25 = arith.constant 0 : index
    %c0_26 = arith.constant 0 : index
    %53 = vector.load %arg13[%c0_25, %c0_26] : memref<512x256xbf16, #tpu.memory_space<vmem>>, vector<512x256xbf16>
    %cst_27 = arith.constant dense<0.000000e+00> : vector<16x256xf32>
    %54 = tpu.matmul %50, %53, %cst_27 {dimension_numbers = #tpu.dot_dimension_numbers<[1], [0], [0], [1], [0, 0, 1, 1], [], []>} : vector<16x512xbf16>, vector<512x256xbf16>, vector<16x256xf32> -> vector<16x256xf32>
    %c0_28 = arith.constant 0 : index
    %c2560 = arith.constant 2560 : index
    %55 = vector.load %arg2[%c0_28, %c2560] : memref<1x3200xf32, #tpu.memory_space<vmem>>, vector<1x256xf32>
    %56 = vector.broadcast %55 : vector<1x256xf32> to vector<16x256xf32>
    %57 = arith.addf %54, %56 : vector<16x256xf32>
    %cst_29 = arith.constant 0.000000e+00 : f32
    %58 = vector.broadcast %cst_29 : f32 to vector<16x256xf32>
    %59 = arith.maximumf %57, %58 : vector<16x256xf32>
    %60 = arith.truncf %59 : vector<16x256xf32> to vector<16x256xbf16>
    %c4_i32_30 = arith.constant 4 : i32
    %61 = tpu.memref_slice %arg16[%c4_i32_30] : memref<6x!tpu.dma_semaphore, #tpu.memory_space<semaphore_mem>> -> memref<1x!tpu.dma_semaphore, #tpu.memory_space<semaphore_mem>>
    %62 = tpu.memref_squeeze %61 : memref<1x!tpu.dma_semaphore, #tpu.memory_space<semaphore_mem>> -> memref<!tpu.dma_semaphore, #tpu.memory_space<semaphore_mem>>
    tpu.wait_dma2 semaphore(%62 : memref<!tpu.dma_semaphore, #tpu.memory_space<semaphore_mem>>) src(%arg7 : memref<256x256xbf16, #tpu.memory_space<any>>) dst(%arg14 : memref<256x256xbf16, #tpu.memory_space<vmem>>)
    %c0_31 = arith.constant 0 : index
    %c0_32 = arith.constant 0 : index
    %63 = vector.load %arg14[%c0_31, %c0_32] : memref<256x256xbf16, #tpu.memory_space<vmem>>, vector<256x256xbf16>
    %cst_33 = arith.constant dense<0.000000e+00> : vector<16x256xf32>
    %64 = tpu.matmul %60, %63, %cst_33 {dimension_numbers = #tpu.dot_dimension_numbers<[1], [0], [0], [1], [0, 0, 1, 1], [], []>} : vector<16x256xbf16>, vector<256x256xbf16>, vector<16x256xf32> -> vector<16x256xf32>
    %c0_34 = arith.constant 0 : index
    %c2816 = arith.constant 2816 : index
    %65 = vector.load %arg2[%c0_34, %c2816] : memref<1x3200xf32, #tpu.memory_space<vmem>>, vector<1x256xf32>
    %66 = vector.broadcast %65 : vector<1x256xf32> to vector<16x256xf32>
    %67 = arith.addf %64, %66 : vector<16x256xf32>
    %cst_35 = arith.constant 0.000000e+00 : f32
    %68 = vector.broadcast %cst_35 : f32 to vector<16x256xf32>
    %69 = arith.maximumf %67, %68 : vector<16x256xf32>
    %70 = arith.truncf %69 : vector<16x256xf32> to vector<16x256xbf16>
    %c5_i32_36 = arith.constant 5 : i32
    %71 = tpu.memref_slice %arg16[%c5_i32_36] : memref<6x!tpu.dma_semaphore, #tpu.memory_space<semaphore_mem>> -> memref<1x!tpu.dma_semaphore, #tpu.memory_space<semaphore_mem>>
    %72 = tpu.memref_squeeze %71 : memref<1x!tpu.dma_semaphore, #tpu.memory_space<semaphore_mem>> -> memref<!tpu.dma_semaphore, #tpu.memory_space<semaphore_mem>>
    tpu.wait_dma2 semaphore(%72 : memref<!tpu.dma_semaphore, #tpu.memory_space<semaphore_mem>>) src(%arg8 : memref<256x128xbf16, #tpu.memory_space<any>>) dst(%arg15 : memref<256x128xbf16, #tpu.memory_space<vmem>>)
    %c0_37 = arith.constant 0 : index
    %c0_38 = arith.constant 0 : index
    %73 = vector.load %arg15[%c0_37, %c0_38] : memref<256x128xbf16, #tpu.memory_space<vmem>>, vector<256x128xbf16>
    %cst_39 = arith.constant dense<0.000000e+00> : vector<16x128xf32>
    %74 = tpu.matmul %70, %73, %cst_39 {dimension_numbers = #tpu.dot_dimension_numbers<[1], [0], [0], [1], [0, 0, 1, 1], [], []>} : vector<16x256xbf16>, vector<256x128xbf16>, vector<16x128xf32> -> vector<16x128xf32>
    %c0_40 = arith.constant 0 : index
    %c3072 = arith.constant 3072 : index
    %75 = vector.load %arg2[%c0_40, %c3072] : memref<1x3200xf32, #tpu.memory_space<vmem>>, vector<1x128xf32>
    %76 = vector.broadcast %75 : vector<1x128xf32> to vector<16x128xf32>
    %77 = arith.addf %74, %76 : vector<16x128xf32>
    %c0_41 = arith.constant 0 : index
    %c0_42 = arith.constant 0 : index
    %78 = vector.load %arg9[%c0_41, %c0_42] : memref<16x128xf32, #tpu.memory_space<vmem>>, vector<16x128xf32>
    tpu.vector_store %arg9[%c0_41, %c0_42], %77 {strides = array<i32>} : memref<16x128xf32, #tpu.memory_space<vmem>>, vector<16x128xf32>,
    return
  }
}

</mosaic_0001>

<bundles_post_ra>
// kernel: tpu_custom_call.1
= control target key start
LH: loop header
LB: loop body
LE: loop exit
PB: predicated region body
PF: predicated region fallthrough
CT: control target
= control target key end

     0   :  { %14 = vsyncpa [#allocation10], 0  ;;  %s15635_s0 = inlined_call_operand.hbm [shape: bf16[16,1024], index: 0, kind: input, shape index: {}]   ;;  %s15636_s1 = inlined_call_operand.hbm [shape: bf16[1024,1024], index: 1, kind: input, shape index: {}]   ;;  %s15637_s2 = inlined_call_operand.hbm [shape: f32[1,3200], index: 2, kind: input, shape index: {}]   ;;  %s15638_s3 = inlined_call_operand.hbm [shape: bf16[1024,512], index: 3, kind: input, shape index: {}]   ;;  %s15639_s4 = inlined_call_operand.hbm [shape: bf16[512,512], index: 4, kind: input, shape index: {}]   ;;  %s15640_s5 = inlined_call_operand.hbm [shape: bf16[512,512], index: 5, kind: input, shape index: {}]   ;;  %s15641_s6 = inlined_call_operand.hbm [shape: bf16[512,256], index: 6, kind: input, shape index: {}]   ;;  %s15642_s7 = inlined_call_operand.hbm [shape: bf16[256,256], index: 7, kind: input, shape index: {}]   ;;  %s15643_s8 = inlined_call_operand.hbm [shape: bf16[256,128], index: 8, kind: input, shape index: {}]   ;;  %s15644_s9 = inlined_call_operand.hbm [shape: f32[16,128], index: 9, kind: output, shape index: {}]  }
   0x1   :  { %15 = vsyncpa [#allocation13], 0 }
   0x2   :  { %16 = vsyncpa [#allocation11], 0  ;;  %s34_s11 = sshll.u32 %s15636_s1, 4  ;;  %s15253_s12 = smov [#allocation12]   ;;  %s35_s11 = int_to_ptr.hbm [resolvable:$true] %s34_s11 }
   0x3   :  { %s36_s13 = sshll.u32 %s15253_s12, 4  ;;  %s21_s16 = sshll.u32 %s15635_s0, 4  ;;  %s37_s13 = int_to_ptr.vmem [resolvable:$true] %s36_s13  ;;  %s22_s16 = int_to_ptr.hbm [resolvable:$true] %s21_s16 }
   0x4   :  { %s15254_s17 = smov 512   ;;  %s15255_s18 = smov 32  }
   0x5   :  { %42 = dma.hbm_to_vmem [thread:$0]  %s35_s11, 65536, %s37_s13, [#allocation13], %s15254_s17, %s15254_s17, %s15255_s18  }
   0x6   :  { %s15256_s19 = smov [#allocation9]   ;;  %s48_s23 = sshll.u32 %s15637_s2, 4  ;;  %s49_s23 = int_to_ptr.hbm [resolvable:$true] %s48_s23 }
   0x7   :  { %s23_s20 = sshll.u32 %s15256_s19, 4  ;;  %s15257_s1 = smov [#allocation14]   ;;  %s24_s20 = int_to_ptr.vmem [resolvable:$true] %s23_s20 }
   0x8   :  { %29 = dma.hbm_to_vmem [thread:$0]  %s22_s16, 1024, %s24_s20, [#allocation10], %s15254_s17, %s15254_s17, %s15255_s18  }
   0x9   :  { %s50_s24 = sshll.u32 %s15257_s1, 4  ;;  %s51_s24 = int_to_ptr.vmem [resolvable:$true] %s50_s24 }
   0xa   :  { %53 = dma.hbm_to_vmem [thread:$0]  %s49_s23, 400, %s51_s24, [#allocation13]  }
   0xb   :  { %15235 = dma.done.wait [#allocation10], 1024  }
   0xc   :  { %15236 = vsyncadd [#allocation10], 4294966272 }
   0xd   :  { %15237 = dma.done.wait [#allocation13], 65936  }
   0xe   :  { %15238 = vsyncadd [#allocation13], 4294901360  ;;  %v9510_v0 = vld [vmem:[#allocation12 + $0x1c0] sm:$0xf]  ;;  %s73_s25 = sshll.u32 %s15638_s3, 4  ;;  %s15258_s26 = smov [#allocation2]   ;;  %s74_s25 = int_to_ptr.hbm [resolvable:$true] %s73_s25 }
   0xf   :  { %v13902_v1 = vld [vmem:[#allocation12 + $0x1dc] sm:$0xf0]  ;;  %s75_s27 = sshll.u32 %s15258_s26, 4  ;;  %s87_s30 = sshll.u32 %s15639_s4, 4  ;;  %s76_s27 = int_to_ptr.vmem [resolvable:$true] %s75_s27  ;;  %s88_s30 = int_to_ptr.hbm [resolvable:$true] %s87_s30 }
  0x10   :  { %v9766_v2 = vld [vmem:[#allocation12 + $0x3c0] sm:$0xf]  ;;  %v9511_v3 = vor.u32 %v13902_v1, %v9510_v0  ;;  %78 = dma.hbm_to_vmem [thread:$0]  %s74_s25, 32768, %s76_s27, [#allocation8] }
  0x11   :  { %v13966_v4 = vld [vmem:[#allocation12 + $0x3dc] sm:$0xf0]  ;;  %s15259_s10 = smov [#allocation3]   ;;  %s101_s13 = sshll.u32 %s15640_s5, 4  ;;  %s102_s13 = int_to_ptr.hbm [resolvable:$true] %s101_s13 }
  0x12   :  { %v10022_v5 = vld [vmem:[#allocation12 + $0x5c0] sm:$0xf]  ;;  %v9767_v7 = vor.u32 %v13966_v4, %v9766_v2  ;;  %3287 = vmatpush.bf16.msra.mxu0 %v9511_v3  ;;  %s89_s11 = sshll.u32 %s15259_s10, 4  ;;  %s15260_s14 = smov [#allocation4]   ;;  %s90_s11 = int_to_ptr.vmem [resolvable:$true] %s89_s11 }
  0x13   :  { %v14030_v6 = vld [vmem:[#allocation12 + $0x5dc] sm:$0xf0]  ;;  %92 = dma.hbm_to_vmem [thread:$0]  %s88_s30, 16384, %s90_s11, [#allocation8 + $0x1] }
  0x14   :  { %v10023_v8 = vor.u32 %v14030_v6, %v10022_v5  ;;  %v10278_v9 = vld [vmem:[#allocation12 + $0x7c0] sm:$0xf]  ;;  %3301 = vmatpush.bf16.msra.mxu1 %v9767_v7  ;;  %s103_s15 = sshll.u32 %s15260_s14, 4  ;;  %s115_s18 = sshll.u32 %s15641_s6, 4  ;;  %s104_s15 = int_to_ptr.vmem [resolvable:$true] %s103_s15  ;;  %s116_s18 = int_to_ptr.hbm [resolvable:$true] %s115_s18 }
  0x15   :  { %v14094_v10 = vld [vmem:[#allocation12 + $0x7dc] sm:$0xf0]  ;;  %106 = dma.hbm_to_vmem [thread:$0]  %s102_s13, 16384, %s104_s15, [#allocation8 + $0x2] }
  0x16   :  { %v9478_v11 = vld [vmem:[#allocation12 + $0x180] sm:$0xf]  ;;  %v10279_v12 = vor.u32 %v14094_v10, %v10278_v9  ;;  %3315 = vmatpush.bf16.msra.mxu2 %v10023_v8  ;;  %s129_s20 = sshll.u32 %s15642_s7, 4  ;;  %s15261_s5 = smov [#allocation5]   ;;  %s130_s20 = int_to_ptr.hbm [resolvable:$true] %s129_s20 }
  0x17   :  { %v13894_v13 = vld [vmem:[#allocation12 + $0x19c] sm:$0xf0]  ;;  %s117_s21 = sshll.u32 %s15261_s5, 4  ;;  %s15262_s6 = smov [#allocation6]   ;;  %s118_s21 = int_to_ptr.vmem [resolvable:$true] %s117_s21 }
  0x18   :  { %v9734_v14 = vld [vmem:[#allocation12 + $0x380] sm:$0xf]  ;;  %v9479_v16 = vor.u32 %v13894_v13, %v9478_v11  ;;  %3329 = vmatpush.bf16.msra.mxu3 %v10279_v12  ;;  %120 = dma.hbm_to_vmem [thread:$0]  %s116_s18, 8192, %s118_s21, [#allocation8 + $0x3] }
  0x19   :  { %v13958_v15 = vld [vmem:[#allocation12 + $0x39c] sm:$0xf0]  ;;  %s131_s22 = sshll.u32 %s15262_s6, 4  ;;  %s143_s24 = sshll.u32 %s15643_s8, 4  ;;  %s132_s22 = int_to_ptr.vmem [resolvable:$true] %s131_s22  ;;  %s144_s24 = int_to_ptr.hbm [resolvable:$true] %s143_s24 }
  0x1a   :  { %v9735_v17 = vor.u32 %v13958_v15, %v9734_v14  ;;  %v9990_v18 = vld [vmem:[#allocation12 + $0x580] sm:$0xf]  ;;  %3288 = vmatpush.bf16.msra.mxu0 %v9479_v16  ;;  %134 = dma.hbm_to_vmem [thread:$0]  %s130_s20, 4096, %s132_s22, [#allocation8 + $0x4] }
  0x1b   :  { %v14022_v19 = vld [vmem:[#allocation12 + $0x59c] sm:$0xf0]  ;;  %s15263_s0 = smov [#allocation7]  }
  0x1c   :  { %v10246_v20 = vld [vmem:[#allocation12 + $0x780] sm:$0xf]  ;;  %v9991_v21 = vor.u32 %v14022_v19, %v9990_v18  ;;  %3302 = vmatpush.bf16.msra.mxu1 %v9735_v17  ;;  %s145_s7 = sshll.u32 %s15263_s0, 4  ;;  %s146_s7 = int_to_ptr.vmem [resolvable:$true] %s145_s7 }
  0x1d   :  { %v14086_v22 = vld [vmem:[#allocation12 + $0x79c] sm:$0xf0]  ;;  %148 = dma.hbm_to_vmem [thread:$0]  %s144_s24, 2048, %s146_s7, [#allocation8 + $0x5] }
  0x1e   :  { %v9446_v23 = vld [vmem:[#allocation12 + $0x140] sm:$0xf]  ;;  %v10247_v25 = vor.u32 %v14086_v22, %v10246_v20  ;;  %3316 = vmatpush.bf16.msra.mxu2 %v9991_v21 }
  0x1f   :  { %v13886_v24 = vld [vmem:[#allocation12 + $0x15c] sm:$0xf0] }
  0x20   :  { %v9702_v26 = vld [vmem:[#allocation12 + $0x340] sm:$0xf]  ;;  %v9447_v29 = vor.u32 %v13886_v24, %v9446_v23  ;;  %3330 = vmatpush.bf16.msra.mxu3 %v10247_v25 }
  0x21   :  { %v13950_v27 = vld [vmem:[#allocation12 + $0x35c] sm:$0xf0] }
  0x22   :  { %v9958_v28 = vld [vmem:[#allocation12 + $0x540] sm:$0xf]  ;;  %v9703_v33 = vor.u32 %v13950_v27, %v9702_v26  ;;  %3289 = vmatpush.bf16.msra.mxu0 %v9447_v29 }
  0x23   :  { %v14014_v30 = vld [vmem:[#allocation12 + $0x55c] sm:$0xf0] }
  0x24   :  { %v10214_v31 = vld [vmem:[#allocation12 + $0x740] sm:$0xf]  ;;  %v9959_v34 = vor.u32 %v14014_v30, %v9958_v28  ;;  %3303 = vmatpush.bf16.msra.mxu1 %v9703_v33 }
  0x25   :  { %v14078_v32 = vld [vmem:[#allocation12 + $0x75c] sm:$0xf0] }
  0x26   :  { %v9414_v35 = vld [vmem:[#allocation12 + $0x100] sm:$0xf]  ;;  %v10215_v38 = vor.u32 %v14078_v32, %v10214_v31  ;;  %3317 = vmatpush.bf16.msra.mxu2 %v9959_v34 }
  0x27   :  { %v13878_v36 = vld [vmem:[#allocation12 + $0x11c] sm:$0xf0] }
  0x28   :  { %v9670_v37 = vld [vmem:[#allocation12 + $0x300] sm:$0xf]  ;;  %v9415_v44 = vor.u32 %v13878_v36, %v9414_v35  ;;  %3331 = vmatpush.bf16.msra.mxu3 %v10215_v38 }
  0x29   :  { %v13942_v39 = vld [vmem:[#allocation12 + $0x31c] sm:$0xf0] }
  0x2a   :  { %v9926_v40 = vld [vmem:[#allocation12 + $0x500] sm:$0xf]  ;;  %v9671_v45 = vor.u32 %v13942_v39, %v9670_v37  ;;  %3290 = vmatpush.bf16.msra.mxu0 %v9415_v44 }
  0x2b   :  { %v14006_v41 = vld [vmem:[#allocation12 + $0x51c] sm:$0xf0] }
  0x2c   :  { %v10182_v42 = vld [vmem:[#allocation12 + $0x700] sm:$0xf]  ;;  %v9927_v46 = vor.u32 %v14006_v41, %v9926_v40  ;;  %3304 = vmatpush.bf16.msra.mxu1 %v9671_v45 }
  0x2d   :  { %v14070_v43 = vld [vmem:[#allocation12 + $0x71c] sm:$0xf0] }
  0x2e   :  { %v9382_v47 = vld [vmem:[#allocation12 + $0xc0] sm:$0xf]  ;;  %v10183_v50 = vor.u32 %v14070_v43, %v10182_v42  ;;  %3318 = vmatpush.bf16.msra.mxu2 %v9927_v46 }
  0x2f   :  { %v13870_v48 = vld [vmem:[#allocation12 + $0xdc] sm:$0xf0] }
  0x30   :  { %v9638_v49 = vld [vmem:[#allocation12 + $0x2c0] sm:$0xf]  ;;  %v9383_v56 = vor.u32 %v13870_v48, %v9382_v47  ;;  %3332 = vmatpush.bf16.msra.mxu3 %v10183_v50 }
  0x31   :  { %v13934_v51 = vld [vmem:[#allocation12 + $0x2dc] sm:$0xf0] }
  0x32   :  { %v9894_v52 = vld [vmem:[#allocation12 + $0x4c0] sm:$0xf]  ;;  %v9639_v57 = vor.u32 %v13934_v51, %v9638_v49  ;;  %3291 = vmatpush.bf16.msra.mxu0 %v9383_v56 }
  0x33   :  { %v13998_v53 = vld [vmem:[#allocation12 + $0x4dc] sm:$0xf0] }
  0x34   :  { %v10150_v54 = vld [vmem:[#allocation12 + $0x6c0] sm:$0xf]  ;;  %v9895_v58 = vor.u32 %v13998_v53, %v9894_v52  ;;  %3305 = vmatpush.bf16.msra.mxu1 %v9639_v57 }
  0x35   :  { %v14062_v55 = vld [vmem:[#allocation12 + $0x6dc] sm:$0xf0] }
  0x36   :  { %v9350_v59 = vld [vmem:[#allocation12 + $0x80] sm:$0xf]  ;;  %v10151_v62 = vor.u32 %v14062_v55, %v10150_v54  ;;  %3319 = vmatpush.bf16.msra.mxu2 %v9895_v58  ;;  %v9262_v54 = vld [vmem:[#allocation9 + $0x8] sm:$0xf] }
  0x37   :  { %v13862_v60 = vld [vmem:[#allocation12 + $0x9c] sm:$0xf0] }
  0x38   :  { %v9606_v61 = vld [vmem:[#allocation12 + $0x280] sm:$0xf]  ;;  %v9351_v4 = vor.u32 %v13862_v60, %v9350_v59  ;;  %3333 = vmatpush.bf16.msra.mxu3 %v10151_v62  ;;  %v13839_v59 = vld [vmem:[#allocation9 + $0x24] sm:$0xf0] }
  0x39   :  { %v13926_v63 = vld [vmem:[#allocation12 + $0x29c] sm:$0xf0] }
  0x3a   :  { %v9862_v0 = vld [vmem:[#allocation12 + $0x480] sm:$0xf]  ;;  %v9607_v5 = vor.u32 %v13926_v63, %v9606_v61  ;;  %3292 = vmatpush.bf16.msra.mxu0 %v9351_v4 }
  0x3b   :  { %v13990_v1 = vld [vmem:[#allocation12 + $0x49c] sm:$0xf0] }
  0x3c   :  { %v10118_v2 = vld [vmem:[#allocation12 + $0x680] sm:$0xf]  ;;  %v9863_v6 = vor.u32 %v13990_v1, %v9862_v0  ;;  %3306 = vmatpush.bf16.msra.mxu1 %v9607_v5  ;;  %v15328_v1 = vor.u32 %v13839_v59, %v9262_v54 }
  0x3d   :  { %v14054_v3 = vld [vmem:[#allocation12 + $0x69c] sm:$0xf0] }
  0x3e   :  { %v9318_v7 = vld [vmem:[#allocation12 + $0x40] sm:$0xf]  ;;  %v10119_v10 = vor.u32 %v14054_v3, %v10118_v2  ;;  %3320 = vmatpush.bf16.msra.mxu2 %v9863_v6  ;;  %v13834_v6 = vld [vmem:[#allocation9 + $0x4] sm:$0xf] }
  0x3f   :  { %v13854_v8 = vld [vmem:[#allocation12 + $0x5c] sm:$0xf0] }
  0x40   :  { %v9574_v9 = vld [vmem:[#allocation12 + $0x240] sm:$0xf]  ;;  %v9319_v16 = vor.u32 %v13854_v8, %v9318_v7  ;;  %3334 = vmatpush.bf16.msra.mxu3 %v10119_v10  ;;  %v9256_v7 = vld [vmem:[#allocation9 + $0x20] sm:$0xf0]  ;;  %v13835_v8 = vld [vmem:[#allocation9 + $0xc] sm:$0xf] }
  0x41   :  { %v13918_v11 = vld [vmem:[#allocation12 + $0x25c] sm:$0xf0]  ;;  %v15332_v10 = vor.u32 %v13834_v6, %v9256_v7 }
  0x42   :  { %v9830_v12 = vld [vmem:[#allocation12 + $0x440] sm:$0xf]  ;;  %v9575_v19 = vor.u32 %v13918_v11, %v9574_v9  ;;  %3293 = vmatpush.bf16.msra.mxu0 %v9319_v16  ;;  %v9264_v11 = vld [vmem:[#allocation9 + $0x28] sm:$0xf0] }
  0x43   :  { %v13982_v13 = vld [vmem:[#allocation12 + $0x45c] sm:$0xf0] }
  0x44   :  { %v10086_v14 = vld [vmem:[#allocation12 + $0x640] sm:$0xf]  ;;  %v9831_v20 = vor.u32 %v13982_v13, %v9830_v12  ;;  %3307 = vmatpush.bf16.msra.mxu1 %v9575_v19 }
  0x45   :  { %v14046_v15 = vld [vmem:[#allocation12 + $0x65c] sm:$0xf0] }
  0x46   :  { %v9286_v17 = vld [vmem:[#allocation12] sm:$0xf]  ;;  %v10087_v24 = vor.u32 %v14046_v15, %v10086_v14  ;;  %3321 = vmatpush.bf16.msra.mxu2 %v9831_v20 }
  0x47   :  { %v13846_v18 = vld [vmem:[#allocation12 + $0x1c] sm:$0xf0] }
  0x48   :  { %v9542_v21 = vld [vmem:[#allocation12 + $0x200] sm:$0xf]  ;;  %v9287_v31 = vor.u32 %v13846_v18, %v9286_v17  ;;  %3335 = vmatpush.bf16.msra.mxu3 %v10087_v24  ;;  %v15334_v17 = vor.u32 %v13835_v8, %v9264_v11 }
  0x49   :  { %v13910_v22 = vld [vmem:[#allocation12 + $0x21c] sm:$0xf0] }
  0x4a   :  { %v9798_v23 = vld [vmem:[#allocation12 + $0x400] sm:$0xf]  ;;  %v9543_v35 = vor.u32 %v13910_v22, %v9542_v21  ;;  %3294 = vmatpush.bf16.msra.mxu0 %v9287_v31 }
  0x4b   :  { %v13974_v25 = vld [vmem:[#allocation12 + $0x41c] sm:$0xf0] }
  0x4c   :  { %v10054_v26 = vld [vmem:[#allocation12 + $0x600] sm:$0xf]  ;;  %v9799_v36 = vor.u32 %v13974_v25, %v9798_v23  ;;  %3308 = vmatpush.bf16.msra.mxu1 %v9543_v35 }
  0x4d   :  { %v14038_v27 = vld [vmem:[#allocation12 + $0x61c] sm:$0xf0] }
  0x4e   :  { %v10534_v28 = vld [vmem:[#allocation12 + $0x9c0] sm:$0xf]  ;;  %v10055_v39 = vor.u32 %v14038_v27, %v10054_v26  ;;  %3322 = vmatpush.bf16.msra.mxu2 %v9799_v36 }
  0x4f   :  { %v14158_v29 = vld [vmem:[#allocation12 + $0x9dc] sm:$0xf0]  ;;  %3309 = vmatmul.bf16.vlgmr.msra.gmra.mxu1 %v15332_v10 }
  0x50   :  { %v10790_v30 = vld [vmem:[#allocation12 + $0xbc0] sm:$0xf]  ;;  %v10535_v40 = vor.u32 %v14158_v29, %v10534_v28  ;;  %3336 = vmatpush.bf16.msra.mxu3 %v10055_v39 }
  0x51   :  { %v14222_v32 = vld [vmem:[#allocation12 + $0xbdc] sm:$0xf0]  ;;  %3323 = vmatmul.bf16.vlgmr.msra.gmra.mxu2 %v15328_v1 }
  0x52   :  { %v11046_v33 = vld [vmem:[#allocation12 + $0xdc0] sm:$0xf]  ;;  %v10791_v43 = vor.u32 %v14222_v32, %v10790_v30  ;;  %3343 = vmatpush.bf16.msrb.mxu0 %v10535_v40 }
  0x53   :  { %v14286_v34 = vld [vmem:[#allocation12 + $0xddc] sm:$0xf0]  ;;  %3337 = vmatmul.bf16.vlgmr.msra.gmra.mxu3 %v15334_v17 }
  0x54   :  { %v11302_v37 = vld [vmem:[#allocation12 + $0xfc0] sm:$0xf]  ;;  %v11047_v44 = vor.u32 %v14286_v34, %v11046_v33  ;;  %3357 = vmatpush.bf16.msrb.mxu1 %v10791_v43 }
  0x55   :  { %v14350_v38 = vld [vmem:[#allocation12 + $0xfdc] sm:$0xf0] }
  0x56   :  { %v10502_v41 = vld [vmem:[#allocation12 + $0x980] sm:$0xf]  ;;  %v11303_v48 = vor.u32 %v14350_v38, %v11302_v37  ;;  %3371 = vmatpush.bf16.msrb.mxu2 %v11047_v44 }
  0x57   :  { %v14150_v42 = vld [vmem:[#allocation12 + $0x99c] sm:$0xf0] }
  0x58   :  { %v10758_v45 = vld [vmem:[#allocation12 + $0xb80] sm:$0xf]  ;;  %v10503_v55 = vor.u32 %v14150_v42, %v10502_v41  ;;  %3385 = vmatpush.bf16.msrb.mxu3 %v11303_v48 }
  0x59   :  { %v14214_v46 = vld [vmem:[#allocation12 + $0xb9c] sm:$0xf0] }
  0x5a   :  { %v11014_v47 = vld [vmem:[#allocation12 + $0xd80] sm:$0xf]  ;;  %v10759_v60 = vor.u32 %v14214_v46, %v10758_v45  ;;  %3344 = vmatpush.bf16.msrb.mxu0 %v10503_v55 }
  0x5b   :  { %v14278_v49 = vld [vmem:[#allocation12 + $0xd9c] sm:$0xf0] }
  0x5c   :  { %v11270_v50 = vld [vmem:[#allocation12 + $0xf80] sm:$0xf]  ;;  %v11015_v61 = vor.u32 %v14278_v49, %v11014_v47  ;;  %3358 = vmatpush.bf16.msrb.mxu1 %v10759_v60 }
  0x5d   :  { %v14342_v51 = vld [vmem:[#allocation12 + $0xf9c] sm:$0xf0] }
  0x5e   :  { %v9254_v52 = vld [vmem:[#allocation9] sm:$0xf]  ;;  %v11271_v2 = vor.u32 %v14342_v51, %v11270_v50  ;;  %3372 = vmatpush.bf16.msrb.mxu2 %v11015_v61 }
  0x5f   :  { %v13838_v53 = vld [vmem:[#allocation9 + $0x1c] sm:$0xf0] }
  0x60   :  { %v10470_v56 = vld [vmem:[#allocation12 + $0x940] sm:$0xf]  ;;  %v15326_v58 = vor.u32 %v13838_v53, %v9254_v52  ;;  %3386 = vmatpush.bf16.msrb.mxu3 %v11271_v2 }
  0x61   :  { %v14142_v57 = vld [vmem:[#allocation12 + $0x95c] sm:$0xf0] }
  0x62   :  { %v10726_v62 = vld [vmem:[#allocation12 + $0xb40] sm:$0xf]  ;;  %3295 = vmatmul.bf16.vlgmr.msra.gmra.mxu0 %v15326_v58  ;;  %v10471_v9 = vor.u32 %v14142_v57, %v10470_v56 }
  0x63   :  { %v14206_v63 = vld [vmem:[#allocation12 + $0xb5c] sm:$0xf0] }
  0x64   :  { %v10982_v0 = vld [vmem:[#allocation12 + $0xd40] sm:$0xf]  ;;  %v10727_v12 = vor.u32 %v14206_v63, %v10726_v62  ;;  %3345 = vmatpush.bf16.msrb.mxu0 %v10471_v9  ;;  %v13898_v9 = vld [vmem:[#allocation12 + $0x1c4] sm:$0xf] }
  0x65   :  { %v14270_v3 = vld [vmem:[#allocation12 + $0xd5c] sm:$0xf0] }
  0x66   :  { %v11238_v4 = vld [vmem:[#allocation12 + $0xf40] sm:$0xf]  ;;  %v10983_v13 = vor.u32 %v14270_v3, %v10982_v0  ;;  %3359 = vmatpush.bf16.msrb.mxu1 %v10727_v12  ;;  %v9512_v12 = vld [vmem:[#allocation12 + $0x1e0] sm:$0xf0] }
  0x67   :  { %v14334_v5 = vld [vmem:[#allocation12 + $0xf5c] sm:$0xf0] }
  0x68   :  { %v10438_v14 = vld [vmem:[#allocation12 + $0x900] sm:$0xf]  ;;  %v11239_v18 = vor.u32 %v14334_v5, %v11238_v4  ;;  %3373 = vmatpush.bf16.msrb.mxu2 %v10983_v13  ;;  %v13962_v13 = vld [vmem:[#allocation12 + $0x3c4] sm:$0xf] }
  0x69   :  { %v14134_v15 = vld [vmem:[#allocation12 + $0x91c] sm:$0xf0] }
  0x6a   :  { %v10694_v16 = vld [vmem:[#allocation12 + $0xb00] sm:$0xf]  ;;  %v10439_v24 = vor.u32 %v14134_v15, %v10438_v14  ;;  %3387 = vmatpush.bf16.msrb.mxu3 %v11239_v18  ;;  %v9768_v14 = vld [vmem:[#allocation12 + $0x3e0] sm:$0xf0] }
  0x6b   :  { %v14198_v19 = vld [vmem:[#allocation12 + $0xb1c] sm:$0xf0]  ;;  %v14026_v15 = vld [vmem:[#allocation12 + $0x5c4] sm:$0xf] }
  0x6c   :  { %v10950_v20 = vld [vmem:[#allocation12 + $0xd00] sm:$0xf]  ;;  %v10695_v25 = vor.u32 %v14198_v19, %v10694_v16  ;;  %3346 = vmatpush.bf16.msrb.mxu0 %v10439_v24  ;;  %v10024_v16 = vld [vmem:[#allocation12 + $0x5e0] sm:$0xf0] }
  0x6d   :  { %v14262_v21 = vld [vmem:[#allocation12 + $0xd1c] sm:$0xf0]  ;;  %v14090_v18 = vld [vmem:[#allocation12 + $0x7c4] sm:$0xf] }
  0x6e   :  { %v11206_v22 = vld [vmem:[#allocation12 + $0xf00] sm:$0xf]  ;;  %v10951_v26 = vor.u32 %v14262_v21, %v10950_v20  ;;  %3360 = vmatpush.bf16.msrb.mxu1 %v10695_v25  ;;  %v10280_v20 = vld [vmem:[#allocation12 + $0x7e0] sm:$0xf0]  ;;  %v9270_v21 = vld [vmem:[#allocation9 + $0x10] sm:$0xf] }
  0x6f   :  { %v14326_v23 = vld [vmem:[#allocation12 + $0xf1c] sm:$0xf0]  ;;  %v9278_v25 = vld [vmem:[#allocation9 + $0x18] sm:$0xf] }
  0x70   :  { %v10406_v27 = vld [vmem:[#allocation12 + $0x8c0] sm:$0xf]  ;;  %v11207_v30 = vor.u32 %v14326_v23, %v11206_v22  ;;  %3374 = vmatpush.bf16.msrb.mxu2 %v10951_v26  ;;  %v13840_v22 = vld [vmem:[#allocation9 + $0x2c] sm:$0xf0]  ;;  %v13841_v26 = vld [vmem:[#allocation9 + $0x34] sm:$0xf0] }
  0x71   :  { %v14126_v28 = vld [vmem:[#allocation12 + $0x8dc] sm:$0xf0] }
  0x72   :  { %v10662_v29 = vld [vmem:[#allocation12 + $0xac0] sm:$0xf]  ;;  %v10407_v36 = vor.u32 %v14126_v28, %v10406_v27  ;;  %3388 = vmatpush.bf16.msrb.mxu3 %v11207_v30  ;;  %v13836_v27 = vld [vmem:[#allocation9 + $0x14] sm:$0xf] }
  0x73   :  { %v14190_v31 = vld [vmem:[#allocation12 + $0xadc] sm:$0xf0]  ;;  %v9272_v30 = vld [vmem:[#allocation9 + $0x30] sm:$0xf0] }
  0x74   :  { %v10918_v32 = vld [vmem:[#allocation12 + $0xcc0] sm:$0xf]  ;;  %v10663_v37 = vor.u32 %v14190_v31, %v10662_v29  ;;  %3347 = vmatpush.bf16.msrb.mxu0 %v10407_v36  ;;  %v9515_v29 = vor.u32 %v13898_v9, %v9512_v12  ;;  %v13837_v31 = vld [vmem:[#allocation9 + $0x1c] sm:$0xf]  ;;  %v9480_v36 = vld [vmem:[#allocation12 + $0x1a0] sm:$0xf0] }
  0x75   :  { %v14254_v33 = vld [vmem:[#allocation12 + $0xcdc] sm:$0xf0]  ;;  %v10184_v9 = vld [vmem:[#allocation12 + $0x720] sm:$0xf0] }
  0x76   :  { %v11174_v34 = vld [vmem:[#allocation12 + $0xec0] sm:$0xf]  ;;  %v10919_v38 = vor.u32 %v14254_v33, %v10918_v32  ;;  %3361 = vmatpush.bf16.msrb.mxu1 %v10663_v37  ;;  %v9280_v32 = vld [vmem:[#allocation9 + $0x38] sm:$0xf0]  ;;  %v9771_v33 = vor.u32 %v13962_v13, %v9768_v14  ;;  %v13954_v37 = vld [vmem:[#allocation12 + $0x384] sm:$0xf] }
  0x77   :  { %v14318_v35 = vld [vmem:[#allocation12 + $0xedc] sm:$0xf0]  ;;  %v13866_v14 = vld [vmem:[#allocation12 + $0xc4] sm:$0xf] }
  0x78   :  { %v10374_v39 = vld [vmem:[#allocation12 + $0x880] sm:$0xf]  ;;  %v11175_v42 = vor.u32 %v14318_v35, %v11174_v34  ;;  %3375 = vmatpush.bf16.msrb.mxu2 %v10919_v38  ;;  %v10027_v34 = vor.u32 %v14026_v15, %v10024_v16  ;;  %v13890_v35 = vld [vmem:[#allocation12 + $0x184] sm:$0xf]  ;;  %v10283_v38 = vor.u32 %v14090_v18, %v10280_v20 }
  0x79   :  { %v14118_v40 = vld [vmem:[#allocation12 + $0x89c] sm:$0xf0]  ;;  %v9384_v15 = vld [vmem:[#allocation12 + $0xe0] sm:$0xf0] }
  0x7a   :  { %v10630_v41 = vld [vmem:[#allocation12 + $0xa80] sm:$0xf]  ;;  %v10375_v48 = vor.u32 %v14118_v40, %v10374_v39  ;;  %3389 = vmatpush.bf16.msrb.mxu3 %v11175_v42  ;;  %v15338_v39 = vor.u32 %v13840_v22, %v9270_v21  ;;  %v9736_v40 = vld [vmem:[#allocation12 + $0x3a0] sm:$0xf0] }
  0x7b   :  { %v14182_v43 = vld [vmem:[#allocation12 + $0xa9c] sm:$0xf0]  ;;  %v9992_v42 = vld [vmem:[#allocation12 + $0x5a0] sm:$0xf0] }
  0x7c   :  { %v10886_v44 = vld [vmem:[#allocation12 + $0xc80] sm:$0xf]  ;;  %v10631_v50 = vor.u32 %v14182_v43, %v10630_v41  ;;  %3348 = vmatpush.bf16.msrb.mxu0 %v10375_v48  ;;  %v14018_v41 = vld [vmem:[#allocation12 + $0x584] sm:$0xf]  ;;  %v15340_v43 = vor.u32 %v13841_v26, %v9278_v25  ;;  %v9483_v48 = vor.u32 %v13890_v35, %v9480_v36 }
  0x7d   :  { %v14246_v45 = vld [vmem:[#allocation12 + $0xc9c] sm:$0xf0]  ;;  %v13930_v16 = vld [vmem:[#allocation12 + $0x2c4] sm:$0xf] }
  0x7e   :  { %v11142_v46 = vld [vmem:[#allocation12 + $0xe80] sm:$0xf]  ;;  %v10887_v51 = vor.u32 %v14246_v45, %v10886_v44  ;;  %3362 = vmatpush.bf16.msrb.mxu1 %v10631_v50  ;;  %v15342_v44 = vor.u32 %v13836_v27, %v9272_v30  ;;  %v14082_v45 = vld [vmem:[#allocation12 + $0x784] sm:$0xf]  ;;  %v9995_v50 = vor.u32 %v14018_v41, %v9992_v42 }
  0x7f   :  { %v14310_v47 = vld [vmem:[#allocation12 + $0xe9c] sm:$0xf0]  ;;  %v13994_v20 = vld [vmem:[#allocation12 + $0x4c4] sm:$0xf] }
  0x80   :  { %v10342_v49 = vld [vmem:[#allocation12 + $0x840] sm:$0xf]  ;;  %v11143_v55 = vor.u32 %v14310_v47, %v11142_v46  ;;  %3376 = vmatpush.bf16.msrb.mxu2 %v10887_v51  ;;  %v10248_v46 = vld [vmem:[#allocation12 + $0x7a0] sm:$0xf0]  ;;  %v15344_v47 = vor.u32 %v13837_v31, %v9280_v32 }
  0x81   :  { %v14110_v52 = vld [vmem:[#allocation12 + $0x85c] sm:$0xf0]  ;;  %v13882_v51 = vld [vmem:[#allocation12 + $0x144] sm:$0xf] }
  0x82   :  { %v10598_v53 = vld [vmem:[#allocation12 + $0xa40] sm:$0xf]  ;;  %v10343_v63 = vor.u32 %v14110_v52, %v10342_v49  ;;  %3390 = vmatpush.bf16.msrb.mxu3 %v11143_v55  ;;  %v9739_v49 = vor.u32 %v13954_v37, %v9736_v40  ;;  %v9448_v52 = vld [vmem:[#allocation12 + $0x160] sm:$0xf0] }
  0x83   :  { %v14174_v54 = vld [vmem:[#allocation12 + $0xa5c] sm:$0xf0]  ;;  %v9704_v55 = vld [vmem:[#allocation12 + $0x360] sm:$0xf0] }
  0x84   :  { %v10854_v56 = vld [vmem:[#allocation12 + $0xc40] sm:$0xf]  ;;  %v10599_v5 = vor.u32 %v14174_v54, %v10598_v53  ;;  %3349 = vmatpush.bf16.msrb.mxu0 %v10343_v63  ;;  %v13946_v53 = vld [vmem:[#allocation12 + $0x344] sm:$0xf]  ;;  %v10251_v54 = vor.u32 %v14082_v45, %v10248_v46 }
  0x85   :  { %v14238_v57 = vld [vmem:[#allocation12 + $0xc5c] sm:$0xf0]  ;;  %v9896_v21 = vld [vmem:[#allocation12 + $0x4e0] sm:$0xf0] }
  0x86   :  { %v11110_v59 = vld [vmem:[#allocation12 + $0xe40] sm:$0xf]  ;;  %v10855_v6 = vor.u32 %v14238_v57, %v10854_v56  ;;  %3363 = vmatpush.bf16.msrb.mxu1 %v10599_v5  ;;  %v14010_v56 = vld [vmem:[#allocation12 + $0x544] sm:$0xf]  ;;  %v9899_v26 = vor.u32 %v13994_v20, %v9896_v21 }
  0x87   :  { %v14302_v60 = vld [vmem:[#allocation12 + $0xe5c] sm:$0xf0]  ;;  %v9960_v57 = vld [vmem:[#allocation12 + $0x560] sm:$0xf0] }
  0x88   :  { %v10310_v61 = vld [vmem:[#allocation12 + $0x800] sm:$0xf]  ;;  %v11111_v11 = vor.u32 %v14302_v60, %v11110_v59  ;;  %3377 = vmatpush.bf16.msrb.mxu2 %v10855_v6  ;;  %v14074_v59 = vld [vmem:[#allocation12 + $0x744] sm:$0xf]  ;;  %v9963_v63 = vor.u32 %v14010_v56, %v9960_v57 }
  0x89   :  { %v14102_v62 = vld [vmem:[#allocation12 + $0x81c] sm:$0xf0]  ;;  %v10216_v60 = vld [vmem:[#allocation12 + $0x760] sm:$0xf0] }
  0x8a   :  { %v10566_v0 = vld [vmem:[#allocation12 + $0xa00] sm:$0xf]  ;;  %v10311_v19 = vor.u32 %v14102_v62, %v10310_v61  ;;  %3391 = vmatpush.bf16.msrb.mxu3 %v11111_v11  ;;  %v9451_v61 = vor.u32 %v13882_v51, %v9448_v52  ;;  %v9707_v62 = vor.u32 %v13946_v53, %v9704_v55  ;;  %v9672_v5 = vld [vmem:[#allocation12 + $0x320] sm:$0xf0] }
  0x8b   :  { %v14166_v2 = vld [vmem:[#allocation12 + $0xa1c] sm:$0xf0]  ;;  %v14002_v6 = vld [vmem:[#allocation12 + $0x504] sm:$0xf] }
  0x8c   :  { %v10822_v3 = vld [vmem:[#allocation12 + $0xc00] sm:$0xf]  ;;  %v10567_v23 = vor.u32 %v14166_v2, %v10566_v0  ;;  %3350 = vmatpush.bf16.msrb.mxu0 %v10311_v19  ;;  %v13874_v0 = vld [vmem:[#allocation12 + $0x104] sm:$0xf] }
  0x8d   :  { %v14230_v4 = vld [vmem:[#allocation12 + $0xc1c] sm:$0xf0]  ;;  %v9416_v2 = vld [vmem:[#allocation12 + $0x120] sm:$0xf0] }
  0x8e   :  { %v11078_v7 = vld [vmem:[#allocation12 + $0xe00] sm:$0xf]  ;;  %v10823_v24 = vor.u32 %v14230_v4, %v10822_v3  ;;  %3364 = vmatpush.bf16.msrb.mxu1 %v10567_v23  ;;  %v13938_v3 = vld [vmem:[#allocation12 + $0x304] sm:$0xf]  ;;  %v10219_v4 = vor.u32 %v14074_v59, %v10216_v60  ;;  %v9419_v11 = vor.u32 %v13874_v0, %v9416_v2 }
  0x8f   :  { %v14294_v8 = vld [vmem:[#allocation12 + $0xe1c] sm:$0xf0]  ;;  %3351 = vmatmul.bf16.vlgmr.msrb.gmra.mxu0 %v15338_v39  ;;  %v9675_v12 = vor.u32 %v13938_v3, %v9672_v5  ;;  %v9640_v19 = vld [vmem:[#allocation12 + $0x2e0] sm:$0xf0] }
  0x90   :  { %v11079_v28 = vor.u32 %v14294_v8, %v11078_v7  ;;  %3378 = vmatpush.bf16.msrb.mxu2 %v10823_v24  ;;  %3399 = vmatpush.bf16.msra.mxu0 %v9515_v29  ;;  %v9928_v7 = vld [vmem:[#allocation12 + $0x520] sm:$0xf0]  ;;  %v9387_v24 = vor.u32 %v13866_v14, %v9384_v15  ;;  %v9643_v25 = vor.u32 %v13930_v16, %v9640_v19 }
  0x91   :  { %3365 = vmatmul.bf16.vlgmr.msrb.gmra.mxu1 %v15342_v44  ;;  %v14066_v8 = vld [vmem:[#allocation12 + $0x704] sm:$0xf]  ;;  %v9931_v13 = vor.u32 %v14002_v6, %v9928_v7 }
  0x92   :  { %3392 = vmatpush.bf16.msrb.mxu3 %v11079_v28  ;;  %3413 = vmatpush.bf16.msra.mxu1 %v9771_v33  ;;  %v10187_v18 = vor.u32 %v14066_v8, %v10184_v9  ;;  %v14058_v22 = vld [vmem:[#allocation12 + $0x6c4] sm:$0xf] }
  0x93   :  { %3379 = vmatmul.bf16.vlgmr.msrb.gmra.mxu2 %v15340_v43  ;;  %v10152_v23 = vld [vmem:[#allocation12 + $0x6e0] sm:$0xf0] }
  0x94   :  { %3427 = vmatpush.bf16.msra.mxu2 %v10027_v34  ;;  %3400 = vmatpush.bf16.msra.mxu0 %v9483_v48  ;;  %v13858_v27 = vld [vmem:[#allocation12 + $0x84] sm:$0xf]  ;;  %v10155_v30 = vor.u32 %v14058_v22, %v10152_v23 }
  0x95   :  { %3393 = vmatmul.bf16.vlgmr.msrb.gmra.mxu3 %v15344_v47  ;;  %v9352_v28 = vld [vmem:[#allocation12 + $0xa0] sm:$0xf0] }
  0x96   :  { %3441 = vmatpush.bf16.msra.mxu3 %v10283_v38  ;;  %3414 = vmatpush.bf16.msra.mxu1 %v9739_v49  ;;  %v13922_v29 = vld [vmem:[#allocation12 + $0x284] sm:$0xf]  ;;  %v9355_v36 = vor.u32 %v13858_v27, %v9352_v28 }
  0x97   :  { %v9608_v31 = vld [vmem:[#allocation12 + $0x2a0] sm:$0xf0] }
  0x98   :  { %3428 = vmatpush.bf16.msra.mxu2 %v9995_v50  ;;  %3401 = vmatpush.bf16.msra.mxu0 %v9451_v61  ;;  %v13986_v32 = vld [vmem:[#allocation12 + $0x484] sm:$0xf]  ;;  %v9611_v37 = vor.u32 %v13922_v29, %v9608_v31 }
  0x99   :  { %v9864_v33 = vld [vmem:[#allocation12 + $0x4a0] sm:$0xf0] }
  0x9a   :  { %3442 = vmatpush.bf16.msra.mxu3 %v10251_v54  ;;  %3415 = vmatpush.bf16.msra.mxu1 %v9707_v62  ;;  %v14050_v34 = vld [vmem:[#allocation12 + $0x684] sm:$0xf]  ;;  %v9867_v38 = vor.u32 %v13986_v32, %v9864_v33 }
  0x9b   :  { %v10120_v35 = vld [vmem:[#allocation12 + $0x6a0] sm:$0xf0] }
  0x9c   :  { %3429 = vmatpush.bf16.msra.mxu2 %v9963_v63  ;;  %3402 = vmatpush.bf16.msra.mxu0 %v9419_v11  ;;  %v13850_v40 = vld [vmem:[#allocation12 + $0x44] sm:$0xf]  ;;  %v10123_v45 = vor.u32 %v14050_v34, %v10120_v35 }
  0x9d   :  { %v9320_v41 = vld [vmem:[#allocation12 + $0x60] sm:$0xf0] }
  0x9e   :  { %3443 = vmatpush.bf16.msra.mxu3 %v10219_v4  ;;  %3416 = vmatpush.bf16.msra.mxu1 %v9675_v12  ;;  %v13914_v42 = vld [vmem:[#allocation12 + $0x244] sm:$0xf]  ;;  %v9323_v52 = vor.u32 %v13850_v40, %v9320_v41 }
  0x9f   :  { %v9576_v46 = vld [vmem:[#allocation12 + $0x260] sm:$0xf0] }
  0xa0   :  { %3430 = vmatpush.bf16.msra.mxu2 %v9931_v13  ;;  %3403 = vmatpush.bf16.msra.mxu0 %v9387_v24  ;;  %v13978_v48 = vld [vmem:[#allocation12 + $0x444] sm:$0xf]  ;;  %v9579_v55 = vor.u32 %v13914_v42, %v9576_v46 }
  0xa1   :  { %v9832_v49 = vld [vmem:[#allocation12 + $0x460] sm:$0xf0] }
  0xa2   :  { %3444 = vmatpush.bf16.msra.mxu3 %v10187_v18  ;;  %3417 = vmatpush.bf16.msra.mxu1 %v9643_v25  ;;  %v14042_v50 = vld [vmem:[#allocation12 + $0x644] sm:$0xf]  ;;  %v9835_v56 = vor.u32 %v13978_v48, %v9832_v49 }
  0xa3   :  { %v10088_v51 = vld [vmem:[#allocation12 + $0x660] sm:$0xf0] }
  0xa4   :  { %3431 = vmatpush.bf16.msra.mxu2 %v9899_v26  ;;  %3404 = vmatpush.bf16.msra.mxu0 %v9355_v36  ;;  %v13842_v53 = vld [vmem:[#allocation12 + $0x4] sm:$0xf]  ;;  %v10091_v61 = vor.u32 %v14042_v50, %v10088_v51 }
  0xa5   :  { %v9288_v54 = vld [vmem:[#allocation12 + $0x20] sm:$0xf0] }
  0xa6   :  { %3445 = vmatpush.bf16.msra.mxu3 %v10155_v30  ;;  %3418 = vmatpush.bf16.msra.mxu1 %v9611_v37  ;;  %v13906_v57 = vld [vmem:[#allocation12 + $0x204] sm:$0xf]  ;;  %v9291_v5 = vor.u32 %v13842_v53, %v9288_v54 }
  0xa7   :  { %v9544_v59 = vld [vmem:[#allocation12 + $0x220] sm:$0xf0] }
  0xa8   :  { %3432 = vmatpush.bf16.msra.mxu2 %v9867_v38  ;;  %v13970_v60 = vld [vmem:[#allocation12 + $0x404] sm:$0xf]  ;;  %3405 = vmatpush.bf16.msra.mxu0 %v9323_v52  ;;  %v9547_v9 = vor.u32 %v13906_v57, %v9544_v59 }
  0xa9   :  { %v9800_v62 = vld [vmem:[#allocation12 + $0x420] sm:$0xf0] }
  0xaa   :  { %3446 = vmatpush.bf16.msra.mxu3 %v10123_v45  ;;  %v14034_v63 = vld [vmem:[#allocation12 + $0x604] sm:$0xf]  ;;  %3419 = vmatpush.bf16.msra.mxu1 %v9579_v55  ;;  %v9803_v11 = vor.u32 %v13970_v60, %v9800_v62 }
  0xab   :  { %v10056_v0 = vld [vmem:[#allocation12 + $0x620] sm:$0xf0] }
  0xac   :  { %v14154_v2 = vld [vmem:[#allocation12 + $0x9c4] sm:$0xf]  ;;  %3433 = vmatpush.bf16.msra.mxu2 %v9835_v56  ;;  %v10059_v14 = vor.u32 %v14034_v63, %v10056_v0  ;;  %3406 = vmatpush.bf16.msra.mxu0 %v9291_v5 }
  0xad   :  { %v10536_v3 = vld [vmem:[#allocation12 + $0x9e0] sm:$0xf0] }
  0xae   :  { %v14218_v4 = vld [vmem:[#allocation12 + $0xbc4] sm:$0xf]  ;;  %3447 = vmatpush.bf16.msra.mxu3 %v10091_v61  ;;  %v10539_v15 = vor.u32 %v14154_v2, %v10536_v3  ;;  %3420 = vmatpush.bf16.msra.mxu1 %v9547_v9 }
  0xaf   :  { %v10792_v6 = vld [vmem:[#allocation12 + $0xbe0] sm:$0xf0]  ;;  %3407 = vmatmul.bf16.vlgmr.msra.gmra.mxu0 %v15326_v58 }
  0xb0   :  { %v14282_v7 = vld [vmem:[#allocation12 + $0xdc4] sm:$0xf]  ;;  %v10795_v16 = vor.u32 %v14218_v4, %v10792_v6  ;;  %3434 = vmatpush.bf16.msra.mxu2 %v9803_v11  ;;  %3455 = vmatpush.bf16.msrb.mxu0 %v10539_v15 }
  0xb1   :  { %v11048_v8 = vld [vmem:[#allocation12 + $0xde0] sm:$0xf0]  ;;  %3421 = vmatmul.bf16.vlgmr.msra.gmra.mxu1 %v15332_v10 }
  0xb2   :  { %v14346_v12 = vld [vmem:[#allocation12 + $0xfc4] sm:$0xf]  ;;  %v11051_v18 = vor.u32 %v14282_v7, %v11048_v8  ;;  %3448 = vmatpush.bf16.msra.mxu3 %v10059_v14  ;;  %3469 = vmatpush.bf16.msrb.mxu1 %v10795_v16 }
  0xb3   :  { %v11304_v13 = vld [vmem:[#allocation12 + $0xfe0] sm:$0xf0]  ;;  %3435 = vmatmul.bf16.vlgmr.msra.gmra.mxu2 %v15328_v1 }
  0xb4   :  { %v14146_v19 = vld [vmem:[#allocation12 + $0x984] sm:$0xf]  ;;  %v11307_v22 = vor.u32 %v14346_v12, %v11304_v13  ;;  %3483 = vmatpush.bf16.msrb.mxu2 %v11051_v18 }
  0xb5   :  { %v10504_v20 = vld [vmem:[#allocation12 + $0x9a0] sm:$0xf0]  ;;  %3449 = vmatmul.bf16.vlgmr.msra.gmra.mxu3 %v15334_v17 }
  0xb6   :  { %v14210_v21 = vld [vmem:[#allocation12 + $0xb84] sm:$0xf]  ;;  %v10507_v28 = vor.u32 %v14146_v19, %v10504_v20  ;;  %3497 = vmatpush.bf16.msrb.mxu3 %v11307_v22 }
  0xb7   :  { %v10760_v23 = vld [vmem:[#allocation12 + $0xba0] sm:$0xf0] }
  0xb8   :  { %v14274_v24 = vld [vmem:[#allocation12 + $0xd84] sm:$0xf]  ;;  %v10763_v29 = vor.u32 %v14210_v21, %v10760_v23  ;;  %3456 = vmatpush.bf16.msrb.mxu0 %v10507_v28 }
  0xb9   :  { %v11016_v25 = vld [vmem:[#allocation12 + $0xda0] sm:$0xf0] }
  0xba   :  { %v14338_v26 = vld [vmem:[#allocation12 + $0xf84] sm:$0xf]  ;;  %v11019_v30 = vor.u32 %v14274_v24, %v11016_v25  ;;  %3470 = vmatpush.bf16.msrb.mxu1 %v10763_v29 }
  0xbb   :  { %v11272_v27 = vld [vmem:[#allocation12 + $0xfa0] sm:$0xf0] }
  0xbc   :  { %v14138_v31 = vld [vmem:[#allocation12 + $0x944] sm:$0xf]  ;;  %v11275_v34 = vor.u32 %v14338_v26, %v11272_v27  ;;  %3484 = vmatpush.bf16.msrb.mxu2 %v11019_v30 }
  0xbd   :  { %v10472_v32 = vld [vmem:[#allocation12 + $0x960] sm:$0xf0] }
  0xbe   :  { %v14202_v33 = vld [vmem:[#allocation12 + $0xb44] sm:$0xf]  ;;  %v10475_v41 = vor.u32 %v14138_v31, %v10472_v32  ;;  %3498 = vmatpush.bf16.msrb.mxu3 %v11275_v34 }
  0xbf   :  { %v10728_v35 = vld [vmem:[#allocation12 + $0xb60] sm:$0xf0] }
  0xc0   :  { %v14266_v36 = vld [vmem:[#allocation12 + $0xd44] sm:$0xf]  ;;  %v10731_v42 = vor.u32 %v14202_v33, %v10728_v35  ;;  %3457 = vmatpush.bf16.msrb.mxu0 %v10475_v41 }
  0xc1   :  { %v10984_v37 = vld [vmem:[#allocation12 + $0xd60] sm:$0xf0] }
  0xc2   :  { %v14330_v38 = vld [vmem:[#allocation12 + $0xf44] sm:$0xf]  ;;  %v10987_v45 = vor.u32 %v14266_v36, %v10984_v37  ;;  %3471 = vmatpush.bf16.msrb.mxu1 %v10731_v42 }
  0xc3   :  { %v11240_v40 = vld [vmem:[#allocation12 + $0xf60] sm:$0xf0] }
  0xc4   :  { %v14130_v46 = vld [vmem:[#allocation12 + $0x904] sm:$0xf]  ;;  %v11243_v50 = vor.u32 %v14330_v38, %v11240_v40  ;;  %3485 = vmatpush.bf16.msrb.mxu2 %v10987_v45 }
  0xc5   :  { %v10440_v48 = vld [vmem:[#allocation12 + $0x920] sm:$0xf0] }
  0xc6   :  { %v14194_v49 = vld [vmem:[#allocation12 + $0xb04] sm:$0xf]  ;;  %v10443_v56 = vor.u32 %v14130_v46, %v10440_v48  ;;  %3499 = vmatpush.bf16.msrb.mxu3 %v11243_v50  ;;  %v9518_v48 = vld [vmem:[#allocation12 + $0x1c8] sm:$0xf] }
  0xc7   :  { %v10696_v51 = vld [vmem:[#allocation12 + $0xb20] sm:$0xf0]  ;;  %v9774_v50 = vld [vmem:[#allocation12 + $0x3c8] sm:$0xf] }
  0xc8   :  { %v14258_v52 = vld [vmem:[#allocation12 + $0xd04] sm:$0xf]  ;;  %v10699_v57 = vor.u32 %v14194_v49, %v10696_v51  ;;  %3458 = vmatpush.bf16.msrb.mxu0 %v10443_v56  ;;  %v13903_v49 = vld [vmem:[#allocation12 + $0x1e4] sm:$0xf0] }
  0xc9   :  { %v10952_v53 = vld [vmem:[#allocation12 + $0xd20] sm:$0xf0] }
  0xca   :  { %v14322_v54 = vld [vmem:[#allocation12 + $0xf04] sm:$0xf]  ;;  %v10955_v59 = vor.u32 %v14258_v52, %v10952_v53  ;;  %3472 = vmatpush.bf16.msrb.mxu1 %v10699_v57  ;;  %v13967_v52 = vld [vmem:[#allocation12 + $0x3e4] sm:$0xf0] }
  0xcb   :  { %v11208_v55 = vld [vmem:[#allocation12 + $0xf20] sm:$0xf0]  ;;  %v10030_v53 = vld [vmem:[#allocation12 + $0x5c8] sm:$0xf] }
  0xcc   :  { %v14122_v60 = vld [vmem:[#allocation12 + $0x8c4] sm:$0xf]  ;;  %v11211_v63 = vor.u32 %v14322_v54, %v11208_v55  ;;  %3486 = vmatpush.bf16.msrb.mxu2 %v10955_v59  ;;  %v14031_v54 = vld [vmem:[#allocation12 + $0x5e4] sm:$0xf0] }
  0xcd   :  { %v10408_v61 = vld [vmem:[#allocation12 + $0x8e0] sm:$0xf0]  ;;  %v10286_v57 = vld [vmem:[#allocation12 + $0x7c8] sm:$0xf] }
  0xce   :  { %v14186_v62 = vld [vmem:[#allocation12 + $0xac4] sm:$0xf]  ;;  %v10411_v6 = vor.u32 %v14122_v60, %v10408_v61  ;;  %3500 = vmatpush.bf16.msrb.mxu3 %v11211_v63  ;;  %v14095_v59 = vld [vmem:[#allocation12 + $0x7e4] sm:$0xf0]  ;;  %v9519_v61 = vor.u32 %v13903_v49, %v9518_v48  ;;  %v10031_v63 = vor.u32 %v14031_v54, %v10030_v53 }
  0xcf   :  { %v10664_v0 = vld [vmem:[#allocation12 + $0xae0] sm:$0xf0]  ;;  %v9902_v48 = vld [vmem:[#allocation12 + $0x4c8] sm:$0xf] }
  0xd0   :  { %v14250_v2 = vld [vmem:[#allocation12 + $0xcc4] sm:$0xf]  ;;  %v10667_v7 = vor.u32 %v14186_v62, %v10664_v0  ;;  %3459 = vmatpush.bf16.msrb.mxu0 %v10411_v6  ;;  %v9775_v62 = vor.u32 %v13967_v52, %v9774_v50  ;;  %v9486_v0 = vld [vmem:[#allocation12 + $0x188] sm:$0xf] }
  0xd1   :  { %v10920_v3 = vld [vmem:[#allocation12 + $0xce0] sm:$0xf0]  ;;  %v9998_v6 = vld [vmem:[#allocation12 + $0x588] sm:$0xf] }
  0xd2   :  { %v14314_v4 = vld [vmem:[#allocation12 + $0xec4] sm:$0xf]  ;;  %v10923_v8 = vor.u32 %v14250_v2, %v10920_v3  ;;  %3473 = vmatpush.bf16.msrb.mxu1 %v10667_v7  ;;  %v13895_v2 = vld [vmem:[#allocation12 + $0x1a4] sm:$0xf0] }
  0xd3   :  { %v11176_v5 = vld [vmem:[#allocation12 + $0xee0] sm:$0xf0]  ;;  %v9742_v3 = vld [vmem:[#allocation12 + $0x388] sm:$0xf] }
  0xd4   :  { %v14114_v9 = vld [vmem:[#allocation12 + $0x884] sm:$0xf]  ;;  %v11179_v13 = vor.u32 %v14314_v4, %v11176_v5  ;;  %3487 = vmatpush.bf16.msrb.mxu2 %v10923_v8  ;;  %v10287_v4 = vor.u32 %v14095_v59, %v10286_v57  ;;  %v13959_v5 = vld [vmem:[#allocation12 + $0x3a4] sm:$0xf0] }
  0xd5   :  { %v10376_v11 = vld [vmem:[#allocation12 + $0x8a0] sm:$0xf0]  ;;  %v14023_v7 = vld [vmem:[#allocation12 + $0x5a4] sm:$0xf0] }
  0xd6   :  { %v14178_v12 = vld [vmem:[#allocation12 + $0xa84] sm:$0xf]  ;;  %v10379_v20 = vor.u32 %v14114_v9, %v10376_v11  ;;  %3501 = vmatpush.bf16.msrb.mxu3 %v11179_v13  ;;  %v10254_v8 = vld [vmem:[#allocation12 + $0x788] sm:$0xf]  ;;  %v9487_v11 = vor.u32 %v13895_v2, %v9486_v0  ;;  %v9999_v13 = vor.u32 %v14023_v7, %v9998_v6 }
  0xd7   :  { %v10632_v14 = vld [vmem:[#allocation12 + $0xaa0] sm:$0xf0]  ;;  %v14087_v9 = vld [vmem:[#allocation12 + $0x7a4] sm:$0xf0] }
  0xd8   :  { %v14242_v15 = vld [vmem:[#allocation12 + $0xc84] sm:$0xf]  ;;  %v10635_v21 = vor.u32 %v14178_v12, %v10632_v14  ;;  %3460 = vmatpush.bf16.msrb.mxu0 %v10379_v20  ;;  %v9743_v12 = vor.u32 %v13959_v5, %v9742_v3  ;;  %v9454_v14 = vld [vmem:[#allocation12 + $0x148] sm:$0xf] }
  0xd9   :  { %v10888_v16 = vld [vmem:[#allocation12 + $0xca0] sm:$0xf0]  ;;  %v9966_v20 = vld [vmem:[#allocation12 + $0x548] sm:$0xf] }
  0xda   :  { %v14306_v18 = vld [vmem:[#allocation12 + $0xe84] sm:$0xf]  ;;  %v10891_v22 = vor.u32 %v14242_v15, %v10888_v16  ;;  %3474 = vmatpush.bf16.msrb.mxu1 %v10635_v21  ;;  %v13887_v15 = vld [vmem:[#allocation12 + $0x164] sm:$0xf0] }
  0xdb   :  { %v11144_v19 = vld [vmem:[#allocation12 + $0xea0] sm:$0xf0]  ;;  %v9710_v16 = vld [vmem:[#allocation12 + $0x348] sm:$0xf] }
  0xdc   :  { %v14106_v23 = vld [vmem:[#allocation12 + $0x844] sm:$0xf]  ;;  %v11147_v26 = vor.u32 %v14306_v18, %v11144_v19  ;;  %3488 = vmatpush.bf16.msrb.mxu2 %v10891_v22  ;;  %v10255_v18 = vor.u32 %v14087_v9, %v10254_v8  ;;  %v13951_v19 = vld [vmem:[#allocation12 + $0x364] sm:$0xf0] }
  0xdd   :  { %v10344_v24 = vld [vmem:[#allocation12 + $0x860] sm:$0xf0]  ;;  %v14015_v21 = vld [vmem:[#allocation12 + $0x564] sm:$0xf0] }
  0xde   :  { %v14170_v25 = vld [vmem:[#allocation12 + $0xa44] sm:$0xf]  ;;  %v10347_v32 = vor.u32 %v14106_v23, %v10344_v24  ;;  %3502 = vmatpush.bf16.msrb.mxu3 %v11147_v26  ;;  %v10222_v22 = vld [vmem:[#allocation12 + $0x748] sm:$0xf]  ;;  %v9455_v24 = vor.u32 %v13887_v15, %v9454_v14  ;;  %v9967_v26 = vor.u32 %v14015_v21, %v9966_v20 }
  0xdf   :  { %v10600_v27 = vld [vmem:[#allocation12 + $0xa60] sm:$0xf0]  ;;  %v14079_v23 = vld [vmem:[#allocation12 + $0x764] sm:$0xf0] }
  0xe0   :  { %v14234_v28 = vld [vmem:[#allocation12 + $0xc44] sm:$0xf]  ;;  %v10603_v35 = vor.u32 %v14170_v25, %v10600_v27  ;;  %3461 = vmatpush.bf16.msrb.mxu0 %v10347_v32  ;;  %v9711_v25 = vor.u32 %v13951_v19, %v9710_v16  ;;  %v9422_v27 = vld [vmem:[#allocation12 + $0x108] sm:$0xf] }
  0xe1   :  { %v10856_v29 = vld [vmem:[#allocation12 + $0xc60] sm:$0xf0]  ;;  %v9934_v32 = vld [vmem:[#allocation12 + $0x508] sm:$0xf] }
  0xe2   :  { %v14298_v30 = vld [vmem:[#allocation12 + $0xe44] sm:$0xf]  ;;  %v10859_v36 = vor.u32 %v14234_v28, %v10856_v29  ;;  %3475 = vmatpush.bf16.msrb.mxu1 %v10603_v35  ;;  %v13879_v28 = vld [vmem:[#allocation12 + $0x124] sm:$0xf0] }
  0xe3   :  { %v11112_v31 = vld [vmem:[#allocation12 + $0xe60] sm:$0xf0]  ;;  %v9678_v29 = vld [vmem:[#allocation12 + $0x308] sm:$0xf] }
  0xe4   :  { %v14098_v33 = vld [vmem:[#allocation12 + $0x804] sm:$0xf]  ;;  %v11115_v41 = vor.u32 %v14298_v30, %v11112_v31  ;;  %3489 = vmatpush.bf16.msrb.mxu2 %v10859_v36  ;;  %v10223_v30 = vor.u32 %v14079_v23, %v10222_v22  ;;  %v13943_v31 = vld [vmem:[#allocation12 + $0x324] sm:$0xf0]  ;;  %v9423_v36 = vor.u32 %v13879_v28, %v9422_v27 }
  0xe5   :  { %v10312_v34 = vld [vmem:[#allocation12 + $0x820] sm:$0xf0]  ;;  %v14071_v35 = vld [vmem:[#allocation12 + $0x724] sm:$0xf0] }
  0xe6   :  { %v14162_v37 = vld [vmem:[#allocation12 + $0xa04] sm:$0xf]  ;;  %v10315_v51 = vor.u32 %v14098_v33, %v10312_v34  ;;  %3503 = vmatpush.bf16.msrb.mxu3 %v11115_v41  ;;  %v14007_v33 = vld [vmem:[#allocation12 + $0x524] sm:$0xf0] }
  0xe7   :  { %v10568_v38 = vld [vmem:[#allocation12 + $0xa20] sm:$0xf0]  ;;  %v10190_v34 = vld [vmem:[#allocation12 + $0x708] sm:$0xf] }
  0xe8   :  { %v14226_v40 = vld [vmem:[#allocation12 + $0xc04] sm:$0xf]  ;;  %v10571_v55 = vor.u32 %v14162_v37, %v10568_v38  ;;  %3462 = vmatpush.bf16.msrb.mxu0 %v10315_v51  ;;  %v9679_v37 = vor.u32 %v13943_v31, %v9678_v29  ;;  %v9935_v38 = vor.u32 %v14007_v33, %v9934_v32  ;;  %v13871_v41 = vld [vmem:[#allocation12 + $0xe4] sm:$0xf0] }
  0xe9   :  { %v10824_v42 = vld [vmem:[#allocation12 + $0xc20] sm:$0xf0]  ;;  %v13999_v49 = vld [vmem:[#allocation12 + $0x4e4] sm:$0xf0] }
  0xea   :  { %v14290_v45 = vld [vmem:[#allocation12 + $0xe04] sm:$0xf]  ;;  %v10827_v56 = vor.u32 %v14226_v40, %v10824_v42  ;;  %3476 = vmatpush.bf16.msrb.mxu1 %v10571_v55  ;;  %v9390_v40 = vld [vmem:[#allocation12 + $0xc8] sm:$0xf]  ;;  %v9903_v54 = vor.u32 %v13999_v49, %v9902_v48 }
  0xeb   :  { %v11080_v46 = vld [vmem:[#allocation12 + $0xe20] sm:$0xf0]  ;;  %3463 = vmatmul.bf16.vlgmr.msrb.gmra.mxu0 %v15338_v39  ;;  %v9646_v42 = vld [vmem:[#allocation12 + $0x2c8] sm:$0xf]  ;;  %v9391_v52 = vor.u32 %v13871_v41, %v9390_v40 }
  0xec   :  { %v11083_v60 = vor.u32 %v14290_v45, %v11080_v46  ;;  %3490 = vmatpush.bf16.msrb.mxu2 %v10827_v56  ;;  %3511 = vmatpush.bf16.msra.mxu0 %v9519_v61  ;;  %v10191_v45 = vor.u32 %v14071_v35, %v10190_v34  ;;  %v13935_v46 = vld [vmem:[#allocation12 + $0x2e4] sm:$0xf0] }
  0xed   :  { %3477 = vmatmul.bf16.vlgmr.msrb.gmra.mxu1 %v15342_v44  ;;  %v10158_v50 = vld [vmem:[#allocation12 + $0x6c8] sm:$0xf]  ;;  %v9647_v53 = vor.u32 %v13935_v46, %v9646_v42 }
  0xee   :  { %3504 = vmatpush.bf16.msrb.mxu3 %v11083_v60  ;;  %3525 = vmatpush.bf16.msra.mxu1 %v9775_v62  ;;  %v14063_v51 = vld [vmem:[#allocation12 + $0x6e4] sm:$0xf0] }
  0xef   :  { %3491 = vmatmul.bf16.vlgmr.msrb.gmra.mxu2 %v15340_v43  ;;  %v9358_v55 = vld [vmem:[#allocation12 + $0x88] sm:$0xf]  ;;  %v10159_v59 = vor.u32 %v14063_v51, %v10158_v50 }
  0xf0   :  { %3539 = vmatpush.bf16.msra.mxu2 %v10031_v63  ;;  %3512 = vmatpush.bf16.msra.mxu0 %v9487_v11  ;;  %v13863_v56 = vld [vmem:[#allocation12 + $0xa4] sm:$0xf0] }
  0xf1   :  { %3505 = vmatmul.bf16.vlgmr.msrb.gmra.mxu3 %v15344_v47  ;;  %v9614_v57 = vld [vmem:[#allocation12 + $0x288] sm:$0xf]  ;;  %v9359_v2 = vor.u32 %v13863_v56, %v9358_v55 }
  0xf2   :  { %3553 = vmatpush.bf16.msra.mxu3 %v10287_v4  ;;  %3526 = vmatpush.bf16.msra.mxu1 %v9743_v12  ;;  %v13927_v60 = vld [vmem:[#allocation12 + $0x2a4] sm:$0xf0] }
  0xf3   :  { %v9870_v61 = vld [vmem:[#allocation12 + $0x488] sm:$0xf]  ;;  %v9615_v3 = vor.u32 %v13927_v60, %v9614_v57 }
  0xf4   :  { %3540 = vmatpush.bf16.msra.mxu2 %v9999_v13  ;;  %3513 = vmatpush.bf16.msra.mxu0 %v9455_v24  ;;  %v13991_v62 = vld [vmem:[#allocation12 + $0x4a4] sm:$0xf0] }
  0xf5   :  { %v10126_v63 = vld [vmem:[#allocation12 + $0x688] sm:$0xf]  ;;  %v9871_v4 = vor.u32 %v13991_v62, %v9870_v61 }
  0xf6   :  { %3554 = vmatpush.bf16.msra.mxu3 %v10255_v18  ;;  %3527 = vmatpush.bf16.msra.mxu1 %v9711_v25  ;;  %v14055_v0 = vld [vmem:[#allocation12 + $0x6a4] sm:$0xf0] }
  0xf7   :  { %v9326_v5 = vld [vmem:[#allocation12 + $0x48] sm:$0xf]  ;;  %v10127_v8 = vor.u32 %v14055_v0, %v10126_v63  ;;  %v15358_v63 = vld [vmem:[#allocation14] sm:$0xff] }
  0xf8   :  { %3541 = vmatpush.bf16.msra.mxu2 %v9967_v26  ;;  %3514 = vmatpush.bf16.msra.mxu0 %v9423_v36  ;;  %v13855_v6 = vld [vmem:[#allocation12 + $0x64] sm:$0xf0] }
  0xf9   :  { %v9582_v7 = vld [vmem:[#allocation12 + $0x248] sm:$0xf]  ;;  %v9327_v15 = vor.u32 %v13855_v6, %v9326_v5 }
  0xfa   :  { %3555 = vmatpush.bf16.msra.mxu3 %v10223_v30  ;;  %3528 = vmatpush.bf16.msra.mxu1 %v9679_v37  ;;  %v13919_v9 = vld [vmem:[#allocation12 + $0x264] sm:$0xf0] }
  0xfb   :  { %v9838_v11 = vld [vmem:[#allocation12 + $0x448] sm:$0xf]  ;;  %v9583_v19 = vor.u32 %v13919_v9, %v9582_v7 }
  0xfc   :  { %3542 = vmatpush.bf16.msra.mxu2 %v9935_v38  ;;  %3515 = vmatpush.bf16.msra.mxu0 %v9391_v52  ;;  %v13983_v12 = vld [vmem:[#allocation12 + $0x464] sm:$0xf0] }
  0xfd   :  { %v10094_v13 = vld [vmem:[#allocation12 + $0x648] sm:$0xf]  ;;  %v9839_v20 = vor.u32 %v13983_v12, %v9838_v11 }
  0xfe   :  { %3556 = vmatpush.bf16.msra.mxu3 %v10191_v45  ;;  %3529 = vmatpush.bf16.msra.mxu1 %v9647_v53  ;;  %v14047_v14 = vld [vmem:[#allocation12 + $0x664] sm:$0xf0] }
  0xff   :  { %v9294_v16 = vld [vmem:[#allocation12 + $0x8] sm:$0xf]  ;;  %v10095_v24 = vor.u32 %v14047_v14, %v10094_v13 }
 0x100   :  { %3543 = vmatpush.bf16.msra.mxu2 %v9903_v54  ;;  %3516 = vmatpush.bf16.msra.mxu0 %v9359_v2  ;;  %v13847_v18 = vld [vmem:[#allocation12 + $0x24] sm:$0xf0] }
 0x101   :  { %v9550_v21 = vld [vmem:[#allocation12 + $0x208] sm:$0xf]  ;;  %v9295_v31 = vor.u32 %v13847_v18, %v9294_v16 }
 0x102   :  { %3557 = vmatpush.bf16.msra.mxu3 %v10159_v59  ;;  %3530 = vmatpush.bf16.msra.mxu1 %v9615_v3  ;;  %v13911_v22 = vld [vmem:[#allocation12 + $0x224] sm:$0xf0] }
 0x103   :  { %v9806_v23 = vld [vmem:[#allocation12 + $0x408] sm:$0xf]  ;;  %v9551_v35 = vor.u32 %v13911_v22, %v9550_v21  ;;  %v3296_v22 = vpop.f32.mrf.mxu0 }
 0x104   :  { %3544 = vmatpush.bf16.msra.mxu2 %v9871_v4  ;;  %v13975_v25 = vld [vmem:[#allocation12 + $0x424] sm:$0xf0]  ;;  %3517 = vmatpush.bf16.msra.mxu0 %v9327_v15 }
 0x105   :  { %v10062_v26 = vld [vmem:[#allocation12 + $0x608] sm:$0xf]  ;;  %v9807_v36 = vor.u32 %v13975_v25, %v9806_v23 }
 0x106   :  { %3558 = vmatpush.bf16.msra.mxu3 %v10127_v8  ;;  %v14039_v27 = vld [vmem:[#allocation12 + $0x624] sm:$0xf0]  ;;  %3531 = vmatpush.bf16.msra.mxu1 %v9583_v19  ;;  %v671_v8 = vperm.slane %v15358_v63, 0 }
 0x107   :  { %v10542_v28 = vld [vmem:[#allocation12 + $0x9c8] sm:$0xf]  ;;  %v10063_v40 = vor.u32 %v14039_v27, %v10062_v26 }
 0x108   :  { %v14159_v29 = vld [vmem:[#allocation12 + $0x9e4] sm:$0xf0]  ;;  %3545 = vmatpush.bf16.msra.mxu2 %v9839_v20  ;;  %3518 = vmatpush.bf16.msra.mxu0 %v9295_v31 }
 0x109   :  { %v10798_v30 = vld [vmem:[#allocation12 + $0xbc8] sm:$0xf]  ;;  %v10543_v41 = vor.u32 %v14159_v29, %v10542_v28 }
 0x10a   :  { %v14223_v32 = vld [vmem:[#allocation12 + $0xbe4] sm:$0xf0]  ;;  %3559 = vmatpush.bf16.msra.mxu3 %v10095_v24  ;;  %3532 = vmatpush.bf16.msra.mxu1 %v9551_v35  ;;  %v3297_v24 = vadd.f32 %v3296_v22, %v671_v8 }
 0x10b   :  { %v11054_v33 = vld [vmem:[#allocation12 + $0xdc8] sm:$0xf]  ;;  %v10799_v42 = vor.u32 %v14223_v32, %v10798_v30  ;;  %3519 = vmatmul.bf16.vlgmr.msra.gmra.mxu0 %v15326_v58 }
 0x10c   :  { %v14287_v34 = vld [vmem:[#allocation12 + $0xde4] sm:$0xf0]  ;;  %3546 = vmatpush.bf16.msra.mxu2 %v9807_v36  ;;  %3567 = vmatpush.bf16.msrb.mxu0 %v10543_v41  ;;  %v3310_v36 = vpop.f32.mrf.mxu1 }
 0x10d   :  { %v11310_v37 = vld [vmem:[#allocation12 + $0xfc8] sm:$0xf]  ;;  %v11055_v45 = vor.u32 %v14287_v34, %v11054_v33  ;;  %3533 = vmatmul.bf16.vlgmr.msra.gmra.mxu1 %v15332_v10 }
 0x10e   :  { %v14351_v38 = vld [vmem:[#allocation12 + $0xfe4] sm:$0xf0]  ;;  %3560 = vmatpush.bf16.msra.mxu3 %v10063_v40  ;;  %3581 = vmatpush.bf16.msrb.mxu1 %v10799_v42 }
 0x10f   :  { %v10510_v46 = vld [vmem:[#allocation12 + $0x988] sm:$0xf]  ;;  %v11311_v50 = vor.u32 %v14351_v38, %v11310_v37  ;;  %3547 = vmatmul.bf16.vlgmr.msra.gmra.mxu2 %v15328_v1  ;;  %v3311_v38 = vadd.f32 %v3310_v36, %v3297_v24  ;;  %v13899_v24 = vld [vmem:[#allocation12 + $0x1cc] sm:$0xf] }
 0x110   :  { %v14151_v48 = vld [vmem:[#allocation12 + $0x9a4] sm:$0xf0]  ;;  %3595 = vmatpush.bf16.msrb.mxu2 %v11055_v45 }
 0x111   :  { %v10766_v49 = vld [vmem:[#allocation12 + $0xb88] sm:$0xf]  ;;  %v10511_v56 = vor.u32 %v14151_v48, %v10510_v46  ;;  %3561 = vmatmul.bf16.vlgmr.msra.gmra.mxu3 %v15334_v17 }
 0x112   :  { %v14215_v51 = vld [vmem:[#allocation12 + $0xba4] sm:$0xf0]  ;;  %3609 = vmatpush.bf16.msrb.mxu3 %v11311_v50 }
 0x113   :  { %v11022_v52 = vld [vmem:[#allocation12 + $0xd88] sm:$0xf]  ;;  %v10767_v59 = vor.u32 %v14215_v51, %v10766_v49  ;;  %3568 = vmatpush.bf16.msrb.mxu0 %v10511_v56 }
 0x114   :  { %v14279_v53 = vld [vmem:[#allocation12 + $0xda4] sm:$0xf0] }
 0x115   :  { %v11278_v54 = vld [vmem:[#allocation12 + $0xf88] sm:$0xf]  ;;  %v11023_v60 = vor.u32 %v14279_v53, %v11022_v52  ;;  %3582 = vmatpush.bf16.msrb.mxu1 %v10767_v59  ;;  %v3324_v52 = vpop.f32.mrf.mxu2 }
 0x116   :  { %v14343_v55 = vld [vmem:[#allocation12 + $0xfa4] sm:$0xf0] }
 0x117   :  { %v10478_v57 = vld [vmem:[#allocation12 + $0x948] sm:$0xf]  ;;  %v11279_v0 = vor.u32 %v14343_v55, %v11278_v54  ;;  %3596 = vmatpush.bf16.msrb.mxu2 %v11023_v60  ;;  %v3325_v55 = vadd.f32 %v3324_v52, %v3311_v38  ;;  %v14083_v52 = vld [vmem:[#allocation12 + $0x78c] sm:$0xf] }
 0x118   :  { %v14143_v61 = vld [vmem:[#allocation12 + $0x964] sm:$0xf0] }
 0x119   :  { %v10734_v62 = vld [vmem:[#allocation12 + $0xb48] sm:$0xf]  ;;  %v10479_v7 = vor.u32 %v14143_v61, %v10478_v57  ;;  %3610 = vmatpush.bf16.msrb.mxu3 %v11279_v0 }
 0x11a   :  { %v14207_v2 = vld [vmem:[#allocation12 + $0xb64] sm:$0xf0] }
 0x11b   :  { %v10990_v3 = vld [vmem:[#allocation12 + $0xd48] sm:$0xf]  ;;  %v10735_v9 = vor.u32 %v14207_v2, %v10734_v62  ;;  %3569 = vmatpush.bf16.msrb.mxu0 %v10479_v7 }
 0x11c   :  { %v14271_v4 = vld [vmem:[#allocation12 + $0xd64] sm:$0xf0] }
 0x11d   :  { %v11246_v5 = vld [vmem:[#allocation12 + $0xf48] sm:$0xf]  ;;  %v10991_v11 = vor.u32 %v14271_v4, %v10990_v3  ;;  %3583 = vmatpush.bf16.msrb.mxu1 %v10735_v9 }
 0x11e   :  { %v14335_v6 = vld [vmem:[#allocation12 + $0xf64] sm:$0xf0] }
 0x11f   :  { %v10446_v12 = vld [vmem:[#allocation12 + $0x908] sm:$0xf]  ;;  %v11247_v15 = vor.u32 %v14335_v6, %v11246_v5  ;;  %3597 = vmatpush.bf16.msrb.mxu2 %v10991_v11  ;;  %v3338_v5 = vpop.f32.mrf.mxu3 }
 0x120   :  { %v14135_v13 = vld [vmem:[#allocation12 + $0x924] sm:$0xf0]  ;;  %v15367_v9 = vadd.f32 %v3338_v5, %v3325_v55  ;;  %v10224_v5 = vld [vmem:[#allocation12 + $0x768] sm:$0xf0] }
 0x121   :  { %v10702_v14 = vld [vmem:[#allocation12 + $0xb08] sm:$0xf]  ;;  %v10447_v23 = vor.u32 %v14135_v13, %v10446_v12  ;;  %3611 = vmatpush.bf16.msrb.mxu3 %v11247_v15 }
 0x122   :  { %v14199_v16 = vld [vmem:[#allocation12 + $0xb24] sm:$0xf0] }
 0x123   :  { %v10958_v18 = vld [vmem:[#allocation12 + $0xd08] sm:$0xf]  ;;  %v10703_v25 = vor.u32 %v14199_v16, %v10702_v14  ;;  %3570 = vmatpush.bf16.msrb.mxu0 %v10447_v23 }
 0x124   :  { %v14263_v19 = vld [vmem:[#allocation12 + $0xd24] sm:$0xf0] }
 0x125   :  { %v11214_v20 = vld [vmem:[#allocation12 + $0xf08] sm:$0xf]  ;;  %v10959_v26 = vor.u32 %v14263_v19, %v10958_v18  ;;  %3584 = vmatpush.bf16.msrb.mxu1 %v10703_v25  ;;  %v9520_v25 = vld [vmem:[#allocation12 + $0x1e8] sm:$0xf0] }
 0x126   :  { %v14327_v21 = vld [vmem:[#allocation12 + $0xf24] sm:$0xf0]  ;;  %v9523_v36 = vor.u32 %v13899_v24, %v9520_v25  ;;  %v10192_v24 = vld [vmem:[#allocation12 + $0x728] sm:$0xf0] }
 0x127   :  { %v10414_v27 = vld [vmem:[#allocation12 + $0x8c8] sm:$0xf]  ;;  %v11215_v30 = vor.u32 %v14327_v21, %v11214_v20  ;;  %3598 = vmatpush.bf16.msrb.mxu2 %v10959_v26  ;;  %v13963_v26 = vld [vmem:[#allocation12 + $0x3cc] sm:$0xf] }
 0x128   :  { %v14127_v28 = vld [vmem:[#allocation12 + $0x8e4] sm:$0xf0] }
 0x129   :  { %v10670_v29 = vld [vmem:[#allocation12 + $0xac8] sm:$0xf]  ;;  %v10415_v37 = vor.u32 %v14127_v28, %v10414_v27  ;;  %3612 = vmatpush.bf16.msrb.mxu3 %v11215_v30  ;;  %v9776_v28 = vld [vmem:[#allocation12 + $0x3e8] sm:$0xf0] }
 0x12a   :  { %v14191_v31 = vld [vmem:[#allocation12 + $0xae4] sm:$0xf0]  ;;  %v10032_v30 = vld [vmem:[#allocation12 + $0x5e8] sm:$0xf0] }
 0x12b   :  { %v10926_v32 = vld [vmem:[#allocation12 + $0xcc8] sm:$0xf]  ;;  %v10671_v40 = vor.u32 %v14191_v31, %v10670_v29  ;;  %3571 = vmatpush.bf16.msrb.mxu0 %v10415_v37  ;;  %v14027_v29 = vld [vmem:[#allocation12 + $0x5cc] sm:$0xf]  ;;  %v9779_v37 = vor.u32 %v13963_v26, %v9776_v28 }
 0x12c   :  { %v14255_v33 = vld [vmem:[#allocation12 + $0xce4] sm:$0xf0]  ;;  %v10035_v38 = vor.u32 %v14027_v29, %v10032_v30 }
 0x12d   :  { %v11182_v34 = vld [vmem:[#allocation12 + $0xec8] sm:$0xf]  ;;  %v10927_v41 = vor.u32 %v14255_v33, %v10926_v32  ;;  %3585 = vmatpush.bf16.msrb.mxu1 %v10671_v40  ;;  %v14091_v33 = vld [vmem:[#allocation12 + $0x7cc] sm:$0xf]  ;;  %v3298_v40 = vpop.f32.mrf.mxu0 }
 0x12e   :  { %v14319_v35 = vld [vmem:[#allocation12 + $0xee4] sm:$0xf0]  ;;  %v3299_v55 = vadd.f32 %v3298_v40, %v671_v8  ;;  %v14059_v40 = vld [vmem:[#allocation12 + $0x6cc] sm:$0xf] }
 0x12f   :  { %v10382_v42 = vld [vmem:[#allocation12 + $0x888] sm:$0xf]  ;;  %v11183_v48 = vor.u32 %v14319_v35, %v11182_v34  ;;  %3599 = vmatpush.bf16.msrb.mxu2 %v10927_v41  ;;  %v10288_v34 = vld [vmem:[#allocation12 + $0x7e8] sm:$0xf0] }
 0x130   :  { %v14119_v45 = vld [vmem:[#allocation12 + $0x8a4] sm:$0xf0]  ;;  %v13891_v41 = vld [vmem:[#allocation12 + $0x18c] sm:$0xf] }
 0x131   :  { %v10638_v46 = vld [vmem:[#allocation12 + $0xa88] sm:$0xf]  ;;  %v10383_v56 = vor.u32 %v14119_v45, %v10382_v42  ;;  %3613 = vmatpush.bf16.msrb.mxu3 %v11183_v48  ;;  %v9488_v42 = vld [vmem:[#allocation12 + $0x1a8] sm:$0xf0] }
 0x132   :  { %v14183_v49 = vld [vmem:[#allocation12 + $0xaa4] sm:$0xf0]  ;;  %v13955_v45 = vld [vmem:[#allocation12 + $0x38c] sm:$0xf] }
 0x133   :  { %v10894_v50 = vld [vmem:[#allocation12 + $0xc88] sm:$0xf]  ;;  %v10639_v57 = vor.u32 %v14183_v49, %v10638_v46  ;;  %3572 = vmatpush.bf16.msrb.mxu0 %v10383_v56  ;;  %v10291_v46 = vor.u32 %v14091_v33, %v10288_v34  ;;  %v9744_v48 = vld [vmem:[#allocation12 + $0x3a8] sm:$0xf0] }
 0x134   :  { %v14247_v51 = vld [vmem:[#allocation12 + $0xca4] sm:$0xf0]  ;;  %v14019_v49 = vld [vmem:[#allocation12 + $0x58c] sm:$0xf]  ;;  %v9747_v56 = vor.u32 %v13955_v45, %v9744_v48 }
 0x135   :  { %v11150_v53 = vld [vmem:[#allocation12 + $0xe88] sm:$0xf]  ;;  %v10895_v59 = vor.u32 %v14247_v51, %v10894_v50  ;;  %3586 = vmatpush.bf16.msrb.mxu1 %v10639_v57  ;;  %v10000_v50 = vld [vmem:[#allocation12 + $0x5a8] sm:$0xf0]  ;;  %v3312_v51 = vpop.f32.mrf.mxu1 }
 0x136   :  { %v14311_v54 = vld [vmem:[#allocation12 + $0xea4] sm:$0xf0]  ;;  %v10003_v57 = vor.u32 %v14019_v49, %v10000_v50  ;;  %v13931_v33 = vld [vmem:[#allocation12 + $0x2cc] sm:$0xf] }
 0x137   :  { %v10350_v60 = vld [vmem:[#allocation12 + $0x848] sm:$0xf]  ;;  %v11151_v0 = vor.u32 %v14311_v54, %v11150_v53  ;;  %3600 = vmatpush.bf16.msrb.mxu2 %v10895_v59  ;;  %v10256_v53 = vld [vmem:[#allocation12 + $0x7a8] sm:$0xf0]  ;;  %v9491_v54 = vor.u32 %v13891_v41, %v9488_v42 }
 0x138   :  { %v14111_v61 = vld [vmem:[#allocation12 + $0x864] sm:$0xf0]  ;;  %v13883_v59 = vld [vmem:[#allocation12 + $0x14c] sm:$0xf] }
 0x139   :  { %v10606_v62 = vld [vmem:[#allocation12 + $0xa48] sm:$0xf]  ;;  %v10351_v11 = vor.u32 %v14111_v61, %v10350_v60  ;;  %3614 = vmatpush.bf16.msrb.mxu3 %v11151_v0  ;;  %v9456_v60 = vld [vmem:[#allocation12 + $0x168] sm:$0xf0] }
 0x13a   :  { %v14175_v2 = vld [vmem:[#allocation12 + $0xa64] sm:$0xf0]  ;;  %v13947_v61 = vld [vmem:[#allocation12 + $0x34c] sm:$0xf]  ;;  %v9459_v8 = vor.u32 %v13883_v59, %v9456_v60 }
 0x13b   :  { %v10862_v3 = vld [vmem:[#allocation12 + $0xc48] sm:$0xf]  ;;  %v10607_v14 = vor.u32 %v14175_v2, %v10606_v62  ;;  %3573 = vmatpush.bf16.msrb.mxu0 %v10351_v11  ;;  %v10259_v62 = vor.u32 %v14083_v52, %v10256_v53  ;;  %v9712_v0 = vld [vmem:[#allocation12 + $0x368] sm:$0xf0] }
 0x13c   :  { %v14239_v4 = vld [vmem:[#allocation12 + $0xc64] sm:$0xf0]  ;;  %v14011_v2 = vld [vmem:[#allocation12 + $0x54c] sm:$0xf]  ;;  %v9715_v11 = vor.u32 %v13947_v61, %v9712_v0 }
 0x13d   :  { %v11118_v6 = vld [vmem:[#allocation12 + $0xe48] sm:$0xf]  ;;  %v10863_v15 = vor.u32 %v14239_v4, %v10862_v3  ;;  %3587 = vmatpush.bf16.msrb.mxu1 %v10607_v14  ;;  %v9968_v3 = vld [vmem:[#allocation12 + $0x568] sm:$0xf0] }
 0x13e   :  { %v14303_v7 = vld [vmem:[#allocation12 + $0xe64] sm:$0xf0]  ;;  %v14075_v4 = vld [vmem:[#allocation12 + $0x74c] sm:$0xf] }
 0x13f   :  { %v10318_v12 = vld [vmem:[#allocation12 + $0x808] sm:$0xf]  ;;  %v11119_v20 = vor.u32 %v14303_v7, %v11118_v6  ;;  %3601 = vmatpush.bf16.msrb.mxu2 %v10863_v15  ;;  %v3326_v6 = vpop.f32.mrf.mxu2  ;;  %v3313_v7 = vadd.f32 %v3312_v51, %v3299_v55  ;;  %v13875_v14 = vld [vmem:[#allocation12 + $0x10c] sm:$0xf] }
 0x140   :  { %v14103_v13 = vld [vmem:[#allocation12 + $0x824] sm:$0xf0]  ;;  %v9424_v15 = vld [vmem:[#allocation12 + $0x128] sm:$0xf0] }
 0x141   :  { %v10574_v16 = vld [vmem:[#allocation12 + $0xa08] sm:$0xf]  ;;  %v10319_v27 = vor.u32 %v14103_v13, %v10318_v12  ;;  %3615 = vmatpush.bf16.msrb.mxu3 %v11119_v20  ;;  %v9971_v12 = vor.u32 %v14011_v2, %v9968_v3  ;;  %v3340_v13 = vpop.f32.mrf.mxu3  ;;  %v14003_v20 = vld [vmem:[#allocation12 + $0x50c] sm:$0xf]  ;;  %v9427_v26 = vor.u32 %v13875_v14, %v9424_v15  ;;  %v3327_v28 = vadd.f32 %v3326_v6, %v3313_v7 }
 0x142   :  { %v14167_v18 = vld [vmem:[#allocation12 + $0xa24] sm:$0xf0]  ;;  %v10160_v41 = vld [vmem:[#allocation12 + $0x6e8] sm:$0xf0] }
 0x143   :  { %v10830_v19 = vld [vmem:[#allocation12 + $0xc08] sm:$0xf]  ;;  %v10575_v31 = vor.u32 %v14167_v18, %v10574_v16  ;;  %3574 = vmatpush.bf16.msrb.mxu0 %v10319_v27  ;;  %v13939_v16 = vld [vmem:[#allocation12 + $0x30c] sm:$0xf]  ;;  %v10227_v18 = vor.u32 %v14075_v4, %v10224_v5  ;;  %v3366_v27 = vpop.f32.mrf.mxu1  ;;  %v3341_v45 = vadd.f32 %v3340_v13, %v3327_v28  ;;  %v10163_v52 = vor.u32 %v14059_v40, %v10160_v41 }
 0x144   :  { %v14231_v21 = vld [vmem:[#allocation12 + $0xc24] sm:$0xf0]  ;;  %v13859_v42 = vld [vmem:[#allocation12 + $0x8c] sm:$0xf] }
 0x145   :  { %v11086_v22 = vld [vmem:[#allocation12 + $0xe08] sm:$0xf]  ;;  %v10831_v32 = vor.u32 %v14231_v21, %v10830_v19  ;;  %3588 = vmatpush.bf16.msrb.mxu1 %v10575_v31  ;;  %v9680_v19 = vld [vmem:[#allocation12 + $0x328] sm:$0xf0] }
 0x146   :  { %v14295_v23 = vld [vmem:[#allocation12 + $0xe24] sm:$0xf0]  ;;  %3575 = vmatmul.bf16.vlgmr.msrb.gmra.mxu0 %v15338_v39  ;;  %v9936_v21 = vld [vmem:[#allocation12 + $0x528] sm:$0xf0]  ;;  %v9683_v29 = vor.u32 %v13939_v16, %v9680_v19 }
 0x147   :  { %v11087_v35 = vor.u32 %v14295_v23, %v11086_v22  ;;  %3602 = vmatpush.bf16.msrb.mxu2 %v10831_v32  ;;  %3623 = vmatpush.bf16.msra.mxu0 %v9523_v36  ;;  %v3352_v22 = vpop.f32.mrf.mxu0  ;;  %v14067_v23 = vld [vmem:[#allocation12 + $0x70c] sm:$0xf]  ;;  %v9939_v30 = vor.u32 %v14003_v20, %v9936_v21  ;;  %v3380_v53 = vpop.f32.mrf.mxu2 }
 0x148   :  { %3589 = vmatmul.bf16.vlgmr.msrb.gmra.mxu1 %v15342_v44  ;;  %v3353_v25 = vadd.f32 %v3352_v22, %v15367_v9  ;;  %v13867_v31 = vld [vmem:[#allocation12 + $0xcc] sm:$0xf]  ;;  %v10195_v34 = vor.u32 %v14067_v23, %v10192_v24 }
 0x149   :  { %3616 = vmatpush.bf16.msrb.mxu3 %v11087_v35  ;;  %3637 = vmatpush.bf16.msra.mxu1 %v9779_v37  ;;  %v9392_v32 = vld [vmem:[#allocation12 + $0xe8] sm:$0xf0]  ;;  %v3394_v59 = vpop.f32.mrf.mxu3 }
 0x14a   :  { %3603 = vmatmul.bf16.vlgmr.msrb.gmra.mxu2 %v15340_v43  ;;  %v3367_v35 = vadd.f32 %v3366_v27, %v3353_v25  ;;  %v9648_v36 = vld [vmem:[#allocation12 + $0x2e8] sm:$0xf0]  ;;  %v9395_v9 = vor.u32 %v13867_v31, %v9392_v32 }
 0x14b   :  { %3651 = vmatpush.bf16.msra.mxu2 %v10035_v38  ;;  %3624 = vmatpush.bf16.msra.mxu0 %v9491_v54  ;;  %v13995_v37 = vld [vmem:[#allocation12 + $0x4cc] sm:$0xf] }
 0x14c   :  { %3617 = vmatmul.bf16.vlgmr.msrb.gmra.mxu3 %v15344_v47  ;;  %v9904_v38 = vld [vmem:[#allocation12 + $0x4e8] sm:$0xf0] }
 0x14d   :  { %3665 = vmatpush.bf16.msra.mxu3 %v10291_v46  ;;  %3638 = vmatpush.bf16.msra.mxu1 %v9747_v56  ;;  %v9651_v46 = vor.u32 %v13931_v33, %v9648_v36  ;;  %v9907_v48 = vor.u32 %v13995_v37, %v9904_v38  ;;  %v9360_v49 = vld [vmem:[#allocation12 + $0xa8] sm:$0xf0]  ;;  %v3381_v56 = vadd.f32 %v3380_v53, %v3367_v35 }
 0x14e   :  { %v13923_v50 = vld [vmem:[#allocation12 + $0x28c] sm:$0xf] }
 0x14f   :  { %3652 = vmatpush.bf16.msra.mxu2 %v10003_v57  ;;  %3625 = vmatpush.bf16.msra.mxu0 %v9459_v8  ;;  %v9616_v51 = vld [vmem:[#allocation12 + $0x2a8] sm:$0xf0]  ;;  %v3354_v57 = vpop.f32.mrf.mxu0  ;;  %v15376_v3 = vadd.f32 %v3394_v59, %v3381_v56  ;;  %v3382_v28 = vpop.f32.mrf.mxu2 }
 0x150   :  { %v13987_v54 = vld [vmem:[#allocation12 + $0x48c] sm:$0xf]  ;;  %v9619_v0 = vor.u32 %v13923_v50, %v9616_v51  ;;  %v3355_v2 = vadd.f32 %v3354_v57, %v3341_v45 }
 0x151   :  { %3666 = vmatpush.bf16.msra.mxu3 %v10259_v62  ;;  %3639 = vmatpush.bf16.msra.mxu1 %v9715_v11  ;;  %v9872_v55 = vld [vmem:[#allocation12 + $0x4a8] sm:$0xf0]  ;;  %v9363_v62 = vor.u32 %v13859_v42, %v9360_v49  ;;  %v3368_v11 = vpop.f32.mrf.mxu1  ;;  %v3396_v33 = vpop.f32.mrf.mxu3 }
 0x152   :  { %v14051_v60 = vld [vmem:[#allocation12 + $0x68c] sm:$0xf]  ;;  %v9875_v4 = vor.u32 %v13987_v54, %v9872_v55  ;;  %v3369_v21 = vadd.f32 %v3368_v11, %v3355_v2 }
 0x153   :  { %3653 = vmatpush.bf16.msra.mxu2 %v9971_v12  ;;  %3626 = vmatpush.bf16.msra.mxu0 %v9427_v26  ;;  %v10128_v61 = vld [vmem:[#allocation12 + $0x6a8] sm:$0xf0] }
 0x154   :  { %v13851_v5 = vld [vmem:[#allocation12 + $0x4c] sm:$0xf]  ;;  %v10131_v7 = vor.u32 %v14051_v60, %v10128_v61  ;;  %v3383_v32 = vadd.f32 %v3382_v28, %v3369_v21 }
 0x155   :  { %3667 = vmatpush.bf16.msra.mxu3 %v10227_v18  ;;  %3640 = vmatpush.bf16.msra.mxu1 %v9683_v29  ;;  %v9328_v8 = vld [vmem:[#allocation12 + $0x68] sm:$0xf0] }
 0x156   :  { %v13915_v6 = vld [vmem:[#allocation12 + $0x24c] sm:$0xf]  ;;  %v9331_v18 = vor.u32 %v13851_v5, %v9328_v8 }
 0x157   :  { %3654 = vmatpush.bf16.msra.mxu2 %v9939_v30  ;;  %3627 = vmatpush.bf16.msra.mxu0 %v9395_v9  ;;  %v9584_v12 = vld [vmem:[#allocation12 + $0x268] sm:$0xf0]  ;;  %v3397_v9 = vadd.f32 %v3396_v33, %v3383_v32  ;;  %v3408_v32 = vpop.f32.mrf.mxu0 }
 0x158   :  { %v13979_v13 = vld [vmem:[#allocation12 + $0x44c] sm:$0xf]  ;;  %v9587_v22 = vor.u32 %v13915_v6, %v9584_v12 }
 0x159   :  { %3668 = vmatpush.bf16.msra.mxu3 %v10195_v34  ;;  %3641 = vmatpush.bf16.msra.mxu1 %v9651_v46  ;;  %v9840_v14 = vld [vmem:[#allocation12 + $0x468] sm:$0xf0]  ;;  %v4191_v53 = vmax.f32 %v3397_v9, 0.0 }
 0x15a   :  { %v14043_v15 = vld [vmem:[#allocation12 + $0x64c] sm:$0xf]  ;;  %v9843_v23 = vor.u32 %v13979_v13, %v9840_v14 }
 0x15b   :  { %3655 = vmatpush.bf16.msra.mxu2 %v9907_v48  ;;  %v10096_v16 = vld [vmem:[#allocation12 + $0x668] sm:$0xf0]  ;;  %3628 = vmatpush.bf16.msra.mxu0 %v9363_v62 }
 0x15c   :  { %v13843_v19 = vld [vmem:[#allocation12 + $0xc] sm:$0xf]  ;;  %v10099_v27 = vor.u32 %v14043_v15, %v10096_v16 }
 0x15d   :  { %3669 = vmatpush.bf16.msra.mxu3 %v10163_v52  ;;  %v9296_v20 = vld [vmem:[#allocation12 + $0x28] sm:$0xf0]  ;;  %3642 = vmatpush.bf16.msra.mxu1 %v9619_v0  ;;  %v4183_v52 = vmax.f32 %v15376_v3, 0.0 }
 0x15e   :  { %v13907_v24 = vld [vmem:[#allocation12 + $0x20c] sm:$0xf]  ;;  %v9299_v37 = vor.u32 %v13843_v19, %v9296_v20  ;;  %v672_v20 = vperm.slane %v15358_v63, 1 }
 0x15f   :  { %3656 = vmatpush.bf16.msra.mxu2 %v9875_v4  ;;  %v9552_v25 = vld [vmem:[#allocation12 + $0x228] sm:$0xf0]  ;;  %3629 = vmatpush.bf16.msra.mxu0 %v9331_v18  ;;  %v15379_v0 = vpack.c.bf16 %v4191_v53, %v4183_v52 }
 0x160   :  { %v13971_v26 = vld [vmem:[#allocation12 + $0x40c] sm:$0xf]  ;;  %v9555_v42 = vor.u32 %v13907_v24, %v9552_v25 }
 0x161   :  { %3670 = vmatpush.bf16.msra.mxu3 %v10131_v7  ;;  %v9808_v29 = vld [vmem:[#allocation12 + $0x428] sm:$0xf0]  ;;  %3643 = vmatpush.bf16.msra.mxu1 %v9587_v22 }
 0x162   :  { %v14035_v30 = vld [vmem:[#allocation12 + $0x60c] sm:$0xf]  ;;  %v9811_v45 = vor.u32 %v13971_v26, %v9808_v29 }
 0x163   :  { %v10064_v31 = vld [vmem:[#allocation12 + $0x628] sm:$0xf0]  ;;  %3657 = vmatpush.bf16.msra.mxu2 %v9843_v23  ;;  %3630 = vmatpush.bf16.msra.mxu0 %v9299_v37 }
 0x164   :  { %v14155_v34 = vld [vmem:[#allocation12 + $0x9cc] sm:$0xf]  ;;  %v10067_v49 = vor.u32 %v14035_v30, %v10064_v31 }
 0x165   :  { %v10544_v35 = vld [vmem:[#allocation12 + $0x9e8] sm:$0xf0]  ;;  %3671 = vmatpush.bf16.msra.mxu3 %v10099_v27  ;;  %3644 = vmatpush.bf16.msra.mxu1 %v9555_v42 }
 0x166   :  { %v14219_v36 = vld [vmem:[#allocation12 + $0xbcc] sm:$0xf]  ;;  %v10547_v50 = vor.u32 %v14155_v34, %v10544_v35  ;;  %3631 = vmatmul.bf16.vlgmr.msra.gmra.mxu0 %v15326_v58  ;;  %v3409_v34 = vadd.f32 %v3408_v32, %v672_v20 }
 0x167   :  { %v10800_v38 = vld [vmem:[#allocation12 + $0xbe8] sm:$0xf0]  ;;  %3658 = vmatpush.bf16.msra.mxu2 %v9811_v45 }
 0x168   :  { %v14283_v40 = vld [vmem:[#allocation12 + $0xdcc] sm:$0xf]  ;;  %v10803_v54 = vor.u32 %v14219_v36, %v10800_v38  ;;  %3679 = vmatpush.bf16.msrb.mxu0 %v10547_v50  ;;  %3645 = vmatmul.bf16.vlgmr.msra.gmra.mxu1 %v15332_v10 }
 0x169   :  { %v11056_v41 = vld [vmem:[#allocation12 + $0xde8] sm:$0xf0]  ;;  %3672 = vmatpush.bf16.msra.mxu3 %v10067_v49 }
 0x16a   :  { %v14347_v46 = vld [vmem:[#allocation12 + $0xfcc] sm:$0xf]  ;;  %v11059_v55 = vor.u32 %v14283_v40, %v11056_v41  ;;  %3693 = vmatpush.bf16.msrb.mxu1 %v10803_v54  ;;  %3659 = vmatmul.bf16.vlgmr.msra.gmra.mxu2 %v15328_v1  ;;  %v3422_v41 = vpop.f32.mrf.mxu1 }
 0x16b   :  { %v11312_v48 = vld [vmem:[#allocation12 + $0xfe8] sm:$0xf0] }
 0x16c   :  { %v14147_v51 = vld [vmem:[#allocation12 + $0x98c] sm:$0xf]  ;;  %v11315_v59 = vor.u32 %v14347_v46, %v11312_v48  ;;  %3707 = vmatpush.bf16.msrb.mxu2 %v11059_v55  ;;  %3673 = vmatmul.bf16.vlgmr.msra.gmra.mxu3 %v15334_v17  ;;  %v3423_v48 = vadd.f32 %v3422_v41, %v3409_v34  ;;  %v10038_v41 = vld [vmem:[#allocation12 + $0x5d0] sm:$0xf] }
 0x16d   :  { %v10512_v56 = vld [vmem:[#allocation12 + $0x9a8] sm:$0xf0] }
 0x16e   :  { %v14211_v57 = vld [vmem:[#allocation12 + $0xb8c] sm:$0xf]  ;;  %v10515_v5 = vor.u32 %v14147_v51, %v10512_v56  ;;  %3721 = vmatpush.bf16.msrb.mxu3 %v11315_v59 }
 0x16f   :  { %v10768_v60 = vld [vmem:[#allocation12 + $0xba8] sm:$0xf0] }
 0x170   :  { %v14275_v61 = vld [vmem:[#allocation12 + $0xd8c] sm:$0xf]  ;;  %v10771_v3 = vor.u32 %v14211_v57, %v10768_v60  ;;  %3680 = vmatpush.bf16.msrb.mxu0 %v10515_v5 }
 0x171   :  { %v11024_v62 = vld [vmem:[#allocation12 + $0xda8] sm:$0xf0] }
 0x172   :  { %v14339_v2 = vld [vmem:[#allocation12 + $0xf8c] sm:$0xf]  ;;  %v11027_v8 = vor.u32 %v14275_v61, %v11024_v62  ;;  %3694 = vmatpush.bf16.msrb.mxu1 %v10771_v3  ;;  %v3436_v62 = vpop.f32.mrf.mxu2 }
 0x173   :  { %v11280_v4 = vld [vmem:[#allocation12 + $0xfa8] sm:$0xf0]  ;;  %v3437_v5 = vadd.f32 %v3436_v62, %v3423_v48  ;;  %v14096_v48 = vld [vmem:[#allocation12 + $0x7ec] sm:$0xf0]  ;;  %v3424_v62 = vpop.f32.mrf.mxu1 }
 0x174   :  { %v14139_v6 = vld [vmem:[#allocation12 + $0x94c] sm:$0xf]  ;;  %v11283_v12 = vor.u32 %v14339_v2, %v11280_v4  ;;  %3708 = vmatpush.bf16.msrb.mxu2 %v11027_v8  ;;  %v3450_v8 = vpop.f32.mrf.mxu3 }
 0x175   :  { %v10480_v7 = vld [vmem:[#allocation12 + $0x968] sm:$0xf0] }
 0x176   :  { %v14203_v11 = vld [vmem:[#allocation12 + $0xb4c] sm:$0xf]  ;;  %v10483_v19 = vor.u32 %v14139_v6, %v10480_v7  ;;  %3722 = vmatpush.bf16.msrb.mxu3 %v11283_v12 }
 0x177   :  { %v10736_v13 = vld [vmem:[#allocation12 + $0xb68] sm:$0xf0] }
 0x178   :  { %v14267_v14 = vld [vmem:[#allocation12 + $0xd4c] sm:$0xf]  ;;  %v10739_v21 = vor.u32 %v14203_v11, %v10736_v13  ;;  %3681 = vmatpush.bf16.msrb.mxu0 %v10483_v19 }
 0x179   :  { %v10992_v15 = vld [vmem:[#allocation12 + $0xd68] sm:$0xf0] }
 0x17a   :  { %v14331_v16 = vld [vmem:[#allocation12 + $0xf4c] sm:$0xf]  ;;  %v10995_v22 = vor.u32 %v14267_v14, %v10992_v15  ;;  %3695 = vmatpush.bf16.msrb.mxu1 %v10739_v21  ;;  %v15388_v14 = vadd.f32 %v3450_v8, %v3437_v5 }
 0x17b   :  { %v11248_v18 = vld [vmem:[#allocation12 + $0xf68] sm:$0xf0] }
 0x17c   :  { %v14131_v23 = vld [vmem:[#allocation12 + $0x90c] sm:$0xf]  ;;  %v11251_v26 = vor.u32 %v14331_v16, %v11248_v18  ;;  %3709 = vmatpush.bf16.msrb.mxu2 %v10995_v22 }
 0x17d   :  { %v10448_v24 = vld [vmem:[#allocation12 + $0x928] sm:$0xf0] }
 0x17e   :  { %v14195_v25 = vld [vmem:[#allocation12 + $0xb0c] sm:$0xf]  ;;  %v10451_v33 = vor.u32 %v14131_v23, %v10448_v24  ;;  %3723 = vmatpush.bf16.msrb.mxu3 %v11251_v26 }
 0x17f   :  { %v10704_v27 = vld [vmem:[#allocation12 + $0xb28] sm:$0xf0] }
 0x180   :  { %v14259_v28 = vld [vmem:[#allocation12 + $0xd0c] sm:$0xf]  ;;  %v10707_v35 = vor.u32 %v14195_v25, %v10704_v27  ;;  %3682 = vmatpush.bf16.msrb.mxu0 %v10451_v33 }
 0x181   :  { %v10960_v29 = vld [vmem:[#allocation12 + $0xd28] sm:$0xf0] }
 0x182   :  { %v14323_v30 = vld [vmem:[#allocation12 + $0xf0c] sm:$0xf]  ;;  %v10963_v36 = vor.u32 %v14259_v28, %v10960_v29  ;;  %3696 = vmatpush.bf16.msrb.mxu1 %v10707_v35  ;;  %v9526_v35 = vld [vmem:[#allocation12 + $0x1d0] sm:$0xf] }
 0x183   :  { %v11216_v31 = vld [vmem:[#allocation12 + $0xf28] sm:$0xf0] }
 0x184   :  { %v14123_v37 = vld [vmem:[#allocation12 + $0x8cc] sm:$0xf]  ;;  %v11219_v9 = vor.u32 %v14323_v30, %v11216_v31  ;;  %3710 = vmatpush.bf16.msrb.mxu2 %v10963_v36  ;;  %v13904_v36 = vld [vmem:[#allocation12 + $0x1ec] sm:$0xf0] }
 0x185   :  { %v10416_v38 = vld [vmem:[#allocation12 + $0x8e8] sm:$0xf0] }
 0x186   :  { %v14187_v40 = vld [vmem:[#allocation12 + $0xacc] sm:$0xf]  ;;  %v10419_v51 = vor.u32 %v14123_v37, %v10416_v38  ;;  %3724 = vmatpush.bf16.msrb.mxu3 %v11219_v9  ;;  %v9782_v37 = vld [vmem:[#allocation12 + $0x3d0] sm:$0xf] }
 0x187   :  { %v10672_v42 = vld [vmem:[#allocation12 + $0xae8] sm:$0xf0]  ;;  %v14032_v9 = vld [vmem:[#allocation12 + $0x5ec] sm:$0xf0] }
 0x188   :  { %v14251_v45 = vld [vmem:[#allocation12 + $0xccc] sm:$0xf]  ;;  %v10675_v52 = vor.u32 %v14187_v40, %v10672_v42  ;;  %3683 = vmatpush.bf16.msrb.mxu0 %v10419_v51  ;;  %v13968_v40 = vld [vmem:[#allocation12 + $0x3ec] sm:$0xf0] }
 0x189   :  { %v10928_v46 = vld [vmem:[#allocation12 + $0xce8] sm:$0xf0]  ;;  %v9783_v51 = vor.u32 %v13968_v40, %v9782_v37 }
 0x18a   :  { %v14315_v49 = vld [vmem:[#allocation12 + $0xecc] sm:$0xf]  ;;  %v10931_v53 = vor.u32 %v14251_v45, %v10928_v46  ;;  %3697 = vmatpush.bf16.msrb.mxu1 %v10675_v52  ;;  %v10294_v46 = vld [vmem:[#allocation12 + $0x7d0] sm:$0xf]  ;;  %v10039_v52 = vor.u32 %v14032_v9, %v10038_v41 }
 0x18b   :  { %v11184_v50 = vld [vmem:[#allocation12 + $0xee8] sm:$0xf0] }
 0x18c   :  { %v14115_v54 = vld [vmem:[#allocation12 + $0x88c] sm:$0xf]  ;;  %v11187_v57 = vor.u32 %v14315_v49, %v11184_v50  ;;  %3711 = vmatpush.bf16.msrb.mxu2 %v10931_v53  ;;  %v9527_v50 = vor.u32 %v13904_v36, %v9526_v35  ;;  %v3410_v53 = vpop.f32.mrf.mxu0  ;;  %v14072_v35 = vld [vmem:[#allocation12 + $0x72c] sm:$0xf0] }
 0x18d   :  { %v10384_v55 = vld [vmem:[#allocation12 + $0x8a8] sm:$0xf0] }
 0x18e   :  { %v14179_v56 = vld [vmem:[#allocation12 + $0xa8c] sm:$0xf]  ;;  %v10387_v3 = vor.u32 %v14115_v54, %v10384_v55  ;;  %3725 = vmatpush.bf16.msrb.mxu3 %v11187_v57  ;;  %v9494_v54 = vld [vmem:[#allocation12 + $0x190] sm:$0xf]  ;;  %v10295_v57 = vor.u32 %v14096_v48, %v10294_v46 }
 0x18f   :  { %v10640_v59 = vld [vmem:[#allocation12 + $0xaa8] sm:$0xf0]  ;;  %v13896_v55 = vld [vmem:[#allocation12 + $0x1ac] sm:$0xf0] }
 0x190   :  { %v14243_v60 = vld [vmem:[#allocation12 + $0xc8c] sm:$0xf]  ;;  %v10643_v6 = vor.u32 %v14179_v56, %v10640_v59  ;;  %3684 = vmatpush.bf16.msrb.mxu0 %v10387_v3  ;;  %v9750_v56 = vld [vmem:[#allocation12 + $0x390] sm:$0xf]  ;;  %v9495_v5 = vor.u32 %v13896_v55, %v9494_v54  ;;  %v3411_v3 = vadd.f32 %v3410_v53, %v672_v20  ;;  %v3438_v20 = vpop.f32.mrf.mxu2 }
 0x191   :  { %v10896_v61 = vld [vmem:[#allocation12 + $0xca8] sm:$0xf0]  ;;  %v13960_v59 = vld [vmem:[#allocation12 + $0x3ac] sm:$0xf0] }
 0x192   :  { %v14307_v2 = vld [vmem:[#allocation12 + $0xe8c] sm:$0xf]  ;;  %v10899_v7 = vor.u32 %v14243_v60, %v10896_v61  ;;  %3698 = vmatpush.bf16.msrb.mxu1 %v10643_v6  ;;  %v10006_v60 = vld [vmem:[#allocation12 + $0x590] sm:$0xf]  ;;  %v9751_v8 = vor.u32 %v13960_v59, %v9750_v56 }
 0x193   :  { %v11152_v4 = vld [vmem:[#allocation12 + $0xea8] sm:$0xf0]  ;;  %v14024_v61 = vld [vmem:[#allocation12 + $0x5ac] sm:$0xf0] }
 0x194   :  { %v14107_v11 = vld [vmem:[#allocation12 + $0x84c] sm:$0xf]  ;;  %v11155_v15 = vor.u32 %v14307_v2, %v11152_v4  ;;  %3712 = vmatpush.bf16.msrb.mxu2 %v10899_v7  ;;  %v10262_v2 = vld [vmem:[#allocation12 + $0x790] sm:$0xf]  ;;  %v10007_v6 = vor.u32 %v14024_v61, %v10006_v60 }
 0x195   :  { %v10352_v12 = vld [vmem:[#allocation12 + $0x868] sm:$0xf0]  ;;  %v14088_v4 = vld [vmem:[#allocation12 + $0x7ac] sm:$0xf0] }
 0x196   :  { %v14171_v13 = vld [vmem:[#allocation12 + $0xa4c] sm:$0xf]  ;;  %v10355_v23 = vor.u32 %v14107_v11, %v10352_v12  ;;  %3726 = vmatpush.bf16.msrb.mxu3 %v11155_v15  ;;  %v9462_v7 = vld [vmem:[#allocation12 + $0x150] sm:$0xf] }
 0x197   :  { %v10608_v16 = vld [vmem:[#allocation12 + $0xa68] sm:$0xf0]  ;;  %v13888_v11 = vld [vmem:[#allocation12 + $0x16c] sm:$0xf0] }
 0x198   :  { %v14235_v18 = vld [vmem:[#allocation12 + $0xc4c] sm:$0xf]  ;;  %v10611_v26 = vor.u32 %v14171_v13, %v10608_v16  ;;  %3685 = vmatpush.bf16.msrb.mxu0 %v10355_v23  ;;  %v9718_v12 = vld [vmem:[#allocation12 + $0x350] sm:$0xf]  ;;  %v10263_v13 = vor.u32 %v14088_v4, %v10262_v2  ;;  %v9463_v63 = vor.u32 %v13888_v11, %v9462_v7  ;;  %v3492_v4 = vpop.f32.mrf.mxu2 }
 0x199   :  { %v10864_v19 = vld [vmem:[#allocation12 + $0xc68] sm:$0xf0]  ;;  %v13952_v15 = vld [vmem:[#allocation12 + $0x36c] sm:$0xf0] }
 0x19a   :  { %v14299_v21 = vld [vmem:[#allocation12 + $0xe4c] sm:$0xf]  ;;  %v10867_v27 = vor.u32 %v14235_v18, %v10864_v19  ;;  %3699 = vmatpush.bf16.msrb.mxu1 %v10611_v26  ;;  %v9974_v16 = vld [vmem:[#allocation12 + $0x550] sm:$0xf]  ;;  %v9719_v23 = vor.u32 %v13952_v15, %v9718_v12 }
 0x19b   :  { %v11120_v22 = vld [vmem:[#allocation12 + $0xe68] sm:$0xf0]  ;;  %v14016_v18 = vld [vmem:[#allocation12 + $0x56c] sm:$0xf0] }
 0x19c   :  { %v14099_v24 = vld [vmem:[#allocation12 + $0x80c] sm:$0xf]  ;;  %v11123_v31 = vor.u32 %v14299_v21, %v11120_v22  ;;  %3713 = vmatpush.bf16.msrb.mxu2 %v10867_v27  ;;  %v10230_v19 = vld [vmem:[#allocation12 + $0x750] sm:$0xf]  ;;  %v3425_v22 = vadd.f32 %v3424_v62, %v3411_v3 }
 0x19d   :  { %v10320_v25 = vld [vmem:[#allocation12 + $0x828] sm:$0xf0]  ;;  %v14080_v21 = vld [vmem:[#allocation12 + $0x76c] sm:$0xf0] }
 0x19e   :  { %v14163_v28 = vld [vmem:[#allocation12 + $0xa0c] sm:$0xf]  ;;  %v10323_v38 = vor.u32 %v14099_v24, %v10320_v25  ;;  %3727 = vmatpush.bf16.msrb.mxu3 %v11123_v31  ;;  %v9975_v24 = vor.u32 %v14016_v18, %v9974_v16  ;;  %v3452_v25 = vpop.f32.mrf.mxu3  ;;  %v9430_v26 = vld [vmem:[#allocation12 + $0x110] sm:$0xf]  ;;  %v3439_v40 = vadd.f32 %v3438_v20, %v3425_v22 }
 0x19f   :  { %v10576_v29 = vld [vmem:[#allocation12 + $0xa28] sm:$0xf0]  ;;  %v13880_v27 = vld [vmem:[#allocation12 + $0x12c] sm:$0xf0] }
 0x1a0   :  { %v14227_v30 = vld [vmem:[#allocation12 + $0xc0c] sm:$0xf]  ;;  %v10579_v42 = vor.u32 %v14163_v28, %v10576_v29  ;;  %3686 = vmatpush.bf16.msrb.mxu0 %v10323_v38  ;;  %v9686_v28 = vld [vmem:[#allocation12 + $0x310] sm:$0xf]  ;;  %v10231_v29 = vor.u32 %v14080_v21, %v10230_v19  ;;  %v9431_v37 = vor.u32 %v13880_v27, %v9430_v26  ;;  %v3478_v38 = vpop.f32.mrf.mxu1  ;;  %v3453_v56 = vadd.f32 %v3452_v25, %v3439_v40  ;;  %v3494_v40 = vpop.f32.mrf.mxu2 }
 0x1a1   :  { %v10832_v32 = vld [vmem:[#allocation12 + $0xc28] sm:$0xf0]  ;;  %v9942_v31 = vld [vmem:[#allocation12 + $0x510] sm:$0xf] }
 0x1a2   :  { %v14291_v33 = vld [vmem:[#allocation12 + $0xe0c] sm:$0xf]  ;;  %v10835_v45 = vor.u32 %v14227_v30, %v10832_v32  ;;  %3700 = vmatpush.bf16.msrb.mxu1 %v10579_v42  ;;  %v13944_v30 = vld [vmem:[#allocation12 + $0x32c] sm:$0xf0] }
 0x1a3   :  { %v11088_v34 = vld [vmem:[#allocation12 + $0xe28] sm:$0xf0]  ;;  %3687 = vmatmul.bf16.vlgmr.msrb.gmra.mxu0 %v15338_v39  ;;  %v14008_v32 = vld [vmem:[#allocation12 + $0x52c] sm:$0xf0]  ;;  %v9687_v41 = vor.u32 %v13944_v30, %v9686_v28 }
 0x1a4   :  { %v11091_v49 = vor.u32 %v14291_v33, %v11088_v34  ;;  %3714 = vmatpush.bf16.msrb.mxu2 %v10835_v45  ;;  %3735 = vmatpush.bf16.msra.mxu0 %v9527_v50  ;;  %v3464_v33 = vpop.f32.mrf.mxu0  ;;  %v10198_v34 = vld [vmem:[#allocation12 + $0x710] sm:$0xf]  ;;  %v9943_v9 = vor.u32 %v14008_v32, %v9942_v31 }
 0x1a5   :  { %3701 = vmatmul.bf16.vlgmr.msrb.gmra.mxu1 %v15342_v44  ;;  %v3465_v36 = vadd.f32 %v3464_v33, %v15388_v14  ;;  %v9398_v42 = vld [vmem:[#allocation12 + $0xd0] sm:$0xf]  ;;  %v10199_v48 = vor.u32 %v14072_v35, %v10198_v34 }
 0x1a6   :  { %3728 = vmatpush.bf16.msrb.mxu3 %v11091_v49  ;;  %3749 = vmatpush.bf16.msra.mxu1 %v9783_v51  ;;  %v13872_v45 = vld [vmem:[#allocation12 + $0xec] sm:$0xf0]  ;;  %v3506_v7 = vpop.f32.mrf.mxu3 }
 0x1a7   :  { %3715 = vmatmul.bf16.vlgmr.msrb.gmra.mxu2 %v15340_v43  ;;  %v9654_v46 = vld [vmem:[#allocation12 + $0x2d0] sm:$0xf]  ;;  %v3479_v49 = vadd.f32 %v3478_v38, %v3465_v36  ;;  %v9399_v14 = vor.u32 %v13872_v45, %v9398_v42 }
 0x1a8   :  { %3763 = vmatpush.bf16.msra.mxu2 %v10039_v52  ;;  %3736 = vmatpush.bf16.msra.mxu0 %v9495_v5  ;;  %v13936_v50 = vld [vmem:[#allocation12 + $0x2ec] sm:$0xf0] }
 0x1a9   :  { %3729 = vmatmul.bf16.vlgmr.msrb.gmra.mxu3 %v15344_v47  ;;  %v9910_v51 = vld [vmem:[#allocation12 + $0x4d0] sm:$0xf] }
 0x1aa   :  { %3777 = vmatpush.bf16.msra.mxu3 %v10295_v57  ;;  %3750 = vmatpush.bf16.msra.mxu1 %v9751_v8  ;;  %v14000_v52 = vld [vmem:[#allocation12 + $0x4ec] sm:$0xf0]  ;;  %v9655_v57 = vor.u32 %v13936_v50, %v9654_v46  ;;  %v3493_v8 = vadd.f32 %v3492_v4, %v3479_v49 }
 0x1ab   :  { %v10166_v53 = vld [vmem:[#allocation12 + $0x6d0] sm:$0xf]  ;;  %v9911_v59 = vor.u32 %v14000_v52, %v9910_v51 }
 0x1ac   :  { %3764 = vmatpush.bf16.msra.mxu2 %v10007_v6  ;;  %3737 = vmatpush.bf16.msra.mxu0 %v9463_v63  ;;  %v14064_v54 = vld [vmem:[#allocation12 + $0x6ec] sm:$0xf0]  ;;  %v3466_v6 = vpop.f32.mrf.mxu0  ;;  %v15397_v18 = vadd.f32 %v3506_v7, %v3493_v8 }
 0x1ad   :  { %v9366_v55 = vld [vmem:[#allocation12 + $0x90] sm:$0xf]  ;;  %v10167_v2 = vor.u32 %v14064_v54, %v10166_v53  ;;  %v3467_v16 = vadd.f32 %v3466_v6, %v3453_v56 }
 0x1ae   :  { %3778 = vmatpush.bf16.msra.mxu3 %v10263_v13  ;;  %3751 = vmatpush.bf16.msra.mxu1 %v9719_v23  ;;  %v13864_v60 = vld [vmem:[#allocation12 + $0xac] sm:$0xf0]  ;;  %v3480_v23 = vpop.f32.mrf.mxu1  ;;  %v3508_v46 = vpop.f32.mrf.mxu3 }
 0x1af   :  { %v9622_v61 = vld [vmem:[#allocation12 + $0x290] sm:$0xf]  ;;  %v9367_v13 = vor.u32 %v13864_v60, %v9366_v55  ;;  %v3481_v32 = vadd.f32 %v3480_v23, %v3467_v16 }
 0x1b0   :  { %3765 = vmatpush.bf16.msra.mxu2 %v9975_v24  ;;  %3738 = vmatpush.bf16.msra.mxu0 %v9431_v37  ;;  %v13928_v62 = vld [vmem:[#allocation12 + $0x2ac] sm:$0xf0] }
 0x1b1   :  { %v9878_v5 = vld [vmem:[#allocation12 + $0x490] sm:$0xf]  ;;  %v9623_v15 = vor.u32 %v13928_v62, %v9622_v61  ;;  %v3495_v45 = vadd.f32 %v3494_v40, %v3481_v32 }
 0x1b2   :  { %3779 = vmatpush.bf16.msra.mxu3 %v10231_v29  ;;  %3752 = vmatpush.bf16.msra.mxu1 %v9687_v41  ;;  %v13992_v3 = vld [vmem:[#allocation12 + $0x4ac] sm:$0xf0] }
 0x1b3   :  { %v10134_v11 = vld [vmem:[#allocation12 + $0x690] sm:$0xf]  ;;  %v9879_v19 = vor.u32 %v13992_v3, %v9878_v5 }
 0x1b4   :  { %3766 = vmatpush.bf16.msra.mxu2 %v9943_v9  ;;  %v14056_v12 = vld [vmem:[#allocation12 + $0x6ac] sm:$0xf0]  ;;  %3739 = vmatpush.bf16.msra.mxu0 %v9399_v14  ;;  %v3509_v14 = vadd.f32 %v3508_v46, %v3495_v45  ;;  %v3520_v46 = vpop.f32.mrf.mxu0 }
 0x1b5   :  { %v9334_v21 = vld [vmem:[#allocation12 + $0x50] sm:$0xf]  ;;  %v10135_v22 = vor.u32 %v14056_v12, %v10134_v11 }
 0x1b6   :  { %3780 = vmatpush.bf16.msra.mxu3 %v10199_v48  ;;  %3753 = vmatpush.bf16.msra.mxu1 %v9655_v57  ;;  %v13856_v63 = vld [vmem:[#allocation12 + $0x6c] sm:$0xf0]  ;;  %v4192_v4 = vmax.f32 %v3509_v14, 0.0 }
 0x1b7   :  { %v9590_v20 = vld [vmem:[#allocation12 + $0x250] sm:$0xf]  ;;  %v9335_v29 = vor.u32 %v13856_v63, %v9334_v21 }
 0x1b8   :  { %3767 = vmatpush.bf16.msra.mxu2 %v9911_v59  ;;  %v13920_v24 = vld [vmem:[#allocation12 + $0x26c] sm:$0xf0]  ;;  %3740 = vmatpush.bf16.msra.mxu0 %v9367_v13 }
 0x1b9   :  { %v9846_v25 = vld [vmem:[#allocation12 + $0x450] sm:$0xf]  ;;  %v9591_v33 = vor.u32 %v13920_v24, %v9590_v20 }
 0x1ba   :  { %3781 = vmatpush.bf16.msra.mxu3 %v10167_v2  ;;  %v13984_v26 = vld [vmem:[#allocation12 + $0x46c] sm:$0xf0]  ;;  %3754 = vmatpush.bf16.msra.mxu1 %v9623_v15  ;;  %v4184_v2 = vmax.f32 %v15397_v18, 0.0 }
 0x1bb   :  { %v10102_v27 = vld [vmem:[#allocation12 + $0x650] sm:$0xf]  ;;  %v9847_v34 = vor.u32 %v13984_v26, %v9846_v25 }
 0x1bc   :  { %v14048_v28 = vld [vmem:[#allocation12 + $0x66c] sm:$0xf0]  ;;  %3768 = vmatpush.bf16.msra.mxu2 %v9879_v19  ;;  %3741 = vmatpush.bf16.msra.mxu0 %v9335_v29  ;;  %v15400_v15 = vpack.c.bf16 %v4192_v4, %v4184_v2 }
 0x1bd   :  { %v9302_v30 = vld [vmem:[#allocation12 + $0x10] sm:$0xf]  ;;  %v10103_v38 = vor.u32 %v14048_v28, %v10102_v27 }
 0x1be   :  { %v13848_v31 = vld [vmem:[#allocation12 + $0x2c] sm:$0xf0]  ;;  %3782 = vmatpush.bf16.msra.mxu3 %v10135_v22  ;;  %3755 = vmatpush.bf16.msra.mxu1 %v9591_v33 }
 0x1bf   :  { %v9558_v35 = vld [vmem:[#allocation12 + $0x210] sm:$0xf]  ;;  %v9303_v51 = vor.u32 %v13848_v31, %v9302_v30  ;;  %v15406_v31 = vld [vmem:[#allocation14] sm:$0xff] }
 0x1c0   :  { %v13912_v36 = vld [vmem:[#allocation12 + $0x22c] sm:$0xf0]  ;;  %3769 = vmatpush.bf16.msra.mxu2 %v9847_v34  ;;  %v673_v32 = vperm.slane %v15406_v31, 2 }
 0x1c1   :  { %v9814_v37 = vld [vmem:[#allocation12 + $0x410] sm:$0xf]  ;;  %v9559_v55 = vor.u32 %v13912_v36, %v9558_v35  ;;  %3742 = vmatpush.bf16.msra.mxu0 %v9303_v51 }
 0x1c2   :  { %v13976_v41 = vld [vmem:[#allocation12 + $0x42c] sm:$0xf0]  ;;  %3783 = vmatpush.bf16.msra.mxu3 %v10103_v38 }
 0x1c3   :  { %v10070_v9 = vld [vmem:[#allocation12 + $0x610] sm:$0xf]  ;;  %v9815_v56 = vor.u32 %v13976_v41, %v9814_v37  ;;  %3756 = vmatpush.bf16.msra.mxu1 %v9559_v55 }
 0x1c4   :  { %v14040_v42 = vld [vmem:[#allocation12 + $0x62c] sm:$0xf0]  ;;  %3743 = vmatmul.bf16.vlgmr.msra.gmra.mxu0 %v15326_v58 }
 0x1c5   :  { %v10550_v48 = vld [vmem:[#allocation12 + $0x9d0] sm:$0xf]  ;;  %v10071_v60 = vor.u32 %v14040_v42, %v10070_v9  ;;  %3770 = vmatpush.bf16.msra.mxu2 %v9815_v56 }
 0x1c6   :  { %v14160_v49 = vld [vmem:[#allocation12 + $0x9ec] sm:$0xf0]  ;;  %3757 = vmatmul.bf16.vlgmr.msra.gmra.mxu1 %v15332_v10 }
 0x1c7   :  { %v10806_v50 = vld [vmem:[#allocation12 + $0xbd0] sm:$0xf]  ;;  %v10551_v61 = vor.u32 %v14160_v49, %v10550_v48  ;;  %3784 = vmatpush.bf16.msra.mxu3 %v10071_v60  ;;  %v3521_v49 = vadd.f32 %v3520_v46, %v673_v32 }
 0x1c8   :  { %v14224_v52 = vld [vmem:[#allocation12 + $0xbec] sm:$0xf0]  ;;  %3771 = vmatmul.bf16.vlgmr.msra.gmra.mxu2 %v15328_v1 }
 0x1c9   :  { %v11062_v53 = vld [vmem:[#allocation12 + $0xdd0] sm:$0xf]  ;;  %v10807_v5 = vor.u32 %v14224_v52, %v10806_v50  ;;  %3791 = vmatpush.bf16.msrb.mxu0 %v10551_v61  ;;  %v3534_v50 = vpop.f32.mrf.mxu1 }
 0x1ca   :  { %v14288_v54 = vld [vmem:[#allocation12 + $0xdec] sm:$0xf0]  ;;  %3785 = vmatmul.bf16.vlgmr.msra.gmra.mxu3 %v15334_v17  ;;  %v3535_v60 = vadd.f32 %v3534_v50, %v3521_v49 }
 0x1cb   :  { %v11318_v57 = vld [vmem:[#allocation12 + $0xfd0] sm:$0xf]  ;;  %v11063_v3 = vor.u32 %v14288_v54, %v11062_v53  ;;  %3805 = vmatpush.bf16.msrb.mxu1 %v10807_v5 }
 0x1cc   :  { %v14352_v59 = vld [vmem:[#allocation12 + $0xfec] sm:$0xf0] }
 0x1cd   :  { %v10518_v62 = vld [vmem:[#allocation12 + $0x990] sm:$0xf]  ;;  %v11319_v7 = vor.u32 %v14352_v59, %v11318_v57  ;;  %3819 = vmatpush.bf16.msrb.mxu2 %v11063_v3 }
 0x1ce   :  { %v14152_v8 = vld [vmem:[#allocation12 + $0x9ac] sm:$0xf0] }
 0x1cf   :  { %v10774_v6 = vld [vmem:[#allocation12 + $0xb90] sm:$0xf]  ;;  %v10519_v21 = vor.u32 %v14152_v8, %v10518_v62  ;;  %3833 = vmatpush.bf16.msrb.mxu3 %v11319_v7 }
 0x1d0   :  { %v14216_v11 = vld [vmem:[#allocation12 + $0xbac] sm:$0xf0] }
 0x1d1   :  { %v11030_v12 = vld [vmem:[#allocation12 + $0xd90] sm:$0xf]  ;;  %v10775_v18 = vor.u32 %v14216_v11, %v10774_v6  ;;  %3792 = vmatpush.bf16.msrb.mxu0 %v10519_v21 }
 0x1d2   :  { %v14280_v13 = vld [vmem:[#allocation12 + $0xdac] sm:$0xf0] }
 0x1d3   :  { %v11286_v16 = vld [vmem:[#allocation12 + $0xf90] sm:$0xf]  ;;  %v11031_v63 = vor.u32 %v14280_v13, %v11030_v12  ;;  %3806 = vmatpush.bf16.msrb.mxu1 %v10775_v18 }
 0x1d4   :  { %v14344_v19 = vld [vmem:[#allocation12 + $0xfac] sm:$0xf0] }
 0x1d5   :  { %v10486_v20 = vld [vmem:[#allocation12 + $0x950] sm:$0xf]  ;;  %v11287_v24 = vor.u32 %v14344_v19, %v11286_v16  ;;  %3820 = vmatpush.bf16.msrb.mxu2 %v11031_v63  ;;  %v3548_v16 = vpop.f32.mrf.mxu2  ;;  %v3522_v63 = vpop.f32.mrf.mxu0 }
 0x1d6   :  { %v14144_v22 = vld [vmem:[#allocation12 + $0x96c] sm:$0xf0]  ;;  %v3549_v18 = vadd.f32 %v3548_v16, %v3535_v60  ;;  %v9784_v60 = vld [vmem:[#allocation12 + $0x3f0] sm:$0xf0] }
 0x1d7   :  { %v10742_v23 = vld [vmem:[#allocation12 + $0xb50] sm:$0xf]  ;;  %v10487_v30 = vor.u32 %v14144_v22, %v10486_v20  ;;  %3834 = vmatpush.bf16.msrb.mxu3 %v11287_v24  ;;  %v3562_v20 = vpop.f32.mrf.mxu3  ;;  %v13892_v16 = vld [vmem:[#allocation12 + $0x194] sm:$0xf] }
 0x1d8   :  { %v14208_v25 = vld [vmem:[#allocation12 + $0xb6c] sm:$0xf0] }
 0x1d9   :  { %v10998_v26 = vld [vmem:[#allocation12 + $0xd50] sm:$0xf]  ;;  %v10743_v33 = vor.u32 %v14208_v25, %v10742_v23  ;;  %3793 = vmatpush.bf16.msrb.mxu0 %v10487_v30  ;;  %v3523_v23 = vadd.f32 %v3522_v63, %v673_v32  ;;  %v3536_v30 = vpop.f32.mrf.mxu1  ;;  %v9752_v63 = vld [vmem:[#allocation12 + $0x3b0] sm:$0xf0] }
 0x1da   :  { %v14272_v27 = vld [vmem:[#allocation12 + $0xd6c] sm:$0xf0] }
 0x1db   :  { %v11254_v28 = vld [vmem:[#allocation12 + $0xf50] sm:$0xf]  ;;  %v10999_v34 = vor.u32 %v14272_v27, %v10998_v26  ;;  %3807 = vmatpush.bf16.msrb.mxu1 %v10743_v33 }
 0x1dc   :  { %v14336_v29 = vld [vmem:[#allocation12 + $0xf6c] sm:$0xf0] }
 0x1dd   :  { %v10454_v35 = vld [vmem:[#allocation12 + $0x910] sm:$0xf]  ;;  %v11255_v38 = vor.u32 %v14336_v29, %v11254_v28  ;;  %3821 = vmatpush.bf16.msrb.mxu2 %v10999_v34  ;;  %v15409_v29 = vadd.f32 %v3562_v20, %v3549_v18  ;;  %v14020_v20 = vld [vmem:[#allocation12 + $0x594] sm:$0xf] }
 0x1de   :  { %v14136_v36 = vld [vmem:[#allocation12 + $0x92c] sm:$0xf0] }
 0x1df   :  { %v10710_v37 = vld [vmem:[#allocation12 + $0xb10] sm:$0xf]  ;;  %v10455_v48 = vor.u32 %v14136_v36, %v10454_v35  ;;  %3835 = vmatpush.bf16.msrb.mxu3 %v11255_v38 }
 0x1e0   :  { %v14200_v40 = vld [vmem:[#allocation12 + $0xb2c] sm:$0xf0] }
 0x1e1   :  { %v10966_v41 = vld [vmem:[#allocation12 + $0xd10] sm:$0xf]  ;;  %v10711_v51 = vor.u32 %v14200_v40, %v10710_v37  ;;  %3794 = vmatpush.bf16.msrb.mxu0 %v10455_v48  ;;  %v3537_v37 = vadd.f32 %v3536_v30, %v3523_v23  ;;  %v14084_v23 = vld [vmem:[#allocation12 + $0x794] sm:$0xf] }
 0x1e2   :  { %v14264_v9 = vld [vmem:[#allocation12 + $0xd2c] sm:$0xf0]  ;;  %v9464_v30 = vld [vmem:[#allocation12 + $0x170] sm:$0xf0] }
 0x1e3   :  { %v11222_v42 = vld [vmem:[#allocation12 + $0xf10] sm:$0xf]  ;;  %v10967_v52 = vor.u32 %v14264_v9, %v10966_v41  ;;  %3808 = vmatpush.bf16.msrb.mxu1 %v10711_v51 }
 0x1e4   :  { %v14328_v45 = vld [vmem:[#allocation12 + $0xf2c] sm:$0xf0] }
 0x1e5   :  { %v10422_v53 = vld [vmem:[#allocation12 + $0x8d0] sm:$0xf]  ;;  %v11223_v55 = vor.u32 %v14328_v45, %v11222_v42  ;;  %3822 = vmatpush.bf16.msrb.mxu2 %v10967_v52 }
 0x1e6   :  { %v14128_v54 = vld [vmem:[#allocation12 + $0x8ec] sm:$0xf0] }
 0x1e7   :  { %v10678_v14 = vld [vmem:[#allocation12 + $0xad0] sm:$0xf]  ;;  %v10423_v2 = vor.u32 %v14128_v54, %v10422_v53  ;;  %3836 = vmatpush.bf16.msrb.mxu3 %v11223_v55  ;;  %v3550_v54 = vpop.f32.mrf.mxu2  ;;  %v9528_v55 = vld [vmem:[#allocation12 + $0x1f0] sm:$0xf0] }
 0x1e8   :  { %v14192_v56 = vld [vmem:[#allocation12 + $0xaec] sm:$0xf0] }
 0x1e9   :  { %v10934_v57 = vld [vmem:[#allocation12 + $0xcd0] sm:$0xf]  ;;  %v10679_v4 = vor.u32 %v14192_v56, %v10678_v14  ;;  %3795 = vmatpush.bf16.msrb.mxu0 %v10423_v2  ;;  %v13900_v14 = vld [vmem:[#allocation12 + $0x1d4] sm:$0xf]  ;;  %v3564_v2 = vpop.f32.mrf.mxu3 }
 0x1ea   :  { %v14256_v59 = vld [vmem:[#allocation12 + $0xcec] sm:$0xf0]  ;;  %v13964_v56 = vld [vmem:[#allocation12 + $0x3d4] sm:$0xf] }
 0x1eb   :  { %v11190_v61 = vld [vmem:[#allocation12 + $0xed0] sm:$0xf]  ;;  %v10935_v5 = vor.u32 %v14256_v59, %v10934_v57  ;;  %3809 = vmatpush.bf16.msrb.mxu1 %v10679_v4  ;;  %v3551_v57 = vadd.f32 %v3550_v54, %v3537_v37  ;;  %v9976_v37 = vld [vmem:[#allocation12 + $0x570] sm:$0xf0] }
 0x1ec   :  { %v14320_v62 = vld [vmem:[#allocation12 + $0xeec] sm:$0xf0]  ;;  %v10200_v54 = vld [vmem:[#allocation12 + $0x730] sm:$0xf0] }
 0x1ed   :  { %v10390_v3 = vld [vmem:[#allocation12 + $0x890] sm:$0xf]  ;;  %v11191_v7 = vor.u32 %v14320_v62, %v11190_v61  ;;  %3823 = vmatpush.bf16.msrb.mxu2 %v10935_v5  ;;  %v14028_v61 = vld [vmem:[#allocation12 + $0x5d4] sm:$0xf] }
 0x1ee   :  { %v14120_v8 = vld [vmem:[#allocation12 + $0x8ac] sm:$0xf0]  ;;  %v10040_v62 = vld [vmem:[#allocation12 + $0x5f0] sm:$0xf0] }
 0x1ef   :  { %v10646_v6 = vld [vmem:[#allocation12 + $0xa90] sm:$0xf]  ;;  %v10391_v22 = vor.u32 %v14120_v8, %v10390_v3  ;;  %3837 = vmatpush.bf16.msrb.mxu3 %v11191_v7  ;;  %v14092_v3 = vld [vmem:[#allocation12 + $0x7d4] sm:$0xf] }
 0x1f0   :  { %v14184_v11 = vld [vmem:[#allocation12 + $0xaac] sm:$0xf0]  ;;  %v10296_v8 = vld [vmem:[#allocation12 + $0x7f0] sm:$0xf0] }
 0x1f1   :  { %v10902_v12 = vld [vmem:[#allocation12 + $0xc90] sm:$0xf]  ;;  %v10647_v24 = vor.u32 %v14184_v11, %v10646_v6  ;;  %3796 = vmatpush.bf16.msrb.mxu0 %v10391_v22  ;;  %v15411_v6 = vadd.f32 %v3564_v2, %v3551_v57  ;;  %v9531_v11 = vor.u32 %v13900_v14, %v9528_v55  ;;  %v10299_v18 = vor.u32 %v14092_v3, %v10296_v8  ;;  %v10008_v22 = vld [vmem:[#allocation12 + $0x5b0] sm:$0xf0] }
 0x1f2   :  { %v14248_v13 = vld [vmem:[#allocation12 + $0xcac] sm:$0xf0]  ;;  %v13996_v3 = vld [vmem:[#allocation12 + $0x4d4] sm:$0xf] }
 0x1f3   :  { %v11158_v19 = vld [vmem:[#allocation12 + $0xe90] sm:$0xf]  ;;  %v10903_v25 = vor.u32 %v14248_v13, %v10902_v12  ;;  %3810 = vmatpush.bf16.msrb.mxu1 %v10647_v24  ;;  %v9787_v12 = vor.u32 %v13964_v56, %v9784_v60  ;;  %v10043_v13 = vor.u32 %v14028_v61, %v10040_v62  ;;  %v10264_v24 = vld [vmem:[#allocation12 + $0x7b0] sm:$0xf0]  ;;  %v3590_v56 = vpop.f32.mrf.mxu1 }
 0x1f4   :  { %v14312_v21 = vld [vmem:[#allocation12 + $0xeac] sm:$0xf0]  ;;  %v13868_v60 = vld [vmem:[#allocation12 + $0xd4] sm:$0xf] }
 0x1f5   :  { %v10358_v26 = vld [vmem:[#allocation12 + $0x850] sm:$0xf]  ;;  %v11159_v33 = vor.u32 %v14312_v21, %v11158_v19  ;;  %3824 = vmatpush.bf16.msrb.mxu2 %v10903_v25  ;;  %v9496_v19 = vld [vmem:[#allocation12 + $0x1b0] sm:$0xf0] }
 0x1f6   :  { %v14112_v27 = vld [vmem:[#allocation12 + $0x86c] sm:$0xf0]  ;;  %v13956_v21 = vld [vmem:[#allocation12 + $0x394] sm:$0xf]  ;;  %v9499_v25 = vor.u32 %v13892_v16, %v9496_v19 }
 0x1f7   :  { %v10614_v28 = vld [vmem:[#allocation12 + $0xa50] sm:$0xf]  ;;  %v10359_v32 = vor.u32 %v14112_v27, %v10358_v26  ;;  %3838 = vmatpush.bf16.msrb.mxu3 %v11159_v33  ;;  %v9755_v26 = vor.u32 %v13956_v21, %v9752_v63  ;;  %v10011_v27 = vor.u32 %v14020_v20, %v10008_v22  ;;  %v13948_v33 = vld [vmem:[#allocation12 + $0x354] sm:$0xf]  ;;  %v3604_v63 = vpop.f32.mrf.mxu2 }
 0x1f8   :  { %v14176_v34 = vld [vmem:[#allocation12 + $0xa6c] sm:$0xf0]  ;;  %v9400_v61 = vld [vmem:[#allocation12 + $0xf0] sm:$0xf0] }
 0x1f9   :  { %v10870_v35 = vld [vmem:[#allocation12 + $0xc50] sm:$0xf]  ;;  %v10615_v42 = vor.u32 %v14176_v34, %v10614_v28  ;;  %3797 = vmatpush.bf16.msrb.mxu0 %v10359_v32  ;;  %v13884_v28 = vld [vmem:[#allocation12 + $0x154] sm:$0xf]  ;;  %v10267_v34 = vor.u32 %v14084_v23, %v10264_v24 }
 0x1fa   :  { %v14240_v36 = vld [vmem:[#allocation12 + $0xc6c] sm:$0xf0]  ;;  %v9467_v32 = vor.u32 %v13884_v28, %v9464_v30  ;;  %v13932_v62 = vld [vmem:[#allocation12 + $0x2d4] sm:$0xf] }
 0x1fb   :  { %v11126_v38 = vld [vmem:[#allocation12 + $0xe50] sm:$0xf]  ;;  %v10871_v45 = vor.u32 %v14240_v36, %v10870_v35  ;;  %3811 = vmatpush.bf16.msrb.mxu1 %v10615_v42  ;;  %v9720_v35 = vld [vmem:[#allocation12 + $0x370] sm:$0xf0] }
 0x1fc   :  { %v14304_v40 = vld [vmem:[#allocation12 + $0xe6c] sm:$0xf0]  ;;  %v14012_v36 = vld [vmem:[#allocation12 + $0x554] sm:$0xf] }
 0x1fd   :  { %v10326_v41 = vld [vmem:[#allocation12 + $0x810] sm:$0xf]  ;;  %v11127_v50 = vor.u32 %v14304_v40, %v11126_v38  ;;  %3825 = vmatpush.bf16.msrb.mxu2 %v10871_v45  ;;  %v14076_v38 = vld [vmem:[#allocation12 + $0x754] sm:$0xf] }
 0x1fe   :  { %v14104_v9 = vld [vmem:[#allocation12 + $0x82c] sm:$0xf0]  ;;  %v10232_v40 = vld [vmem:[#allocation12 + $0x770] sm:$0xf0] }
 0x1ff   :  { %v10582_v46 = vld [vmem:[#allocation12 + $0xa10] sm:$0xf]  ;;  %v10327_v59 = vor.u32 %v14104_v9, %v10326_v41  ;;  %3839 = vmatpush.bf16.msrb.mxu3 %v11127_v50  ;;  %v9723_v41 = vor.u32 %v13948_v33, %v9720_v35  ;;  %v9979_v9 = vor.u32 %v14012_v36, %v9976_v37  ;;  %v13876_v42 = vld [vmem:[#allocation12 + $0x114] sm:$0xf] }
 0x200   :  { %v14168_v48 = vld [vmem:[#allocation12 + $0xa2c] sm:$0xf0]  ;;  %v9432_v45 = vld [vmem:[#allocation12 + $0x130] sm:$0xf0] }
 0x201   :  { %v10838_v49 = vld [vmem:[#allocation12 + $0xc10] sm:$0xf]  ;;  %v10583_v4 = vor.u32 %v14168_v48, %v10582_v46  ;;  %3798 = vmatpush.bf16.msrb.mxu0 %v10327_v59  ;;  %v13940_v46 = vld [vmem:[#allocation12 + $0x314] sm:$0xf]  ;;  %v10235_v48 = vor.u32 %v14076_v38, %v10232_v40  ;;  %v9435_v55 = vor.u32 %v13876_v42, %v9432_v45 }
 0x202   :  { %v14232_v51 = vld [vmem:[#allocation12 + $0xc2c] sm:$0xf0]  ;;  %v14004_v50 = vld [vmem:[#allocation12 + $0x514] sm:$0xf] }
 0x203   :  { %v11094_v52 = vld [vmem:[#allocation12 + $0xe10] sm:$0xf]  ;;  %v10839_v5 = vor.u32 %v14232_v51, %v10838_v49  ;;  %3812 = vmatpush.bf16.msrb.mxu1 %v10583_v4  ;;  %v9688_v49 = vld [vmem:[#allocation12 + $0x330] sm:$0xf0] }
 0x204   :  { %v14296_v53 = vld [vmem:[#allocation12 + $0xe2c] sm:$0xf0]  ;;  %3799 = vmatmul.bf16.vlgmr.msrb.gmra.mxu0 %v15338_v39  ;;  %v9944_v51 = vld [vmem:[#allocation12 + $0x530] sm:$0xf0]  ;;  %v9691_v57 = vor.u32 %v13940_v46, %v9688_v49 }
 0x205   :  { %v11095_v7 = vor.u32 %v14296_v53, %v11094_v52  ;;  %3826 = vmatpush.bf16.msrb.mxu2 %v10839_v5  ;;  %3847 = vmatpush.bf16.msra.mxu0 %v9531_v11  ;;  %v3576_v52 = vpop.f32.mrf.mxu0  ;;  %v14068_v53 = vld [vmem:[#allocation12 + $0x714] sm:$0xf]  ;;  %v9947_v59 = vor.u32 %v14004_v50, %v9944_v51 }
 0x206   :  { %3813 = vmatmul.bf16.vlgmr.msrb.gmra.mxu1 %v15342_v44  ;;  %v3577_v14 = vadd.f32 %v3576_v52, %v15409_v29  ;;  %v10203_v2 = vor.u32 %v14068_v53, %v10200_v54  ;;  %v9656_v5 = vld [vmem:[#allocation12 + $0x2f0] sm:$0xf0] }
 0x207   :  { %3840 = vmatpush.bf16.msrb.mxu3 %v11095_v7  ;;  %3861 = vmatpush.bf16.msra.mxu1 %v9787_v12  ;;  %v9912_v8 = vld [vmem:[#allocation12 + $0x4f0] sm:$0xf0]  ;;  %v9403_v12 = vor.u32 %v13868_v60, %v9400_v61  ;;  %v9659_v29 = vor.u32 %v13932_v62, %v9656_v5 }
 0x208   :  { %3827 = vmatmul.bf16.vlgmr.msrb.gmra.mxu2 %v15340_v43  ;;  %v3591_v4 = vadd.f32 %v3590_v56, %v3577_v14  ;;  %v14060_v7 = vld [vmem:[#allocation12 + $0x6d4] sm:$0xf] }
 0x209   :  { %3875 = vmatpush.bf16.msra.mxu2 %v10043_v13  ;;  %3848 = vmatpush.bf16.msra.mxu0 %v9499_v25  ;;  %v10168_v11 = vld [vmem:[#allocation12 + $0x6f0] sm:$0xf0]  ;;  %v9915_v13 = vor.u32 %v13996_v3, %v9912_v8 }
 0x20a   :  { %3841 = vmatmul.bf16.vlgmr.msrb.gmra.mxu3 %v15344_v47  ;;  %v13860_v16 = vld [vmem:[#allocation12 + $0x94] sm:$0xf]  ;;  %v3605_v24 = vadd.f32 %v3604_v63, %v3591_v4 }
 0x20b   :  { %3889 = vmatpush.bf16.msra.mxu3 %v10299_v18  ;;  %3862 = vmatpush.bf16.msra.mxu1 %v9755_v26  ;;  %v9368_v19 = vld [vmem:[#allocation12 + $0xb0] sm:$0xf0]  ;;  %v10171_v18 = vor.u32 %v14060_v7, %v10168_v11  ;;  %v3618_v26 = vpop.f32.mrf.mxu3 }
 0x20c   :  { %v13924_v21 = vld [vmem:[#allocation12 + $0x294] sm:$0xf]  ;;  %v9371_v33 = vor.u32 %v13860_v16, %v9368_v19  ;;  %v15419_v35 = vadd.f32 %v3618_v26, %v3605_v24 }
 0x20d   :  { %3876 = vmatpush.bf16.msra.mxu2 %v10011_v27  ;;  %3849 = vmatpush.bf16.msra.mxu0 %v9467_v32  ;;  %v9624_v20 = vld [vmem:[#allocation12 + $0x2b0] sm:$0xf0]  ;;  %v3578_v25 = vpop.f32.mrf.mxu0 }
 0x20e   :  { %v13988_v22 = vld [vmem:[#allocation12 + $0x494] sm:$0xf]  ;;  %v3579_v30 = vadd.f32 %v3578_v25, %v15411_v6  ;;  %v9627_v36 = vor.u32 %v13924_v21, %v9624_v20 }
 0x20f   :  { %3890 = vmatpush.bf16.msra.mxu3 %v10267_v34  ;;  %3863 = vmatpush.bf16.msra.mxu1 %v9723_v41  ;;  %v9880_v23 = vld [vmem:[#allocation12 + $0x4b0] sm:$0xf0]  ;;  %v3592_v34 = vpop.f32.mrf.mxu1 }
 0x210   :  { %v14052_v27 = vld [vmem:[#allocation12 + $0x694] sm:$0xf]  ;;  %v9883_v37 = vor.u32 %v13988_v22, %v9880_v23  ;;  %v4185_v22 = vmax.f32 %v15419_v35, 0.0 }
 0x211   :  { %3877 = vmatpush.bf16.msra.mxu2 %v9979_v9  ;;  %3850 = vmatpush.bf16.msra.mxu0 %v9435_v55  ;;  %v10136_v28 = vld [vmem:[#allocation12 + $0x6b0] sm:$0xf0]  ;;  %v3593_v9 = vadd.f32 %v3592_v34, %v3579_v30 }
 0x212   :  { %v13852_v38 = vld [vmem:[#allocation12 + $0x54] sm:$0xf]  ;;  %v10139_v41 = vor.u32 %v14052_v27, %v10136_v28 }
 0x213   :  { %3891 = vmatpush.bf16.msra.mxu3 %v10235_v48  ;;  %3864 = vmatpush.bf16.msra.mxu1 %v9691_v57  ;;  %v9336_v40 = vld [vmem:[#allocation12 + $0x70] sm:$0xf0]  ;;  %v3606_v57 = vpop.f32.mrf.mxu2 }
 0x214   :  { %v13916_v32 = vld [vmem:[#allocation12 + $0x254] sm:$0xf]  ;;  %v9339_v6 = vor.u32 %v13852_v38, %v9336_v40  ;;  %v3607_v62 = vadd.f32 %v3606_v57, %v3593_v9 }
 0x215   :  { %3878 = vmatpush.bf16.msra.mxu2 %v9947_v59  ;;  %3851 = vmatpush.bf16.msra.mxu0 %v9403_v12  ;;  %v9592_v42 = vld [vmem:[#allocation12 + $0x270] sm:$0xf0] }
 0x216   :  { %v13980_v45 = vld [vmem:[#allocation12 + $0x454] sm:$0xf]  ;;  %v9595_v52 = vor.u32 %v13916_v32, %v9592_v42 }
 0x217   :  { %3892 = vmatpush.bf16.msra.mxu3 %v10203_v2  ;;  %3865 = vmatpush.bf16.msra.mxu1 %v9659_v29  ;;  %v9848_v46 = vld [vmem:[#allocation12 + $0x470] sm:$0xf0]  ;;  %v3620_v2 = vpop.f32.mrf.mxu3 }
 0x218   :  { %v14044_v48 = vld [vmem:[#allocation12 + $0x654] sm:$0xf]  ;;  %v9851_v53 = vor.u32 %v13980_v45, %v9848_v46  ;;  %v3621_v29 = vadd.f32 %v3620_v2, %v3607_v62 }
 0x219   :  { %3879 = vmatpush.bf16.msra.mxu2 %v9915_v13  ;;  %v10104_v49 = vld [vmem:[#allocation12 + $0x670] sm:$0xf0]  ;;  %3852 = vmatpush.bf16.msra.mxu0 %v9371_v33 }
 0x21a   :  { %v13844_v50 = vld [vmem:[#allocation12 + $0x14] sm:$0xf]  ;;  %v10107_v56 = vor.u32 %v14044_v48, %v10104_v49  ;;  %v4193_v23 = vmax.f32 %v3621_v29, 0.0 }
 0x21b   :  { %3893 = vmatpush.bf16.msra.mxu3 %v10171_v18  ;;  %v9304_v51 = vld [vmem:[#allocation12 + $0x30] sm:$0xf0]  ;;  %3866 = vmatpush.bf16.msra.mxu1 %v9627_v36 }
 0x21c   :  { %v13908_v54 = vld [vmem:[#allocation12 + $0x214] sm:$0xf]  ;;  %v9307_v8 = vor.u32 %v13844_v50, %v9304_v51  ;;  %v15422_v36 = vpack.c.bf16 %v4193_v23, %v4185_v22 }
 0x21d   :  { %3880 = vmatpush.bf16.msra.mxu2 %v9883_v37  ;;  %v9560_v14 = vld [vmem:[#allocation12 + $0x230] sm:$0xf0]  ;;  %3853 = vmatpush.bf16.msra.mxu0 %v9339_v6 }
 0x21e   :  { %v13972_v55 = vld [vmem:[#allocation12 + $0x414] sm:$0xf]  ;;  %v9563_v13 = vor.u32 %v13908_v54, %v9560_v14 }
 0x21f   :  { %3894 = vmatpush.bf16.msra.mxu3 %v10139_v41  ;;  %v9816_v59 = vld [vmem:[#allocation12 + $0x430] sm:$0xf0]  ;;  %3867 = vmatpush.bf16.msra.mxu1 %v9595_v52  ;;  %v674_v52 = vperm.slane %v15406_v31, 3 }
 0x220   :  { %v14036_v60 = vld [vmem:[#allocation12 + $0x614] sm:$0xf]  ;;  %v9819_v16 = vor.u32 %v13972_v55, %v9816_v59 }
 0x221   :  { %v10072_v61 = vld [vmem:[#allocation12 + $0x630] sm:$0xf0]  ;;  %3881 = vmatpush.bf16.msra.mxu2 %v9851_v53  ;;  %3854 = vmatpush.bf16.msra.mxu0 %v9307_v8  ;;  %v3646_v8 = vpop.f32.mrf.mxu1 }
 0x222   :  { %v14156_v4 = vld [vmem:[#allocation12 + $0x9d4] sm:$0xf]  ;;  %v10075_v18 = vor.u32 %v14036_v60, %v10072_v61 }
 0x223   :  { %v10552_v5 = vld [vmem:[#allocation12 + $0x9f0] sm:$0xf0]  ;;  %3895 = vmatpush.bf16.msra.mxu3 %v10107_v56  ;;  %3868 = vmatpush.bf16.msra.mxu1 %v9563_v13 }
 0x224   :  { %v14220_v3 = vld [vmem:[#allocation12 + $0xbd4] sm:$0xf]  ;;  %v10555_v63 = vor.u32 %v14156_v4, %v10552_v5  ;;  %3855 = vmatmul.bf16.vlgmr.msra.gmra.mxu0 %v15326_v58  ;;  %v3632_v4 = vpop.f32.mrf.mxu0 }
 0x225   :  { %v10808_v7 = vld [vmem:[#allocation12 + $0xbf0] sm:$0xf0]  ;;  %3882 = vmatpush.bf16.msra.mxu2 %v9819_v16 }
 0x226   :  { %v14284_v11 = vld [vmem:[#allocation12 + $0xdd4] sm:$0xf]  ;;  %v10811_v24 = vor.u32 %v14220_v3, %v10808_v7  ;;  %3903 = vmatpush.bf16.msrb.mxu0 %v10555_v63  ;;  %3869 = vmatmul.bf16.vlgmr.msra.gmra.mxu1 %v15332_v10  ;;  %v3633_v3 = vadd.f32 %v3632_v4, %v674_v52 }
 0x227   :  { %v11064_v12 = vld [vmem:[#allocation12 + $0xdf0] sm:$0xf0]  ;;  %3896 = vmatpush.bf16.msra.mxu3 %v10075_v18 }
 0x228   :  { %v14348_v19 = vld [vmem:[#allocation12 + $0xfd4] sm:$0xf]  ;;  %v11067_v25 = vor.u32 %v14284_v11, %v11064_v12  ;;  %3917 = vmatpush.bf16.msrb.mxu1 %v10811_v24  ;;  %3883 = vmatmul.bf16.vlgmr.msra.gmra.mxu2 %v15328_v1  ;;  %v3647_v18 = vadd.f32 %v3646_v8, %v3633_v3 }
 0x229   :  { %v11320_v21 = vld [vmem:[#allocation12 + $0xff0] sm:$0xf0] }
 0x22a   :  { %v14148_v20 = vld [vmem:[#allocation12 + $0x994] sm:$0xf]  ;;  %v11323_v28 = vor.u32 %v14348_v19, %v11320_v21  ;;  %3931 = vmatpush.bf16.msrb.mxu2 %v11067_v25  ;;  %3897 = vmatmul.bf16.vlgmr.msra.gmra.mxu3 %v15334_v17 }
 0x22b   :  { %v10520_v26 = vld [vmem:[#allocation12 + $0x9b0] sm:$0xf0] }
 0x22c   :  { %v14212_v27 = vld [vmem:[#allocation12 + $0xb94] sm:$0xf]  ;;  %v10523_v40 = vor.u32 %v14148_v20, %v10520_v26  ;;  %3945 = vmatpush.bf16.msrb.mxu3 %v11323_v28 }
 0x22d   :  { %v10776_v30 = vld [vmem:[#allocation12 + $0xbb0] sm:$0xf0] }
 0x22e   :  { %v14276_v33 = vld [vmem:[#allocation12 + $0xd94] sm:$0xf]  ;;  %v10779_v35 = vor.u32 %v14212_v27, %v10776_v30  ;;  %3904 = vmatpush.bf16.msrb.mxu0 %v10523_v40 }
 0x22f   :  { %v11032_v34 = vld [vmem:[#allocation12 + $0xdb0] sm:$0xf0] }
 0x230   :  { %v14340_v37 = vld [vmem:[#allocation12 + $0xf94] sm:$0xf]  ;;  %v11035_v32 = vor.u32 %v14276_v33, %v11032_v34  ;;  %3918 = vmatpush.bf16.msrb.mxu1 %v10779_v35 }
 0x231   :  { %v11288_v38 = vld [vmem:[#allocation12 + $0xfb0] sm:$0xf0] }
 0x232   :  { %v14140_v41 = vld [vmem:[#allocation12 + $0x954] sm:$0xf]  ;;  %v11291_v45 = vor.u32 %v14340_v37, %v11288_v38  ;;  %3932 = vmatpush.bf16.msrb.mxu2 %v11035_v32  ;;  %v3660_v37 = vpop.f32.mrf.mxu2  ;;  %v3634_v32 = vpop.f32.mrf.mxu0 }
 0x233   :  { %v10488_v9 = vld [vmem:[#allocation12 + $0x970] sm:$0xf0]  ;;  %v3661_v35 = vadd.f32 %v3660_v37, %v3647_v18  ;;  %v13969_v18 = vld [vmem:[#allocation12 + $0x3f4] sm:$0xf0] }
 0x234   :  { %v14204_v42 = vld [vmem:[#allocation12 + $0xb54] sm:$0xf]  ;;  %v10491_v51 = vor.u32 %v14140_v41, %v10488_v9  ;;  %3946 = vmatpush.bf16.msrb.mxu3 %v11291_v45  ;;  %v3674_v41 = vpop.f32.mrf.mxu3  ;;  %v9502_v37 = vld [vmem:[#allocation12 + $0x198] sm:$0xf] }
 0x235   :  { %v10744_v46 = vld [vmem:[#allocation12 + $0xb70] sm:$0xf0] }
 0x236   :  { %v14268_v48 = vld [vmem:[#allocation12 + $0xd54] sm:$0xf]  ;;  %v10747_v53 = vor.u32 %v14204_v42, %v10744_v46  ;;  %3905 = vmatpush.bf16.msrb.mxu0 %v10491_v51  ;;  %v3635_v42 = vadd.f32 %v3634_v32, %v674_v52  ;;  %v3648_v51 = vpop.f32.mrf.mxu1  ;;  %v13961_v32 = vld [vmem:[#allocation12 + $0x3b4] sm:$0xf0] }
 0x237   :  { %v11000_v49 = vld [vmem:[#allocation12 + $0xd70] sm:$0xf0] }
 0x238   :  { %v14332_v6 = vld [vmem:[#allocation12 + $0xf54] sm:$0xf]  ;;  %v11003_v54 = vor.u32 %v14268_v48, %v11000_v49  ;;  %3919 = vmatpush.bf16.msrb.mxu1 %v10747_v53 }
 0x239   :  { %v11256_v50 = vld [vmem:[#allocation12 + $0xf70] sm:$0xf0] }
 0x23a   :  { %v14132_v14 = vld [vmem:[#allocation12 + $0x914] sm:$0xf]  ;;  %v11259_v57 = vor.u32 %v14332_v6, %v11256_v50  ;;  %3933 = vmatpush.bf16.msrb.mxu2 %v11003_v54  ;;  %v15429_v50 = vadd.f32 %v3674_v41, %v3661_v35  ;;  %v10014_v41 = vld [vmem:[#allocation12 + $0x598] sm:$0xf] }
 0x23b   :  { %v10456_v55 = vld [vmem:[#allocation12 + $0x930] sm:$0xf0] }
 0x23c   :  { %v14196_v56 = vld [vmem:[#allocation12 + $0xb14] sm:$0xf]  ;;  %v10459_v5 = vor.u32 %v14132_v14, %v10456_v55  ;;  %3947 = vmatpush.bf16.msrb.mxu3 %v11259_v57 }
 0x23d   :  { %v10712_v59 = vld [vmem:[#allocation12 + $0xb30] sm:$0xf0] }
 0x23e   :  { %v14260_v60 = vld [vmem:[#allocation12 + $0xd14] sm:$0xf]  ;;  %v10715_v31 = vor.u32 %v14196_v56, %v10712_v59  ;;  %3906 = vmatpush.bf16.msrb.mxu0 %v10459_v5  ;;  %v3649_v56 = vadd.f32 %v3648_v51, %v3635_v42  ;;  %v10270_v42 = vld [vmem:[#allocation12 + $0x798] sm:$0xf] }
 0x23f   :  { %v10968_v61 = vld [vmem:[#allocation12 + $0xd30] sm:$0xf0]  ;;  %v13889_v51 = vld [vmem:[#allocation12 + $0x174] sm:$0xf0] }
 0x240   :  { %v14324_v62 = vld [vmem:[#allocation12 + $0xf14] sm:$0xf]  ;;  %v10971_v7 = vor.u32 %v14260_v60, %v10968_v61  ;;  %3920 = vmatpush.bf16.msrb.mxu1 %v10715_v31 }
 0x241   :  { %v11224_v2 = vld [vmem:[#allocation12 + $0xf30] sm:$0xf0] }
 0x242   :  { %v14124_v11 = vld [vmem:[#allocation12 + $0x8d4] sm:$0xf]  ;;  %v11227_v13 = vor.u32 %v14324_v62, %v11224_v2  ;;  %3934 = vmatpush.bf16.msrb.mxu2 %v10971_v7 }
 0x243   :  { %v10424_v12 = vld [vmem:[#allocation12 + $0x8f0] sm:$0xf0] }
 0x244   :  { %v14188_v29 = vld [vmem:[#allocation12 + $0xad4] sm:$0xf]  ;;  %v10427_v22 = vor.u32 %v14124_v11, %v10424_v12  ;;  %3948 = vmatpush.bf16.msrb.mxu3 %v11227_v13  ;;  %v3662_v12 = vpop.f32.mrf.mxu2  ;;  %v13905_v13 = vld [vmem:[#allocation12 + $0x1f4] sm:$0xf0] }
 0x245   :  { %v10680_v16 = vld [vmem:[#allocation12 + $0xaf0] sm:$0xf0] }
 0x246   :  { %v14252_v19 = vld [vmem:[#allocation12 + $0xcd4] sm:$0xf]  ;;  %v10683_v23 = vor.u32 %v14188_v29, %v10680_v16  ;;  %3907 = vmatpush.bf16.msrb.mxu0 %v10427_v22  ;;  %v9534_v29 = vld [vmem:[#allocation12 + $0x1d8] sm:$0xf]  ;;  %v3676_v22 = vpop.f32.mrf.mxu3 }
 0x247   :  { %v10936_v21 = vld [vmem:[#allocation12 + $0xcf0] sm:$0xf0]  ;;  %v9790_v16 = vld [vmem:[#allocation12 + $0x3d8] sm:$0xf] }
 0x248   :  { %v14316_v63 = vld [vmem:[#allocation12 + $0xed4] sm:$0xf]  ;;  %v10939_v24 = vor.u32 %v14252_v19, %v10936_v21  ;;  %3921 = vmatpush.bf16.msrb.mxu1 %v10683_v23  ;;  %v3663_v19 = vadd.f32 %v3662_v12, %v3649_v56  ;;  %v14017_v56 = vld [vmem:[#allocation12 + $0x574] sm:$0xf0] }
 0x249   :  { %v11192_v20 = vld [vmem:[#allocation12 + $0xef0] sm:$0xf0]  ;;  %v14073_v12 = vld [vmem:[#allocation12 + $0x734] sm:$0xf0] }
 0x24a   :  { %v14116_v25 = vld [vmem:[#allocation12 + $0x894] sm:$0xf]  ;;  %v11195_v28 = vor.u32 %v14316_v63, %v11192_v20  ;;  %3935 = vmatpush.bf16.msrb.mxu2 %v10939_v24  ;;  %v10046_v63 = vld [vmem:[#allocation12 + $0x5d8] sm:$0xf] }
 0x24b   :  { %v10392_v26 = vld [vmem:[#allocation12 + $0x8b0] sm:$0xf0]  ;;  %v14033_v20 = vld [vmem:[#allocation12 + $0x5f4] sm:$0xf0] }
 0x24c   :  { %v14180_v27 = vld [vmem:[#allocation12 + $0xa94] sm:$0xf]  ;;  %v10395_v9 = vor.u32 %v14116_v25, %v10392_v26  ;;  %3949 = vmatpush.bf16.msrb.mxu3 %v11195_v28  ;;  %v10302_v25 = vld [vmem:[#allocation12 + $0x7d8] sm:$0xf] }
 0x24d   :  { %v10648_v30 = vld [vmem:[#allocation12 + $0xab0] sm:$0xf0]  ;;  %v14097_v26 = vld [vmem:[#allocation12 + $0x7f4] sm:$0xf0] }
 0x24e   :  { %v14244_v33 = vld [vmem:[#allocation12 + $0xc94] sm:$0xf]  ;;  %v10651_v45 = vor.u32 %v14180_v27, %v10648_v30  ;;  %3908 = vmatpush.bf16.msrb.mxu0 %v10395_v9  ;;  %v15431_v27 = vadd.f32 %v3676_v22, %v3663_v19  ;;  %v9535_v30 = vor.u32 %v13905_v13, %v9534_v29  ;;  %v10303_v35 = vor.u32 %v14097_v26, %v10302_v25  ;;  %v14025_v9 = vld [vmem:[#allocation12 + $0x5b4] sm:$0xf0] }
 0x24f   :  { %v10904_v34 = vld [vmem:[#allocation12 + $0xcb0] sm:$0xf0]  ;;  %v9918_v25 = vld [vmem:[#allocation12 + $0x4d8] sm:$0xf] }
 0x250   :  { %v14308_v38 = vld [vmem:[#allocation12 + $0xe94] sm:$0xf]  ;;  %v10907_v46 = vor.u32 %v14244_v33, %v10904_v34  ;;  %3922 = vmatpush.bf16.msrb.mxu1 %v10651_v45  ;;  %v9791_v33 = vor.u32 %v13969_v18, %v9790_v16  ;;  %v10047_v34 = vor.u32 %v14033_v20, %v10046_v63  ;;  %v14089_v45 = vld [vmem:[#allocation12 + $0x7b4] sm:$0xf0]  ;;  %v3702_v16 = vpop.f32.mrf.mxu1 }
 0x251   :  { %v11160_v40 = vld [vmem:[#allocation12 + $0xeb0] sm:$0xf0]  ;;  %v9406_v18 = vld [vmem:[#allocation12 + $0xd8] sm:$0xf] }
 0x252   :  { %v14108_v48 = vld [vmem:[#allocation12 + $0x854] sm:$0xf]  ;;  %v11163_v53 = vor.u32 %v14308_v38, %v11160_v40  ;;  %3936 = vmatpush.bf16.msrb.mxu2 %v10907_v46  ;;  %v13897_v38 = vld [vmem:[#allocation12 + $0x1b4] sm:$0xf0] }
 0x253   :  { %v10360_v49 = vld [vmem:[#allocation12 + $0x870] sm:$0xf0]  ;;  %v9758_v40 = vld [vmem:[#allocation12 + $0x398] sm:$0xf]  ;;  %v9503_v46 = vor.u32 %v13897_v38, %v9502_v37 }
 0x254   :  { %v14172_v6 = vld [vmem:[#allocation12 + $0xa54] sm:$0xf]  ;;  %v10363_v52 = vor.u32 %v14108_v48, %v10360_v49  ;;  %3950 = vmatpush.bf16.msrb.mxu3 %v11163_v53  ;;  %v9759_v48 = vor.u32 %v13961_v32, %v9758_v40  ;;  %v10015_v49 = vor.u32 %v14025_v9, %v10014_v41  ;;  %v9726_v53 = vld [vmem:[#allocation12 + $0x358] sm:$0xf]  ;;  %v3716_v32 = vpop.f32.mrf.mxu2 }
 0x255   :  { %v10616_v54 = vld [vmem:[#allocation12 + $0xa70] sm:$0xf0]  ;;  %v13873_v63 = vld [vmem:[#allocation12 + $0xf4] sm:$0xf0] }
 0x256   :  { %v14236_v14 = vld [vmem:[#allocation12 + $0xc54] sm:$0xf]  ;;  %v10619_v62 = vor.u32 %v14172_v6, %v10616_v54  ;;  %3909 = vmatpush.bf16.msrb.mxu0 %v10363_v52  ;;  %v9470_v6 = vld [vmem:[#allocation12 + $0x158] sm:$0xf]  ;;  %v10271_v54 = vor.u32 %v14089_v45, %v10270_v42 }
 0x257   :  { %v10872_v55 = vld [vmem:[#allocation12 + $0xc70] sm:$0xf0]  ;;  %v9471_v52 = vor.u32 %v13889_v51, %v9470_v6  ;;  %v9662_v20 = vld [vmem:[#allocation12 + $0x2d8] sm:$0xf] }
 0x258   :  { %v14300_v57 = vld [vmem:[#allocation12 + $0xe54] sm:$0xf]  ;;  %v10875_v2 = vor.u32 %v14236_v14, %v10872_v55  ;;  %3923 = vmatpush.bf16.msrb.mxu1 %v10619_v62  ;;  %v13953_v14 = vld [vmem:[#allocation12 + $0x374] sm:$0xf0] }
 0x259   :  { %v11128_v59 = vld [vmem:[#allocation12 + $0xe70] sm:$0xf0]  ;;  %v9982_v55 = vld [vmem:[#allocation12 + $0x558] sm:$0xf] }
 0x25a   :  { %v14100_v60 = vld [vmem:[#allocation12 + $0x814] sm:$0xf]  ;;  %v11131_v8 = vor.u32 %v14300_v57, %v11128_v59  ;;  %3937 = vmatpush.bf16.msrb.mxu2 %v10875_v2  ;;  %v10238_v57 = vld [vmem:[#allocation12 + $0x758] sm:$0xf] }
 0x25b   :  { %v10328_v61 = vld [vmem:[#allocation12 + $0x830] sm:$0xf0]  ;;  %v14081_v59 = vld [vmem:[#allocation12 + $0x774] sm:$0xf0] }
 0x25c   :  { %v14164_v4 = vld [vmem:[#allocation12 + $0xa14] sm:$0xf]  ;;  %v10331_v21 = vor.u32 %v14100_v60, %v10328_v61  ;;  %3951 = vmatpush.bf16.msrb.mxu3 %v11131_v8  ;;  %v9727_v60 = vor.u32 %v13953_v14, %v9726_v53  ;;  %v9983_v61 = vor.u32 %v14017_v56, %v9982_v55  ;;  %v9438_v62 = vld [vmem:[#allocation12 + $0x118] sm:$0xf] }
 0x25d   :  { %v10584_v5 = vld [vmem:[#allocation12 + $0xa30] sm:$0xf0]  ;;  %v13881_v2 = vld [vmem:[#allocation12 + $0x134] sm:$0xf0] }
 0x25e   :  { %v14228_v3 = vld [vmem:[#allocation12 + $0xc14] sm:$0xf]  ;;  %v10587_v23 = vor.u32 %v14164_v4, %v10584_v5  ;;  %3910 = vmatpush.bf16.msrb.mxu0 %v10331_v21  ;;  %v9694_v4 = vld [vmem:[#allocation12 + $0x318] sm:$0xf]  ;;  %v10239_v5 = vor.u32 %v14081_v59, %v10238_v57  ;;  %v9439_v13 = vor.u32 %v13881_v2, %v9438_v62 }
 0x25f   :  { %v10840_v31 = vld [vmem:[#allocation12 + $0xc30] sm:$0xf0]  ;;  %v9950_v8 = vld [vmem:[#allocation12 + $0x518] sm:$0xf] }
 0x260   :  { %v14292_v7 = vld [vmem:[#allocation12 + $0xe14] sm:$0xf]  ;;  %v10843_v24 = vor.u32 %v14228_v3, %v10840_v31  ;;  %3924 = vmatpush.bf16.msrb.mxu1 %v10587_v23  ;;  %v13945_v3 = vld [vmem:[#allocation12 + $0x334] sm:$0xf0] }
 0x261   :  { %v11096_v11 = vld [vmem:[#allocation12 + $0xe30] sm:$0xf0]  ;;  %3911 = vmatmul.bf16.vlgmr.msrb.gmra.mxu0 %v15338_v39  ;;  %v14009_v31 = vld [vmem:[#allocation12 + $0x534] sm:$0xf0]  ;;  %v9695_v19 = vor.u32 %v13945_v3, %v9694_v4 }
 0x262   :  { %v11099_v28 = vor.u32 %v14292_v7, %v11096_v11  ;;  %3938 = vmatpush.bf16.msrb.mxu2 %v10843_v24  ;;  %3959 = vmatpush.bf16.msra.mxu0 %v9535_v30  ;;  %v3688_v7 = vpop.f32.mrf.mxu0  ;;  %v10206_v11 = vld [vmem:[#allocation12 + $0x718] sm:$0xf]  ;;  %v9951_v21 = vor.u32 %v14009_v31, %v9950_v8 }
 0x263   :  { %3925 = vmatmul.bf16.vlgmr.msrb.gmra.mxu1 %v15342_v44  ;;  %v3689_v29 = vadd.f32 %v3688_v7, %v15429_v50  ;;  %v10207_v22 = vor.u32 %v14073_v12, %v10206_v11  ;;  %v13937_v24 = vld [vmem:[#allocation12 + $0x2f4] sm:$0xf0] }
 0x264   :  { %3952 = vmatpush.bf16.msrb.mxu3 %v11099_v28  ;;  %3973 = vmatpush.bf16.msra.mxu1 %v9791_v33  ;;  %v14001_v26 = vld [vmem:[#allocation12 + $0x4f4] sm:$0xf0]  ;;  %v9407_v33 = vor.u32 %v13873_v63, %v9406_v18  ;;  %v9663_v50 = vor.u32 %v13937_v24, %v9662_v20 }
 0x265   :  { %3939 = vmatmul.bf16.vlgmr.msrb.gmra.mxu2 %v15340_v43  ;;  %v3703_v23 = vadd.f32 %v3702_v16, %v3689_v29  ;;  %v10174_v28 = vld [vmem:[#allocation12 + $0x6d8] sm:$0xf] }
 0x266   :  { %3987 = vmatpush.bf16.msra.mxu2 %v10047_v34  ;;  %3960 = vmatpush.bf16.msra.mxu0 %v9503_v46  ;;  %v14065_v30 = vld [vmem:[#allocation12 + $0x6f4] sm:$0xf0]  ;;  %v9919_v34 = vor.u32 %v14001_v26, %v9918_v25 }
 0x267   :  { %3953 = vmatmul.bf16.vlgmr.msrb.gmra.mxu3 %v15344_v47  ;;  %v9374_v37 = vld [vmem:[#allocation12 + $0x98] sm:$0xf]  ;;  %v3717_v45 = vadd.f32 %v3716_v32, %v3703_v23 }
 0x268   :  { %4001 = vmatpush.bf16.msra.mxu3 %v10303_v35  ;;  %3974 = vmatpush.bf16.msra.mxu1 %v9759_v48  ;;  %v13865_v38 = vld [vmem:[#allocation12 + $0xb4] sm:$0xf0]  ;;  %v10175_v35 = vor.u32 %v14065_v30, %v10174_v28  ;;  %v3730_v48 = vpop.f32.mrf.mxu3 }
 0x269   :  { %v9630_v40 = vld [vmem:[#allocation12 + $0x298] sm:$0xf]  ;;  %v9375_v53 = vor.u32 %v13865_v38, %v9374_v37  ;;  %v15439_v14 = vadd.f32 %v3730_v48, %v3717_v45 }
 0x26a   :  { %3988 = vmatpush.bf16.msra.mxu2 %v10015_v49  ;;  %3961 = vmatpush.bf16.msra.mxu0 %v9471_v52  ;;  %v13929_v41 = vld [vmem:[#allocation12 + $0x2b4] sm:$0xf0]  ;;  %v3690_v46 = vpop.f32.mrf.mxu0 }
 0x26b   :  { %v9886_v9 = vld [vmem:[#allocation12 + $0x498] sm:$0xf]  ;;  %v3691_v51 = vadd.f32 %v3690_v46, %v15431_v27  ;;  %v9631_v55 = vor.u32 %v13929_v41, %v9630_v40 }
 0x26c   :  { %4002 = vmatpush.bf16.msra.mxu3 %v10271_v54  ;;  %3975 = vmatpush.bf16.msra.mxu1 %v9727_v60  ;;  %v13993_v42 = vld [vmem:[#allocation12 + $0x4b4] sm:$0xf0]  ;;  %v3704_v54 = vpop.f32.mrf.mxu1 }
 0x26d   :  { %v10142_v49 = vld [vmem:[#allocation12 + $0x698] sm:$0xf]  ;;  %v9887_v56 = vor.u32 %v13993_v42, %v9886_v9  ;;  %v4186_v9 = vmax.f32 %v15439_v14, 0.0 }
 0x26e   :  { %3989 = vmatpush.bf16.msra.mxu2 %v9983_v61  ;;  %3962 = vmatpush.bf16.msra.mxu0 %v9439_v13  ;;  %v14057_v6 = vld [vmem:[#allocation12 + $0x6b4] sm:$0xf0]  ;;  %v3705_v61 = vadd.f32 %v3704_v54, %v3691_v51 }
 0x26f   :  { %v9342_v57 = vld [vmem:[#allocation12 + $0x58] sm:$0xf]  ;;  %v10143_v60 = vor.u32 %v14057_v6, %v10142_v49 }
 0x270   :  { %4003 = vmatpush.bf16.msra.mxu3 %v10239_v5  ;;  %3976 = vmatpush.bf16.msra.mxu1 %v9695_v19  ;;  %v13857_v59 = vld [vmem:[#allocation12 + $0x74] sm:$0xf0]  ;;  %v3718_v19 = vpop.f32.mrf.mxu2 }
 0x271   :  { %v9598_v52 = vld [vmem:[#allocation12 + $0x258] sm:$0xf]  ;;  %v9343_v27 = vor.u32 %v13857_v59, %v9342_v57  ;;  %v3719_v20 = vadd.f32 %v3718_v19, %v3705_v61 }
 0x272   :  { %3990 = vmatpush.bf16.msra.mxu2 %v9951_v21  ;;  %3963 = vmatpush.bf16.msra.mxu0 %v9407_v33  ;;  %v13921_v62 = vld [vmem:[#allocation12 + $0x274] sm:$0xf0] }
 0x273   :  { %v9854_v2 = vld [vmem:[#allocation12 + $0x458] sm:$0xf]  ;;  %v9599_v7 = vor.u32 %v13921_v62, %v9598_v52 }
 0x274   :  { %4004 = vmatpush.bf16.msra.mxu3 %v10207_v22  ;;  %3977 = vmatpush.bf16.msra.mxu1 %v9663_v50  ;;  %v13985_v4 = vld [vmem:[#allocation12 + $0x474] sm:$0xf0]  ;;  %v3732_v22 = vpop.f32.mrf.mxu3 }
 0x275   :  { %v10110_v5 = vld [vmem:[#allocation12 + $0x658] sm:$0xf]  ;;  %v9855_v11 = vor.u32 %v13985_v4, %v9854_v2  ;;  %v3733_v50 = vadd.f32 %v3732_v22, %v3719_v20 }
 0x276   :  { %3991 = vmatpush.bf16.msra.mxu2 %v9919_v34  ;;  %v14049_v3 = vld [vmem:[#allocation12 + $0x674] sm:$0xf0]  ;;  %3964 = vmatpush.bf16.msra.mxu0 %v9375_v53 }
 0x277   :  { %v9310_v8 = vld [vmem:[#allocation12 + $0x18] sm:$0xf]  ;;  %v10111_v16 = vor.u32 %v14049_v3, %v10110_v5  ;;  %v4194_v42 = vmax.f32 %v3733_v50, 0.0 }
 0x278   :  { %4005 = vmatpush.bf16.msra.mxu3 %v10175_v35  ;;  %v13849_v31 = vld [vmem:[#allocation12 + $0x34] sm:$0xf0]  ;;  %3978 = vmatpush.bf16.msra.mxu1 %v9631_v55 }
 0x279   :  { %v9566_v12 = vld [vmem:[#allocation12 + $0x218] sm:$0xf]  ;;  %v9311_v26 = vor.u32 %v13849_v31, %v9310_v8  ;;  %v15442_v55 = vpack.c.bf16 %v4194_v42, %v4186_v9 }
 0x27a   :  { %3992 = vmatpush.bf16.msra.mxu2 %v9887_v56  ;;  %v13913_v29 = vld [vmem:[#allocation12 + $0x234] sm:$0xf0]  ;;  %3965 = vmatpush.bf16.msra.mxu0 %v9343_v27 }
 0x27b   :  { %v9822_v13 = vld [vmem:[#allocation12 + $0x418] sm:$0xf]  ;;  %v9567_v34 = vor.u32 %v13913_v29, %v9566_v12 }
 0x27c   :  { %4006 = vmatpush.bf16.msra.mxu3 %v10143_v60  ;;  %v13977_v21 = vld [vmem:[#allocation12 + $0x434] sm:$0xf0]  ;;  %3979 = vmatpush.bf16.msra.mxu1 %v9599_v7  ;;  %v15448_v7 = vld [vmem:[#allocation14] sm:$0xff] }
 0x27d   :  { %v10078_v18 = vld [vmem:[#allocation12 + $0x618] sm:$0xf]  ;;  %v9823_v37 = vor.u32 %v13977_v21, %v9822_v13 }
 0x27e   :  { %v14041_v63 = vld [vmem:[#allocation12 + $0x634] sm:$0xf0]  ;;  %3993 = vmatpush.bf16.msra.mxu2 %v9855_v11  ;;  %3966 = vmatpush.bf16.msra.mxu0 %v9311_v26  ;;  %v675_v11 = vperm.slane %v15448_v7, 4 }
 0x27f   :  { %v10558_v23 = vld [vmem:[#allocation12 + $0x9d8] sm:$0xf]  ;;  %v10079_v35 = vor.u32 %v14041_v63, %v10078_v18 }
 0x280   :  { %v14161_v24 = vld [vmem:[#allocation12 + $0x9f4] sm:$0xf0]  ;;  %4007 = vmatpush.bf16.msra.mxu3 %v10111_v16  ;;  %3980 = vmatpush.bf16.msra.mxu1 %v9567_v34 }
 0x281   :  { %v10814_v25 = vld [vmem:[#allocation12 + $0xbd8] sm:$0xf]  ;;  %v10559_v32 = vor.u32 %v14161_v24, %v10558_v23  ;;  %3967 = vmatmul.bf16.vlgmr.msra.gmra.mxu0 %v15326_v58  ;;  %v3744_v24 = vpop.f32.mrf.mxu0 }
 0x282   :  { %v14225_v28 = vld [vmem:[#allocation12 + $0xbf4] sm:$0xf0]  ;;  %3994 = vmatpush.bf16.msra.mxu2 %v9823_v37  ;;  %v3745_v26 = vadd.f32 %v3744_v24, %v675_v11 }
 0x283   :  { %v11070_v30 = vld [vmem:[#allocation12 + $0xdd8] sm:$0xf]  ;;  %v10815_v45 = vor.u32 %v14225_v28, %v10814_v25  ;;  %4015 = vmatpush.bf16.msrb.mxu0 %v10559_v32  ;;  %3981 = vmatmul.bf16.vlgmr.msra.gmra.mxu1 %v15332_v10  ;;  %v3758_v28 = vpop.f32.mrf.mxu1 }
 0x284   :  { %v14289_v33 = vld [vmem:[#allocation12 + $0xdf4] sm:$0xf0]  ;;  %4008 = vmatpush.bf16.msra.mxu3 %v10079_v35 }
 0x285   :  { %v11326_v38 = vld [vmem:[#allocation12 + $0xfd8] sm:$0xf]  ;;  %v11071_v46 = vor.u32 %v14289_v33, %v11070_v30  ;;  %4029 = vmatpush.bf16.msrb.mxu1 %v10815_v45  ;;  %3995 = vmatmul.bf16.vlgmr.msra.gmra.mxu2 %v15328_v1 }
 0x286   :  { %v14353_v40 = vld [vmem:[#allocation12 + $0xff4] sm:$0xf0] }
 0x287   :  { %v10526_v41 = vld [vmem:[#allocation12 + $0x998] sm:$0xf]  ;;  %v11327_v6 = vor.u32 %v14353_v40, %v11326_v38  ;;  %4043 = vmatpush.bf16.msrb.mxu2 %v11071_v46  ;;  %4009 = vmatmul.bf16.vlgmr.msra.gmra.mxu3 %v15334_v17 }
 0x288   :  { %v14153_v48 = vld [vmem:[#allocation12 + $0x9b4] sm:$0xf0] }
 0x289   :  { %v10782_v49 = vld [vmem:[#allocation12 + $0xb98] sm:$0xf]  ;;  %v10527_v59 = vor.u32 %v14153_v48, %v10526_v41  ;;  %4057 = vmatpush.bf16.msrb.mxu3 %v11327_v6  ;;  %v3759_v41 = vadd.f32 %v3758_v28, %v3745_v26 }
 0x28a   :  { %v14217_v51 = vld [vmem:[#allocation12 + $0xbb4] sm:$0xf0] }
 0x28b   :  { %v11038_v53 = vld [vmem:[#allocation12 + $0xd98] sm:$0xf]  ;;  %v10783_v14 = vor.u32 %v14217_v51, %v10782_v49  ;;  %4016 = vmatpush.bf16.msrb.mxu0 %v10527_v59  ;;  %v3772_v59 = vpop.f32.mrf.mxu2 }
 0x28c   :  { %v14281_v54 = vld [vmem:[#allocation12 + $0xdb4] sm:$0xf0] }
 0x28d   :  { %v11294_v56 = vld [vmem:[#allocation12 + $0xf98] sm:$0xf]  ;;  %v11039_v52 = vor.u32 %v14281_v54, %v11038_v53  ;;  %4030 = vmatpush.bf16.msrb.mxu1 %v10783_v14 }
 0x28e   :  { %v14345_v57 = vld [vmem:[#allocation12 + $0xfb4] sm:$0xf0] }
 0x28f   :  { %v10494_v60 = vld [vmem:[#allocation12 + $0x958] sm:$0xf]  ;;  %v11295_v2 = vor.u32 %v14345_v57, %v11294_v56  ;;  %4044 = vmatpush.bf16.msrb.mxu2 %v11039_v52 }
 0x290   :  { %v14145_v61 = vld [vmem:[#allocation12 + $0x974] sm:$0xf0] }
 0x291   :  { %v10750_v62 = vld [vmem:[#allocation12 + $0xb58] sm:$0xf]  ;;  %v10495_v31 = vor.u32 %v14145_v61, %v10494_v60  ;;  %4058 = vmatpush.bf16.msrb.mxu3 %v11295_v2  ;;  %v3773_v60 = vadd.f32 %v3772_v59, %v3759_v41  ;;  %v3746_v61 = vpop.f32.mrf.mxu0 }
 0x292   :  { %v14209_v4 = vld [vmem:[#allocation12 + $0xb74] sm:$0xf0] }
 0x293   :  { %v11006_v5 = vld [vmem:[#allocation12 + $0xd58] sm:$0xf]  ;;  %v10751_v12 = vor.u32 %v14209_v4, %v10750_v62  ;;  %4017 = vmatpush.bf16.msrb.mxu0 %v10495_v31  ;;  %v3786_v62 = vpop.f32.mrf.mxu3  ;;  %v3747_v4 = vadd.f32 %v3746_v61, %v675_v11  ;;  %v13957_v61 = vld [vmem:[#allocation12 + $0x39c] sm:$0xf] }
 0x294   :  { %v14273_v3 = vld [vmem:[#allocation12 + $0xd74] sm:$0xf0] }
 0x295   :  { %v11262_v27 = vld [vmem:[#allocation12 + $0xf58] sm:$0xf]  ;;  %v11007_v29 = vor.u32 %v14273_v3, %v11006_v5  ;;  %4031 = vmatpush.bf16.msrb.mxu1 %v10751_v12  ;;  %v15451_v12 = vadd.f32 %v3786_v62, %v3773_v60  ;;  %v9504_v60 = vld [vmem:[#allocation12 + $0x1b8] sm:$0xf0] }
 0x296   :  { %v14337_v8 = vld [vmem:[#allocation12 + $0xf74] sm:$0xf0] }
 0x297   :  { %v10462_v13 = vld [vmem:[#allocation12 + $0x918] sm:$0xf]  ;;  %v11263_v21 = vor.u32 %v14337_v8, %v11262_v27  ;;  %4045 = vmatpush.bf16.msrb.mxu2 %v11007_v29  ;;  %v3760_v29 = vpop.f32.mrf.mxu1 }
 0x298   :  { %v14137_v16 = vld [vmem:[#allocation12 + $0x934] sm:$0xf0] }
 0x299   :  { %v10718_v19 = vld [vmem:[#allocation12 + $0xb18] sm:$0xf]  ;;  %v10463_v25 = vor.u32 %v14137_v16, %v10462_v13  ;;  %4059 = vmatpush.bf16.msrb.mxu3 %v11263_v21 }
 0x29a   :  { %v14201_v18 = vld [vmem:[#allocation12 + $0xb34] sm:$0xf0] }
 0x29b   :  { %v10974_v63 = vld [vmem:[#allocation12 + $0xd18] sm:$0xf]  ;;  %v10719_v30 = vor.u32 %v14201_v18, %v10718_v19  ;;  %4018 = vmatpush.bf16.msrb.mxu0 %v10463_v25  ;;  %v3761_v18 = vadd.f32 %v3760_v29, %v3747_v4  ;;  %v14021_v4 = vld [vmem:[#allocation12 + $0x59c] sm:$0xf] }
 0x29c   :  { %v14265_v20 = vld [vmem:[#allocation12 + $0xd34] sm:$0xf0] }
 0x29d   :  { %v11230_v22 = vld [vmem:[#allocation12 + $0xf18] sm:$0xf]  ;;  %v10975_v33 = vor.u32 %v14265_v20, %v10974_v63  ;;  %4032 = vmatpush.bf16.msrb.mxu1 %v10719_v30 }
 0x29e   :  { %v14329_v23 = vld [vmem:[#allocation12 + $0xf34] sm:$0xf0] }
 0x29f   :  { %v10430_v50 = vld [vmem:[#allocation12 + $0x8d8] sm:$0xf]  ;;  %v11231_v38 = vor.u32 %v14329_v23, %v11230_v22  ;;  %4046 = vmatpush.bf16.msrb.mxu2 %v10975_v33 }
 0x2a0   :  { %v14129_v34 = vld [vmem:[#allocation12 + $0x8f4] sm:$0xf0] }
 0x2a1   :  { %v10686_v37 = vld [vmem:[#allocation12 + $0xad8] sm:$0xf]  ;;  %v10431_v45 = vor.u32 %v14129_v34, %v10430_v50  ;;  %4060 = vmatpush.bf16.msrb.mxu3 %v11231_v38  ;;  %v3774_v38 = vpop.f32.mrf.mxu2 }
 0x2a2   :  { %v14193_v40 = vld [vmem:[#allocation12 + $0xaf4] sm:$0xf0]  ;;  %v3775_v41 = vadd.f32 %v3774_v38, %v3761_v18  ;;  %v9728_v18 = vld [vmem:[#allocation12 + $0x378] sm:$0xf0]  ;;  %v3800_v38 = vpop.f32.mrf.mxu0 }
 0x2a3   :  { %v10942_v35 = vld [vmem:[#allocation12 + $0xcd8] sm:$0xf]  ;;  %v10687_v46 = vor.u32 %v14193_v40, %v10686_v37  ;;  %4019 = vmatpush.bf16.msrb.mxu0 %v10431_v45  ;;  %v13901_v40 = vld [vmem:[#allocation12 + $0x1dc] sm:$0xf] }
 0x2a4   :  { %v14257_v32 = vld [vmem:[#allocation12 + $0xcf4] sm:$0xf0]  ;;  %v14029_v45 = vld [vmem:[#allocation12 + $0x5dc] sm:$0xf] }
 0x2a5   :  { %v11198_v9 = vld [vmem:[#allocation12 + $0xed8] sm:$0xf]  ;;  %v10943_v48 = vor.u32 %v14257_v32, %v10942_v35  ;;  %4033 = vmatpush.bf16.msrb.mxu1 %v10687_v46  ;;  %v9536_v35 = vld [vmem:[#allocation12 + $0x1f8] sm:$0xf0] }
 0x2a6   :  { %v14321_v42 = vld [vmem:[#allocation12 + $0xef4] sm:$0xf0]  ;;  %v13965_v32 = vld [vmem:[#allocation12 + $0x3dc] sm:$0xf] }
 0x2a7   :  { %v10398_v49 = vld [vmem:[#allocation12 + $0x898] sm:$0xf]  ;;  %v11199_v53 = vor.u32 %v14321_v42, %v11198_v9  ;;  %4047 = vmatpush.bf16.msrb.mxu2 %v10943_v48  ;;  %v9792_v42 = vld [vmem:[#allocation12 + $0x3f8] sm:$0xf0]  ;;  %v3788_v48 = vpop.f32.mrf.mxu3 }
 0x2a8   :  { %v14121_v6 = vld [vmem:[#allocation12 + $0x8b4] sm:$0xf0]  ;;  %v10048_v46 = vld [vmem:[#allocation12 + $0x5f8] sm:$0xf0]  ;;  %v9795_v59 = vor.u32 %v13965_v32, %v9792_v42  ;;  %v3801_v32 = vadd.f32 %v3800_v38, %v15451_v12 }
 0x2a9   :  { %v10654_v51 = vld [vmem:[#allocation12 + $0xa98] sm:$0xf]  ;;  %v10399_v2 = vor.u32 %v14121_v6, %v10398_v49  ;;  %4061 = vmatpush.bf16.msrb.mxu3 %v11199_v53  ;;  %v10304_v53 = vld [vmem:[#allocation12 + $0x7f8] sm:$0xf0] }
 0x2aa   :  { %v14185_v54 = vld [vmem:[#allocation12 + $0xab4] sm:$0xf0]  ;;  %v13845_v38 = vld [vmem:[#allocation12 + $0x1c] sm:$0xf] }
 0x2ab   :  { %v10910_v56 = vld [vmem:[#allocation12 + $0xc98] sm:$0xf]  ;;  %v10655_v5 = vor.u32 %v14185_v54, %v10654_v51  ;;  %4020 = vmatpush.bf16.msrb.mxu0 %v10399_v2  ;;  %v14093_v51 = vld [vmem:[#allocation12 + $0x7dc] sm:$0xf]  ;;  %v15453_v54 = vadd.f32 %v3788_v48, %v3775_v41 }
 0x2ac   :  { %v14249_v57 = vld [vmem:[#allocation12 + $0xcb4] sm:$0xf0]  ;;  %v10307_v62 = vor.u32 %v14093_v51, %v10304_v53  ;;  %v9760_v2 = vld [vmem:[#allocation12 + $0x3b8] sm:$0xf0] }
 0x2ad   :  { %v11166_v14 = vld [vmem:[#allocation12 + $0xe98] sm:$0xf]  ;;  %v10911_v3 = vor.u32 %v14249_v57, %v10910_v56  ;;  %4034 = vmatpush.bf16.msrb.mxu1 %v10655_v5  ;;  %v9539_v57 = vor.u32 %v13901_v40, %v9536_v35  ;;  %v10016_v5 = vld [vmem:[#allocation12 + $0x5b8] sm:$0xf0] }
 0x2ae   :  { %v14313_v52 = vld [vmem:[#allocation12 + $0xeb4] sm:$0xf0]  ;;  %v10019_v29 = vor.u32 %v14021_v4, %v10016_v5  ;;  %v14069_v40 = vld [vmem:[#allocation12 + $0x71c] sm:$0xf]  ;;  %v3828_v5 = vpop.f32.mrf.mxu2 }
 0x2af   :  { %v10366_v27 = vld [vmem:[#allocation12 + $0x858] sm:$0xf]  ;;  %v11167_v13 = vor.u32 %v14313_v52, %v11166_v14  ;;  %4048 = vmatpush.bf16.msrb.mxu2 %v10911_v3  ;;  %v10051_v14 = vor.u32 %v14029_v45, %v10048_v46  ;;  %v13893_v52 = vld [vmem:[#allocation12 + $0x19c] sm:$0xf] }
 0x2b0   :  { %v14113_v8 = vld [vmem:[#allocation12 + $0x874] sm:$0xf0]  ;;  %v14085_v3 = vld [vmem:[#allocation12 + $0x79c] sm:$0xf] }
 0x2b1   :  { %v10622_v31 = vld [vmem:[#allocation12 + $0xa58] sm:$0xf]  ;;  %v10367_v11 = vor.u32 %v14113_v8, %v10366_v27  ;;  %4062 = vmatpush.bf16.msrb.mxu3 %v11167_v13  ;;  %v10272_v27 = vld [vmem:[#allocation12 + $0x7b8] sm:$0xf0]  ;;  %v9507_v8 = vor.u32 %v13893_v52, %v9504_v60 }
 0x2b2   :  { %v14177_v16 = vld [vmem:[#allocation12 + $0xa74] sm:$0xf0]  ;;  %v13885_v13 = vld [vmem:[#allocation12 + $0x15c] sm:$0xf] }
 0x2b3   :  { %v10878_v19 = vld [vmem:[#allocation12 + $0xc58] sm:$0xf]  ;;  %v10623_v24 = vor.u32 %v14177_v16, %v10622_v31  ;;  %4021 = vmatpush.bf16.msrb.mxu0 %v10367_v11  ;;  %v9763_v31 = vor.u32 %v13957_v61, %v9760_v2  ;;  %v9472_v16 = vld [vmem:[#allocation12 + $0x178] sm:$0xf0] }
 0x2b4   :  { %v14241_v21 = vld [vmem:[#allocation12 + $0xc74] sm:$0xf0]  ;;  %v14077_v11 = vld [vmem:[#allocation12 + $0x75c] sm:$0xf] }
 0x2b5   :  { %v11134_v63 = vld [vmem:[#allocation12 + $0xe58] sm:$0xf]  ;;  %v10879_v25 = vor.u32 %v14241_v21, %v10878_v19  ;;  %4035 = vmatpush.bf16.msrb.mxu1 %v10623_v24  ;;  %v13949_v19 = vld [vmem:[#allocation12 + $0x35c] sm:$0xf]  ;;  %v10275_v21 = vor.u32 %v14085_v3, %v10272_v27 }
 0x2b6   :  { %v14305_v20 = vld [vmem:[#allocation12 + $0xe74] sm:$0xf0]  ;;  %v9731_v24 = vor.u32 %v13949_v19, %v9728_v18  ;;  %v10208_v35 = vld [vmem:[#allocation12 + $0x738] sm:$0xf0] }
 0x2b7   :  { %v10334_v22 = vld [vmem:[#allocation12 + $0x818] sm:$0xf]  ;;  %v11135_v33 = vor.u32 %v14305_v20, %v11134_v63  ;;  %4049 = vmatpush.bf16.msrb.mxu2 %v10879_v25  ;;  %v14013_v63 = vld [vmem:[#allocation12 + $0x55c] sm:$0xf] }
 0x2b8   :  { %v14105_v23 = vld [vmem:[#allocation12 + $0x834] sm:$0xf0]  ;;  %v9984_v20 = vld [vmem:[#allocation12 + $0x578] sm:$0xf0] }
 0x2b9   :  { %v10590_v26 = vld [vmem:[#allocation12 + $0xa18] sm:$0xf]  ;;  %v10335_v9 = vor.u32 %v14105_v23, %v10334_v22  ;;  %4063 = vmatpush.bf16.msrb.mxu3 %v11135_v33  ;;  %v10240_v22 = vld [vmem:[#allocation12 + $0x778] sm:$0xf0]  ;;  %v9475_v23 = vor.u32 %v13885_v13, %v9472_v16  ;;  %v9987_v25 = vor.u32 %v14013_v63, %v9984_v20  ;;  %v3842_v13 = vpop.f32.mrf.mxu3 }
 0x2ba   :  { %v14169_v28 = vld [vmem:[#allocation12 + $0xa34] sm:$0xf0]  ;;  %v10243_v33 = vor.u32 %v14077_v11, %v10240_v22  ;;  %v13869_v46 = vld [vmem:[#allocation12 + $0xdc] sm:$0xf] }
 0x2bb   :  { %v10846_v30 = vld [vmem:[#allocation12 + $0xc18] sm:$0xf]  ;;  %v10591_v49 = vor.u32 %v14169_v28, %v10590_v26  ;;  %4022 = vmatpush.bf16.msrb.mxu0 %v10335_v9  ;;  %v13877_v26 = vld [vmem:[#allocation12 + $0x11c] sm:$0xf]  ;;  %v3814_v9 = vpop.f32.mrf.mxu1 }
 0x2bc   :  { %v14233_v50 = vld [vmem:[#allocation12 + $0xc34] sm:$0xf0]  ;;  %v9440_v28 = vld [vmem:[#allocation12 + $0x138] sm:$0xf0]  ;;  %v3815_v51 = vadd.f32 %v3814_v9, %v3801_v32 }
 0x2bd   :  { %v11102_v34 = vld [vmem:[#allocation12 + $0xe18] sm:$0xf]  ;;  %v10847_v6 = vor.u32 %v14233_v50, %v10846_v30  ;;  %4036 = vmatpush.bf16.msrb.mxu1 %v10591_v49  ;;  %v13941_v30 = vld [vmem:[#allocation12 + $0x31c] sm:$0xf]  ;;  %v9443_v41 = vor.u32 %v13877_v26, %v9440_v28 }
 0x2be   :  { %v14297_v37 = vld [vmem:[#allocation12 + $0xe34] sm:$0xf0]  ;;  %4023 = vmatmul.bf16.vlgmr.msrb.gmra.mxu0 %v15338_v39  ;;  %v9696_v50 = vld [vmem:[#allocation12 + $0x338] sm:$0xf0] }
 0x2bf   :  { %v11103_v56 = vor.u32 %v14297_v37, %v11102_v34  ;;  %4050 = vmatpush.bf16.msrb.mxu2 %v10847_v6  ;;  %4071 = vmatpush.bf16.msra.mxu0 %v9539_v57  ;;  %v14005_v34 = vld [vmem:[#allocation12 + $0x51c] sm:$0xf]  ;;  %v9699_v42 = vor.u32 %v13941_v30, %v9696_v50  ;;  %v10211_v6 = vor.u32 %v14069_v40, %v10208_v35 }
 0x2c0   :  { %4037 = vmatmul.bf16.vlgmr.msrb.gmra.mxu1 %v15342_v44  ;;  %v9952_v37 = vld [vmem:[#allocation12 + $0x538] sm:$0xf0] }
 0x2c1   :  { %4064 = vmatpush.bf16.msrb.mxu3 %v11103_v56  ;;  %4085 = vmatpush.bf16.msra.mxu1 %v9795_v59  ;;  %v9955_v45 = vor.u32 %v14005_v34, %v9952_v37  ;;  %v9408_v48 = vld [vmem:[#allocation12 + $0xf8] sm:$0xf0] }
 0x2c2   :  { %4051 = vmatmul.bf16.vlgmr.msrb.gmra.mxu2 %v15340_v43  ;;  %v13933_v49 = vld [vmem:[#allocation12 + $0x2dc] sm:$0xf]  ;;  %v9411_v52 = vor.u32 %v13869_v46, %v9408_v48  ;;  %v3830_v46 = vpop.f32.mrf.mxu2 }
 0x2c3   :  { %4099 = vmatpush.bf16.msra.mxu2 %v10051_v14  ;;  %4072 = vmatpush.bf16.msra.mxu0 %v9507_v8  ;;  %v9664_v53 = vld [vmem:[#allocation12 + $0x2f8] sm:$0xf0]  ;;  %v3816_v63 = vpop.f32.mrf.mxu1 }
 0x2c4   :  { %4065 = vmatmul.bf16.vlgmr.msrb.gmra.mxu3 %v15344_v47  ;;  %v13997_v56 = vld [vmem:[#allocation12 + $0x4dc] sm:$0xf]  ;;  %v9667_v12 = vor.u32 %v13933_v49, %v9664_v53  ;;  %v3844_v53 = vpop.f32.mrf.mxu3 }
 0x2c5   :  { %4113 = vmatpush.bf16.msra.mxu3 %v10307_v62  ;;  %4086 = vmatpush.bf16.msra.mxu1 %v9763_v31  ;;  %v9920_v57 = vld [vmem:[#allocation12 + $0x4f8] sm:$0xf0]  ;;  %v3829_v31 = vadd.f32 %v3828_v5, %v3815_v51 }
 0x2c6   :  { %v14061_v59 = vld [vmem:[#allocation12 + $0x6dc] sm:$0xf]  ;;  %v9923_v60 = vor.u32 %v13997_v56, %v9920_v57 }
 0x2c7   :  { %4100 = vmatpush.bf16.msra.mxu2 %v10019_v29  ;;  %4073 = vmatpush.bf16.msra.mxu0 %v9475_v23  ;;  %v10176_v14 = vld [vmem:[#allocation12 + $0x6f8] sm:$0xf0]  ;;  %v3802_v29 = vpop.f32.mrf.mxu0  ;;  %v15461_v20 = vadd.f32 %v3842_v13, %v3829_v31 }
 0x2c8   :  { %v13861_v61 = vld [vmem:[#allocation12 + $0x9c] sm:$0xf]  ;;  %v10179_v4 = vor.u32 %v14061_v59, %v10176_v14 }
 0x2c9   :  { %4114 = vmatpush.bf16.msra.mxu3 %v10275_v21  ;;  %4087 = vmatpush.bf16.msra.mxu1 %v9731_v24  ;;  %v9376_v62 = vld [vmem:[#allocation12 + $0xb8] sm:$0xf0]  ;;  %v3803_v21 = vadd.f32 %v3802_v29, %v15453_v54  ;;  %v4187_v31 = vmax.f32 %v15461_v20, 0.0 }
 0x2ca   :  { %v13925_v2 = vld [vmem:[#allocation12 + $0x29c] sm:$0xf]  ;;  %v9379_v18 = vor.u32 %v13861_v61, %v9376_v62 }
 0x2cb   :  { %4101 = vmatpush.bf16.msra.mxu2 %v9987_v25  ;;  %4074 = vmatpush.bf16.msra.mxu0 %v9443_v41  ;;  %v9632_v3 = vld [vmem:[#allocation12 + $0x2b8] sm:$0xf0]  ;;  %v3817_v28 = vadd.f32 %v3816_v63, %v3803_v21 }
 0x2cc   :  { %v13989_v27 = vld [vmem:[#allocation12 + $0x49c] sm:$0xf]  ;;  %v9635_v11 = vor.u32 %v13925_v2, %v9632_v3 }
 0x2cd   :  { %4115 = vmatpush.bf16.msra.mxu3 %v10243_v33  ;;  %4088 = vmatpush.bf16.msra.mxu1 %v9699_v42  ;;  %v9888_v8 = vld [vmem:[#allocation12 + $0x4b8] sm:$0xf0]  ;;  %v3831_v51 = vadd.f32 %v3830_v46, %v3817_v28 }
 0x2ce   :  { %v14053_v16 = vld [vmem:[#allocation12 + $0x69c] sm:$0xf]  ;;  %v9891_v22 = vor.u32 %v13989_v27, %v9888_v8 }
 0x2cf   :  { %4102 = vmatpush.bf16.msra.mxu2 %v9955_v45  ;;  %v10144_v19 = vld [vmem:[#allocation12 + $0x6b8] sm:$0xf0]  ;;  %4075 = vmatpush.bf16.msra.mxu0 %v9411_v52  ;;  %v3845_v61 = vadd.f32 %v3844_v53, %v3831_v51  ;;  %v3856_v53 = vpop.f32.mrf.mxu0 }
 0x2d0   :  { %v13853_v23 = vld [vmem:[#allocation12 + $0x5c] sm:$0xf]  ;;  %v10147_v26 = vor.u32 %v14053_v16, %v10144_v19 }
 0x2d1   :  { %4116 = vmatpush.bf16.msra.mxu3 %v10211_v6  ;;  %4089 = vmatpush.bf16.msra.mxu1 %v9667_v12  ;;  %v9344_v24 = vld [vmem:[#allocation12 + $0x78] sm:$0xf0]  ;;  %v4195_v29 = vmax.f32 %v3845_v61, 0.0 }
 0x2d2   :  { %v13917_v25 = vld [vmem:[#allocation12 + $0x25c] sm:$0xf]  ;;  %v9347_v54 = vor.u32 %v13853_v23, %v9344_v24 }
 0x2d3   :  { %4103 = vmatpush.bf16.msra.mxu2 %v9923_v60  ;;  %v9600_v30 = vld [vmem:[#allocation12 + $0x278] sm:$0xf0]  ;;  %4076 = vmatpush.bf16.msra.mxu0 %v9379_v18  ;;  %v15464_v23 = vpack.c.bf16 %v4195_v29, %v4187_v31 }
 0x2d4   :  { %v13981_v33 = vld [vmem:[#allocation12 + $0x45c] sm:$0xf]  ;;  %v9603_v35 = vor.u32 %v13917_v25, %v9600_v30 }
 0x2d5   :  { %4117 = vmatpush.bf16.msra.mxu3 %v10179_v4  ;;  %v9856_v50 = vld [vmem:[#allocation12 + $0x478] sm:$0xf0]  ;;  %4090 = vmatpush.bf16.msra.mxu1 %v9635_v11 }
 0x2d6   :  { %v14045_v34 = vld [vmem:[#allocation12 + $0x65c] sm:$0xf]  ;;  %v9859_v32 = vor.u32 %v13981_v33, %v9856_v50 }
 0x2d7   :  { %v10112_v37 = vld [vmem:[#allocation12 + $0x678] sm:$0xf0]  ;;  %4104 = vmatpush.bf16.msra.mxu2 %v9891_v22  ;;  %4077 = vmatpush.bf16.msra.mxu0 %v9347_v54 }
 0x2d8   :  { %v9312_v40 = vld [vmem:[#allocation12 + $0x38] sm:$0xf0]  ;;  %v10115_v45 = vor.u32 %v14045_v34, %v10112_v37 }
 0x2d9   :  { %v13909_v41 = vld [vmem:[#allocation12 + $0x21c] sm:$0xf]  ;;  %4118 = vmatpush.bf16.msra.mxu3 %v10147_v26  ;;  %v9315_v14 = vor.u32 %v13845_v38, %v9312_v40  ;;  %4091 = vmatpush.bf16.msra.mxu1 %v9603_v35 }
 0x2da   :  { %v9568_v9 = vld [vmem:[#allocation12 + $0x238] sm:$0xf0] }
 0x2db   :  { %v13973_v42 = vld [vmem:[#allocation12 + $0x41c] sm:$0xf]  ;;  %4105 = vmatpush.bf16.msra.mxu2 %v9859_v32  ;;  %v9571_v62 = vor.u32 %v13909_v41, %v9568_v9  ;;  %4078 = vmatpush.bf16.msra.mxu0 %v9315_v14  ;;  %v676_v41 = vperm.slane %v15448_v7, 5 }
 0x2dc   :  { %v9824_v48 = vld [vmem:[#allocation12 + $0x438] sm:$0xf0] }
 0x2dd   :  { %v14037_v49 = vld [vmem:[#allocation12 + $0x61c] sm:$0xf]  ;;  %v9827_v2 = vor.u32 %v13973_v42, %v9824_v48  ;;  %4119 = vmatpush.bf16.msra.mxu3 %v10115_v45  ;;  %4092 = vmatpush.bf16.msra.mxu1 %v9571_v62 }
 0x2de   :  { %v10080_v6 = vld [vmem:[#allocation12 + $0x638] sm:$0xf0]  ;;  %4079 = vmatmul.bf16.vlgmr.msra.gmra.mxu0 %v15326_v58 }
 0x2df   :  { %v14157_v56 = vld [vmem:[#allocation12 + $0x9dc] sm:$0xf]  ;;  %v10083_v3 = vor.u32 %v14037_v49, %v10080_v6  ;;  %4106 = vmatpush.bf16.msra.mxu2 %v9827_v2 }
 0x2e0   :  { %v10560_v57 = vld [vmem:[#allocation12 + $0x9f8] sm:$0xf0]  ;;  %4093 = vmatmul.bf16.vlgmr.msra.gmra.mxu1 %v15332_v10  ;;  %v3857_v10 = vadd.f32 %v3856_v53, %v676_v41 }
 0x2e1   :  { %v14221_v59 = vld [vmem:[#allocation12 + $0xbdc] sm:$0xf]  ;;  %v10563_v27 = vor.u32 %v14157_v56, %v10560_v57  ;;  %4120 = vmatpush.bf16.msra.mxu3 %v10083_v3  ;;  %v3870_v57 = vpop.f32.mrf.mxu1 }
 0x2e2   :  { %v10816_v52 = vld [vmem:[#allocation12 + $0xbf8] sm:$0xf0]  ;;  %4107 = vmatmul.bf16.vlgmr.msra.gmra.mxu2 %v15328_v1 }
 0x2e3   :  { %v14285_v12 = vld [vmem:[#allocation12 + $0xddc] sm:$0xf]  ;;  %v10819_v13 = vor.u32 %v14221_v59, %v10816_v52  ;;  %4127 = vmatpush.bf16.msrb.mxu0 %v10563_v27 }
 0x2e4   :  { %v11072_v60 = vld [vmem:[#allocation12 + $0xdf8] sm:$0xf0]  ;;  %4121 = vmatmul.bf16.vlgmr.msra.gmra.mxu3 %v15334_v17 }
 0x2e5   :  { %v14349_v4 = vld [vmem:[#allocation12 + $0xfdc] sm:$0xf]  ;;  %v11075_v16 = vor.u32 %v14285_v12, %v11072_v60  ;;  %4141 = vmatpush.bf16.msrb.mxu1 %v10819_v13 }
 0x2e6   :  { %v11328_v5 = vld [vmem:[#allocation12 + $0xff8] sm:$0xf0] }
 0x2e7   :  { %v14149_v8 = vld [vmem:[#allocation12 + $0x99c] sm:$0xf]  ;;  %v11331_v18 = vor.u32 %v14349_v4, %v11328_v5  ;;  %4155 = vmatpush.bf16.msrb.mxu2 %v11075_v16  ;;  %v3871_v5 = vadd.f32 %v3870_v57, %v3857_v10 }
 0x2e8   :  { %v10528_v19 = vld [vmem:[#allocation12 + $0x9b8] sm:$0xf0] }
 0x2e9   :  { %v14213_v21 = vld [vmem:[#allocation12 + $0xb9c] sm:$0xf]  ;;  %v10531_v26 = vor.u32 %v14149_v8, %v10528_v19  ;;  %4169 = vmatpush.bf16.msrb.mxu3 %v11331_v18 }
 0x2ea   :  { %v10784_v63 = vld [vmem:[#allocation12 + $0xbb8] sm:$0xf0] }
 0x2eb   :  { %v14277_v11 = vld [vmem:[#allocation12 + $0xd9c] sm:$0xf]  ;;  %v10787_v20 = vor.u32 %v14213_v21, %v10784_v63  ;;  %4128 = vmatpush.bf16.msrb.mxu0 %v10531_v26 }
 0x2ec   :  { %v11040_v22 = vld [vmem:[#allocation12 + $0xdb8] sm:$0xf0] }
 0x2ed   :  { %v14341_v24 = vld [vmem:[#allocation12 + $0xf9c] sm:$0xf]  ;;  %v11043_v28 = vor.u32 %v14277_v11, %v11040_v22  ;;  %4142 = vmatpush.bf16.msrb.mxu1 %v10787_v20  ;;  %v3884_v22 = vpop.f32.mrf.mxu2  ;;  %v3858_v20 = vpop.f32.mrf.mxu0 }
 0x2ee   :  { %v11296_v25 = vld [vmem:[#allocation12 + $0xfb8] sm:$0xf0]  ;;  %v3885_v26 = vadd.f32 %v3884_v22, %v3871_v5 }
 0x2ef   :  { %v14141_v30 = vld [vmem:[#allocation12 + $0x95c] sm:$0xf]  ;;  %v11299_v34 = vor.u32 %v14341_v24, %v11296_v25  ;;  %4156 = vmatpush.bf16.msrb.mxu2 %v11043_v28  ;;  %v3898_v28 = vpop.f32.mrf.mxu3 }
 0x2f0   :  { %v10496_v33 = vld [vmem:[#allocation12 + $0x978] sm:$0xf0] }
 0x2f1   :  { %v14205_v50 = vld [vmem:[#allocation12 + $0xb5c] sm:$0xf]  ;;  %v10499_v32 = vor.u32 %v14141_v30, %v10496_v33  ;;  %4170 = vmatpush.bf16.msrb.mxu3 %v11299_v34  ;;  %v3859_v33 = vadd.f32 %v3858_v20, %v676_v41 }
 0x2f2   :  { %v10752_v37 = vld [vmem:[#allocation12 + $0xb78] sm:$0xf0] }
 0x2f3   :  { %v14269_v54 = vld [vmem:[#allocation12 + $0xd5c] sm:$0xf]  ;;  %v10755_v9 = vor.u32 %v14205_v50, %v10752_v37  ;;  %4129 = vmatpush.bf16.msrb.mxu0 %v10499_v32 }
 0x2f4   :  { %v11008_v38 = vld [vmem:[#allocation12 + $0xd78] sm:$0xf0] }
 0x2f5   :  { %v14333_v40 = vld [vmem:[#allocation12 + $0xf5c] sm:$0xf]  ;;  %v11011_v42 = vor.u32 %v14269_v54, %v11008_v38  ;;  %4143 = vmatpush.bf16.msrb.mxu1 %v10755_v9 }
 0x2f6   :  { %v11264_v35 = vld [vmem:[#allocation12 + $0xf78] sm:$0xf0] }
 0x2f7   :  { %v14133_v1 = vld [vmem:[#allocation12 + $0x91c] sm:$0xf]  ;;  %v11267_v48 = vor.u32 %v14333_v40, %v11264_v35  ;;  %4157 = vmatpush.bf16.msrb.mxu2 %v11011_v42  ;;  %v3899_v40 = vadd.f32 %v3898_v28, %v3885_v26  ;;  %v3872_v35 = vpop.f32.mrf.mxu1  ;;  %v677_v28 = vperm.slane %v15448_v7, 6 }
 0x2f8   :  { %v10464_v45 = vld [vmem:[#allocation12 + $0x938] sm:$0xf0] }
 0x2f9   :  { %v14197_v46 = vld [vmem:[#allocation12 + $0xb1c] sm:$0xf]  ;;  %v10467_v56 = vor.u32 %v14133_v1, %v10464_v45  ;;  %4171 = vmatpush.bf16.msrb.mxu3 %v11267_v48  ;;  %v3873_v45 = vadd.f32 %v3872_v35, %v3859_v33 }
 0x2fa   :  { %v10720_v49 = vld [vmem:[#allocation12 + $0xb38] sm:$0xf0] }
 0x2fb   :  { %v14261_v6 = vld [vmem:[#allocation12 + $0xd1c] sm:$0xf]  ;;  %v10723_v59 = vor.u32 %v14197_v46, %v10720_v49  ;;  %4130 = vmatpush.bf16.msrb.mxu0 %v10467_v56 }
 0x2fc   :  { %v10976_v58 = vld [vmem:[#allocation12 + $0xd38] sm:$0xf0] }
 0x2fd   :  { %v14325_v51 = vld [vmem:[#allocation12 + $0xf1c] sm:$0xf]  ;;  %v10979_v14 = vor.u32 %v14261_v6, %v10976_v58  ;;  %4144 = vmatpush.bf16.msrb.mxu1 %v10723_v59  ;;  %v3886_v59 = vpop.f32.mrf.mxu2 }
 0x2fe   :  { %v11232_v17 = vld [vmem:[#allocation12 + $0xf38] sm:$0xf0] }
 0x2ff   :  { %v14125_v52 = vld [vmem:[#allocation12 + $0x8dc] sm:$0xf]  ;;  %v11235_v61 = vor.u32 %v14325_v51, %v11232_v17  ;;  %4158 = vmatpush.bf16.msrb.mxu2 %v10979_v14 }
 0x300   :  { %v10432_v12 = vld [vmem:[#allocation12 + $0x8f8] sm:$0xf0] }
 0x301   :  { %v14189_v60 = vld [vmem:[#allocation12 + $0xadc] sm:$0xf]  ;;  %v10435_v8 = vor.u32 %v14125_v52, %v10432_v12  ;;  %4172 = vmatpush.bf16.msrb.mxu3 %v11235_v61  ;;  %v3887_v12 = vadd.f32 %v3886_v59, %v3873_v45  ;;  %v3900_v61 = vpop.f32.mrf.mxu3 }
 0x302   :  { %v10688_v62 = vld [vmem:[#allocation12 + $0xaf8] sm:$0xf0] }
 0x303   :  { %v14253_v2 = vld [vmem:[#allocation12 + $0xcdc] sm:$0xf]  ;;  %v10691_v31 = vor.u32 %v14189_v60, %v10688_v62  ;;  %4131 = vmatpush.bf16.msrb.mxu0 %v10435_v8  ;;  %v3926_v8 = vpop.f32.mrf.mxu1 }
 0x304   :  { %v10944_v4 = vld [vmem:[#allocation12 + $0xcf8] sm:$0xf0] }
 0x305   :  { %v14317_v3 = vld [vmem:[#allocation12 + $0xedc] sm:$0xf]  ;;  %v10947_v29 = vor.u32 %v14253_v2, %v10944_v4  ;;  %4145 = vmatpush.bf16.msrb.mxu1 %v10691_v31  ;;  %v3901_v4 = vadd.f32 %v3900_v61, %v3887_v12 }
 0x306   :  { %v11200_v27 = vld [vmem:[#allocation12 + $0xef8] sm:$0xf0] }
 0x307   :  { %v14117_v13 = vld [vmem:[#allocation12 + $0x89c] sm:$0xf]  ;;  %v11203_v21 = vor.u32 %v14317_v3, %v11200_v27  ;;  %4159 = vmatpush.bf16.msrb.mxu2 %v10947_v29  ;;  %v3912_v3 = vpop.f32.mrf.mxu0  ;;  %v3940_v29 = vpop.f32.mrf.mxu2 }
 0x308   :  { %v10400_v16 = vld [vmem:[#allocation12 + $0x8b8] sm:$0xf0]  ;;  %v3913_v27 = vadd.f32 %v3912_v3, %v3899_v40 }
 0x309   :  { %v14181_v19 = vld [vmem:[#allocation12 + $0xa9c] sm:$0xf]  ;;  %v10403_v30 = vor.u32 %v14117_v13, %v10400_v16  ;;  %4173 = vmatpush.bf16.msrb.mxu3 %v11203_v21 }
 0x30a   :  { %v10656_v18 = vld [vmem:[#allocation12 + $0xab8] sm:$0xf0]  ;;  %v3927_v31 = vadd.f32 %v3926_v8, %v3913_v27 }
 0x30b   :  { %v14245_v63 = vld [vmem:[#allocation12 + $0xc9c] sm:$0xf]  ;;  %v10659_v50 = vor.u32 %v14181_v19, %v10656_v18  ;;  %4132 = vmatpush.bf16.msrb.mxu0 %v10403_v30 }
 0x30c   :  { %v10912_v11 = vld [vmem:[#allocation12 + $0xcb8] sm:$0xf0]  ;;  %v3941_v13 = vadd.f32 %v3940_v29, %v3927_v31 }
 0x30d   :  { %v14309_v24 = vld [vmem:[#allocation12 + $0xe9c] sm:$0xf]  ;;  %v10915_v34 = vor.u32 %v14245_v63, %v10912_v11  ;;  %4146 = vmatpush.bf16.msrb.mxu1 %v10659_v50 }
 0x30e   :  { %v11168_v25 = vld [vmem:[#allocation12 + $0xeb8] sm:$0xf0] }
 0x30f   :  { %v14109_v37 = vld [vmem:[#allocation12 + $0x85c] sm:$0xf]  ;;  %v11171_v32 = vor.u32 %v14309_v24, %v11168_v25  ;;  %4160 = vmatpush.bf16.msrb.mxu2 %v10915_v34  ;;  %v3914_v16 = vpop.f32.mrf.mxu0  ;;  %v3942_v21 = vpop.f32.mrf.mxu2 }
 0x310   :  { %v10368_v54 = vld [vmem:[#allocation12 + $0x878] sm:$0xf0] }
 0x311   :  { %v14173_v38 = vld [vmem:[#allocation12 + $0xa5c] sm:$0xf]  ;;  %v10371_v49 = vor.u32 %v14109_v37, %v10368_v54  ;;  %4174 = vmatpush.bf16.msrb.mxu3 %v11171_v32 }
 0x312   :  { %v10624_v9 = vld [vmem:[#allocation12 + $0xa78] sm:$0xf0] }
 0x313   :  { %v14237_v42 = vld [vmem:[#allocation12 + $0xc5c] sm:$0xf]  ;;  %v10627_v41 = vor.u32 %v14173_v38, %v10624_v9  ;;  %4133 = vmatpush.bf16.msrb.mxu0 %v10371_v49 }
 0x314   :  { %v10880_v1 = vld [vmem:[#allocation12 + $0xc78] sm:$0xf0] }
 0x315   :  { %v14301_v46 = vld [vmem:[#allocation12 + $0xe5c] sm:$0xf]  ;;  %v10883_v6 = vor.u32 %v14237_v42, %v10880_v1  ;;  %4147 = vmatpush.bf16.msrb.mxu1 %v10627_v41 }
 0x316   :  { %v11136_v48 = vld [vmem:[#allocation12 + $0xe78] sm:$0xf0] }
 0x317   :  { %v14101_v58 = vld [vmem:[#allocation12 + $0x81c] sm:$0xf]  ;;  %v11139_v53 = vor.u32 %v14301_v46, %v11136_v48  ;;  %4161 = vmatpush.bf16.msrb.mxu2 %v10883_v6  ;;  %v3968_v26 = vpop.f32.mrf.mxu0  ;;  %v3996_v30 = vpop.f32.mrf.mxu2 }
 0x318   :  { %v10336_v51 = vld [vmem:[#allocation12 + $0x838] sm:$0xf0]  ;;  %v3969_v33 = vadd.f32 %v3968_v26, %v677_v28 }
 0x319   :  { %v14165_v17 = vld [vmem:[#allocation12 + $0xa1c] sm:$0xf]  ;;  %v10339_v60 = vor.u32 %v14101_v58, %v10336_v51  ;;  %4175 = vmatpush.bf16.msrb.mxu3 %v11139_v53 }
 0x31a   :  { %v10592_v56 = vld [vmem:[#allocation12 + $0xa38] sm:$0xf0] }
 0x31b   :  { %v14229_v10 = vld [vmem:[#allocation12 + $0xc1c] sm:$0xf]  ;;  %v10595_v62 = vor.u32 %v14165_v17, %v10592_v56  ;;  %4134 = vmatpush.bf16.msrb.mxu0 %v10339_v60 }
 0x31c   :  { %v10848_v57 = vld [vmem:[#allocation12 + $0xc38] sm:$0xf0] }
 0x31d   :  { %v14293_v14 = vld [vmem:[#allocation12 + $0xe1c] sm:$0xf]  ;;  %v10851_v2 = vor.u32 %v14229_v10, %v10848_v57  ;;  %4148 = vmatpush.bf16.msrb.mxu1 %v10595_v62 }
 0x31e   :  { %v11104_v52 = vld [vmem:[#allocation12 + $0xe38] sm:$0xf0]  ;;  %4135 = vmatmul.bf16.vlgmr.msrb.gmra.mxu0 %v15338_v39  ;;  %v3954_v39 = vpop.f32.mrf.mxu3 }
 0x31f   :  { %v11107_v5 = vor.u32 %v14293_v14, %v11104_v52  ;;  %4162 = vmatpush.bf16.msrb.mxu2 %v10851_v2  ;;  %v3970_v34 = vpop.f32.mrf.mxu0  ;;  %v3998_v35 = vpop.f32.mrf.mxu2 }
 0x320   :  { %4149 = vmatmul.bf16.vlgmr.msrb.gmra.mxu1 %v15342_v44  ;;  %v3915_v44 = vadd.f32 %v3914_v16, %v3901_v4  ;;  %v3971_v38 = vadd.f32 %v3970_v34, %v677_v28 }
 0x321   :  { %4176 = vmatpush.bf16.msrb.mxu3 %v11107_v5  ;;  %v678_v5 = vperm.slane %v15448_v7, 7 }
 0x322   :  { %4163 = vmatmul.bf16.vlgmr.msrb.gmra.mxu2 %v15340_v43  ;;  %v3928_v43 = vpop.f32.mrf.mxu1 }
 0x323   :  { %v3929_v19 = vadd.f32 %v3928_v43, %v3915_v44 }
 0x324   :  { %4177 = vmatmul.bf16.vlgmr.msrb.gmra.mxu3 %v15344_v47  ;;  %v3955_v47 = vadd.f32 %v3954_v39, %v3941_v13 }
 0x325   :  { %v3943_v18 = vadd.f32 %v3942_v21, %v3929_v19 }
 0x326   :  { %v3956_v63 = vpop.f32.mrf.mxu3  ;;  %v4188_v22 = vmax.f32 %v3955_v47, 0.0 }
 0x327   :  { %v3957_v11 = vadd.f32 %v3956_v63, %v3943_v18 }
 0x329   :  { %v4196_v24 = vmax.f32 %v3957_v11, 0.0 }
 0x32a   :  { %v3982_v20 = vpop.f32.mrf.mxu1 }
 0x32b   :  { %v15490_v25 = vpack.c.bf16 %v4196_v24, %v4188_v22  ;;  %v3983_v54 = vadd.f32 %v3982_v20, %v3969_v33 }
 0x32d   :  { %v3997_v40 = vadd.f32 %v3996_v30, %v3983_v54 }
 0x32e   :  { %v4010_v50 = vpop.f32.mrf.mxu3 }
 0x32f   :  { %v4011_v42 = vadd.f32 %v4010_v50, %v3997_v40 }
 0x332   :  { %v3984_v37 = vpop.f32.mrf.mxu1 }
 0x333   :  { %v3985_v32 = vadd.f32 %v3984_v37, %v3971_v38 }
 0x335   :  { %v3999_v46 = vadd.f32 %v3998_v35, %v3985_v32 }
 0x336   :  { %v4012_v9 = vpop.f32.mrf.mxu3 }
 0x337   :  { %v4013_v49 = vadd.f32 %v4012_v9, %v3999_v46 }
 0x33b   :  { %v4024_v1 = vpop.f32.mrf.mxu0 }
 0x33c   :  { %v4025_v48 = vadd.f32 %v4024_v1, %v4011_v42 }
 0x33d   :  { %v4038_v45 = vpop.f32.mrf.mxu1 }
 0x33e   :  { %v4039_v6 = vadd.f32 %v4038_v45, %v4025_v48 }
 0x343   :  { %v4026_v58 = vpop.f32.mrf.mxu0 }
 0x344   :  { %v4027_v17 = vadd.f32 %v4026_v58, %v4013_v49 }
 0x345   :  { %v4052_v41 = vpop.f32.mrf.mxu2  ;;  %v4040_v53 = vpop.f32.mrf.mxu1 }
 0x346   :  { %v4053_v56 = vadd.f32 %v4052_v41, %v4039_v6  ;;  %v4041_v10 = vadd.f32 %v4040_v53, %v4027_v17 }
 0x347   :  { %v4066_v51 = vpop.f32.mrf.mxu3 }
 0x348   :  { %v4067_v59 = vadd.f32 %v4066_v51, %v4053_v56 }
 0x34a   :  { %v4189_v60 = vmax.f32 %v4067_v59, 0.0 }
 0x34d   :  { %v4054_v57 = vpop.f32.mrf.mxu2 }
 0x34e   :  { %v4055_v14 = vadd.f32 %v4054_v57, %v4041_v10 }
 0x34f   :  { %v4068_v52 = vpop.f32.mrf.mxu3 }
 0x350   :  { %v4069_v12 = vadd.f32 %v4068_v52, %v4055_v14 }
 0x352   :  { %v4197_v61 = vmax.f32 %v4069_v12, 0.0 }
 0x354   :  { %v15496_v62 = vpack.c.bf16 %v4197_v61, %v4189_v60 }
 0x35b   :  { %v4080_v2 = vpop.f32.mrf.mxu0 }
 0x35c   :  { %v4081_v8 = vadd.f32 %v4080_v2, %v678_v5 }
 0x35d   :  { %v4094_v4 = vpop.f32.mrf.mxu1 }
 0x35e   :  { %v4095_v13 = vadd.f32 %v4094_v4, %v4081_v8 }
 0x363   :  { %v4082_v31 = vpop.f32.mrf.mxu0 }
 0x364   :  { %v4083_v16 = vadd.f32 %v4082_v31, %v678_v5 }
 0x365   :  { %v4108_v3 = vpop.f32.mrf.mxu2  ;;  %v4096_v29 = vpop.f32.mrf.mxu1 }
 0x366   :  { %v4109_v44 = vadd.f32 %v4108_v3, %v4095_v13  ;;  %v4097_v43 = vadd.f32 %v4096_v29, %v4083_v16 }
 0x367   :  { %v4122_v27 = vpop.f32.mrf.mxu3 }
 0x368   :  { %v4123_v18 = vadd.f32 %v4122_v27, %v4109_v44 }
 0x36d   :  { %v4110_v39 = vpop.f32.mrf.mxu2 }
 0x36e   :  { %v4111_v63 = vadd.f32 %v4110_v39, %v4097_v43 }
 0x36f   :  { %v4124_v47 = vpop.f32.mrf.mxu3 }
 0x370   :  { %v4125_v24 = vadd.f32 %v4124_v47, %v4111_v63 }
 0x39b   :  { %v4136_v19 = vpop.f32.mrf.mxu0 }
 0x39c   :  { %v4137_v11 = vadd.f32 %v4136_v19, %v4123_v18 }
 0x39d   :  { %v4150_v21 = vpop.f32.mrf.mxu1 }
 0x39e   :  { %v4151_v20 = vadd.f32 %v4150_v21, %v4137_v11 }
 0x3a3   :  { %v4138_v7 = vpop.f32.mrf.mxu0 }
 0x3a4   :  { %v4139_v28 = vadd.f32 %v4138_v7, %v4125_v24 }
 0x3a5   :  { %v4164_v22 = vpop.f32.mrf.mxu2  ;;  %v4152_v33 = vpop.f32.mrf.mxu1 }
 0x3a6   :  { %v4165_v30 = vadd.f32 %v4164_v22, %v4151_v20  ;;  %v4153_v50 = vadd.f32 %v4152_v33, %v4139_v28 }
 0x3a7   :  { %v4178_v26 = vpop.f32.mrf.mxu3 }
 0x3a8   :  { %v4179_v37 = vadd.f32 %v4178_v26, %v4165_v30 }
 0x3aa   :  { %v4190_v35 = vmax.f32 %v4179_v37, 0.0 }
 0x3ad   :  { %v4166_v34 = vpop.f32.mrf.mxu2 }
 0x3ae   :  { %v4167_v54 = vadd.f32 %v4166_v34, %v4153_v50 }
 0x3af   :  { %v4180_v38 = vpop.f32.mrf.mxu3 }
 0x3b0   :  { %v4181_v40 = vadd.f32 %v4180_v38, %v4167_v54 }
 0x3b2   :  { %v4198_v32 = vmax.f32 %v4181_v40, 0.0 }
 0x3b4   :  { %v15499_v9 = vpack.c.bf16 %v4198_v32, %v4190_v35 }
 0x3b5   :  { %15239 = dma.done.wait [#allocation8], 32768 }
 0x3b6   :  { %15240 = vsyncadd [#allocation8], 4294934528  ;;  %v11446_v42 = vld [vmem:[#allocation2 + $0xe0] sm:$0xf]  ;;  %v14384_v1 = vld [vmem:[#allocation2 + $0xec] sm:$0xf0] }
 0x3b7   :  { %v11574_v45 = vld [vmem:[#allocation2 + $0x1e0] sm:$0xf]  ;;  %v11447_v46 = vor.u32 %v14384_v1, %v11446_v42  ;;  %v14416_v48 = vld [vmem:[#allocation2 + $0x1ec] sm:$0xf0] }
 0x3b8   :  { %v11702_v49 = vld [vmem:[#allocation2 + $0x2e0] sm:$0xf]  ;;  %v14448_v41 = vld [vmem:[#allocation2 + $0x2ec] sm:$0xf0]  ;;  %v11575_v6 = vor.u32 %v14416_v48, %v11574_v45 }
 0x3b9   :  { %v11703_v58 = vor.u32 %v14448_v41, %v11702_v49  ;;  %v11830_v51 = vld [vmem:[#allocation2 + $0x3e0] sm:$0xf]  ;;  %v14480_v17 = vld [vmem:[#allocation2 + $0x3ec] sm:$0xf0]  ;;  %5757 = vmatpush.bf16.msra.mxu0 %v11447_v46 }
 0x3ba   :  { %v11430_v53 = vld [vmem:[#allocation2 + $0xc0] sm:$0xf]  ;;  %v11831_v56 = vor.u32 %v14480_v17, %v11830_v51  ;;  %v14380_v10 = vld [vmem:[#allocation2 + $0xcc] sm:$0xf0]  ;;  %5771 = vmatpush.bf16.msra.mxu1 %v11575_v6 }
 0x3bb   :  { %v11558_v57 = vld [vmem:[#allocation2 + $0x1c0] sm:$0xf]  ;;  %v14412_v59 = vld [vmem:[#allocation2 + $0x1cc] sm:$0xf0]  ;;  %5785 = vmatpush.bf16.msra.mxu2 %v11703_v58  ;;  %v11431_v14 = vor.u32 %v14380_v10, %v11430_v53 }
 0x3bc   :  { %v11559_v52 = vor.u32 %v14412_v59, %v11558_v57  ;;  %v11686_v12 = vld [vmem:[#allocation2 + $0x2c0] sm:$0xf]  ;;  %v14444_v60 = vld [vmem:[#allocation2 + $0x2cc] sm:$0xf0]  ;;  %5799 = vmatpush.bf16.msra.mxu3 %v11831_v56 }
 0x3bd   :  { %v11814_v61 = vld [vmem:[#allocation2 + $0x3c0] sm:$0xf]  ;;  %v11687_v2 = vor.u32 %v14444_v60, %v11686_v12  ;;  %v14476_v4 = vld [vmem:[#allocation2 + $0x3cc] sm:$0xf0]  ;;  %5758 = vmatpush.bf16.msra.mxu0 %v11431_v14 }
 0x3be   :  { %v11414_v5 = vld [vmem:[#allocation2 + $0xa0] sm:$0xf]  ;;  %v14376_v3 = vld [vmem:[#allocation2 + $0xac] sm:$0xf0]  ;;  %v11815_v27 = vor.u32 %v14476_v4, %v11814_v61  ;;  %5772 = vmatpush.bf16.msra.mxu1 %v11559_v52 }
 0x3bf   :  { %v11542_v8 = vld [vmem:[#allocation2 + $0x1a0] sm:$0xf]  ;;  %v14408_v31 = vld [vmem:[#allocation2 + $0x1ac] sm:$0xf0]  ;;  %v11415_v13 = vor.u32 %v14376_v3, %v11414_v5  ;;  %5786 = vmatpush.bf16.msra.mxu2 %v11687_v2 }
 0x3c0   :  { %v11670_v29 = vld [vmem:[#allocation2 + $0x2a0] sm:$0xf]  ;;  %v14440_v16 = vld [vmem:[#allocation2 + $0x2ac] sm:$0xf0]  ;;  %v11543_v43 = vor.u32 %v14408_v31, %v11542_v8  ;;  %5800 = vmatpush.bf16.msra.mxu3 %v11815_v27 }
 0x3c1   :  { %v11798_v39 = vld [vmem:[#allocation2 + $0x3a0] sm:$0xf]  ;;  %v14472_v44 = vld [vmem:[#allocation2 + $0x3ac] sm:$0xf0]  ;;  %v11671_v47 = vor.u32 %v14440_v16, %v11670_v29  ;;  %5759 = vmatpush.bf16.msra.mxu0 %v11415_v13 }
 0x3c2   :  { %v11398_v19 = vld [vmem:[#allocation2 + $0x80] sm:$0xf]  ;;  %v14372_v21 = vld [vmem:[#allocation2 + $0x8c] sm:$0xf0]  ;;  %v11799_v63 = vor.u32 %v14472_v44, %v11798_v39  ;;  %5773 = vmatpush.bf16.msra.mxu1 %v11543_v43 }
 0x3c3   :  { %v11526_v18 = vld [vmem:[#allocation2 + $0x180] sm:$0xf]  ;;  %v14404_v11 = vld [vmem:[#allocation2 + $0x18c] sm:$0xf0]  ;;  %v11399_v20 = vor.u32 %v14372_v21, %v11398_v19  ;;  %5787 = vmatpush.bf16.msra.mxu2 %v11671_v47 }
 0x3c4   :  { %v11654_v22 = vld [vmem:[#allocation2 + $0x280] sm:$0xf]  ;;  %v14436_v24 = vld [vmem:[#allocation2 + $0x28c] sm:$0xf0]  ;;  %v11527_v28 = vor.u32 %v14404_v11, %v11526_v18  ;;  %5801 = vmatpush.bf16.msra.mxu3 %v11799_v63 }
 0x3c5   :  { %v11782_v26 = vld [vmem:[#allocation2 + $0x380] sm:$0xf]  ;;  %v14468_v7 = vld [vmem:[#allocation2 + $0x38c] sm:$0xf0]  ;;  %v11655_v30 = vor.u32 %v14436_v24, %v11654_v22  ;;  %5760 = vmatpush.bf16.msra.mxu0 %v11399_v20 }
 0x3c6   :  { %v11382_v33 = vld [vmem:[#allocation2 + $0x60] sm:$0xf]  ;;  %v14368_v50 = vld [vmem:[#allocation2 + $0x6c] sm:$0xf0]  ;;  %v11783_v37 = vor.u32 %v14468_v7, %v11782_v26  ;;  %5774 = vmatpush.bf16.msra.mxu1 %v11527_v28 }
 0x3c7   :  { %v11510_v34 = vld [vmem:[#allocation2 + $0x160] sm:$0xf]  ;;  %v14400_v54 = vld [vmem:[#allocation2 + $0x16c] sm:$0xf0]  ;;  %v11383_v42 = vor.u32 %v14368_v50, %v11382_v33  ;;  %5788 = vmatpush.bf16.msra.mxu2 %v11655_v30 }
 0x3c8   :  { %v11638_v38 = vld [vmem:[#allocation2 + $0x260] sm:$0xf]  ;;  %v14432_v40 = vld [vmem:[#allocation2 + $0x26c] sm:$0xf0]  ;;  %v11511_v1 = vor.u32 %v14400_v54, %v11510_v34  ;;  %5802 = vmatpush.bf16.msra.mxu3 %v11783_v37 }
 0x3c9   :  { %v11766_v35 = vld [vmem:[#allocation2 + $0x360] sm:$0xf]  ;;  %v14464_v32 = vld [vmem:[#allocation2 + $0x36c] sm:$0xf0]  ;;  %v11639_v45 = vor.u32 %v14432_v40, %v11638_v38  ;;  %5761 = vmatpush.bf16.msra.mxu0 %v11383_v42 }
 0x3ca   :  { %v11366_v46 = vld [vmem:[#allocation2 + $0x40] sm:$0xf]  ;;  %v14364_v48 = vld [vmem:[#allocation2 + $0x4c] sm:$0xf0]  ;;  %v11767_v41 = vor.u32 %v14464_v32, %v11766_v35  ;;  %5775 = vmatpush.bf16.msra.mxu1 %v11511_v1 }
 0x3cb   :  { %v11494_v49 = vld [vmem:[#allocation2 + $0x140] sm:$0xf]  ;;  %v14396_v6 = vld [vmem:[#allocation2 + $0x14c] sm:$0xf0]  ;;  %v11367_v56 = vor.u32 %v14364_v48, %v11366_v46  ;;  %5789 = vmatpush.bf16.msra.mxu2 %v11639_v45 }
 0x3cc   :  { %v11622_v58 = vld [vmem:[#allocation2 + $0x240] sm:$0xf]  ;;  %v14428_v51 = vld [vmem:[#allocation2 + $0x24c] sm:$0xf0]  ;;  %v11495_v10 = vor.u32 %v14396_v6, %v11494_v49  ;;  %5803 = vmatpush.bf16.msra.mxu3 %v11767_v41 }
 0x3cd   :  { %v11750_v17 = vld [vmem:[#allocation2 + $0x340] sm:$0xf]  ;;  %v14460_v53 = vld [vmem:[#allocation2 + $0x34c] sm:$0xf0]  ;;  %v11623_v57 = vor.u32 %v14428_v51, %v11622_v58  ;;  %5762 = vmatpush.bf16.msra.mxu0 %v11367_v56 }
 0x3ce   :  { %v11350_v59 = vld [vmem:[#allocation2 + $0x20] sm:$0xf]  ;;  %v14360_v14 = vld [vmem:[#allocation2 + $0x2c] sm:$0xf0]  ;;  %v11751_v12 = vor.u32 %v14460_v53, %v11750_v17  ;;  %5776 = vmatpush.bf16.msra.mxu1 %v11495_v10 }
 0x3cf   :  { %v11478_v52 = vld [vmem:[#allocation2 + $0x120] sm:$0xf]  ;;  %v14392_v60 = vld [vmem:[#allocation2 + $0x12c] sm:$0xf0]  ;;  %v11351_v3 = vor.u32 %v14360_v14, %v11350_v59  ;;  %5790 = vmatpush.bf16.msra.mxu2 %v11623_v57 }
 0x3d0   :  { %v11606_v61 = vld [vmem:[#allocation2 + $0x220] sm:$0xf]  ;;  %v14424_v2 = vld [vmem:[#allocation2 + $0x22c] sm:$0xf0]  ;;  %v11479_v31 = vor.u32 %v14392_v60, %v11478_v52  ;;  %5804 = vmatpush.bf16.msra.mxu3 %v11751_v12 }
 0x3d1   :  { %v11734_v4 = vld [vmem:[#allocation2 + $0x320] sm:$0xf]  ;;  %v14456_v5 = vld [vmem:[#allocation2 + $0x32c] sm:$0xf0]  ;;  %v11607_v29 = vor.u32 %v14424_v2, %v11606_v61  ;;  %5763 = vmatpush.bf16.msra.mxu0 %v11351_v3 }
 0x3d2   :  { %v11334_v27 = vld [vmem:[#allocation2] sm:$0xf]  ;;  %v14356_v8 = vld [vmem:[#allocation2 + $0xc] sm:$0xf0]  ;;  %v11735_v44 = vor.u32 %v14456_v5, %v11734_v4  ;;  %5777 = vmatpush.bf16.msra.mxu1 %v11479_v31 }
 0x3d3   :  { %v11462_v13 = vld [vmem:[#allocation2 + $0x100] sm:$0xf]  ;;  %v14388_v16 = vld [vmem:[#allocation2 + $0x10c] sm:$0xf0]  ;;  %v11335_v11 = vor.u32 %v14356_v8, %v11334_v27  ;;  %5791 = vmatpush.bf16.msra.mxu2 %v11607_v29 }
 0x3d4   :  { %v11590_v39 = vld [vmem:[#allocation2 + $0x200] sm:$0xf]  ;;  %v14420_v43 = vld [vmem:[#allocation2 + $0x20c] sm:$0xf0]  ;;  %v11463_v7 = vor.u32 %v14388_v16, %v11462_v13  ;;  %5805 = vmatpush.bf16.msra.mxu3 %v11735_v44 }
 0x3d5   :  { %v11718_v47 = vld [vmem:[#allocation2 + $0x300] sm:$0xf]  ;;  %v14452_v19 = vld [vmem:[#allocation2 + $0x30c] sm:$0xf0]  ;;  %v11591_v20 = vor.u32 %v14420_v43, %v11590_v39  ;;  %5764 = vmatpush.bf16.msra.mxu0 %v11335_v11 }
 0x3d6   :  { %v11958_v21 = vld [vmem:[#allocation2 + $0x4e0] sm:$0xf]  ;;  %v14512_v18 = vld [vmem:[#allocation2 + $0x4ec] sm:$0xf0]  ;;  %v11719_v33 = vor.u32 %v14452_v19, %v11718_v47  ;;  %5778 = vmatpush.bf16.msra.mxu1 %v11463_v7 }
 0x3d7   :  { %v12086_v63 = vld [vmem:[#allocation2 + $0x5e0] sm:$0xf]  ;;  %v14544_v22 = vld [vmem:[#allocation2 + $0x5ec] sm:$0xf0]  ;;  %v11959_v50 = vor.u32 %v14512_v18, %v11958_v21  ;;  %5792 = vmatpush.bf16.msra.mxu2 %v11591_v20 }
 0x3d8   :  { %v12214_v24 = vld [vmem:[#allocation2 + $0x6e0] sm:$0xf]  ;;  %v14576_v26 = vld [vmem:[#allocation2 + $0x6ec] sm:$0xf0]  ;;  %v12087_v34 = vor.u32 %v14544_v22, %v12086_v63  ;;  %5806 = vmatpush.bf16.msra.mxu3 %v11719_v33  ;;  %5765 = vmatmul.bf16.vlgmr.msra.gmra.mxu0 %v15379_v0 }
 0x3d9   :  { %v12342_v28 = vld [vmem:[#allocation2 + $0x7e0] sm:$0xf]  ;;  %v14608_v30 = vld [vmem:[#allocation2 + $0x7ec] sm:$0xf0]  ;;  %v12215_v37 = vor.u32 %v14576_v26, %v12214_v24  ;;  %5813 = vmatpush.bf16.msrb.mxu0 %v11959_v50  ;;  %5779 = vmatmul.bf16.vlgmr.msra.gmra.mxu1 %v15400_v15 }
 0x3da   :  { %v11942_v54 = vld [vmem:[#allocation2 + $0x4c0] sm:$0xf]  ;;  %v14508_v38 = vld [vmem:[#allocation2 + $0x4cc] sm:$0xf0]  ;;  %v12343_v35 = vor.u32 %v14608_v30, %v12342_v28  ;;  %5827 = vmatpush.bf16.msrb.mxu1 %v12087_v34  ;;  %5793 = vmatmul.bf16.vlgmr.msra.gmra.mxu2 %v15422_v36 }
 0x3db   :  { %v12070_v40 = vld [vmem:[#allocation2 + $0x5c0] sm:$0xf]  ;;  %v14540_v32 = vld [vmem:[#allocation2 + $0x5cc] sm:$0xf0]  ;;  %v11943_v48 = vor.u32 %v14508_v38, %v11942_v54  ;;  %5841 = vmatpush.bf16.msrb.mxu2 %v12215_v37  ;;  %5807 = vmatmul.bf16.vlgmr.msra.gmra.mxu3 %v15442_v55 }
 0x3dc   :  { %v12198_v42 = vld [vmem:[#allocation2 + $0x6c0] sm:$0xf]  ;;  %v14572_v1 = vld [vmem:[#allocation2 + $0x6cc] sm:$0xf0]  ;;  %v12071_v49 = vor.u32 %v14540_v32, %v12070_v40  ;;  %5855 = vmatpush.bf16.msrb.mxu3 %v12343_v35 }
 0x3dd   :  { %v12326_v45 = vld [vmem:[#allocation2 + $0x7c0] sm:$0xf]  ;;  %v14604_v46 = vld [vmem:[#allocation2 + $0x7cc] sm:$0xf0]  ;;  %v12199_v41 = vor.u32 %v14572_v1, %v12198_v42  ;;  %5814 = vmatpush.bf16.msrb.mxu0 %v11943_v48 }
 0x3de   :  { %v11926_v6 = vld [vmem:[#allocation2 + $0x4a0] sm:$0xf]  ;;  %v14504_v58 = vld [vmem:[#allocation2 + $0x4ac] sm:$0xf0]  ;;  %v12327_v17 = vor.u32 %v14604_v46, %v12326_v45  ;;  %5828 = vmatpush.bf16.msrb.mxu1 %v12071_v49 }
 0x3df   :  { %v12054_v51 = vld [vmem:[#allocation2 + $0x5a0] sm:$0xf]  ;;  %v14536_v53 = vld [vmem:[#allocation2 + $0x5ac] sm:$0xf0]  ;;  %v11927_v14 = vor.u32 %v14504_v58, %v11926_v6  ;;  %5842 = vmatpush.bf16.msrb.mxu2 %v12199_v41 }
 0x3e0   :  { %v12182_v56 = vld [vmem:[#allocation2 + $0x6a0] sm:$0xf]  ;;  %v14568_v10 = vld [vmem:[#allocation2 + $0x6ac] sm:$0xf0]  ;;  %v12055_v52 = vor.u32 %v14536_v53, %v12054_v51  ;;  %5856 = vmatpush.bf16.msrb.mxu3 %v12327_v17 }
 0x3e1   :  { %v12310_v57 = vld [vmem:[#allocation2 + $0x7a0] sm:$0xf]  ;;  %v14600_v59 = vld [vmem:[#allocation2 + $0x7ac] sm:$0xf0]  ;;  %v12183_v12 = vor.u32 %v14568_v10, %v12182_v56  ;;  %5815 = vmatpush.bf16.msrb.mxu0 %v11927_v14 }
 0x3e2   :  { %v11910_v60 = vld [vmem:[#allocation2 + $0x480] sm:$0xf]  ;;  %v14500_v61 = vld [vmem:[#allocation2 + $0x48c] sm:$0xf0]  ;;  %v12311_v4 = vor.u32 %v14600_v59, %v12310_v57  ;;  %5829 = vmatpush.bf16.msrb.mxu1 %v12055_v52 }
 0x3e3   :  { %v12038_v2 = vld [vmem:[#allocation2 + $0x580] sm:$0xf]  ;;  %v14532_v5 = vld [vmem:[#allocation2 + $0x58c] sm:$0xf0]  ;;  %v11911_v29 = vor.u32 %v14500_v61, %v11910_v60  ;;  %5843 = vmatpush.bf16.msrb.mxu2 %v12183_v12  ;;  %v14382_v61 = vld [vmem:[#allocation2 + $0xe4] sm:$0xf] }
 0x3e4   :  { %v12166_v3 = vld [vmem:[#allocation2 + $0x680] sm:$0xf]  ;;  %v14564_v27 = vld [vmem:[#allocation2 + $0x68c] sm:$0xf0]  ;;  %v12039_v13 = vor.u32 %v14532_v5, %v12038_v2  ;;  %5857 = vmatpush.bf16.msrb.mxu3 %v12311_v4  ;;  %v11448_v2 = vld [vmem:[#allocation2 + $0xf0] sm:$0xf0] }
 0x3e5   :  { %v12294_v8 = vld [vmem:[#allocation2 + $0x780] sm:$0xf]  ;;  %v14596_v31 = vld [vmem:[#allocation2 + $0x78c] sm:$0xf0]  ;;  %v12167_v16 = vor.u32 %v14564_v27, %v12166_v3  ;;  %5816 = vmatpush.bf16.msrb.mxu0 %v11911_v29  ;;  %v14414_v4 = vld [vmem:[#allocation2 + $0x1e4] sm:$0xf] }
 0x3e6   :  { %v11894_v39 = vld [vmem:[#allocation2 + $0x460] sm:$0xf]  ;;  %v14496_v44 = vld [vmem:[#allocation2 + $0x46c] sm:$0xf0]  ;;  %v12295_v47 = vor.u32 %v14596_v31, %v12294_v8  ;;  %5830 = vmatpush.bf16.msrb.mxu1 %v12039_v13  ;;  %v11576_v3 = vld [vmem:[#allocation2 + $0x1f0] sm:$0xf0] }
 0x3e7   :  { %v12022_v43 = vld [vmem:[#allocation2 + $0x560] sm:$0xf]  ;;  %v14528_v19 = vld [vmem:[#allocation2 + $0x56c] sm:$0xf0]  ;;  %v11895_v22 = vor.u32 %v14496_v44, %v11894_v39  ;;  %5844 = vmatpush.bf16.msrb.mxu2 %v12167_v16  ;;  %v14446_v27 = vld [vmem:[#allocation2 + $0x2e4] sm:$0xf]  ;;  %v11451_v44 = vor.u32 %v14382_v61, %v11448_v2 }
 0x3e8   :  { %v12150_v21 = vld [vmem:[#allocation2 + $0x660] sm:$0xf]  ;;  %v14560_v18 = vld [vmem:[#allocation2 + $0x66c] sm:$0xf0]  ;;  %v12023_v24 = vor.u32 %v14528_v19, %v12022_v43  ;;  %5858 = vmatpush.bf16.msrb.mxu3 %v12295_v47  ;;  %v11704_v8 = vld [vmem:[#allocation2 + $0x2f0] sm:$0xf0]  ;;  %v11579_v43 = vor.u32 %v14414_v4, %v11576_v3 }
 0x3e9   :  { %v12278_v63 = vld [vmem:[#allocation2 + $0x760] sm:$0xf]  ;;  %v14592_v11 = vld [vmem:[#allocation2 + $0x76c] sm:$0xf0]  ;;  %v12151_v26 = vor.u32 %v14560_v18, %v12150_v21  ;;  %5817 = vmatpush.bf16.msrb.mxu0 %v11895_v22  ;;  %v14478_v13 = vld [vmem:[#allocation2 + $0x3e4] sm:$0xf]  ;;  %v11707_v47 = vor.u32 %v14446_v27, %v11704_v8 }
 0x3ea   :  { %v11878_v7 = vld [vmem:[#allocation2 + $0x440] sm:$0xf]  ;;  %v14492_v20 = vld [vmem:[#allocation2 + $0x44c] sm:$0xf0]  ;;  %v12279_v30 = vor.u32 %v14592_v11, %v12278_v63  ;;  %5831 = vmatpush.bf16.msrb.mxu1 %v12023_v24  ;;  %v11832_v16 = vld [vmem:[#allocation2 + $0x3f0] sm:$0xf0] }
 0x3eb   :  { %v12006_v28 = vld [vmem:[#allocation2 + $0x540] sm:$0xf]  ;;  %v14524_v33 = vld [vmem:[#allocation2 + $0x54c] sm:$0xf0]  ;;  %v11879_v38 = vor.u32 %v14492_v20, %v11878_v7  ;;  %5845 = vmatpush.bf16.msrb.mxu2 %v12151_v26  ;;  %v14378_v19 = vld [vmem:[#allocation2 + $0xc4] sm:$0xf]  ;;  %v11835_v63 = vor.u32 %v14478_v13, %v11832_v16 }
 0x3ec   :  { %v12134_v50 = vld [vmem:[#allocation2 + $0x640] sm:$0xf]  ;;  %v14556_v34 = vld [vmem:[#allocation2 + $0x64c] sm:$0xf0]  ;;  %v12007_v40 = vor.u32 %v14524_v33, %v12006_v28  ;;  %5859 = vmatpush.bf16.msrb.mxu3 %v12279_v30  ;;  %v11432_v21 = vld [vmem:[#allocation2 + $0xd0] sm:$0xf0] }
 0x3ed   :  { %v12262_v37 = vld [vmem:[#allocation2 + $0x740] sm:$0xf]  ;;  %v14588_v54 = vld [vmem:[#allocation2 + $0x74c] sm:$0xf0]  ;;  %v12135_v35 = vor.u32 %v14556_v34, %v12134_v50  ;;  %5818 = vmatpush.bf16.msrb.mxu0 %v11879_v38  ;;  %v14410_v18 = vld [vmem:[#allocation2 + $0x1c4] sm:$0xf]  ;;  %v11435_v20 = vor.u32 %v14378_v19, %v11432_v21 }
 0x3ee   :  { %v11862_v32 = vld [vmem:[#allocation2 + $0x420] sm:$0xf]  ;;  %v14488_v42 = vld [vmem:[#allocation2 + $0x42c] sm:$0xf0]  ;;  %v12263_v45 = vor.u32 %v14588_v54, %v12262_v37  ;;  %5832 = vmatpush.bf16.msrb.mxu1 %v12007_v40  ;;  %v11560_v11 = vld [vmem:[#allocation2 + $0x1d0] sm:$0xf0] }
 0x3ef   :  { %v11990_v1 = vld [vmem:[#allocation2 + $0x520] sm:$0xf]  ;;  %v14520_v46 = vld [vmem:[#allocation2 + $0x52c] sm:$0xf0]  ;;  %v11863_v58 = vor.u32 %v14488_v42, %v11862_v32  ;;  %5846 = vmatpush.bf16.msrb.mxu2 %v12135_v35  ;;  %v14442_v22 = vld [vmem:[#allocation2 + $0x2c4] sm:$0xf]  ;;  %v11563_v28 = vor.u32 %v14410_v18, %v11560_v11 }
 0x3f0   :  { %v12118_v48 = vld [vmem:[#allocation2 + $0x620] sm:$0xf]  ;;  %v14552_v49 = vld [vmem:[#allocation2 + $0x62c] sm:$0xf0]  ;;  %v11991_v53 = vor.u32 %v14520_v46, %v11990_v1  ;;  %5860 = vmatpush.bf16.msrb.mxu3 %v12263_v45  ;;  %v11688_v24 = vld [vmem:[#allocation2 + $0x2d0] sm:$0xf0] }
 0x3f1   :  { %v12246_v41 = vld [vmem:[#allocation2 + $0x720] sm:$0xf]  ;;  %v14584_v6 = vld [vmem:[#allocation2 + $0x72c] sm:$0xf0]  ;;  %v12119_v56 = vor.u32 %v14552_v49, %v12118_v48  ;;  %5819 = vmatpush.bf16.msrb.mxu0 %v11863_v58  ;;  %v14474_v26 = vld [vmem:[#allocation2 + $0x3c4] sm:$0xf]  ;;  %v11691_v30 = vor.u32 %v14442_v22, %v11688_v24 }
 0x3f2   :  { %v11846_v51 = vld [vmem:[#allocation2 + $0x400] sm:$0xf]  ;;  %v14484_v17 = vld [vmem:[#allocation2 + $0x40c] sm:$0xf0]  ;;  %v12247_v14 = vor.u32 %v14584_v6, %v12246_v41  ;;  %5833 = vmatpush.bf16.msrb.mxu1 %v11991_v53  ;;  %v11816_v7 = vld [vmem:[#allocation2 + $0x3d0] sm:$0xf0] }
 0x3f3   :  { %v11974_v10 = vld [vmem:[#allocation2 + $0x500] sm:$0xf]  ;;  %v14516_v57 = vld [vmem:[#allocation2 + $0x50c] sm:$0xf0]  ;;  %v11847_v5 = vor.u32 %v14484_v17, %v11846_v51  ;;  %5847 = vmatpush.bf16.msrb.mxu2 %v12119_v56  ;;  %v14374_v33 = vld [vmem:[#allocation2 + $0xa4] sm:$0xf]  ;;  %v11819_v37 = vor.u32 %v14474_v26, %v11816_v7 }
 0x3f4   :  { %v12102_v59 = vld [vmem:[#allocation2 + $0x600] sm:$0xf]  ;;  %v14548_v52 = vld [vmem:[#allocation2 + $0x60c] sm:$0xf0]  ;;  %v11975_v31 = vor.u32 %v14516_v57, %v11974_v10  ;;  %5861 = vmatpush.bf16.msrb.mxu3 %v12247_v14  ;;  %v11416_v50 = vld [vmem:[#allocation2 + $0xb0] sm:$0xf0] }
 0x3f5   :  { %v12230_v12 = vld [vmem:[#allocation2 + $0x700] sm:$0xf]  ;;  %v14580_v60 = vld [vmem:[#allocation2 + $0x70c] sm:$0xf0]  ;;  %v12103_v29 = vor.u32 %v14548_v52, %v12102_v59  ;;  %5820 = vmatpush.bf16.msrb.mxu0 %v11847_v5  ;;  %v14406_v34 = vld [vmem:[#allocation2 + $0x1a4] sm:$0xf]  ;;  %v11419_v42 = vor.u32 %v14374_v33, %v11416_v50 }
 0x3f6   :  { %v12231_v39 = vor.u32 %v14580_v60, %v12230_v12  ;;  %5834 = vmatpush.bf16.msrb.mxu1 %v11975_v31  ;;  %v11544_v54 = vld [vmem:[#allocation2 + $0x1b0] sm:$0xf0]  ;;  %v14438_v38 = vld [vmem:[#allocation2 + $0x2a4] sm:$0xf] }
 0x3f7   :  { %5848 = vmatpush.bf16.msrb.mxu2 %v12103_v29  ;;  %v11672_v40 = vld [vmem:[#allocation2 + $0x2b0] sm:$0xf0]  ;;  %v14470_v35 = vld [vmem:[#allocation2 + $0x3a4] sm:$0xf]  ;;  %v11547_v1 = vor.u32 %v14406_v34, %v11544_v54 }
 0x3f8   :  { %5862 = vmatpush.bf16.msrb.mxu3 %v12231_v39  ;;  %5821 = vmatmul.bf16.vlgmr.msrb.gmra.mxu0 %v15464_v23  ;;  %v11800_v32 = vld [vmem:[#allocation2 + $0x3b0] sm:$0xf0]  ;;  %v11675_v45 = vor.u32 %v14438_v38, %v11672_v40  ;;  %v14370_v46 = vld [vmem:[#allocation2 + $0x84] sm:$0xf] }
 0x3f9   :  { %5869 = vmatpush.bf16.msra.mxu0 %v11451_v44  ;;  %5835 = vmatmul.bf16.vlgmr.msrb.gmra.mxu1 %v15490_v25  ;;  %v11400_v48 = vld [vmem:[#allocation2 + $0x90] sm:$0xf0]  ;;  %v14402_v49 = vld [vmem:[#allocation2 + $0x184] sm:$0xf]  ;;  %v11803_v41 = vor.u32 %v14470_v35, %v11800_v32 }
 0x3fa   :  { %5883 = vmatpush.bf16.msra.mxu1 %v11579_v43  ;;  %5849 = vmatmul.bf16.vlgmr.msrb.gmra.mxu2 %v15496_v62  ;;  %v11528_v6 = vld [vmem:[#allocation2 + $0x190] sm:$0xf0]  ;;  %v14434_v58 = vld [vmem:[#allocation2 + $0x284] sm:$0xf]  ;;  %v11403_v56 = vor.u32 %v14370_v46, %v11400_v48 }
 0x3fb   :  { %5897 = vmatpush.bf16.msra.mxu2 %v11707_v47  ;;  %5863 = vmatmul.bf16.vlgmr.msrb.gmra.mxu3 %v15499_v9  ;;  %v11656_v51 = vld [vmem:[#allocation2 + $0x290] sm:$0xf0]  ;;  %v14466_v17 = vld [vmem:[#allocation2 + $0x384] sm:$0xf]  ;;  %v11531_v10 = vor.u32 %v14402_v49, %v11528_v6 }
 0x3fc   :  { %5911 = vmatpush.bf16.msra.mxu3 %v11835_v63  ;;  %v11784_v53 = vld [vmem:[#allocation2 + $0x390] sm:$0xf0]  ;;  %v11659_v57 = vor.u32 %v14434_v58, %v11656_v51  ;;  %v14366_v59 = vld [vmem:[#allocation2 + $0x64] sm:$0xf] }
 0x3fd   :  { %5870 = vmatpush.bf16.msra.mxu0 %v11435_v20  ;;  %v11384_v14 = vld [vmem:[#allocation2 + $0x70] sm:$0xf0]  ;;  %v14398_v52 = vld [vmem:[#allocation2 + $0x164] sm:$0xf]  ;;  %v11787_v12 = vor.u32 %v14466_v17, %v11784_v53 }
 0x3fe   :  { %5884 = vmatpush.bf16.msra.mxu1 %v11563_v28  ;;  %v11512_v60 = vld [vmem:[#allocation2 + $0x170] sm:$0xf0]  ;;  %v14430_v61 = vld [vmem:[#allocation2 + $0x264] sm:$0xf]  ;;  %v11387_v3 = vor.u32 %v14366_v59, %v11384_v14 }
 0x3ff   :  { %5898 = vmatpush.bf16.msra.mxu2 %v11691_v30  ;;  %v11640_v2 = vld [vmem:[#allocation2 + $0x270] sm:$0xf0]  ;;  %v14462_v4 = vld [vmem:[#allocation2 + $0x364] sm:$0xf]  ;;  %v11515_v27 = vor.u32 %v14398_v52, %v11512_v60 }
 0x400   :  { %5912 = vmatpush.bf16.msra.mxu3 %v11819_v37  ;;  %v11768_v5 = vld [vmem:[#allocation2 + $0x370] sm:$0xf0]  ;;  %v11643_v8 = vor.u32 %v14430_v61, %v11640_v2  ;;  %v14362_v31 = vld [vmem:[#allocation2 + $0x44] sm:$0xf] }
 0x401   :  { %5871 = vmatpush.bf16.msra.mxu0 %v11419_v42  ;;  %v11368_v29 = vld [vmem:[#allocation2 + $0x50] sm:$0xf0]  ;;  %v14394_v13 = vld [vmem:[#allocation2 + $0x144] sm:$0xf]  ;;  %v11771_v16 = vor.u32 %v14462_v4, %v11768_v5 }
 0x402   :  { %5885 = vmatpush.bf16.msra.mxu1 %v11547_v1  ;;  %v11496_v39 = vld [vmem:[#allocation2 + $0x150] sm:$0xf0]  ;;  %v14426_v44 = vld [vmem:[#allocation2 + $0x244] sm:$0xf]  ;;  %v11371_v21 = vor.u32 %v14362_v31, %v11368_v29 }
 0x403   :  { %5899 = vmatpush.bf16.msra.mxu2 %v11675_v45  ;;  %v11624_v43 = vld [vmem:[#allocation2 + $0x250] sm:$0xf0]  ;;  %v14458_v47 = vld [vmem:[#allocation2 + $0x344] sm:$0xf]  ;;  %v11499_v18 = vor.u32 %v14394_v13, %v11496_v39 }
 0x404   :  { %5913 = vmatpush.bf16.msra.mxu3 %v11803_v41  ;;  %v11752_v19 = vld [vmem:[#allocation2 + $0x350] sm:$0xf0]  ;;  %v11627_v63 = vor.u32 %v14426_v44, %v11624_v43  ;;  %v14358_v11 = vld [vmem:[#allocation2 + $0x24] sm:$0xf] }
 0x405   :  { %5872 = vmatpush.bf16.msra.mxu0 %v11403_v56  ;;  %v11352_v22 = vld [vmem:[#allocation2 + $0x30] sm:$0xf0]  ;;  %v14390_v24 = vld [vmem:[#allocation2 + $0x124] sm:$0xf]  ;;  %v11755_v26 = vor.u32 %v14458_v47, %v11752_v19 }
 0x406   :  { %5886 = vmatpush.bf16.msra.mxu1 %v11531_v10  ;;  %v11480_v7 = vld [vmem:[#allocation2 + $0x130] sm:$0xf0]  ;;  %v14422_v20 = vld [vmem:[#allocation2 + $0x224] sm:$0xf]  ;;  %v11355_v50 = vor.u32 %v14358_v11, %v11352_v22 }
 0x407   :  { %5900 = vmatpush.bf16.msra.mxu2 %v11659_v57  ;;  %v11608_v28 = vld [vmem:[#allocation2 + $0x230] sm:$0xf0]  ;;  %v14454_v30 = vld [vmem:[#allocation2 + $0x324] sm:$0xf]  ;;  %v11483_v54 = vor.u32 %v14390_v24, %v11480_v7 }
 0x408   :  { %5914 = vmatpush.bf16.msra.mxu3 %v11787_v12  ;;  %v11736_v33 = vld [vmem:[#allocation2 + $0x330] sm:$0xf0]  ;;  %v14354_v34 = vld [vmem:[#allocation2 + $0x4] sm:$0xf]  ;;  %v11611_v38 = vor.u32 %v14422_v20, %v11608_v28 }
 0x409   :  { %5873 = vmatpush.bf16.msra.mxu0 %v11387_v3  ;;  %v11336_v37 = vld [vmem:[#allocation2 + $0x10] sm:$0xf0]  ;;  %v14386_v40 = vld [vmem:[#allocation2 + $0x104] sm:$0xf]  ;;  %v11739_v42 = vor.u32 %v14454_v30, %v11736_v33 }
 0x40a   :  { %5887 = vmatpush.bf16.msra.mxu1 %v11515_v27  ;;  %v11464_v35 = vld [vmem:[#allocation2 + $0x110] sm:$0xf0]  ;;  %v14418_v32 = vld [vmem:[#allocation2 + $0x204] sm:$0xf]  ;;  %v11339_v6 = vor.u32 %v14354_v34, %v11336_v37 }
 0x40b   :  { %5901 = vmatpush.bf16.msra.mxu2 %v11643_v8  ;;  %v11592_v1 = vld [vmem:[#allocation2 + $0x210] sm:$0xf0]  ;;  %v14450_v45 = vld [vmem:[#allocation2 + $0x304] sm:$0xf]  ;;  %v11467_v53 = vor.u32 %v14386_v40, %v11464_v35 }
 0x40c   :  { %5915 = vmatpush.bf16.msra.mxu3 %v11771_v16  ;;  %v11720_v46 = vld [vmem:[#allocation2 + $0x310] sm:$0xf0]  ;;  %v14510_v48 = vld [vmem:[#allocation2 + $0x4e4] sm:$0xf]  ;;  %v11595_v56 = vor.u32 %v14418_v32, %v11592_v1 }
 0x40d   :  { %5874 = vmatpush.bf16.msra.mxu0 %v11371_v21  ;;  %v11960_v49 = vld [vmem:[#allocation2 + $0x4f0] sm:$0xf0]  ;;  %v14542_v41 = vld [vmem:[#allocation2 + $0x5e4] sm:$0xf]  ;;  %v11723_v59 = vor.u32 %v14450_v45, %v11720_v46 }
 0x40e   :  { %5888 = vmatpush.bf16.msra.mxu1 %v11499_v18  ;;  %v12088_v58 = vld [vmem:[#allocation2 + $0x5f0] sm:$0xf0]  ;;  %v14574_v51 = vld [vmem:[#allocation2 + $0x6e4] sm:$0xf]  ;;  %v11963_v14 = vor.u32 %v14510_v48, %v11960_v49 }
 0x40f   :  { %5902 = vmatpush.bf16.msra.mxu2 %v11627_v63  ;;  %v12216_v17 = vld [vmem:[#allocation2 + $0x6f0] sm:$0xf0]  ;;  %v14606_v10 = vld [vmem:[#allocation2 + $0x7e4] sm:$0xf]  ;;  %v12091_v52 = vor.u32 %v14542_v41, %v12088_v58 }
 0x410   :  { %5916 = vmatpush.bf16.msra.mxu3 %v11755_v26  ;;  %v12344_v57 = vld [vmem:[#allocation2 + $0x7f0] sm:$0xf0]  ;;  %v12219_v12 = vor.u32 %v14574_v51, %v12216_v17  ;;  %v14506_v60 = vld [vmem:[#allocation2 + $0x4c4] sm:$0xf] }
 0x411   :  { %5875 = vmatpush.bf16.msra.mxu0 %v11355_v50  ;;  %v11944_v61 = vld [vmem:[#allocation2 + $0x4d0] sm:$0xf0]  ;;  %v14538_v2 = vld [vmem:[#allocation2 + $0x5c4] sm:$0xf]  ;;  %v12347_v4 = vor.u32 %v14606_v10, %v12344_v57 }
 0x412   :  { %5889 = vmatpush.bf16.msra.mxu1 %v11483_v54  ;;  %v12072_v5 = vld [vmem:[#allocation2 + $0x5d0] sm:$0xf0]  ;;  %v14570_v3 = vld [vmem:[#allocation2 + $0x6c4] sm:$0xf]  ;;  %v11947_v29 = vor.u32 %v14506_v60, %v11944_v61 }
 0x413   :  { %5903 = vmatpush.bf16.msra.mxu2 %v11611_v38  ;;  %v12200_v27 = vld [vmem:[#allocation2 + $0x6d0] sm:$0xf0]  ;;  %v14602_v8 = vld [vmem:[#allocation2 + $0x7c4] sm:$0xf]  ;;  %v12075_v13 = vor.u32 %v14538_v2, %v12072_v5 }
 0x414   :  { %5917 = vmatpush.bf16.msra.mxu3 %v11739_v42  ;;  %v12328_v31 = vld [vmem:[#allocation2 + $0x7d0] sm:$0xf0]  ;;  %v12203_v16 = vor.u32 %v14570_v3, %v12200_v27  ;;  %v14502_v39 = vld [vmem:[#allocation2 + $0x4a4] sm:$0xf] }
 0x415   :  { %5876 = vmatpush.bf16.msra.mxu0 %v11339_v6  ;;  %v11928_v44 = vld [vmem:[#allocation2 + $0x4b0] sm:$0xf0]  ;;  %v14534_v43 = vld [vmem:[#allocation2 + $0x5a4] sm:$0xf]  ;;  %v12331_v47 = vor.u32 %v14602_v8, %v12328_v31 }
 0x416   :  { %5890 = vmatpush.bf16.msra.mxu1 %v11467_v53  ;;  %v12056_v19 = vld [vmem:[#allocation2 + $0x5b0] sm:$0xf0]  ;;  %v14566_v21 = vld [vmem:[#allocation2 + $0x6a4] sm:$0xf]  ;;  %v11931_v22 = vor.u32 %v14502_v39, %v11928_v44 }
 0x417   :  { %5904 = vmatpush.bf16.msra.mxu2 %v11595_v56  ;;  %v12184_v18 = vld [vmem:[#allocation2 + $0x6b0] sm:$0xf0]  ;;  %v14598_v63 = vld [vmem:[#allocation2 + $0x7a4] sm:$0xf]  ;;  %v12059_v24 = vor.u32 %v14534_v43, %v12056_v19 }
 0x418   :  { %5918 = vmatpush.bf16.msra.mxu3 %v11723_v59  ;;  %5877 = vmatmul.bf16.vlgmr.msra.gmra.mxu0 %v15379_v0  ;;  %v12312_v11 = vld [vmem:[#allocation2 + $0x7b0] sm:$0xf0]  ;;  %v12187_v26 = vor.u32 %v14566_v21, %v12184_v18  ;;  %v14498_v7 = vld [vmem:[#allocation2 + $0x484] sm:$0xf] }
 0x419   :  { %5925 = vmatpush.bf16.msrb.mxu0 %v11963_v14  ;;  %5891 = vmatmul.bf16.vlgmr.msra.gmra.mxu1 %v15400_v15  ;;  %v11912_v20 = vld [vmem:[#allocation2 + $0x490] sm:$0xf0]  ;;  %v14530_v28 = vld [vmem:[#allocation2 + $0x584] sm:$0xf]  ;;  %v12315_v30 = vor.u32 %v14598_v63, %v12312_v11 }
 0x41a   :  { %5939 = vmatpush.bf16.msrb.mxu1 %v12091_v52  ;;  %5905 = vmatmul.bf16.vlgmr.msra.gmra.mxu2 %v15422_v36  ;;  %v12040_v33 = vld [vmem:[#allocation2 + $0x590] sm:$0xf0]  ;;  %v14562_v50 = vld [vmem:[#allocation2 + $0x684] sm:$0xf]  ;;  %v11915_v38 = vor.u32 %v14498_v7, %v11912_v20  ;;  %v11454_v20 = vld [vmem:[#allocation2 + $0xe8] sm:$0xf] }
 0x41b   :  { %5953 = vmatpush.bf16.msrb.mxu2 %v12219_v12  ;;  %5919 = vmatmul.bf16.vlgmr.msra.gmra.mxu3 %v15442_v55  ;;  %v12168_v34 = vld [vmem:[#allocation2 + $0x690] sm:$0xf0]  ;;  %v14594_v37 = vld [vmem:[#allocation2 + $0x784] sm:$0xf]  ;;  %v12043_v40 = vor.u32 %v14530_v28, %v12040_v33  ;;  %v14385_v28 = vld [vmem:[#allocation2 + $0xf4] sm:$0xf0] }
 0x41c   :  { %5967 = vmatpush.bf16.msrb.mxu3 %v12347_v4  ;;  %v12296_v54 = vld [vmem:[#allocation2 + $0x790] sm:$0xf0]  ;;  %v12171_v35 = vor.u32 %v14562_v50, %v12168_v34  ;;  %v14494_v32 = vld [vmem:[#allocation2 + $0x464] sm:$0xf]  ;;  %v14417_v50 = vld [vmem:[#allocation2 + $0x1f4] sm:$0xf0] }
 0x41d   :  { %5926 = vmatpush.bf16.msrb.mxu0 %v11947_v29  ;;  %v11896_v42 = vld [vmem:[#allocation2 + $0x470] sm:$0xf0]  ;;  %v14526_v1 = vld [vmem:[#allocation2 + $0x564] sm:$0xf]  ;;  %v12299_v45 = vor.u32 %v14594_v37, %v12296_v54  ;;  %v11710_v34 = vld [vmem:[#allocation2 + $0x2e8] sm:$0xf] }
 0x41e   :  { %5940 = vmatpush.bf16.msrb.mxu1 %v12075_v13  ;;  %v12024_v46 = vld [vmem:[#allocation2 + $0x570] sm:$0xf0]  ;;  %v14558_v48 = vld [vmem:[#allocation2 + $0x664] sm:$0xf]  ;;  %v11899_v58 = vor.u32 %v14494_v32, %v11896_v42  ;;  %v14449_v37 = vld [vmem:[#allocation2 + $0x2f4] sm:$0xf0]  ;;  %v11455_v42 = vor.u32 %v14385_v28, %v11454_v20 }
 0x41f   :  { %5954 = vmatpush.bf16.msrb.mxu2 %v12203_v16  ;;  %v12152_v49 = vld [vmem:[#allocation2 + $0x670] sm:$0xf0]  ;;  %v14590_v41 = vld [vmem:[#allocation2 + $0x764] sm:$0xf]  ;;  %v12027_v51 = vor.u32 %v14526_v1, %v12024_v46  ;;  %v11438_v46 = vld [vmem:[#allocation2 + $0xc8] sm:$0xf] }
 0x420   :  { %5968 = vmatpush.bf16.msrb.mxu3 %v12331_v47  ;;  %v12280_v6 = vld [vmem:[#allocation2 + $0x770] sm:$0xf0]  ;;  %v12155_v17 = vor.u32 %v14558_v48, %v12152_v49  ;;  %v14490_v53 = vld [vmem:[#allocation2 + $0x444] sm:$0xf]  ;;  %v14381_v48 = vld [vmem:[#allocation2 + $0xd4] sm:$0xf0] }
 0x421   :  { %5927 = vmatpush.bf16.msrb.mxu0 %v11931_v22  ;;  %v11880_v56 = vld [vmem:[#allocation2 + $0x450] sm:$0xf0]  ;;  %v14522_v10 = vld [vmem:[#allocation2 + $0x544] sm:$0xf]  ;;  %v12283_v57 = vor.u32 %v14590_v41, %v12280_v6  ;;  %v11566_v49 = vld [vmem:[#allocation2 + $0x1c8] sm:$0xf] }
 0x422   :  { %5941 = vmatpush.bf16.msrb.mxu1 %v12059_v24  ;;  %v12008_v59 = vld [vmem:[#allocation2 + $0x550] sm:$0xf0]  ;;  %v14554_v14 = vld [vmem:[#allocation2 + $0x644] sm:$0xf]  ;;  %v11883_v61 = vor.u32 %v14490_v53, %v11880_v56  ;;  %v14413_v6 = vld [vmem:[#allocation2 + $0x1d4] sm:$0xf0]  ;;  %v11439_v56 = vor.u32 %v14381_v48, %v11438_v46 }
 0x423   :  { %5955 = vmatpush.bf16.msrb.mxu2 %v12187_v26  ;;  %v12136_v52 = vld [vmem:[#allocation2 + $0x650] sm:$0xf0]  ;;  %v14586_v12 = vld [vmem:[#allocation2 + $0x744] sm:$0xf]  ;;  %v12011_v2 = vor.u32 %v14522_v10, %v12008_v59  ;;  %v14477_v53 = vld [vmem:[#allocation2 + $0x3d4] sm:$0xf0]  ;;  %v11567_v10 = vor.u32 %v14413_v6, %v11566_v49 }
 0x424   :  { %5969 = vmatpush.bf16.msrb.mxu3 %v12315_v30  ;;  %v12264_v60 = vld [vmem:[#allocation2 + $0x750] sm:$0xf0]  ;;  %v12139_v4 = vor.u32 %v14554_v14, %v12136_v52  ;;  %v14486_v5 = vld [vmem:[#allocation2 + $0x424] sm:$0xf]  ;;  %v11582_v30 = vld [vmem:[#allocation2 + $0x1e8] sm:$0xf] }
 0x425   :  { %5928 = vmatpush.bf16.msrb.mxu0 %v11915_v38  ;;  %v11864_v3 = vld [vmem:[#allocation2 + $0x430] sm:$0xf0]  ;;  %v14518_v27 = vld [vmem:[#allocation2 + $0x524] sm:$0xf]  ;;  %v12267_v8 = vor.u32 %v14586_v12, %v12264_v60  ;;  %v11583_v1 = vor.u32 %v14417_v50, %v11582_v30  ;;  %v11422_v59 = vld [vmem:[#allocation2 + $0xa8] sm:$0xf] }
 0x426   :  { %5942 = vmatpush.bf16.msrb.mxu1 %v12043_v40  ;;  %v11992_v31 = vld [vmem:[#allocation2 + $0x530] sm:$0xf0]  ;;  %v14550_v29 = vld [vmem:[#allocation2 + $0x624] sm:$0xf]  ;;  %v11867_v44 = vor.u32 %v14486_v5, %v11864_v3  ;;  %v11838_v40 = vld [vmem:[#allocation2 + $0x3e8] sm:$0xf] }
 0x427   :  { %5956 = vmatpush.bf16.msrb.mxu2 %v12171_v35  ;;  %v12120_v13 = vld [vmem:[#allocation2 + $0x630] sm:$0xf0]  ;;  %v14582_v16 = vld [vmem:[#allocation2 + $0x724] sm:$0xf]  ;;  %v11995_v19 = vor.u32 %v14518_v27, %v11992_v31  ;;  %v14481_v35 = vld [vmem:[#allocation2 + $0x3f4] sm:$0xf0] }
 0x428   :  { %5970 = vmatpush.bf16.msrb.mxu3 %v12299_v45  ;;  %v12248_v39 = vld [vmem:[#allocation2 + $0x730] sm:$0xf0]  ;;  %v14482_v43 = vld [vmem:[#allocation2 + $0x404] sm:$0xf]  ;;  %v12123_v21 = vor.u32 %v14550_v29, %v12120_v13  ;;  %v11711_v45 = vor.u32 %v14449_v37, %v11710_v34  ;;  %v11839_v41 = vor.u32 %v14481_v35, %v11838_v40  ;;  %v14377_v14 = vld [vmem:[#allocation2 + $0xb4] sm:$0xf0] }
 0x429   :  { %5929 = vmatpush.bf16.msrb.mxu0 %v11899_v58  ;;  %v11848_v47 = vld [vmem:[#allocation2 + $0x410] sm:$0xf0]  ;;  %v14514_v18 = vld [vmem:[#allocation2 + $0x504] sm:$0xf]  ;;  %v12251_v22 = vor.u32 %v14582_v16, %v12248_v39  ;;  %v11694_v58 = vld [vmem:[#allocation2 + $0x2c8] sm:$0xf]  ;;  %v11423_v3 = vor.u32 %v14377_v14, %v11422_v59 }
 0x42a   :  { %5943 = vmatpush.bf16.msrb.mxu1 %v12027_v51  ;;  %v11976_v63 = vld [vmem:[#allocation2 + $0x510] sm:$0xf0]  ;;  %v14546_v11 = vld [vmem:[#allocation2 + $0x604] sm:$0xf]  ;;  %v11851_v33 = vor.u32 %v14482_v43, %v11848_v47  ;;  %v14445_v51 = vld [vmem:[#allocation2 + $0x2d4] sm:$0xf0] }
 0x42b   :  { %5957 = vmatpush.bf16.msrb.mxu2 %v12155_v17  ;;  %v12104_v24 = vld [vmem:[#allocation2 + $0x610] sm:$0xf0]  ;;  %v14578_v26 = vld [vmem:[#allocation2 + $0x704] sm:$0xf]  ;;  %v11979_v54 = vor.u32 %v14514_v18, %v11976_v63  ;;  %v11822_v17 = vld [vmem:[#allocation2 + $0x3c8] sm:$0xf] }
 0x42c   :  { %5971 = vmatpush.bf16.msrb.mxu3 %v12283_v57  ;;  %v12232_v7 = vld [vmem:[#allocation2 + $0x710] sm:$0xf0]  ;;  %v12107_v38 = vor.u32 %v14546_v11, %v12104_v24  ;;  %v11695_v57 = vor.u32 %v14445_v51, %v11694_v58  ;;  %v11550_v52 = vld [vmem:[#allocation2 + $0x1a8] sm:$0xf]  ;;  %v11823_v12 = vor.u32 %v14477_v53, %v11822_v17  ;;  %v14409_v60 = vld [vmem:[#allocation2 + $0x1b4] sm:$0xf0] }
 0x42d   :  { %5930 = vmatpush.bf16.msrb.mxu0 %v11883_v61  ;;  %v12235_v32 = vor.u32 %v14578_v26, %v12232_v7  ;;  %v11678_v61 = vld [vmem:[#allocation2 + $0x2a8] sm:$0xf]  ;;  %v14473_v5 = vld [vmem:[#allocation2 + $0x3b4] sm:$0xf0]  ;;  %v11551_v27 = vor.u32 %v14409_v60, %v11550_v52 }
 0x42e   :  { %5944 = vmatpush.bf16.msrb.mxu1 %v12011_v2  ;;  %v14441_v2 = vld [vmem:[#allocation2 + $0x2b4] sm:$0xf0]  ;;  %v11406_v31 = vld [vmem:[#allocation2 + $0x88] sm:$0xf] }
 0x42f   :  { %5958 = vmatpush.bf16.msrb.mxu2 %v12139_v4  ;;  %v11806_v4 = vld [vmem:[#allocation2 + $0x3a8] sm:$0xf]  ;;  %v14373_v29 = vld [vmem:[#allocation2 + $0x94] sm:$0xf0] }
 0x430   :  { %5972 = vmatpush.bf16.msrb.mxu3 %v12267_v8  ;;  %v11679_v8 = vor.u32 %v14441_v2, %v11678_v61  ;;  %v11534_v13 = vld [vmem:[#allocation2 + $0x188] sm:$0xf]  ;;  %v11807_v16 = vor.u32 %v14473_v5, %v11806_v4  ;;  %v14405_v39 = vld [vmem:[#allocation2 + $0x194] sm:$0xf0] }
 0x431   :  { %5931 = vmatpush.bf16.msrb.mxu0 %v11867_v44  ;;  %v11662_v44 = vld [vmem:[#allocation2 + $0x288] sm:$0xf]  ;;  %v14437_v43 = vld [vmem:[#allocation2 + $0x294] sm:$0xf0]  ;;  %v11535_v18 = vor.u32 %v14405_v39, %v11534_v13 }
 0x432   :  { %5945 = vmatpush.bf16.msrb.mxu1 %v11995_v19  ;;  %v11790_v47 = vld [vmem:[#allocation2 + $0x388] sm:$0xf]  ;;  %v14469_v19 = vld [vmem:[#allocation2 + $0x394] sm:$0xf0]  ;;  %v11663_v63 = vor.u32 %v14437_v43, %v11662_v44 }
 0x433   :  { %5959 = vmatpush.bf16.msrb.mxu2 %v12123_v21  ;;  %v11407_v21 = vor.u32 %v14373_v29, %v11406_v31  ;;  %v11390_v11 = vld [vmem:[#allocation2 + $0x68] sm:$0xf]  ;;  %v11791_v26 = vor.u32 %v14469_v19, %v11790_v47  ;;  %v14401_v7 = vld [vmem:[#allocation2 + $0x174] sm:$0xf0] }
 0x434   :  { %5973 = vmatpush.bf16.msrb.mxu3 %v12251_v22  ;;  %v14369_v22 = vld [vmem:[#allocation2 + $0x74] sm:$0xf0]  ;;  %v11518_v24 = vld [vmem:[#allocation2 + $0x168] sm:$0xf] }
 0x435   :  { %5932 = vmatpush.bf16.msrb.mxu0 %v11851_v33  ;;  %v11646_v20 = vld [vmem:[#allocation2 + $0x268] sm:$0xf]  ;;  %v14433_v28 = vld [vmem:[#allocation2 + $0x274] sm:$0xf0]  ;;  %v11391_v50 = vor.u32 %v14369_v22, %v11390_v11  ;;  %v11519_v34 = vor.u32 %v14401_v7, %v11518_v24 }
 0x436   :  { %5946 = vmatpush.bf16.msrb.mxu1 %v11979_v54  ;;  %v11774_v30 = vld [vmem:[#allocation2 + $0x368] sm:$0xf]  ;;  %v14465_v33 = vld [vmem:[#allocation2 + $0x374] sm:$0xf0]  ;;  %v11647_v37 = vor.u32 %v14433_v28, %v11646_v20 }
 0x437   :  { %5960 = vmatpush.bf16.msrb.mxu2 %v12107_v38  ;;  %v11374_v54 = vld [vmem:[#allocation2 + $0x48] sm:$0xf]  ;;  %v14365_v38 = vld [vmem:[#allocation2 + $0x54] sm:$0xf0]  ;;  %v11775_v35 = vor.u32 %v14465_v33, %v11774_v30 }
 0x438   :  { %5974 = vmatpush.bf16.msrb.mxu3 %v12235_v32  ;;  %5933 = vmatmul.bf16.vlgmr.msrb.gmra.mxu0 %v15464_v23  ;;  %v11502_v40 = vld [vmem:[#allocation2 + $0x148] sm:$0xf]  ;;  %v14397_v32 = vld [vmem:[#allocation2 + $0x154] sm:$0xf0]  ;;  %v11375_v48 = vor.u32 %v14365_v38, %v11374_v54 }
 0x439   :  { %5981 = vmatpush.bf16.msra.mxu0 %v11455_v42  ;;  %5947 = vmatmul.bf16.vlgmr.msrb.gmra.mxu1 %v15490_v25  ;;  %v11630_v42 = vld [vmem:[#allocation2 + $0x248] sm:$0xf]  ;;  %v14461_v46 = vld [vmem:[#allocation2 + $0x354] sm:$0xf0]  ;;  %v11503_v49 = vor.u32 %v14397_v32, %v11502_v40 }
 0x43a   :  { %5995 = vmatpush.bf16.msra.mxu1 %v11583_v1  ;;  %5961 = vmatmul.bf16.vlgmr.msrb.gmra.mxu2 %v15496_v62  ;;  %v14429_v1 = vld [vmem:[#allocation2 + $0x254] sm:$0xf0]  ;;  %v11358_v6 = vld [vmem:[#allocation2 + $0x28] sm:$0xf] }
 0x43b   :  { %6009 = vmatpush.bf16.msra.mxu2 %v11711_v45  ;;  %5975 = vmatmul.bf16.vlgmr.msrb.gmra.mxu3 %v15499_v9  ;;  %v11758_v45 = vld [vmem:[#allocation2 + $0x348] sm:$0xf]  ;;  %v14361_v58 = vld [vmem:[#allocation2 + $0x34] sm:$0xf0] }
 0x43c   :  { %6023 = vmatpush.bf16.msra.mxu3 %v11839_v41  ;;  %v11631_v41 = vor.u32 %v14429_v1, %v11630_v42  ;;  %v11486_v51 = vld [vmem:[#allocation2 + $0x128] sm:$0xf]  ;;  %v11759_v17 = vor.u32 %v14461_v46, %v11758_v45  ;;  %v14393_v53 = vld [vmem:[#allocation2 + $0x134] sm:$0xf0]  ;;  %v11359_v14 = vor.u32 %v14361_v58, %v11358_v6 }
 0x43d   :  { %5982 = vmatpush.bf16.msra.mxu0 %v11439_v56  ;;  %v11614_v56 = vld [vmem:[#allocation2 + $0x228] sm:$0xf]  ;;  %v14457_v59 = vld [vmem:[#allocation2 + $0x334] sm:$0xf0]  ;;  %v11487_v60 = vor.u32 %v14393_v53, %v11486_v51 }
 0x43e   :  { %5996 = vmatpush.bf16.msra.mxu1 %v11567_v10  ;;  %v14425_v10 = vld [vmem:[#allocation2 + $0x234] sm:$0xf0]  ;;  %v11342_v52 = vld [vmem:[#allocation2 + $0x8] sm:$0xf] }
 0x43f   :  { %6010 = vmatpush.bf16.msra.mxu2 %v11695_v57  ;;  %v11742_v57 = vld [vmem:[#allocation2 + $0x328] sm:$0xf]  ;;  %v11615_v61 = vor.u32 %v14425_v10, %v11614_v56  ;;  %v14389_v4 = vld [vmem:[#allocation2 + $0x114] sm:$0xf0] }
 0x440   :  { %6024 = vmatpush.bf16.msra.mxu3 %v11823_v12  ;;  %v14357_v12 = vld [vmem:[#allocation2 + $0x14] sm:$0xf0]  ;;  %v11470_v2 = vld [vmem:[#allocation2 + $0x108] sm:$0xf] }
 0x441   :  { %5983 = vmatpush.bf16.msra.mxu0 %v11423_v3  ;;  %v11598_v5 = vld [vmem:[#allocation2 + $0x208] sm:$0xf]  ;;  %v11743_v3 = vor.u32 %v14457_v59, %v11742_v57  ;;  %v14453_v31 = vld [vmem:[#allocation2 + $0x314] sm:$0xf0]  ;;  %v11343_v39 = vor.u32 %v14357_v12, %v11342_v52  ;;  %v11471_v19 = vor.u32 %v14389_v4, %v11470_v2 }
 0x442   :  { %5997 = vmatpush.bf16.msra.mxu1 %v11551_v27  ;;  %v14421_v27 = vld [vmem:[#allocation2 + $0x214] sm:$0xf0]  ;;  %v11966_v29 = vld [vmem:[#allocation2 + $0x4e8] sm:$0xf] }
 0x443   :  { %6011 = vmatpush.bf16.msra.mxu2 %v11679_v8  ;;  %v11726_v8 = vld [vmem:[#allocation2 + $0x308] sm:$0xf]  ;;  %v14513_v13 = vld [vmem:[#allocation2 + $0x4f4] sm:$0xf0] }
 0x444   :  { %6025 = vmatpush.bf16.msra.mxu3 %v11807_v16  ;;  %v12094_v16 = vld [vmem:[#allocation2 + $0x5e8] sm:$0xf]  ;;  %v14545_v44 = vld [vmem:[#allocation2 + $0x5f4] sm:$0xf0]  ;;  %v11727_v11 = vor.u32 %v14453_v31, %v11726_v8  ;;  %v11967_v22 = vor.u32 %v14513_v13, %v11966_v29 }
 0x445   :  { %5984 = vmatpush.bf16.msra.mxu0 %v11407_v21  ;;  %v12222_v43 = vld [vmem:[#allocation2 + $0x6e8] sm:$0xf]  ;;  %v14577_v47 = vld [vmem:[#allocation2 + $0x6f4] sm:$0xf0]  ;;  %v11599_v21 = vor.u32 %v14421_v27, %v11598_v5  ;;  %v12095_v24 = vor.u32 %v14545_v44, %v12094_v16 }
 0x446   :  { %5998 = vmatpush.bf16.msra.mxu1 %v11535_v18  ;;  %v12350_v18 = vld [vmem:[#allocation2 + $0x7e8] sm:$0xf]  ;;  %v14509_v20 = vld [vmem:[#allocation2 + $0x4d4] sm:$0xf0] }
 0x447   :  { %6012 = vmatpush.bf16.msra.mxu2 %v11663_v63  ;;  %v14609_v63 = vld [vmem:[#allocation2 + $0x7f4] sm:$0xf0]  ;;  %v11950_v7 = vld [vmem:[#allocation2 + $0x4c8] sm:$0xf] }
 0x448   :  { %6026 = vmatpush.bf16.msra.mxu3 %v11791_v26  ;;  %v12223_v26 = vor.u32 %v14577_v47, %v12222_v43  ;;  %v12078_v28 = vld [vmem:[#allocation2 + $0x5c8] sm:$0xf]  ;;  %v12351_v30 = vor.u32 %v14609_v63, %v12350_v18  ;;  %v14541_v33 = vld [vmem:[#allocation2 + $0x5d4] sm:$0xf0]  ;;  %v11951_v38 = vor.u32 %v14509_v20, %v11950_v7 }
 0x449   :  { %5985 = vmatpush.bf16.msra.mxu0 %v11391_v50  ;;  %v12206_v50 = vld [vmem:[#allocation2 + $0x6c8] sm:$0xf]  ;;  %v14605_v54 = vld [vmem:[#allocation2 + $0x7d4] sm:$0xf0] }
 0x44a   :  { %5999 = vmatpush.bf16.msra.mxu1 %v11519_v34  ;;  %v14573_v34 = vld [vmem:[#allocation2 + $0x6d4] sm:$0xf0]  ;;  %v11934_v40 = vld [vmem:[#allocation2 + $0x4a8] sm:$0xf] }
 0x44b   :  { %6013 = vmatpush.bf16.msra.mxu2 %v11647_v37  ;;  %v12334_v37 = vld [vmem:[#allocation2 + $0x7c8] sm:$0xf]  ;;  %v12207_v32 = vor.u32 %v14573_v34, %v12206_v50  ;;  %v14505_v42 = vld [vmem:[#allocation2 + $0x4b4] sm:$0xf0] }
 0x44c   :  { %6027 = vmatpush.bf16.msra.mxu3 %v11775_v35  ;;  %v12079_v35 = vor.u32 %v14541_v33, %v12078_v28  ;;  %v12062_v1 = vld [vmem:[#allocation2 + $0x5a8] sm:$0xf]  ;;  %v12335_v46 = vor.u32 %v14605_v54, %v12334_v37  ;;  %v14601_v58 = vld [vmem:[#allocation2 + $0x7b4] sm:$0xf0]  ;;  %v11935_v51 = vor.u32 %v14505_v42, %v11934_v40 }
 0x44d   :  { %5986 = vmatpush.bf16.msra.mxu0 %v11375_v48  ;;  %v15517_v45 = vld [vmem:[#allocation14 + $0x8] sm:$0xf]  ;;  %v14537_v48 = vld [vmem:[#allocation2 + $0x5b4] sm:$0xf0] }
 0x44e   :  { %6000 = vmatpush.bf16.msra.mxu1 %v11503_v49  ;;  %v12190_v49 = vld [vmem:[#allocation2 + $0x6a8] sm:$0xf]  ;;  %v12063_v53 = vor.u32 %v14537_v48, %v12062_v1  ;;  %v14501_v57 = vld [vmem:[#allocation2 + $0x494] sm:$0xf0] }
 0x44f   :  { %6014 = vmatpush.bf16.msra.mxu2 %v11631_v41  ;;  %v14569_v41 = vld [vmem:[#allocation2 + $0x6b4] sm:$0xf0]  ;;  %v12318_v6 = vld [vmem:[#allocation2 + $0x7a8] sm:$0xf] }
 0x450   :  { %6028 = vmatpush.bf16.msra.mxu3 %v11759_v17  ;;  %v4469_v17 = vperm.slane %v15517_v45, 0  ;;  %v12191_v56 = vor.u32 %v14569_v41, %v12190_v49  ;;  %v11918_v10 = vld [vmem:[#allocation2 + $0x488] sm:$0xf]  ;;  %v14533_v52 = vld [vmem:[#allocation2 + $0x594] sm:$0xf0] }
 0x451   :  { %5987 = vmatpush.bf16.msra.mxu0 %v11359_v14  ;;  %v12046_v59 = vld [vmem:[#allocation2 + $0x588] sm:$0xf]  ;;  %v12319_v14 = vor.u32 %v14601_v58, %v12318_v6  ;;  %v14597_v2 = vld [vmem:[#allocation2 + $0x794] sm:$0xf0]  ;;  %v11919_v5 = vor.u32 %v14501_v57, %v11918_v10 }
 0x452   :  { %6001 = vmatpush.bf16.msra.mxu1 %v11487_v60  ;;  %v12174_v12 = vld [vmem:[#allocation2 + $0x688] sm:$0xf]  ;;  %v14565_v60 = vld [vmem:[#allocation2 + $0x694] sm:$0xf0]  ;;  %v12047_v8 = vor.u32 %v14533_v52, %v12046_v59 }
 0x453   :  { %6015 = vmatpush.bf16.msra.mxu2 %v11615_v61  ;;  %v12302_v61 = vld [vmem:[#allocation2 + $0x788] sm:$0xf]  ;;  %v12175_v31 = vor.u32 %v14565_v60, %v12174_v12  ;;  %v14497_v13 = vld [vmem:[#allocation2 + $0x474] sm:$0xf0] }
 0x454   :  { %6029 = vmatpush.bf16.msra.mxu3 %v11743_v3  ;;  %v11902_v29 = vld [vmem:[#allocation2 + $0x468] sm:$0xf]  ;;  %v14529_v44 = vld [vmem:[#allocation2 + $0x574] sm:$0xf0] }
 0x455   :  { %5988 = vmatpush.bf16.msra.mxu0 %v11343_v39  ;;  %v5766_v4 = vpop.f32.mrf.mxu0  ;;  %v12030_v16 = vld [vmem:[#allocation2 + $0x568] sm:$0xf]  ;;  %v12303_v39 = vor.u32 %v14597_v2, %v12302_v61  ;;  %v14561_v47 = vld [vmem:[#allocation2 + $0x674] sm:$0xf0]  ;;  %v11903_v63 = vor.u32 %v14497_v13, %v11902_v29  ;;  %v14383_v29 = vld [vmem:[#allocation2 + $0xec] sm:$0xf] }
 0x456   :  { %6002 = vmatpush.bf16.msra.mxu1 %v11471_v19  ;;  %v5767_v3 = vadd.f32 %v5766_v4, %v4469_v17  ;;  %v5780_v27 = vpop.f32.mrf.mxu1  ;;  %v12158_v43 = vld [vmem:[#allocation2 + $0x668] sm:$0xf]  ;;  %v14593_v18 = vld [vmem:[#allocation2 + $0x774] sm:$0xf0]  ;;  %v11456_v13 = vld [vmem:[#allocation2 + $0xf8] sm:$0xf0] }
 0x457   :  { %6016 = vmatpush.bf16.msra.mxu2 %v11599_v21  ;;  %v12286_v21 = vld [vmem:[#allocation2 + $0x768] sm:$0xf]  ;;  %v14525_v28 = vld [vmem:[#allocation2 + $0x554] sm:$0xf0] }
 0x458   :  { %6030 = vmatpush.bf16.msra.mxu3 %v11727_v11  ;;  %5989 = vmatmul.bf16.vlgmr.msra.gmra.mxu0 %v15379_v0  ;;  %v5781_v19 = vadd.f32 %v5780_v27, %v5767_v3  ;;  %v12031_v11 = vor.u32 %v14529_v44, %v12030_v16  ;;  %v12014_v7 = vld [vmem:[#allocation2 + $0x548] sm:$0xf]  ;;  %v12287_v20 = vor.u32 %v14593_v18, %v12286_v21  ;;  %v14557_v33 = vld [vmem:[#allocation2 + $0x654] sm:$0xf0]  ;;  %v14415_v16 = vld [vmem:[#allocation2 + $0x1ec] sm:$0xf] }
 0x459   :  { %6037 = vmatpush.bf16.msrb.mxu0 %v11967_v22  ;;  %6003 = vmatmul.bf16.vlgmr.msra.gmra.mxu1 %v15400_v15  ;;  %v12159_v22 = vor.u32 %v14561_v47, %v12158_v43  ;;  %v12270_v34 = vld [vmem:[#allocation2 + $0x748] sm:$0xf]  ;;  %v14589_v37 = vld [vmem:[#allocation2 + $0x754] sm:$0xf0]  ;;  %v12015_v42 = vor.u32 %v14525_v28, %v12014_v7  ;;  %v11584_v43 = vld [vmem:[#allocation2 + $0x1f8] sm:$0xf0]  ;;  %v11459_v7 = vor.u32 %v14383_v29, %v11456_v13 }
 0x45a   :  { %6051 = vmatpush.bf16.msrb.mxu1 %v12095_v24  ;;  %6017 = vmatmul.bf16.vlgmr.msra.gmra.mxu2 %v15422_v36  ;;  %v11886_v24 = vld [vmem:[#allocation2 + $0x448] sm:$0xf]  ;;  %v14489_v48 = vld [vmem:[#allocation2 + $0x434] sm:$0xf0]  ;;  %v12271_v58 = vor.u32 %v14589_v37, %v12270_v34  ;;  %v14447_v47 = vld [vmem:[#allocation2 + $0x2ec] sm:$0xf] }
 0x45b   :  { %6065 = vmatpush.bf16.msrb.mxu2 %v12223_v26  ;;  %6031 = vmatmul.bf16.vlgmr.msra.gmra.mxu3 %v15442_v55  ;;  %v14493_v26 = vld [vmem:[#allocation2 + $0x454] sm:$0xf0]  ;;  %v11998_v49 = vld [vmem:[#allocation2 + $0x528] sm:$0xf]  ;;  %v11568_v37 = vld [vmem:[#allocation2 + $0x1d8] sm:$0xf0] }
 0x45c   :  { %6079 = vmatpush.bf16.msrb.mxu3 %v12351_v30  ;;  %v12142_v30 = vld [vmem:[#allocation2 + $0x648] sm:$0xf]  ;;  %v14585_v59 = vld [vmem:[#allocation2 + $0x734] sm:$0xf0] }
 0x45d   :  { %6038 = vmatpush.bf16.msrb.mxu0 %v11951_v38  ;;  %v5794_v50 = vpop.f32.mrf.mxu2  ;;  %v5768_v38 = vpop.f32.mrf.mxu0  ;;  %v12143_v1 = vor.u32 %v14557_v33, %v12142_v30  ;;  %v12254_v57 = vld [vmem:[#allocation2 + $0x728] sm:$0xf]  ;;  %v14485_v52 = vld [vmem:[#allocation2 + $0x414] sm:$0xf0]  ;;  %v14379_v30 = vld [vmem:[#allocation2 + $0xcc] sm:$0xf] }
 0x45e   :  { %6052 = vmatpush.bf16.msrb.mxu1 %v12079_v35  ;;  %v5795_v54 = vadd.f32 %v5794_v50, %v5781_v19  ;;  %v5808_v40 = vpop.f32.mrf.mxu3  ;;  %v11887_v35 = vor.u32 %v14493_v26, %v11886_v24  ;;  %v5782_v6 = vpop.f32.mrf.mxu1  ;;  %v11982_v61 = vld [vmem:[#allocation2 + $0x508] sm:$0xf]  ;;  %v14517_v2 = vld [vmem:[#allocation2 + $0x514] sm:$0xf0]  ;;  %v11712_v19 = vld [vmem:[#allocation2 + $0x2f8] sm:$0xf0] }
 0x45f   :  { %6066 = vmatpush.bf16.msrb.mxu2 %v12207_v32  ;;  %v5769_v32 = vadd.f32 %v5768_v38, %v4469_v17  ;;  %v12110_v4 = vld [vmem:[#allocation2 + $0x608] sm:$0xf]  ;;  %v14549_v3 = vld [vmem:[#allocation2 + $0x614] sm:$0xf0]  ;;  %v11983_v18 = vor.u32 %v14517_v2, %v11982_v61  ;;  %v11715_v28 = vor.u32 %v14447_v47, %v11712_v19  ;;  %v11440_v33 = vld [vmem:[#allocation2 + $0xd8] sm:$0xf0] }
 0x460   :  { %6080 = vmatpush.bf16.msrb.mxu3 %v12335_v46  ;;  %v11870_v46 = vld [vmem:[#allocation2 + $0x428] sm:$0xf]  ;;  %v15524_v41 = vadd.f32 %v5808_v40, %v5795_v54  ;;  %v14411_v50 = vld [vmem:[#allocation2 + $0x1cc] sm:$0xf]  ;;  %v11696_v38 = vld [vmem:[#allocation2 + $0x2d8] sm:$0xf0] }
 0x461   :  { %6039 = vmatpush.bf16.msrb.mxu0 %v11935_v51  ;;  %v14521_v51 = vld [vmem:[#allocation2 + $0x534] sm:$0xf0]  ;;  %v5783_v10 = vadd.f32 %v5782_v6, %v5769_v32  ;;  %v11871_v17 = vor.u32 %v14489_v48, %v11870_v46  ;;  %v12238_v27 = vld [vmem:[#allocation2 + $0x708] sm:$0xf]  ;;  %v14443_v54 = vld [vmem:[#allocation2 + $0x2cc] sm:$0xf]  ;;  %v11443_v32 = vor.u32 %v14379_v30, %v11440_v33 }
 0x462   :  { %6053 = vmatpush.bf16.msrb.mxu1 %v12063_v53  ;;  %v12126_v53 = vld [vmem:[#allocation2 + $0x628] sm:$0xf]  ;;  %v11999_v12 = vor.u32 %v14521_v51, %v11998_v49  ;;  %v14475_v40 = vld [vmem:[#allocation2 + $0x3cc] sm:$0xf]  ;;  %v11424_v48 = vld [vmem:[#allocation2 + $0xb8] sm:$0xf0] }
 0x463   :  { %6067 = vmatpush.bf16.msrb.mxu2 %v12191_v56  ;;  %v14553_v56 = vld [vmem:[#allocation2 + $0x634] sm:$0xf0]  ;;  %v14375_v46 = vld [vmem:[#allocation2 + $0xac] sm:$0xf]  ;;  %v11536_v61 = vld [vmem:[#allocation2 + $0x198] sm:$0xf0] }
 0x464   :  { %6081 = vmatpush.bf16.msrb.mxu3 %v12319_v14  ;;  %v11854_v14 = vld [vmem:[#allocation2 + $0x408] sm:$0xf]  ;;  %v12127_v60 = vor.u32 %v14553_v56, %v12126_v53  ;;  %v14407_v49 = vld [vmem:[#allocation2 + $0x1ac] sm:$0xf]  ;;  %v11680_v53 = vld [vmem:[#allocation2 + $0x2b8] sm:$0xf0] }
 0x465   :  { %6040 = vmatpush.bf16.msrb.mxu0 %v11919_v5  ;;  %v12255_v5 = vor.u32 %v14585_v59, %v12254_v57  ;;  %v11855_v44 = vor.u32 %v14485_v52, %v11854_v14  ;;  %v14439_v51 = vld [vmem:[#allocation2 + $0x2ac] sm:$0xf]  ;;  %v11427_v57 = vor.u32 %v14375_v46, %v11424_v48  ;;  %v11408_v52 = vld [vmem:[#allocation2 + $0x98] sm:$0xf0] }
 0x466   :  { %6054 = vmatpush.bf16.msrb.mxu1 %v12047_v8  ;;  %v14581_v8 = vld [vmem:[#allocation2 + $0x714] sm:$0xf0]  ;;  %v5810_v21 = vpop.f32.mrf.mxu3  ;;  %v14471_v56 = vld [vmem:[#allocation2 + $0x3ac] sm:$0xf] }
 0x467   :  { %6068 = vmatpush.bf16.msrb.mxu2 %v12175_v31  ;;  %v5796_v31 = vpop.f32.mrf.mxu2  ;;  %v12239_v26 = vor.u32 %v14581_v8, %v12238_v27  ;;  %v14371_v14 = vld [vmem:[#allocation2 + $0x8c] sm:$0xf]  ;;  %v11792_v27 = vld [vmem:[#allocation2 + $0x398] sm:$0xf0] }
 0x468   :  { %6082 = vmatpush.bf16.msrb.mxu3 %v12303_v39  ;;  %v5797_v39 = vadd.f32 %v5796_v31, %v5783_v10  ;;  %v11808_v10 = vld [vmem:[#allocation2 + $0x3b8] sm:$0xf0]  ;;  %v14435_v2 = vld [vmem:[#allocation2 + $0x28c] sm:$0xf]  ;;  %v11411_v31 = vor.u32 %v14371_v14, %v11408_v52 }
 0x469   :  { %6041 = vmatpush.bf16.msrb.mxu0 %v11903_v63  ;;  %v12111_v63 = vor.u32 %v14549_v3, %v12110_v4  ;;  %v11664_v4 = vld [vmem:[#allocation2 + $0x298] sm:$0xf0]  ;;  %v14467_v3 = vld [vmem:[#allocation2 + $0x38c] sm:$0xf] }
 0x46a   :  { %6055 = vmatpush.bf16.msrb.mxu1 %v12031_v11  ;;  %v14479_v11 = vld [vmem:[#allocation2 + $0x3ec] sm:$0xf]  ;;  %v15526_v24 = vadd.f32 %v5810_v21, %v5797_v39  ;;  %v11795_v47 = vor.u32 %v14467_v3, %v11792_v27  ;;  %v11520_v21 = vld [vmem:[#allocation2 + $0x178] sm:$0xf0] }
 0x46b   :  { %6069 = vmatpush.bf16.msrb.mxu2 %v12159_v22  ;;  %v11840_v22 = vld [vmem:[#allocation2 + $0x3f8] sm:$0xf0]  ;;  %v14367_v39 = vld [vmem:[#allocation2 + $0x6c] sm:$0xf] }
 0x46c   :  { %6083 = vmatpush.bf16.msrb.mxu3 %v12287_v20  ;;  %v11587_v20 = vor.u32 %v14415_v16, %v11584_v43  ;;  %v11843_v34 = vor.u32 %v14479_v11, %v11840_v22  ;;  %v11667_v16 = vor.u32 %v14435_v2, %v11664_v4  ;;  %v14399_v43 = vld [vmem:[#allocation2 + $0x16c] sm:$0xf]  ;;  %v11776_v22 = vld [vmem:[#allocation2 + $0x378] sm:$0xf0] }
 0x46d   :  { %6042 = vmatpush.bf16.msrb.mxu0 %v11887_v35  ;;  %v11824_v35 = vld [vmem:[#allocation2 + $0x3d8] sm:$0xf0]  ;;  %v14463_v11 = vld [vmem:[#allocation2 + $0x36c] sm:$0xf] }
 0x46e   :  { %6056 = vmatpush.bf16.msrb.mxu1 %v12015_v42  ;;  %v11571_v42 = vor.u32 %v14411_v50, %v11568_v37  ;;  %v11827_v6 = vor.u32 %v14475_v40, %v11824_v35  ;;  %v14395_v30 = vld [vmem:[#allocation2 + $0x14c] sm:$0xf]  ;;  %v11779_v33 = vor.u32 %v14463_v11, %v11776_v22  ;;  %v11616_v14 = vld [vmem:[#allocation2 + $0x238] sm:$0xf0] }
 0x46f   :  { %6070 = vmatpush.bf16.msrb.mxu2 %v12143_v1  ;;  %v11699_v1 = vor.u32 %v14443_v54, %v11696_v38  ;;  %v14427_v37 = vld [vmem:[#allocation2 + $0x24c] sm:$0xf]  ;;  %v11632_v54 = vld [vmem:[#allocation2 + $0x258] sm:$0xf0] }
 0x470   :  { %6084 = vmatpush.bf16.msrb.mxu3 %v12271_v58  ;;  %v11552_v58 = vld [vmem:[#allocation2 + $0x1b8] sm:$0xf0]  ;;  %v14455_v52 = vld [vmem:[#allocation2 + $0x32c] sm:$0xf] }
 0x471   :  { %6043 = vmatpush.bf16.msrb.mxu0 %v11871_v17  ;;  %v11555_v59 = vor.u32 %v14407_v49, %v11552_v58  ;;  %v11683_v17 = vor.u32 %v14439_v51, %v11680_v53  ;;  %v11635_v58 = vor.u32 %v14427_v37, %v11632_v54  ;;  %v14359_v51 = vld [vmem:[#allocation2 + $0x2c] sm:$0xf]  ;;  %v11360_v53 = vld [vmem:[#allocation2 + $0x38] sm:$0xf0] }
 0x472   :  { %6057 = vmatpush.bf16.msrb.mxu1 %v11999_v12  ;;  %v14403_v12 = vld [vmem:[#allocation2 + $0x18c] sm:$0xf]  ;;  %v11472_v3 = vld [vmem:[#allocation2 + $0x118] sm:$0xf0] }
 0x473   :  { %6071 = vmatpush.bf16.msrb.mxu2 %v12127_v60  ;;  %v11811_v60 = vor.u32 %v14471_v56, %v11808_v10  ;;  %v11539_v13 = vor.u32 %v14403_v12, %v11536_v61  ;;  %v14391_v56 = vld [vmem:[#allocation2 + $0x12c] sm:$0xf]  ;;  %v11744_v12 = vld [vmem:[#allocation2 + $0x338] sm:$0xf0] }
 0x474   :  { %6085 = vmatpush.bf16.msrb.mxu3 %v12255_v5  ;;  %v11344_v61 = vld [vmem:[#allocation2 + $0x18] sm:$0xf0]  ;;  %v14419_v27 = vld [vmem:[#allocation2 + $0x20c] sm:$0xf] }
 0x475   :  { %6044 = vmatpush.bf16.msrb.mxu0 %v11855_v44  ;;  %v5822_v5 = vpop.f32.mrf.mxu0  ;;  %v11392_v44 = vld [vmem:[#allocation2 + $0x78] sm:$0xf0] }
 0x476   :  { %6058 = vmatpush.bf16.msrb.mxu1 %v11983_v18  ;;  %v5823_v8 = vadd.f32 %v5822_v5, %v15524_v41  ;;  %v5836_v29 = vpop.f32.mrf.mxu1  ;;  %v14431_v18 = vld [vmem:[#allocation2 + $0x26c] sm:$0xf]  ;;  %v11523_v41 = vor.u32 %v14399_v43, %v11520_v21  ;;  %v12224_v11 = vld [vmem:[#allocation2 + $0x6f8] sm:$0xf0] }
 0x477   :  { %6072 = vmatpush.bf16.msrb.mxu2 %v12111_v63  ;;  %v11648_v63 = vld [vmem:[#allocation2 + $0x278] sm:$0xf0]  ;;  %v14387_v5 = vld [vmem:[#allocation2 + $0x10c] sm:$0xf] }
 0x478   :  { %6086 = vmatpush.bf16.msrb.mxu3 %v12239_v26  ;;  %6045 = vmatmul.bf16.vlgmr.msrb.gmra.mxu0 %v15464_v23  ;;  %v5837_v19 = vadd.f32 %v5836_v29, %v5823_v8  ;;  %v11395_v26 = vor.u32 %v14367_v39, %v11392_v44  ;;  %v11747_v8 = vor.u32 %v14455_v52, %v11744_v12  ;;  %v11600_v29 = vld [vmem:[#allocation2 + $0x218] sm:$0xf0]  ;;  %v14511_v43 = vld [vmem:[#allocation2 + $0x4ec] sm:$0xf] }
 0x479   :  { %6093 = vmatpush.bf16.msra.mxu0 %v11459_v7  ;;  %6059 = vmatmul.bf16.vlgmr.msrb.gmra.mxu1 %v15490_v25  ;;  %v11651_v7 = vor.u32 %v14431_v18, %v11648_v63  ;;  %v12096_v18 = vld [vmem:[#allocation2 + $0x5f8] sm:$0xf0]  ;;  %v14575_v63 = vld [vmem:[#allocation2 + $0x6ec] sm:$0xf] }
 0x47a   :  { %6107 = vmatpush.bf16.msra.mxu1 %v11587_v20  ;;  %6073 = vmatmul.bf16.vlgmr.msrb.gmra.mxu2 %v15496_v62  ;;  %v14363_v20 = vld [vmem:[#allocation2 + $0x4c] sm:$0xf]  ;;  %v12227_v54 = vor.u32 %v14575_v63, %v12224_v11  ;;  %v12320_v12 = vld [vmem:[#allocation2 + $0x7b8] sm:$0xf0] }
 0x47b   :  { %6121 = vmatpush.bf16.msra.mxu2 %v11715_v28  ;;  %6087 = vmatmul.bf16.vlgmr.msrb.gmra.mxu3 %v15499_v9  ;;  %v11376_v28 = vld [vmem:[#allocation2 + $0x58] sm:$0xf0]  ;;  %v14599_v52 = vld [vmem:[#allocation2 + $0x7ac] sm:$0xf] }
 0x47c   :  { %6135 = vmatpush.bf16.msra.mxu3 %v11843_v34  ;;  %v11504_v34 = vld [vmem:[#allocation2 + $0x158] sm:$0xf0]  ;;  %v11379_v46 = vor.u32 %v14363_v20, %v11376_v28  ;;  %v14559_v63 = vld [vmem:[#allocation2 + $0x66c] sm:$0xf] }
 0x47d   :  { %6094 = vmatpush.bf16.msra.mxu0 %v11443_v32  ;;  %v5850_v50 = vpop.f32.mrf.mxu2  ;;  %v5824_v40 = vpop.f32.mrf.mxu0  ;;  %v14459_v32 = vld [vmem:[#allocation2 + $0x34c] sm:$0xf]  ;;  %v12352_v20 = vld [vmem:[#allocation2 + $0x7f8] sm:$0xf0] }
 0x47e   :  { %6108 = vmatpush.bf16.msra.mxu1 %v11571_v42  ;;  %v5851_v38 = vadd.f32 %v5850_v50, %v5837_v19  ;;  %v5864_v35 = vpop.f32.mrf.mxu3  ;;  %v11760_v42 = vld [vmem:[#allocation2 + $0x358] sm:$0xf0]  ;;  %v5838_v48 = vpop.f32.mrf.mxu1  ;;  %v14543_v19 = vld [vmem:[#allocation2 + $0x5ec] sm:$0xf] }
 0x47f   :  { %6122 = vmatpush.bf16.msra.mxu2 %v11699_v1  ;;  %v5825_v1 = vadd.f32 %v5824_v40, %v15526_v24  ;;  %v11763_v10 = vor.u32 %v14459_v32, %v11760_v42  ;;  %v11363_v24 = vor.u32 %v14359_v51, %v11360_v53  ;;  %v12099_v37 = vor.u32 %v14543_v19, %v12096_v18  ;;  %v14539_v40 = vld [vmem:[#allocation2 + $0x5cc] sm:$0xf]  ;;  %v12080_v32 = vld [vmem:[#allocation2 + $0x5d8] sm:$0xf0] }
 0x480   :  { %6136 = vmatpush.bf16.msra.mxu3 %v11827_v6  ;;  %v15534_v49 = vadd.f32 %v5864_v35, %v5851_v38  ;;  %v11507_v6 = vor.u32 %v14395_v30, %v11504_v34  ;;  %v11952_v38 = vld [vmem:[#allocation2 + $0x4d8] sm:$0xf0]  ;;  %v14571_v42 = vld [vmem:[#allocation2 + $0x6cc] sm:$0xf] }
 0x481   :  { %6095 = vmatpush.bf16.msra.mxu0 %v11427_v57  ;;  %v5839_v57 = vadd.f32 %v5838_v48, %v5825_v1  ;;  %v12208_v1 = vld [vmem:[#allocation2 + $0x6d8] sm:$0xf0]  ;;  %v14603_v48 = vld [vmem:[#allocation2 + $0x7cc] sm:$0xf] }
 0x482   :  { %6109 = vmatpush.bf16.msra.mxu1 %v11555_v59  ;;  %v11488_v59 = vld [vmem:[#allocation2 + $0x138] sm:$0xf0]  ;;  %v6205_v50 = vmax.f32 %v15534_v49, 0.0  ;;  %v12083_v49 = vor.u32 %v14539_v40, %v12080_v32  ;;  %v12211_v51 = vor.u32 %v14571_v42, %v12208_v1  ;;  %v14503_v53 = vld [vmem:[#allocation2 + $0x4ac] sm:$0xf] }
 0x483   :  { %6123 = vmatpush.bf16.msra.mxu2 %v11683_v17  ;;  %v14423_v17 = vld [vmem:[#allocation2 + $0x22c] sm:$0xf]  ;;  %v11491_v2 = vor.u32 %v14391_v56, %v11488_v59  ;;  %v11936_v56 = vld [vmem:[#allocation2 + $0x4b8] sm:$0xf0] }
 0x484   :  { %6137 = vmatpush.bf16.msra.mxu3 %v11811_v60  ;;  %v14355_v60 = vld [vmem:[#allocation2 + $0xc] sm:$0xf]  ;;  %v11619_v4 = vor.u32 %v14423_v17, %v11616_v14  ;;  %v12064_v59 = vld [vmem:[#allocation2 + $0x5b8] sm:$0xf0] }
 0x485   :  { %6096 = vmatpush.bf16.msra.mxu0 %v11411_v31  ;;  %v5852_v31 = vpop.f32.mrf.mxu2  ;;  %v11347_v21 = vor.u32 %v14355_v60, %v11344_v61  ;;  %v14567_v17 = vld [vmem:[#allocation2 + $0x6ac] sm:$0xf]  ;;  %v12192_v14 = vld [vmem:[#allocation2 + $0x6b8] sm:$0xf0]  ;;  %v4470_v60 = vperm.slane %v15517_v45, 1 }
 0x486   :  { %6110 = vmatpush.bf16.msra.mxu1 %v11539_v13  ;;  %v14451_v13 = vld [vmem:[#allocation2 + $0x30c] sm:$0xf]  ;;  %v5853_v39 = vadd.f32 %v5852_v31, %v5839_v57  ;;  %v5866_v44 = vpop.f32.mrf.mxu3  ;;  %v12032_v18 = vld [vmem:[#allocation2 + $0x578] sm:$0xf0] }
 0x487   :  { %6124 = vmatpush.bf16.msra.mxu2 %v11667_v16  ;;  %v11728_v16 = vld [vmem:[#allocation2 + $0x318] sm:$0xf0]  ;;  %v14595_v31 = vld [vmem:[#allocation2 + $0x78c] sm:$0xf] }
 0x488   :  { %6138 = vmatpush.bf16.msra.mxu3 %v11795_v47  ;;  %v11968_v47 = vld [vmem:[#allocation2 + $0x4f8] sm:$0xf0]  ;;  %v5867_v22 = vadd.f32 %v5866_v44, %v5853_v39  ;;  %v11731_v28 = vor.u32 %v14451_v13, %v11728_v16  ;;  %v14527_v19 = vld [vmem:[#allocation2 + $0x56c] sm:$0xf] }
 0x489   :  { %6097 = vmatpush.bf16.msra.mxu0 %v11395_v26  ;;  %v11475_v26 = vor.u32 %v14387_v5, %v11472_v3  ;;  %v11971_v30 = vor.u32 %v14511_v43, %v11968_v47  ;;  %v14531_v5 = vld [vmem:[#allocation2 + $0x58c] sm:$0xf]  ;;  %v12323_v3 = vor.u32 %v14599_v52, %v12320_v12  ;;  %v11904_v47 = vld [vmem:[#allocation2 + $0x478] sm:$0xf0] }
 0x48a   :  { %6111 = vmatpush.bf16.msra.mxu1 %v11523_v41  ;;  %v11603_v41 = vor.u32 %v14419_v27, %v11600_v29  ;;  %v6209_v34 = vmax.f32 %v5867_v22, 0.0  ;;  %v12048_v27 = vld [vmem:[#allocation2 + $0x598] sm:$0xf0]  ;;  %v14495_v43 = vld [vmem:[#allocation2 + $0x46c] sm:$0xf] }
 0x48b   :  { %6125 = vmatpush.bf16.msra.mxu2 %v11651_v7  ;;  %v14607_v7 = vld [vmem:[#allocation2 + $0x7ec] sm:$0xf]  ;;  %v12051_v39 = vor.u32 %v14531_v5, %v12048_v27  ;;  %v12160_v11 = vld [vmem:[#allocation2 + $0x678] sm:$0xf0] }
 0x48c   :  { %6139 = vmatpush.bf16.msra.mxu3 %v11779_v33  ;;  %v14507_v33 = vld [vmem:[#allocation2 + $0x4cc] sm:$0xf]  ;;  %v12355_v35 = vor.u32 %v14607_v7, %v12352_v20  ;;  %v11907_v7 = vor.u32 %v14495_v43, %v11904_v47  ;;  %v12035_v20 = vor.u32 %v14527_v19, %v12032_v18  ;;  %v12272_v32 = vld [vmem:[#allocation2 + $0x758] sm:$0xf0] }
 0x48d   :  { %6098 = vmatpush.bf16.msra.mxu0 %v11379_v46  ;;  %v15537_v46 = vpack.c.bf16 %v6209_v34, %v6205_v50  ;;  %v14523_v50 = vld [vmem:[#allocation2 + $0x54c] sm:$0xf]  ;;  %v12128_v12 = vld [vmem:[#allocation2 + $0x638] sm:$0xf0] }
 0x48e   :  { %6112 = vmatpush.bf16.msra.mxu1 %v11507_v6  ;;  %v12336_v6 = vld [vmem:[#allocation2 + $0x7d8] sm:$0xf0]  ;;  %v14551_v52 = vld [vmem:[#allocation2 + $0x62c] sm:$0xf] }
 0x48f   :  { %6126 = vmatpush.bf16.msra.mxu2 %v11635_v58  ;;  %v11955_v58 = vor.u32 %v14507_v33, %v11952_v38  ;;  %v12339_v57 = vor.u32 %v14603_v48, %v12336_v6  ;;  %v11888_v33 = vld [vmem:[#allocation2 + $0x458] sm:$0xf0]  ;;  %v14483_v5 = vld [vmem:[#allocation2 + $0x40c] sm:$0xf] }
 0x490   :  { %6140 = vmatpush.bf16.msra.mxu3 %v11763_v10  ;;  %v14535_v10 = vld [vmem:[#allocation2 + $0x5ac] sm:$0xf]  ;;  %v12144_v38 = vld [vmem:[#allocation2 + $0x658] sm:$0xf0] }
 0x491   :  { %6099 = vmatpush.bf16.msra.mxu0 %v11363_v24  ;;  %v11939_v24 = vor.u32 %v14503_v53, %v11936_v56  ;;  %v12067_v61 = vor.u32 %v14535_v10, %v12064_v59  ;;  %v14487_v53 = vld [vmem:[#allocation2 + $0x42c] sm:$0xf]  ;;  %v11872_v56 = vld [vmem:[#allocation2 + $0x438] sm:$0xf0] }
 0x492   :  { %6113 = vmatpush.bf16.msra.mxu1 %v11491_v2  ;;  %v12195_v2 = vor.u32 %v14567_v17, %v12192_v14  ;;  %v14519_v10 = vld [vmem:[#allocation2 + $0x52c] sm:$0xf]  ;;  %v12000_v14 = vld [vmem:[#allocation2 + $0x538] sm:$0xf0] }
 0x493   :  { %6127 = vmatpush.bf16.msra.mxu2 %v11619_v4  ;;  %v11920_v4 = vld [vmem:[#allocation2 + $0x498] sm:$0xf0]  ;;  %v14515_v27 = vld [vmem:[#allocation2 + $0x50c] sm:$0xf] }
 0x494   :  { %6141 = vmatpush.bf16.msra.mxu3 %v11747_v8  ;;  %v14563_v8 = vld [vmem:[#allocation2 + $0x68c] sm:$0xf] }
 0x495   :  { %6100 = vmatpush.bf16.msra.mxu0 %v11347_v21  ;;  %v5878_v29 = vpop.f32.mrf.mxu0 }
 0x496   :  { %6114 = vmatpush.bf16.msra.mxu1 %v11475_v26  ;;  %v5892_v16 = vpop.f32.mrf.mxu1  ;;  %v14591_v26 = vld [vmem:[#allocation2 + $0x76c] sm:$0xf] }
 0x497   :  { %6128 = vmatpush.bf16.msra.mxu2 %v11603_v41  ;;  %v12288_v41 = vld [vmem:[#allocation2 + $0x778] sm:$0xf0] }
 0x498   :  { %6142 = vmatpush.bf16.msra.mxu3 %v11731_v28  ;;  %6101 = vmatmul.bf16.vlgmr.msra.gmra.mxu0 %v15379_v0  ;;  %v12176_v0 = vld [vmem:[#allocation2 + $0x698] sm:$0xf0]  ;;  %v12163_v28 = vor.u32 %v14559_v63, %v12160_v11  ;;  %v12291_v34 = vor.u32 %v14591_v26, %v12288_v41 }
 0x499   :  { %6149 = vmatpush.bf16.msrb.mxu0 %v11971_v30  ;;  %6115 = vmatmul.bf16.vlgmr.msra.gmra.mxu1 %v15400_v15  ;;  %v5879_v15 = vadd.f32 %v5878_v29, %v4470_v60  ;;  %v12179_v44 = vor.u32 %v14563_v8, %v12176_v0  ;;  %v14491_v30 = vld [vmem:[#allocation2 + $0x44c] sm:$0xf]  ;;  %v11984_v0 = vld [vmem:[#allocation2 + $0x518] sm:$0xf0] }
 0x49a   :  { %6163 = vmatpush.bf16.msrb.mxu1 %v12099_v37  ;;  %6129 = vmatmul.bf16.vlgmr.msra.gmra.mxu2 %v15422_v36  ;;  %v14499_v36 = vld [vmem:[#allocation2 + $0x48c] sm:$0xf]  ;;  %v12016_v37 = vld [vmem:[#allocation2 + $0x558] sm:$0xf0]  ;;  %v11891_v6 = vor.u32 %v14491_v30, %v11888_v33  ;;  %v11987_v43 = vor.u32 %v14515_v27, %v11984_v0 }
 0x49b   :  { %6177 = vmatpush.bf16.msrb.mxu2 %v12227_v54  ;;  %6143 = vmatmul.bf16.vlgmr.msra.gmra.mxu3 %v15442_v55  ;;  %v12304_v55 = vld [vmem:[#allocation2 + $0x798] sm:$0xf0]  ;;  %v11923_v13 = vor.u32 %v14499_v36, %v11920_v4  ;;  %v5893_v22 = vadd.f32 %v5892_v16, %v5879_v15  ;;  %v14555_v54 = vld [vmem:[#allocation2 + $0x64c] sm:$0xf]  ;;  %v11875_v36 = vor.u32 %v14487_v53, %v11872_v56 }
 0x49c   :  { %6191 = vmatpush.bf16.msrb.mxu3 %v12355_v35  ;;  %v12307_v21 = vor.u32 %v14595_v31, %v12304_v55  ;;  %v14587_v35 = vld [vmem:[#allocation2 + $0x74c] sm:$0xf]  ;;  %v12131_v4 = vor.u32 %v14551_v52, %v12128_v12  ;;  %v12112_v55 = vld [vmem:[#allocation2 + $0x618] sm:$0xf0] }
 0x49d   :  { %6150 = vmatpush.bf16.msrb.mxu0 %v11955_v58  ;;  %v5906_v40 = vpop.f32.mrf.mxu2  ;;  %v5880_v1 = vpop.f32.mrf.mxu0  ;;  %v12275_v17 = vor.u32 %v14587_v35, %v12272_v32  ;;  %v14547_v31 = vld [vmem:[#allocation2 + $0x60c] sm:$0xf]  ;;  %v12240_v15 = vld [vmem:[#allocation2 + $0x718] sm:$0xf0]  ;;  %v4471_v35 = vperm.slane %v15517_v45, 2 }
 0x49e   :  { %6164 = vmatpush.bf16.msrb.mxu1 %v12083_v49  ;;  %v5907_v42 = vadd.f32 %v5906_v40, %v5893_v22  ;;  %v5920_v48 = vpop.f32.mrf.mxu3  ;;  %v5881_v58 = vadd.f32 %v5880_v1, %v4470_v60  ;;  %v12019_v49 = vor.u32 %v14523_v50, %v12016_v37  ;;  %v5894_v59 = vpop.f32.mrf.mxu1  ;;  %v12003_v60 = vor.u32 %v14519_v10, %v12000_v14 }
 0x49f   :  { %6178 = vmatpush.bf16.msrb.mxu2 %v12211_v51  ;;  %v12147_v51 = vor.u32 %v14555_v54, %v12144_v38  ;;  %v12115_v47 = vor.u32 %v14547_v31, %v12112_v55 }
 0x4a0   :  { %6192 = vmatpush.bf16.msrb.mxu3 %v12339_v57  ;;  %v5921_v57 = vadd.f32 %v5920_v48, %v5907_v42 }
 0x4a1   :  { %6151 = vmatpush.bf16.msrb.mxu0 %v11939_v24  ;;  %v5895_v24 = vadd.f32 %v5894_v59, %v5881_v58 }
 0x4a2   :  { %6165 = vmatpush.bf16.msrb.mxu1 %v12067_v61  ;;  %v14583_v61 = vld [vmem:[#allocation2 + $0x72c] sm:$0xf] }
 0x4a3   :  { %6179 = vmatpush.bf16.msrb.mxu2 %v12195_v2  ;;  %v12256_v2 = vld [vmem:[#allocation2 + $0x738] sm:$0xf0] }
 0x4a4   :  { %6193 = vmatpush.bf16.msrb.mxu3 %v12323_v3  ;;  %v11856_v3 = vld [vmem:[#allocation2 + $0x418] sm:$0xf0]  ;;  %v12259_v8 = vor.u32 %v14583_v61, %v12256_v2 }
 0x4a5   :  { %6152 = vmatpush.bf16.msrb.mxu0 %v11923_v13  ;;  %v5908_v29 = vpop.f32.mrf.mxu2  ;;  %v14579_v13 = vld [vmem:[#allocation2 + $0x70c] sm:$0xf] }
 0x4a6   :  { %6166 = vmatpush.bf16.msrb.mxu1 %v12051_v39  ;;  %v5909_v16 = vadd.f32 %v5908_v29, %v5895_v24  ;;  %v11859_v39 = vor.u32 %v14483_v5, %v11856_v3 }
 0x4a7   :  { %6180 = vmatpush.bf16.msrb.mxu2 %v12179_v44  ;;  %v5922_v44 = vpop.f32.mrf.mxu3 }
 0x4a8   :  { %6194 = vmatpush.bf16.msrb.mxu3 %v12307_v21  ;;  %v5923_v19 = vadd.f32 %v5922_v44, %v5909_v16  ;;  %v12243_v21 = vor.u32 %v14579_v13, %v12240_v15  ;;  %v4472_v44 = vperm.slane %v15517_v45, 3 }
 0x4a9   :  { %6153 = vmatpush.bf16.msrb.mxu0 %v11907_v7 }
 0x4aa   :  { %6167 = vmatpush.bf16.msrb.mxu1 %v12035_v20 }
 0x4ab   :  { %6181 = vmatpush.bf16.msrb.mxu2 %v12163_v28 }
 0x4ac   :  { %6195 = vmatpush.bf16.msrb.mxu3 %v12291_v34 }
 0x4ad   :  { %6154 = vmatpush.bf16.msrb.mxu0 %v11891_v6 }
 0x4ae   :  { %6168 = vmatpush.bf16.msrb.mxu1 %v12019_v49 }
 0x4af   :  { %6182 = vmatpush.bf16.msrb.mxu2 %v12147_v51 }
 0x4b0   :  { %6196 = vmatpush.bf16.msrb.mxu3 %v12275_v17 }
 0x4b1   :  { %6155 = vmatpush.bf16.msrb.mxu0 %v11875_v36 }
 0x4b2   :  { %6169 = vmatpush.bf16.msrb.mxu1 %v12003_v60 }
 0x4b3   :  { %6183 = vmatpush.bf16.msrb.mxu2 %v12131_v4 }
 0x4b4   :  { %6197 = vmatpush.bf16.msrb.mxu3 %v12259_v8 }
 0x4b5   :  { %6156 = vmatpush.bf16.msrb.mxu0 %v11859_v39  ;;  %v5934_v18 = vpop.f32.mrf.mxu0 }
 0x4b6   :  { %6170 = vmatpush.bf16.msrb.mxu1 %v11987_v43  ;;  %v5935_v63 = vadd.f32 %v5934_v18, %v5921_v57  ;;  %v5948_v11 = vpop.f32.mrf.mxu1 }
 0x4b7   :  { %6184 = vmatpush.bf16.msrb.mxu2 %v12115_v47 }
 0x4b8   :  { %6198 = vmatpush.bf16.msrb.mxu3 %v12243_v21  ;;  %6157 = vmatmul.bf16.vlgmr.msrb.gmra.mxu0 %v15464_v23  ;;  %v5949_v22 = vadd.f32 %v5948_v11, %v5935_v63 }
 0x4b9   :  { %6171 = vmatmul.bf16.vlgmr.msrb.gmra.mxu1 %v15490_v25 }
 0x4ba   :  { %6185 = vmatmul.bf16.vlgmr.msrb.gmra.mxu2 %v15496_v62 }
 0x4bb   :  { %6199 = vmatmul.bf16.vlgmr.msrb.gmra.mxu3 %v15499_v9 }
 0x4bd   :  { %v5962_v26 = vpop.f32.mrf.mxu2  ;;  %v5936_v7 = vpop.f32.mrf.mxu0 }
 0x4be   :  { %v5963_v41 = vadd.f32 %v5962_v26, %v5949_v22  ;;  %v5976_v20 = vpop.f32.mrf.mxu3  ;;  %v5937_v28 = vadd.f32 %v5936_v7, %v5923_v19  ;;  %v5950_v30 = vpop.f32.mrf.mxu1 }
 0x4c0   :  { %v5977_v33 = vadd.f32 %v5976_v20, %v5963_v41  ;;  %v5951_v50 = vadd.f32 %v5950_v30, %v5937_v28 }
 0x4c2   :  { %v6206_v54 = vmax.f32 %v5977_v33, 0.0 }
 0x4c5   :  { %v5964_v34 = vpop.f32.mrf.mxu2 }
 0x4c6   :  { %v5965_v23 = vadd.f32 %v5964_v34, %v5951_v50  ;;  %v5978_v37 = vpop.f32.mrf.mxu3 }
 0x4c8   :  { %v5979_v25 = vadd.f32 %v5978_v37, %v5965_v23 }
 0x4ca   :  { %v6210_v62 = vmax.f32 %v5979_v25, 0.0 }
 0x4cc   :  { %v15548_v38 = vpack.c.bf16 %v6210_v62, %v6206_v54 }
 0x4d5   :  { %v5990_v9 = vpop.f32.mrf.mxu0 }
 0x4d6   :  { %v6004_v40 = vpop.f32.mrf.mxu1  ;;  %v5991_v42 = vadd.f32 %v5990_v9, %v4471_v35 }
 0x4d8   :  { %v6005_v58 = vadd.f32 %v6004_v40, %v5991_v42 }
 0x4dd   :  { %v6018_v32 = vpop.f32.mrf.mxu2  ;;  %v5992_v48 = vpop.f32.mrf.mxu0 }
 0x4de   :  { %v6032_v1 = vpop.f32.mrf.mxu3  ;;  %v6006_v6 = vpop.f32.mrf.mxu1  ;;  %v5993_v49 = vadd.f32 %v5992_v48, %v4471_v35  ;;  %v6019_v51 = vadd.f32 %v6018_v32, %v6005_v58 }
 0x4e0   :  { %v6007_v56 = vadd.f32 %v6006_v6, %v5993_v49  ;;  %v6033_v57 = vadd.f32 %v6032_v1, %v6019_v51 }
 0x4e5   :  { %v6020_v53 = vpop.f32.mrf.mxu2 }
 0x4e6   :  { %v6034_v10 = vpop.f32.mrf.mxu3  ;;  %v6021_v14 = vadd.f32 %v6020_v53, %v6007_v56 }
 0x4e8   :  { %v6035_v12 = vadd.f32 %v6034_v10, %v6021_v14 }
 0x4f5   :  { %v6046_v59 = vpop.f32.mrf.mxu0 }
 0x4f6   :  { %v6060_v17 = vpop.f32.mrf.mxu1  ;;  %v6047_v52 = vadd.f32 %v6046_v59, %v6033_v57 }
 0x4f8   :  { %v6061_v61 = vadd.f32 %v6060_v17, %v6047_v52 }
 0x4fd   :  { %v6074_v24 = vpop.f32.mrf.mxu2  ;;  %v6048_v2 = vpop.f32.mrf.mxu0 }
 0x4fe   :  { %v6088_v36 = vpop.f32.mrf.mxu3  ;;  %v6049_v60 = vadd.f32 %v6048_v2, %v6035_v12  ;;  %v6062_v4 = vpop.f32.mrf.mxu1  ;;  %v6075_v5 = vadd.f32 %v6074_v24, %v6061_v61 }
 0x500   :  { %v6063_v3 = vadd.f32 %v6062_v4, %v6049_v60  ;;  %v6089_v8 = vadd.f32 %v6088_v36, %v6075_v5 }
 0x502   :  { %v6207_v29 = vmax.f32 %v6089_v8, 0.0 }
 0x505   :  { %v6076_v27 = vpop.f32.mrf.mxu2 }
 0x506   :  { %v6077_v0 = vadd.f32 %v6076_v27, %v6063_v3  ;;  %v6090_v31 = vpop.f32.mrf.mxu3 }
 0x508   :  { %v6091_v55 = vadd.f32 %v6090_v31, %v6077_v0 }
 0x50a   :  { %v6211_v13 = vmax.f32 %v6091_v55, 0.0 }
 0x50c   :  { %v15551_v15 = vpack.c.bf16 %v6211_v13, %v6207_v29 }
 0x515   :  { %v6102_v16 = vpop.f32.mrf.mxu0 }
 0x516   :  { %v6116_v39 = vpop.f32.mrf.mxu1  ;;  %v6103_v19 = vadd.f32 %v6102_v16, %v4472_v44 }
 0x518   :  { %v6117_v63 = vadd.f32 %v6116_v39, %v6103_v19 }
 0x51d   :  { %v6130_v43 = vpop.f32.mrf.mxu2  ;;  %v6104_v21 = vpop.f32.mrf.mxu0 }
 0x51e   :  { %v6144_v47 = vpop.f32.mrf.mxu3  ;;  %v6118_v18 = vpop.f32.mrf.mxu1  ;;  %v6105_v11 = vadd.f32 %v6104_v21, %v4472_v44  ;;  %v6131_v26 = vadd.f32 %v6130_v43, %v6117_v63 }
 0x520   :  { %v6119_v41 = vadd.f32 %v6118_v18, %v6105_v11  ;;  %v6145_v30 = vadd.f32 %v6144_v47, %v6131_v26 }
 0x525   :  { %v6132_v22 = vpop.f32.mrf.mxu2 }
 0x526   :  { %v6146_v7 = vpop.f32.mrf.mxu3  ;;  %v6133_v33 = vadd.f32 %v6132_v22, %v6119_v41 }
 0x528   :  { %v6147_v23 = vadd.f32 %v6146_v7, %v6133_v33 }
 0x535   :  { %v6158_v20 = vpop.f32.mrf.mxu0 }
 0x536   :  { %v6172_v28 = vpop.f32.mrf.mxu1  ;;  %v6159_v50 = vadd.f32 %v6158_v20, %v6145_v30 }
 0x538   :  { %v6173_v25 = vadd.f32 %v6172_v28, %v6159_v50 }
 0x53d   :  { %v6186_v34 = vpop.f32.mrf.mxu2  ;;  %v6160_v45 = vpop.f32.mrf.mxu0 }
 0x53e   :  { %v6200_v37 = vpop.f32.mrf.mxu3  ;;  %v6161_v54 = vadd.f32 %v6160_v45, %v6147_v23  ;;  %v6187_v62 = vadd.f32 %v6186_v34, %v6173_v25  ;;  %v6174_v9 = vpop.f32.mrf.mxu1 }
 0x540   :  { %v6175_v40 = vadd.f32 %v6174_v9, %v6161_v54  ;;  %v6201_v32 = vadd.f32 %v6200_v37, %v6187_v62 }
 0x542   :  { %v6208_v6 = vmax.f32 %v6201_v32, 0.0 }
 0x545   :  { %v6188_v35 = vpop.f32.mrf.mxu2 }
 0x546   :  { %v6189_v42 = vadd.f32 %v6188_v35, %v6175_v40  ;;  %v6202_v1 = vpop.f32.mrf.mxu3 }
 0x548   :  { %v6203_v48 = vadd.f32 %v6202_v1, %v6189_v42 }
 0x54a   :  { %v6212_v58 = vmax.f32 %v6203_v48, 0.0 }
 0x54c   :  { %v15554_v49 = vpack.c.bf16 %v6212_v58, %v6208_v6 }
 0x54d   :  { %15241 = dma.done.wait [#allocation8 + $0x1], 16384 }
 0x54e   :  { %15242 = vsyncadd [#allocation8 + $0x1], 4294950912  ;;  %v12470_v51 = vld [vmem:[#allocation3 + $0xe0] sm:$0xf]  ;;  %v14640_v53 = vld [vmem:[#allocation3 + $0xec] sm:$0xf0] }
 0x54f   :  { %v12598_v56 = vld [vmem:[#allocation3 + $0x1e0] sm:$0xf]  ;;  %v12471_v10 = vor.u32 %v14640_v53, %v12470_v51  ;;  %v14672_v57 = vld [vmem:[#allocation3 + $0x1ec] sm:$0xf0] }
 0x550   :  { %v12726_v59 = vld [vmem:[#allocation3 + $0x2e0] sm:$0xf]  ;;  %v14704_v17 = vld [vmem:[#allocation3 + $0x2ec] sm:$0xf0]  ;;  %v12599_v14 = vor.u32 %v14672_v57, %v12598_v56 }
 0x551   :  { %v12727_v52 = vor.u32 %v14704_v17, %v12726_v59  ;;  %v12854_v12 = vld [vmem:[#allocation3 + $0x3e0] sm:$0xf]  ;;  %v14736_v24 = vld [vmem:[#allocation3 + $0x3ec] sm:$0xf0]  ;;  %6999 = vmatpush.bf16.msra.mxu0 %v12471_v10 }
 0x552   :  { %v12454_v61 = vld [vmem:[#allocation3 + $0xc0] sm:$0xf]  ;;  %v12855_v2 = vor.u32 %v14736_v24, %v12854_v12  ;;  %v14636_v36 = vld [vmem:[#allocation3 + $0xcc] sm:$0xf0]  ;;  %7013 = vmatpush.bf16.msra.mxu1 %v12599_v14 }
 0x553   :  { %v12582_v60 = vld [vmem:[#allocation3 + $0x1c0] sm:$0xf]  ;;  %v14668_v4 = vld [vmem:[#allocation3 + $0x1cc] sm:$0xf0]  ;;  %7027 = vmatpush.bf16.msra.mxu2 %v12727_v52  ;;  %v12455_v5 = vor.u32 %v14636_v36, %v12454_v61 }
 0x554   :  { %v12583_v3 = vor.u32 %v14668_v4, %v12582_v60  ;;  %v12710_v27 = vld [vmem:[#allocation3 + $0x2c0] sm:$0xf]  ;;  %v14700_v8 = vld [vmem:[#allocation3 + $0x2cc] sm:$0xf0]  ;;  %7041 = vmatpush.bf16.msra.mxu3 %v12855_v2 }
 0x555   :  { %v12838_v0 = vld [vmem:[#allocation3 + $0x3c0] sm:$0xf]  ;;  %v12711_v31 = vor.u32 %v14700_v8, %v12710_v27  ;;  %v14732_v55 = vld [vmem:[#allocation3 + $0x3cc] sm:$0xf0]  ;;  %7000 = vmatpush.bf16.msra.mxu0 %v12455_v5 }
 0x556   :  { %v12438_v29 = vld [vmem:[#allocation3 + $0xa0] sm:$0xf]  ;;  %v14632_v13 = vld [vmem:[#allocation3 + $0xac] sm:$0xf0]  ;;  %v12839_v16 = vor.u32 %v14732_v55, %v12838_v0  ;;  %7014 = vmatpush.bf16.msra.mxu1 %v12583_v3 }
 0x557   :  { %v12566_v39 = vld [vmem:[#allocation3 + $0x1a0] sm:$0xf]  ;;  %v14664_v44 = vld [vmem:[#allocation3 + $0x1ac] sm:$0xf0]  ;;  %v12439_v47 = vor.u32 %v14632_v13, %v12438_v29  ;;  %7028 = vmatpush.bf16.msra.mxu2 %v12711_v31 }
 0x558   :  { %v12694_v43 = vld [vmem:[#allocation3 + $0x2a0] sm:$0xf]  ;;  %v14696_v19 = vld [vmem:[#allocation3 + $0x2ac] sm:$0xf0]  ;;  %v12567_v63 = vor.u32 %v14664_v44, %v12566_v39  ;;  %7042 = vmatpush.bf16.msra.mxu3 %v12839_v16 }
 0x559   :  { %v12822_v21 = vld [vmem:[#allocation3 + $0x3a0] sm:$0xf]  ;;  %v14728_v18 = vld [vmem:[#allocation3 + $0x3ac] sm:$0xf0]  ;;  %v12695_v11 = vor.u32 %v14696_v19, %v12694_v43  ;;  %7001 = vmatpush.bf16.msra.mxu0 %v12439_v47 }
 0x55a   :  { %v12422_v22 = vld [vmem:[#allocation3 + $0x80] sm:$0xf]  ;;  %v14628_v26 = vld [vmem:[#allocation3 + $0x8c] sm:$0xf0]  ;;  %v12823_v7 = vor.u32 %v14728_v18, %v12822_v21  ;;  %7015 = vmatpush.bf16.msra.mxu1 %v12567_v63  ;;  %v14638_v18 = vld [vmem:[#allocation3 + $0xe4] sm:$0xf] }
 0x55b   :  { %v12550_v41 = vld [vmem:[#allocation3 + $0x180] sm:$0xf]  ;;  %v14660_v20 = vld [vmem:[#allocation3 + $0x18c] sm:$0xf0]  ;;  %v12423_v34 = vor.u32 %v14628_v26, %v12422_v22  ;;  %7029 = vmatpush.bf16.msra.mxu2 %v12695_v11  ;;  %v12472_v63 = vld [vmem:[#allocation3 + $0xf0] sm:$0xf0] }
 0x55c   :  { %v12678_v28 = vld [vmem:[#allocation3 + $0x280] sm:$0xf]  ;;  %v14692_v30 = vld [vmem:[#allocation3 + $0x28c] sm:$0xf0]  ;;  %v12551_v23 = vor.u32 %v14660_v20, %v12550_v41  ;;  %7043 = vmatpush.bf16.msra.mxu3 %v12823_v7  ;;  %v14670_v11 = vld [vmem:[#allocation3 + $0x1e4] sm:$0xf] }
 0x55d   :  { %v12806_v33 = vld [vmem:[#allocation3 + $0x380] sm:$0xf]  ;;  %v14724_v50 = vld [vmem:[#allocation3 + $0x38c] sm:$0xf0]  ;;  %v12679_v37 = vor.u32 %v14692_v30, %v12678_v28  ;;  %7002 = vmatpush.bf16.msra.mxu0 %v12423_v34  ;;  %v12600_v26 = vld [vmem:[#allocation3 + $0x1f0] sm:$0xf0]  ;;  %v12475_v34 = vor.u32 %v14638_v18, %v12472_v63 }
 0x55e   :  { %v12406_v45 = vld [vmem:[#allocation3 + $0x60] sm:$0xf]  ;;  %v14624_v25 = vld [vmem:[#allocation3 + $0x6c] sm:$0xf0]  ;;  %v12807_v62 = vor.u32 %v14724_v50, %v12806_v33  ;;  %7016 = vmatpush.bf16.msra.mxu1 %v12551_v23  ;;  %v14702_v41 = vld [vmem:[#allocation3 + $0x2e4] sm:$0xf]  ;;  %v12603_v23 = vor.u32 %v14670_v11, %v12600_v26 }
 0x55f   :  { %v12534_v54 = vld [vmem:[#allocation3 + $0x160] sm:$0xf]  ;;  %v14656_v9 = vld [vmem:[#allocation3 + $0x16c] sm:$0xf0]  ;;  %v12407_v1 = vor.u32 %v14624_v25, %v12406_v45  ;;  %7030 = vmatpush.bf16.msra.mxu2 %v12679_v37  ;;  %v12728_v7 = vld [vmem:[#allocation3 + $0x2f0] sm:$0xf0] }
 0x560   :  { %v12662_v40 = vld [vmem:[#allocation3 + $0x260] sm:$0xf]  ;;  %v14688_v35 = vld [vmem:[#allocation3 + $0x26c] sm:$0xf0]  ;;  %v12535_v48 = vor.u32 %v14656_v9, %v12534_v54  ;;  %7044 = vmatpush.bf16.msra.mxu3 %v12807_v62  ;;  %v14734_v30 = vld [vmem:[#allocation3 + $0x3e4] sm:$0xf]  ;;  %v12731_v37 = vor.u32 %v14702_v41, %v12728_v7 }
 0x561   :  { %v12790_v32 = vld [vmem:[#allocation3 + $0x360] sm:$0xf]  ;;  %v14720_v42 = vld [vmem:[#allocation3 + $0x36c] sm:$0xf0]  ;;  %v12663_v6 = vor.u32 %v14688_v35, %v12662_v40  ;;  %7003 = vmatpush.bf16.msra.mxu0 %v12407_v1  ;;  %v12856_v33 = vld [vmem:[#allocation3 + $0x3f0] sm:$0xf0] }
 0x562   :  { %v12390_v58 = vld [vmem:[#allocation3 + $0x40] sm:$0xf]  ;;  %v14620_v51 = vld [vmem:[#allocation3 + $0x4c] sm:$0xf0]  ;;  %v12791_v56 = vor.u32 %v14720_v42, %v12790_v32  ;;  %7017 = vmatpush.bf16.msra.mxu1 %v12535_v48  ;;  %v14634_v45 = vld [vmem:[#allocation3 + $0xc4] sm:$0xf]  ;;  %v12859_v62 = vor.u32 %v14734_v30, %v12856_v33 }
 0x563   :  { %v12518_v53 = vld [vmem:[#allocation3 + $0x140] sm:$0xf]  ;;  %v14652_v10 = vld [vmem:[#allocation3 + $0x14c] sm:$0xf0]  ;;  %v12391_v52 = vor.u32 %v14620_v51, %v12390_v58  ;;  %7031 = vmatpush.bf16.msra.mxu2 %v12663_v6  ;;  %v12456_v25 = vld [vmem:[#allocation3 + $0xd0] sm:$0xf0] }
 0x564   :  { %v12646_v57 = vld [vmem:[#allocation3 + $0x240] sm:$0xf]  ;;  %v14684_v59 = vld [vmem:[#allocation3 + $0x24c] sm:$0xf0]  ;;  %v12519_v12 = vor.u32 %v14652_v10, %v12518_v53  ;;  %7045 = vmatpush.bf16.msra.mxu3 %v12791_v56  ;;  %v14666_v54 = vld [vmem:[#allocation3 + $0x1c4] sm:$0xf]  ;;  %v12459_v1 = vor.u32 %v14634_v45, %v12456_v25 }
 0x565   :  { %v12774_v17 = vld [vmem:[#allocation3 + $0x340] sm:$0xf]  ;;  %v14716_v14 = vld [vmem:[#allocation3 + $0x34c] sm:$0xf0]  ;;  %v12647_v24 = vor.u32 %v14684_v59, %v12646_v57  ;;  %7004 = vmatpush.bf16.msra.mxu0 %v12391_v52  ;;  %v12584_v9 = vld [vmem:[#allocation3 + $0x1d0] sm:$0xf0] }
 0x566   :  { %v12374_v61 = vld [vmem:[#allocation3 + $0x20] sm:$0xf]  ;;  %v14616_v2 = vld [vmem:[#allocation3 + $0x2c] sm:$0xf0]  ;;  %v12775_v60 = vor.u32 %v14716_v14, %v12774_v17  ;;  %7018 = vmatpush.bf16.msra.mxu1 %v12519_v12  ;;  %v14698_v40 = vld [vmem:[#allocation3 + $0x2c4] sm:$0xf]  ;;  %v12587_v48 = vor.u32 %v14666_v54, %v12584_v9 }
 0x567   :  { %v12502_v36 = vld [vmem:[#allocation3 + $0x120] sm:$0xf]  ;;  %v14648_v4 = vld [vmem:[#allocation3 + $0x12c] sm:$0xf0]  ;;  %v12375_v0 = vor.u32 %v14616_v2, %v12374_v61  ;;  %7032 = vmatpush.bf16.msra.mxu2 %v12647_v24  ;;  %v12712_v35 = vld [vmem:[#allocation3 + $0x2d0] sm:$0xf0] }
 0x568   :  { %v12630_v5 = vld [vmem:[#allocation3 + $0x220] sm:$0xf]  ;;  %v14680_v3 = vld [vmem:[#allocation3 + $0x22c] sm:$0xf0]  ;;  %v12503_v29 = vor.u32 %v14648_v4, %v12502_v36  ;;  %7046 = vmatpush.bf16.msra.mxu3 %v12775_v60  ;;  %v14730_v32 = vld [vmem:[#allocation3 + $0x3c4] sm:$0xf]  ;;  %v12715_v6 = vor.u32 %v14698_v40, %v12712_v35 }
 0x569   :  { %v12758_v27 = vld [vmem:[#allocation3 + $0x320] sm:$0xf]  ;;  %v14712_v8 = vld [vmem:[#allocation3 + $0x32c] sm:$0xf0]  ;;  %v12631_v13 = vor.u32 %v14680_v3, %v12630_v5  ;;  %7005 = vmatpush.bf16.msra.mxu0 %v12375_v0  ;;  %v12840_v42 = vld [vmem:[#allocation3 + $0x3d0] sm:$0xf0] }
 0x56a   :  { %v12358_v31 = vld [vmem:[#allocation3] sm:$0xf]  ;;  %v14612_v55 = vld [vmem:[#allocation3 + $0xc] sm:$0xf0]  ;;  %v12759_v43 = vor.u32 %v14712_v8, %v12758_v27  ;;  %7019 = vmatpush.bf16.msra.mxu1 %v12503_v29  ;;  %v14630_v58 = vld [vmem:[#allocation3 + $0xa4] sm:$0xf]  ;;  %v12843_v56 = vor.u32 %v14730_v32, %v12840_v42 }
 0x56b   :  { %v12486_v16 = vld [vmem:[#allocation3 + $0x100] sm:$0xf]  ;;  %v14644_v39 = vld [vmem:[#allocation3 + $0x10c] sm:$0xf0]  ;;  %v12359_v22 = vor.u32 %v14612_v55, %v12358_v31  ;;  %7033 = vmatpush.bf16.msra.mxu2 %v12631_v13  ;;  %v12440_v51 = vld [vmem:[#allocation3 + $0xb0] sm:$0xf0] }
 0x56c   :  { %v12614_v44 = vld [vmem:[#allocation3 + $0x200] sm:$0xf]  ;;  %v14676_v47 = vld [vmem:[#allocation3 + $0x20c] sm:$0xf0]  ;;  %v12487_v20 = vor.u32 %v14644_v39, %v12486_v16  ;;  %7047 = vmatpush.bf16.msra.mxu3 %v12759_v43  ;;  %v14662_v53 = vld [vmem:[#allocation3 + $0x1a4] sm:$0xf]  ;;  %v12443_v52 = vor.u32 %v14630_v58, %v12440_v51 }
 0x56d   :  { %v12742_v19 = vld [vmem:[#allocation3 + $0x300] sm:$0xf]  ;;  %v14708_v21 = vld [vmem:[#allocation3 + $0x30c] sm:$0xf0]  ;;  %v12615_v28 = vor.u32 %v14676_v47, %v12614_v44  ;;  %7006 = vmatpush.bf16.msra.mxu0 %v12359_v22  ;;  %v12568_v10 = vld [vmem:[#allocation3 + $0x1b0] sm:$0xf0] }
 0x56e   :  { %v12743_v50 = vor.u32 %v14708_v21, %v12742_v19  ;;  %7020 = vmatpush.bf16.msra.mxu1 %v12487_v20  ;;  %v14694_v57 = vld [vmem:[#allocation3 + $0x2a4] sm:$0xf]  ;;  %v12696_v59 = vld [vmem:[#allocation3 + $0x2b0] sm:$0xf0]  ;;  %v12571_v12 = vor.u32 %v14662_v53, %v12568_v10 }
 0x56f   :  { %7034 = vmatpush.bf16.msra.mxu2 %v12615_v28  ;;  %v14726_v17 = vld [vmem:[#allocation3 + $0x3a4] sm:$0xf]  ;;  %v12824_v14 = vld [vmem:[#allocation3 + $0x3b0] sm:$0xf0]  ;;  %v12699_v24 = vor.u32 %v14694_v57, %v12696_v59 }
 0x570   :  { %7048 = vmatpush.bf16.msra.mxu3 %v12743_v50  ;;  %7007 = vmatmul.bf16.vlgmr.msra.gmra.mxu0 %v15537_v46  ;;  %v14626_v61 = vld [vmem:[#allocation3 + $0x84] sm:$0xf]  ;;  %v12424_v2 = vld [vmem:[#allocation3 + $0x90] sm:$0xf0]  ;;  %v12827_v60 = vor.u32 %v14726_v17, %v12824_v14 }
 0x571   :  { %7055 = vmatpush.bf16.msrb.mxu0 %v12475_v34  ;;  %7021 = vmatmul.bf16.vlgmr.msra.gmra.mxu1 %v15548_v38  ;;  %v14658_v36 = vld [vmem:[#allocation3 + $0x184] sm:$0xf]  ;;  %v12552_v4 = vld [vmem:[#allocation3 + $0x190] sm:$0xf0]  ;;  %v12427_v0 = vor.u32 %v14626_v61, %v12424_v2  ;;  %v14673_v2 = vld [vmem:[#allocation3 + $0x1f4] sm:$0xf0] }
 0x572   :  { %7069 = vmatpush.bf16.msrb.mxu1 %v12603_v23  ;;  %7035 = vmatmul.bf16.vlgmr.msra.gmra.mxu2 %v15551_v15  ;;  %v14690_v5 = vld [vmem:[#allocation3 + $0x284] sm:$0xf]  ;;  %v12680_v3 = vld [vmem:[#allocation3 + $0x290] sm:$0xf0]  ;;  %v12555_v31 = vor.u32 %v14658_v36, %v12552_v4  ;;  %v12734_v36 = vld [vmem:[#allocation3 + $0x2e8] sm:$0xf] }
 0x573   :  { %7083 = vmatpush.bf16.msrb.mxu2 %v12731_v37  ;;  %7049 = vmatmul.bf16.vlgmr.msra.gmra.mxu3 %v15554_v49  ;;  %v14722_v27 = vld [vmem:[#allocation3 + $0x384] sm:$0xf]  ;;  %v12808_v8 = vld [vmem:[#allocation3 + $0x390] sm:$0xf0]  ;;  %v12683_v55 = vor.u32 %v14690_v5, %v12680_v3  ;;  %v12862_v3 = vld [vmem:[#allocation3 + $0x3e8] sm:$0xf] }
 0x574   :  { %7097 = vmatpush.bf16.msrb.mxu3 %v12859_v62  ;;  %v14622_v29 = vld [vmem:[#allocation3 + $0x64] sm:$0xf]  ;;  %v12408_v13 = vld [vmem:[#allocation3 + $0x70] sm:$0xf0]  ;;  %v12811_v39 = vor.u32 %v14722_v27, %v12808_v8  ;;  %v14737_v27 = vld [vmem:[#allocation3 + $0x3f4] sm:$0xf0] }
 0x575   :  { %7056 = vmatpush.bf16.msrb.mxu0 %v12459_v1  ;;  %v14654_v16 = vld [vmem:[#allocation3 + $0x164] sm:$0xf]  ;;  %v12536_v44 = vld [vmem:[#allocation3 + $0x170] sm:$0xf0]  ;;  %v12411_v18 = vor.u32 %v14622_v29, %v12408_v13  ;;  %v12462_v29 = vld [vmem:[#allocation3 + $0xc8] sm:$0xf] }
 0x576   :  { %7070 = vmatpush.bf16.msrb.mxu1 %v12587_v48  ;;  %v14686_v43 = vld [vmem:[#allocation3 + $0x264] sm:$0xf]  ;;  %v12664_v47 = vld [vmem:[#allocation3 + $0x270] sm:$0xf0]  ;;  %v12539_v63 = vor.u32 %v14654_v16, %v12536_v44  ;;  %v14637_v13 = vld [vmem:[#allocation3 + $0xd4] sm:$0xf0] }
 0x577   :  { %7084 = vmatpush.bf16.msrb.mxu2 %v12715_v6  ;;  %v14718_v19 = vld [vmem:[#allocation3 + $0x364] sm:$0xf]  ;;  %v12792_v21 = vld [vmem:[#allocation3 + $0x370] sm:$0xf0]  ;;  %v12667_v11 = vor.u32 %v14686_v43, %v12664_v47  ;;  %v12590_v16 = vld [vmem:[#allocation3 + $0x1c8] sm:$0xf] }
 0x578   :  { %7098 = vmatpush.bf16.msrb.mxu3 %v12843_v56  ;;  %v14618_v22 = vld [vmem:[#allocation3 + $0x44] sm:$0xf]  ;;  %v12392_v26 = vld [vmem:[#allocation3 + $0x50] sm:$0xf0]  ;;  %v12795_v7 = vor.u32 %v14718_v19, %v12792_v21  ;;  %v14669_v44 = vld [vmem:[#allocation3 + $0x1d4] sm:$0xf0] }
 0x579   :  { %7057 = vmatpush.bf16.msrb.mxu0 %v12443_v52  ;;  %v14650_v41 = vld [vmem:[#allocation3 + $0x144] sm:$0xf]  ;;  %v12520_v20 = vld [vmem:[#allocation3 + $0x150] sm:$0xf0]  ;;  %v12395_v34 = vor.u32 %v14618_v22, %v12392_v26  ;;  %v12478_v52 = vld [vmem:[#allocation3 + $0xe8] sm:$0xf] }
 0x57a   :  { %7071 = vmatpush.bf16.msrb.mxu1 %v12571_v12  ;;  %v14682_v28 = vld [vmem:[#allocation3 + $0x244] sm:$0xf]  ;;  %v12648_v30 = vld [vmem:[#allocation3 + $0x250] sm:$0xf0]  ;;  %v12523_v23 = vor.u32 %v14650_v41, %v12520_v20  ;;  %v14641_v12 = vld [vmem:[#allocation3 + $0xf4] sm:$0xf0] }
 0x57b   :  { %7085 = vmatpush.bf16.msrb.mxu2 %v12699_v24  ;;  %v14714_v33 = vld [vmem:[#allocation3 + $0x344] sm:$0xf]  ;;  %v12776_v50 = vld [vmem:[#allocation3 + $0x350] sm:$0xf0]  ;;  %v12651_v37 = vor.u32 %v14682_v28, %v12648_v30  ;;  %v12606_v24 = vld [vmem:[#allocation3 + $0x1e8] sm:$0xf] }
 0x57c   :  { %7099 = vmatpush.bf16.msrb.mxu3 %v12827_v60  ;;  %v14614_v45 = vld [vmem:[#allocation3 + $0x24] sm:$0xf]  ;;  %v12376_v25 = vld [vmem:[#allocation3 + $0x30] sm:$0xf0]  ;;  %v12779_v62 = vor.u32 %v14714_v33, %v12776_v50  ;;  %v14705_v60 = vld [vmem:[#allocation3 + $0x2f4] sm:$0xf0] }
 0x57d   :  { %7058 = vmatpush.bf16.msrb.mxu0 %v12427_v0  ;;  %v14646_v54 = vld [vmem:[#allocation3 + $0x124] sm:$0xf]  ;;  %v12504_v9 = vld [vmem:[#allocation3 + $0x130] sm:$0xf0]  ;;  %v12379_v1 = vor.u32 %v14614_v45, %v12376_v25  ;;  %v12479_v0 = vor.u32 %v14641_v12, %v12478_v52  ;;  %v12718_v43 = vld [vmem:[#allocation3 + $0x2c8] sm:$0xf] }
 0x57e   :  { %7072 = vmatpush.bf16.msrb.mxu1 %v12555_v31  ;;  %v14678_v40 = vld [vmem:[#allocation3 + $0x224] sm:$0xf]  ;;  %v12632_v35 = vld [vmem:[#allocation3 + $0x230] sm:$0xf0]  ;;  %v12507_v58 = vor.u32 %v14646_v54, %v12504_v9  ;;  %v12607_v31 = vor.u32 %v14673_v2, %v12606_v24  ;;  %v14701_v47 = vld [vmem:[#allocation3 + $0x2d4] sm:$0xf0] }
 0x57f   :  { %7086 = vmatpush.bf16.msrb.mxu2 %v12683_v55  ;;  %v14710_v32 = vld [vmem:[#allocation3 + $0x324] sm:$0xf]  ;;  %v12760_v42 = vld [vmem:[#allocation3 + $0x330] sm:$0xf0]  ;;  %v12635_v51 = vor.u32 %v14678_v40, %v12632_v35  ;;  %v12735_v55 = vor.u32 %v14705_v60, %v12734_v36  ;;  %v12846_v19 = vld [vmem:[#allocation3 + $0x3c8] sm:$0xf] }
 0x580   :  { %7100 = vmatpush.bf16.msrb.mxu3 %v12811_v39  ;;  %v14610_v48 = vld [vmem:[#allocation3 + $0x4] sm:$0xf]  ;;  %v12360_v6 = vld [vmem:[#allocation3 + $0x10] sm:$0xf0]  ;;  %v12763_v57 = vor.u32 %v14710_v32, %v12760_v42  ;;  %v12863_v39 = vor.u32 %v14737_v27, %v12862_v3  ;;  %v14733_v21 = vld [vmem:[#allocation3 + $0x3d4] sm:$0xf0] }
 0x581   :  { %7059 = vmatpush.bf16.msrb.mxu0 %v12411_v18  ;;  %v14642_v53 = vld [vmem:[#allocation3 + $0x104] sm:$0xf]  ;;  %v12488_v56 = vld [vmem:[#allocation3 + $0x110] sm:$0xf0]  ;;  %v12363_v61 = vor.u32 %v14610_v48, %v12360_v6  ;;  %v12463_v18 = vor.u32 %v14637_v13, %v12462_v29  ;;  %v12446_v22 = vld [vmem:[#allocation3 + $0xa8] sm:$0xf] }
 0x582   :  { %7073 = vmatpush.bf16.msrb.mxu1 %v12539_v63  ;;  %v14674_v10 = vld [vmem:[#allocation3 + $0x204] sm:$0xf]  ;;  %v12616_v59 = vld [vmem:[#allocation3 + $0x210] sm:$0xf0]  ;;  %v12491_v4 = vor.u32 %v14642_v53, %v12488_v56  ;;  %v12591_v63 = vor.u32 %v14669_v44, %v12590_v16  ;;  %v14633_v26 = vld [vmem:[#allocation3 + $0xb4] sm:$0xf0] }
 0x583   :  { %7087 = vmatpush.bf16.msrb.mxu2 %v12667_v11  ;;  %v14706_v17 = vld [vmem:[#allocation3 + $0x304] sm:$0xf]  ;;  %v12744_v14 = vld [vmem:[#allocation3 + $0x310] sm:$0xf0]  ;;  %v12619_v5 = vor.u32 %v14674_v10, %v12616_v59  ;;  %v12719_v11 = vor.u32 %v14701_v47, %v12718_v43  ;;  %v12574_v41 = vld [vmem:[#allocation3 + $0x1a8] sm:$0xf] }
 0x584   :  { %7101 = vmatpush.bf16.msrb.mxu3 %v12795_v7  ;;  %v12747_v8 = vor.u32 %v14706_v17, %v12744_v14  ;;  %v12847_v7 = vor.u32 %v14733_v21, %v12846_v19  ;;  %v14665_v20 = vld [vmem:[#allocation3 + $0x1b4] sm:$0xf0]  ;;  %v12702_v28 = vld [vmem:[#allocation3 + $0x2a8] sm:$0xf] }
 0x585   :  { %7060 = vmatpush.bf16.msrb.mxu0 %v12395_v34  ;;  %v14697_v30 = vld [vmem:[#allocation3 + $0x2b4] sm:$0xf0]  ;;  %v12830_v33 = vld [vmem:[#allocation3 + $0x3a8] sm:$0xf]  ;;  %v12447_v34 = vor.u32 %v14633_v26, %v12446_v22 }
 0x586   :  { %7074 = vmatpush.bf16.msrb.mxu1 %v12523_v23  ;;  %v14729_v50 = vld [vmem:[#allocation3 + $0x3b4] sm:$0xf0]  ;;  %v12575_v23 = vor.u32 %v14665_v20, %v12574_v41  ;;  %v12430_v45 = vld [vmem:[#allocation3 + $0x88] sm:$0xf] }
 0x587   :  { %7088 = vmatpush.bf16.msrb.mxu2 %v12651_v37  ;;  %v12703_v37 = vor.u32 %v14697_v30, %v12702_v28  ;;  %v14629_v25 = vld [vmem:[#allocation3 + $0x94] sm:$0xf0]  ;;  %v12558_v54 = vld [vmem:[#allocation3 + $0x188] sm:$0xf] }
 0x588   :  { %7102 = vmatpush.bf16.msrb.mxu3 %v12779_v62  ;;  %v12831_v62 = vor.u32 %v14729_v50, %v12830_v33  ;;  %v14661_v9 = vld [vmem:[#allocation3 + $0x194] sm:$0xf0]  ;;  %v12686_v40 = vld [vmem:[#allocation3 + $0x288] sm:$0xf] }
 0x589   :  { %7061 = vmatpush.bf16.msrb.mxu0 %v12379_v1  ;;  %v14693_v35 = vld [vmem:[#allocation3 + $0x294] sm:$0xf0]  ;;  %v12814_v32 = vld [vmem:[#allocation3 + $0x388] sm:$0xf]  ;;  %v12431_v1 = vor.u32 %v14629_v25, %v12430_v45  ;;  %v12559_v48 = vor.u32 %v14661_v9, %v12558_v54  ;;  %v12608_v25 = vld [vmem:[#allocation3 + $0x1f8] sm:$0xf0] }
 0x58a   :  { %7075 = vmatpush.bf16.msrb.mxu1 %v12507_v58  ;;  %v14725_v42 = vld [vmem:[#allocation3 + $0x394] sm:$0xf0]  ;;  %v12687_v6 = vor.u32 %v14693_v35, %v12686_v40  ;;  %v12414_v58 = vld [vmem:[#allocation3 + $0x68] sm:$0xf]  ;;  %v14703_v54 = vld [vmem:[#allocation3 + $0x2ec] sm:$0xf] }
 0x58b   :  { %7089 = vmatpush.bf16.msrb.mxu2 %v12635_v51  ;;  %v14625_v51 = vld [vmem:[#allocation3 + $0x74] sm:$0xf0]  ;;  %v12542_v53 = vld [vmem:[#allocation3 + $0x168] sm:$0xf]  ;;  %v12815_v56 = vor.u32 %v14725_v42, %v12814_v32  ;;  %v14735_v35 = vld [vmem:[#allocation3 + $0x3ec] sm:$0xf] }
 0x58c   :  { %7103 = vmatpush.bf16.msrb.mxu3 %v12763_v57  ;;  %v14657_v10 = vld [vmem:[#allocation3 + $0x174] sm:$0xf0]  ;;  %v12670_v57 = vld [vmem:[#allocation3 + $0x268] sm:$0xf]  ;;  %v12415_v52 = vor.u32 %v14625_v51, %v12414_v58  ;;  %v12864_v32 = vld [vmem:[#allocation3 + $0x3f8] sm:$0xf0] }
 0x58d   :  { %7062 = vmatpush.bf16.msrb.mxu0 %v12363_v61  ;;  %v14689_v59 = vld [vmem:[#allocation3 + $0x274] sm:$0xf0]  ;;  %v12798_v17 = vld [vmem:[#allocation3 + $0x368] sm:$0xf]  ;;  %v12543_v12 = vor.u32 %v14657_v10, %v12542_v53  ;;  %v14635_v58 = vld [vmem:[#allocation3 + $0xcc] sm:$0xf] }
 0x58e   :  { %7076 = vmatpush.bf16.msrb.mxu1 %v12491_v4  ;;  %v14721_v14 = vld [vmem:[#allocation3 + $0x374] sm:$0xf0]  ;;  %v12671_v24 = vor.u32 %v14689_v59, %v12670_v57  ;;  %v12398_v61 = vld [vmem:[#allocation3 + $0x48] sm:$0xf]  ;;  %v12464_v51 = vld [vmem:[#allocation3 + $0xd8] sm:$0xf0] }
 0x58f   :  { %7090 = vmatpush.bf16.msrb.mxu2 %v12619_v5  ;;  %v14621_v2 = vld [vmem:[#allocation3 + $0x54] sm:$0xf0]  ;;  %v12526_v36 = vld [vmem:[#allocation3 + $0x148] sm:$0xf]  ;;  %v12799_v60 = vor.u32 %v14721_v14, %v12798_v17  ;;  %v14667_v53 = vld [vmem:[#allocation3 + $0x1cc] sm:$0xf] }
 0x590   :  { %7104 = vmatpush.bf16.msrb.mxu3 %v12747_v8  ;;  %7063 = vmatmul.bf16.vlgmr.msrb.gmra.mxu0 %v15537_v46  ;;  %v14653_v4 = vld [vmem:[#allocation3 + $0x154] sm:$0xf0]  ;;  %v12654_v5 = vld [vmem:[#allocation3 + $0x248] sm:$0xf]  ;;  %v12592_v10 = vld [vmem:[#allocation3 + $0x1d8] sm:$0xf0] }
 0x591   :  { %7111 = vmatpush.bf16.msra.mxu0 %v12479_v0  ;;  %7077 = vmatmul.bf16.vlgmr.msrb.gmra.mxu1 %v15548_v38  ;;  %v14685_v3 = vld [vmem:[#allocation3 + $0x254] sm:$0xf0]  ;;  %v12782_v27 = vld [vmem:[#allocation3 + $0x348] sm:$0xf]  ;;  %v12399_v0 = vor.u32 %v14621_v2, %v12398_v61  ;;  %v14699_v57 = vld [vmem:[#allocation3 + $0x2cc] sm:$0xf] }
 0x592   :  { %7125 = vmatpush.bf16.msra.mxu1 %v12607_v31  ;;  %7091 = vmatmul.bf16.vlgmr.msrb.gmra.mxu2 %v15551_v15  ;;  %v14717_v8 = vld [vmem:[#allocation3 + $0x354] sm:$0xf0]  ;;  %v12527_v31 = vor.u32 %v14653_v4, %v12526_v36  ;;  %v12382_v29 = vld [vmem:[#allocation3 + $0x28] sm:$0xf]  ;;  %v12720_v59 = vld [vmem:[#allocation3 + $0x2d8] sm:$0xf0] }
 0x593   :  { %7139 = vmatpush.bf16.msra.mxu2 %v12735_v55  ;;  %7105 = vmatmul.bf16.vlgmr.msrb.gmra.mxu3 %v15554_v49  ;;  %v12655_v55 = vor.u32 %v14685_v3, %v12654_v5  ;;  %v14617_v13 = vld [vmem:[#allocation3 + $0x34] sm:$0xf0]  ;;  %v12510_v16 = vld [vmem:[#allocation3 + $0x128] sm:$0xf]  ;;  %v14731_v17 = vld [vmem:[#allocation3 + $0x3cc] sm:$0xf] }
 0x594   :  { %7153 = vmatpush.bf16.msra.mxu3 %v12863_v39  ;;  %v12783_v39 = vor.u32 %v14717_v8, %v12782_v27  ;;  %v14649_v44 = vld [vmem:[#allocation3 + $0x134] sm:$0xf0]  ;;  %v12638_v43 = vld [vmem:[#allocation3 + $0x228] sm:$0xf]  ;;  %v12848_v14 = vld [vmem:[#allocation3 + $0x3d8] sm:$0xf0] }
 0x595   :  { %7112 = vmatpush.bf16.msra.mxu0 %v12463_v18  ;;  %v14681_v47 = vld [vmem:[#allocation3 + $0x234] sm:$0xf0]  ;;  %v12766_v19 = vld [vmem:[#allocation3 + $0x328] sm:$0xf]  ;;  %v12383_v18 = vor.u32 %v14617_v13, %v12382_v29  ;;  %v12511_v22 = vor.u32 %v14649_v44, %v12510_v16  ;;  %v14631_v61 = vld [vmem:[#allocation3 + $0xac] sm:$0xf] }
 0x596   :  { %7126 = vmatpush.bf16.msra.mxu1 %v12591_v63  ;;  %v14713_v21 = vld [vmem:[#allocation3 + $0x334] sm:$0xf0]  ;;  %v12366_v63 = vld [vmem:[#allocation3 + $0x8] sm:$0xf]  ;;  %v12639_v26 = vor.u32 %v14681_v47, %v12638_v43  ;;  %v12448_v2 = vld [vmem:[#allocation3 + $0xb8] sm:$0xf0] }
 0x597   :  { %7140 = vmatpush.bf16.msra.mxu2 %v12719_v11  ;;  %v14613_v11 = vld [vmem:[#allocation3 + $0x14] sm:$0xf0]  ;;  %v12494_v41 = vld [vmem:[#allocation3 + $0x108] sm:$0xf]  ;;  %v12767_v28 = vor.u32 %v14713_v21, %v12766_v19  ;;  %v14663_v36 = vld [vmem:[#allocation3 + $0x1ac] sm:$0xf] }
 0x598   :  { %7154 = vmatpush.bf16.msra.mxu3 %v12847_v7  ;;  %v14645_v7 = vld [vmem:[#allocation3 + $0x114] sm:$0xf0]  ;;  %v12622_v20 = vld [vmem:[#allocation3 + $0x208] sm:$0xf]  ;;  %v12367_v45 = vor.u32 %v14613_v11, %v12366_v63  ;;  %v12576_v4 = vld [vmem:[#allocation3 + $0x1b8] sm:$0xf0] }
 0x599   :  { %7113 = vmatpush.bf16.msra.mxu0 %v12447_v34  ;;  %v14677_v30 = vld [vmem:[#allocation3 + $0x214] sm:$0xf0]  ;;  %v12750_v33 = vld [vmem:[#allocation3 + $0x308] sm:$0xf]  ;;  %v14639_v34 = vld [vmem:[#allocation3 + $0xec] sm:$0xf]  ;;  %v12495_v9 = vor.u32 %v14645_v7, %v12494_v41 }
 0x59a   :  { %7127 = vmatpush.bf16.msra.mxu1 %v12575_v23  ;;  %v14709_v50 = vld [vmem:[#allocation3 + $0x314] sm:$0xf0]  ;;  %v12480_v23 = vld [vmem:[#allocation3 + $0xf8] sm:$0xf0]  ;;  %v12623_v40 = vor.u32 %v14677_v30, %v12622_v20  ;;  %v14695_v5 = vld [vmem:[#allocation3 + $0x2ac] sm:$0xf] }
 0x59b   :  { %7141 = vmatpush.bf16.msra.mxu2 %v12703_v37  ;;  %v14671_v37 = vld [vmem:[#allocation3 + $0x1ec] sm:$0xf]  ;;  %v12751_v42 = vor.u32 %v14709_v50, %v12750_v33  ;;  %v12704_v3 = vld [vmem:[#allocation3 + $0x2b8] sm:$0xf0] }
 0x59c   :  { %7155 = vmatpush.bf16.msra.mxu3 %v12831_v62  ;;  %v12736_v62 = vld [vmem:[#allocation3 + $0x2f8] sm:$0xf0]  ;;  %v14727_v27 = vld [vmem:[#allocation3 + $0x3ac] sm:$0xf] }
 0x59d   :  { %7114 = vmatpush.bf16.msra.mxu0 %v12431_v1  ;;  %v12483_v1 = vor.u32 %v14639_v34, %v12480_v23  ;;  %v12832_v8 = vld [vmem:[#allocation3 + $0x3b8] sm:$0xf0]  ;;  %v14627_v29 = vld [vmem:[#allocation3 + $0x8c] sm:$0xf] }
 0x59e   :  { %7128 = vmatpush.bf16.msra.mxu1 %v12559_v48  ;;  %v12611_v48 = vor.u32 %v14671_v37, %v12608_v25  ;;  %v12432_v13 = vld [vmem:[#allocation3 + $0x98] sm:$0xf0]  ;;  %v14659_v16 = vld [vmem:[#allocation3 + $0x18c] sm:$0xf] }
 0x59f   :  { %7142 = vmatpush.bf16.msra.mxu2 %v12687_v6  ;;  %v12739_v6 = vor.u32 %v14703_v54, %v12736_v62  ;;  %v12560_v44 = vld [vmem:[#allocation3 + $0x198] sm:$0xf0]  ;;  %v14691_v43 = vld [vmem:[#allocation3 + $0x28c] sm:$0xf] }
 0x5a0   :  { %7156 = vmatpush.bf16.msra.mxu3 %v12815_v56  ;;  %v12867_v56 = vor.u32 %v14735_v35, %v12864_v32  ;;  %v12688_v47 = vld [vmem:[#allocation3 + $0x298] sm:$0xf0]  ;;  %v14723_v19 = vld [vmem:[#allocation3 + $0x38c] sm:$0xf]  ;;  %v12563_v63 = vor.u32 %v14659_v16, %v12560_v44 }
 0x5a1   :  { %7115 = vmatpush.bf16.msra.mxu0 %v12415_v52  ;;  %v12467_v52 = vor.u32 %v14635_v58, %v12464_v51  ;;  %v12816_v21 = vld [vmem:[#allocation3 + $0x398] sm:$0xf0]  ;;  %v12691_v11 = vor.u32 %v14691_v43, %v12688_v47  ;;  %v14655_v41 = vld [vmem:[#allocation3 + $0x16c] sm:$0xf] }
 0x5a2   :  { %7129 = vmatpush.bf16.msra.mxu1 %v12543_v12  ;;  %v12595_v12 = vor.u32 %v14667_v53, %v12592_v10  ;;  %v12819_v7 = vor.u32 %v14723_v19, %v12816_v21  ;;  %v12544_v20 = vld [vmem:[#allocation3 + $0x178] sm:$0xf0]  ;;  %v14719_v33 = vld [vmem:[#allocation3 + $0x36c] sm:$0xf] }
 0x5a3   :  { %7143 = vmatpush.bf16.msra.mxu2 %v12671_v24  ;;  %v12723_v24 = vor.u32 %v14699_v57, %v12720_v59  ;;  %v12672_v30 = vld [vmem:[#allocation3 + $0x278] sm:$0xf0]  ;;  %v12547_v23 = vor.u32 %v14655_v41, %v12544_v20  ;;  %v14651_v54 = vld [vmem:[#allocation3 + $0x14c] sm:$0xf] }
 0x5a4   :  { %7157 = vmatpush.bf16.msra.mxu3 %v12799_v60  ;;  %v12851_v60 = vor.u32 %v14731_v17, %v12848_v14  ;;  %v12800_v50 = vld [vmem:[#allocation3 + $0x378] sm:$0xf0]  ;;  %v14715_v32 = vld [vmem:[#allocation3 + $0x34c] sm:$0xf] }
 0x5a5   :  { %7116 = vmatpush.bf16.msra.mxu0 %v12399_v0  ;;  %v12451_v0 = vor.u32 %v14631_v61, %v12448_v2  ;;  %v12400_v25 = vld [vmem:[#allocation3 + $0x58] sm:$0xf0]  ;;  %v12803_v62 = vor.u32 %v14719_v33, %v12800_v50  ;;  %v14615_v58 = vld [vmem:[#allocation3 + $0x2c] sm:$0xf] }
 0x5a6   :  { %7130 = vmatpush.bf16.msra.mxu1 %v12527_v31  ;;  %v12579_v31 = vor.u32 %v14663_v36, %v12576_v4  ;;  %v12656_v35 = vld [vmem:[#allocation3 + $0x258] sm:$0xf0]  ;;  %v14647_v53 = vld [vmem:[#allocation3 + $0x12c] sm:$0xf] }
 0x5a7   :  { %7144 = vmatpush.bf16.msra.mxu2 %v12655_v55  ;;  %v12707_v55 = vor.u32 %v14695_v5, %v12704_v3  ;;  %v12384_v51 = vld [vmem:[#allocation3 + $0x38] sm:$0xf0]  ;;  %v14679_v57 = vld [vmem:[#allocation3 + $0x22c] sm:$0xf] }
 0x5a8   :  { %7158 = vmatpush.bf16.msra.mxu3 %v12783_v39  ;;  %v12835_v39 = vor.u32 %v14727_v27, %v12832_v8  ;;  %v12512_v10 = vld [vmem:[#allocation3 + $0x138] sm:$0xf0]  ;;  %v14711_v17 = vld [vmem:[#allocation3 + $0x32c] sm:$0xf] }
 0x5a9   :  { %7117 = vmatpush.bf16.msra.mxu0 %v12383_v18  ;;  %v12435_v18 = vor.u32 %v14627_v29, %v12432_v13  ;;  %v12640_v59 = vld [vmem:[#allocation3 + $0x238] sm:$0xf0]  ;;  %v14611_v61 = vld [vmem:[#allocation3 + $0xc] sm:$0xf] }
 0x5aa   :  { %7131 = vmatpush.bf16.msra.mxu1 %v12511_v22  ;;  %v14623_v22 = vld [vmem:[#allocation3 + $0x6c] sm:$0xf]  ;;  %v12768_v14 = vld [vmem:[#allocation3 + $0x338] sm:$0xf0] }
 0x5ab   :  { %7145 = vmatpush.bf16.msra.mxu2 %v12639_v26  ;;  %v12416_v26 = vld [vmem:[#allocation3 + $0x78] sm:$0xf0]  ;;  %v14643_v36 = vld [vmem:[#allocation3 + $0x10c] sm:$0xf] }
 0x5ac   :  { %7159 = vmatpush.bf16.msra.mxu3 %v12767_v28  ;;  %v14687_v28 = vld [vmem:[#allocation3 + $0x26c] sm:$0xf]  ;;  %v12419_v34 = vor.u32 %v14623_v22, %v12416_v26  ;;  %v12368_v2 = vld [vmem:[#allocation3 + $0x18] sm:$0xf0] }
 0x5ad   :  { %7118 = vmatpush.bf16.msra.mxu0 %v12367_v45  ;;  %v12675_v37 = vor.u32 %v14687_v28, %v12672_v30  ;;  %v14619_v45 = vld [vmem:[#allocation3 + $0x4c] sm:$0xf]  ;;  %v12496_v4 = vld [vmem:[#allocation3 + $0x118] sm:$0xf0] }
 0x5ae   :  { %7132 = vmatpush.bf16.msra.mxu1 %v12495_v9  ;;  %v12528_v9 = vld [vmem:[#allocation3 + $0x158] sm:$0xf0]  ;;  %v14675_v5 = vld [vmem:[#allocation3 + $0x20c] sm:$0xf] }
 0x5af   :  { %7146 = vmatpush.bf16.msra.mxu2 %v12623_v40  ;;  %v14683_v40 = vld [vmem:[#allocation3 + $0x24c] sm:$0xf]  ;;  %v12624_v3 = vld [vmem:[#allocation3 + $0x218] sm:$0xf0] }
 0x5b0   :  { %7160 = vmatpush.bf16.msra.mxu3 %v12751_v42  ;;  %7119 = vmatmul.bf16.vlgmr.msra.gmra.mxu0 %v15537_v46  ;;  %v12784_v42 = vld [vmem:[#allocation3 + $0x358] sm:$0xf0]  ;;  %v14707_v27 = vld [vmem:[#allocation3 + $0x30c] sm:$0xf] }
 0x5b1   :  { %7167 = vmatpush.bf16.msrb.mxu0 %v12483_v1  ;;  %7133 = vmatmul.bf16.vlgmr.msra.gmra.mxu1 %v15548_v38  ;;  %v12403_v1 = vor.u32 %v14619_v45, %v12400_v25  ;;  %v12752_v8 = vld [vmem:[#allocation3 + $0x318] sm:$0xf0]  ;;  %v15572_v13 = vld [vmem:[#allocation14 + $0xc] sm:$0xf] }
 0x5b2   :  { %7181 = vmatpush.bf16.msrb.mxu1 %v12611_v48  ;;  %7147 = vmatmul.bf16.vlgmr.msra.gmra.mxu2 %v15551_v15  ;;  %v12531_v48 = vor.u32 %v14651_v54, %v12528_v9  ;;  %v12755_v29 = vor.u32 %v14707_v27, %v12752_v8  ;;  %v6351_v16 = vperm.slane %v15572_v13, 0  ;;  %v6352_v30 = vperm.slane %v15572_v13, 1 }
 0x5b3   :  { %7195 = vmatpush.bf16.msrb.mxu2 %v12739_v6  ;;  %7161 = vmatmul.bf16.vlgmr.msra.gmra.mxu3 %v15554_v49  ;;  %v12659_v6 = vor.u32 %v14683_v40, %v12656_v35 }
 0x5b4   :  { %7209 = vmatpush.bf16.msrb.mxu3 %v12867_v56  ;;  %v12787_v56 = vor.u32 %v14715_v32, %v12784_v42 }
 0x5b5   :  { %7168 = vmatpush.bf16.msrb.mxu0 %v12467_v52  ;;  %v12387_v52 = vor.u32 %v14615_v58, %v12384_v51 }
 0x5b6   :  { %7182 = vmatpush.bf16.msrb.mxu1 %v12595_v12  ;;  %v12515_v12 = vor.u32 %v14647_v53, %v12512_v10  ;;  %v6353_v53 = vperm.slane %v15572_v13, 2 }
 0x5b7   :  { %7196 = vmatpush.bf16.msrb.mxu2 %v12723_v24  ;;  %v12643_v24 = vor.u32 %v14679_v57, %v12640_v59 }
 0x5b8   :  { %7210 = vmatpush.bf16.msrb.mxu3 %v12851_v60  ;;  %v12771_v60 = vor.u32 %v14711_v17, %v12768_v14 }
 0x5b9   :  { %7169 = vmatpush.bf16.msrb.mxu0 %v12451_v0  ;;  %v12371_v0 = vor.u32 %v14611_v61, %v12368_v2 }
 0x5ba   :  { %7183 = vmatpush.bf16.msrb.mxu1 %v12579_v31  ;;  %v12499_v31 = vor.u32 %v14643_v36, %v12496_v4 }
 0x5bb   :  { %7197 = vmatpush.bf16.msrb.mxu2 %v12707_v55  ;;  %v12627_v55 = vor.u32 %v14675_v5, %v12624_v3 }
 0x5bc   :  { %7211 = vmatpush.bf16.msrb.mxu3 %v12835_v39 }
 0x5bd   :  { %7170 = vmatpush.bf16.msrb.mxu0 %v12435_v18 }
 0x5be   :  { %7184 = vmatpush.bf16.msrb.mxu1 %v12563_v63 }
 0x5bf   :  { %7198 = vmatpush.bf16.msrb.mxu2 %v12691_v11 }
 0x5c0   :  { %7212 = vmatpush.bf16.msrb.mxu3 %v12819_v7 }
 0x5c1   :  { %7171 = vmatpush.bf16.msrb.mxu0 %v12419_v34 }
 0x5c2   :  { %7185 = vmatpush.bf16.msrb.mxu1 %v12547_v23 }
 0x5c3   :  { %7199 = vmatpush.bf16.msrb.mxu2 %v12675_v37 }
 0x5c4   :  { %7213 = vmatpush.bf16.msrb.mxu3 %v12803_v62 }
 0x5c5   :  { %7172 = vmatpush.bf16.msrb.mxu0 %v12403_v1 }
 0x5c6   :  { %7186 = vmatpush.bf16.msrb.mxu1 %v12531_v48 }
 0x5c7   :  { %7200 = vmatpush.bf16.msrb.mxu2 %v12659_v6 }
 0x5c8   :  { %7214 = vmatpush.bf16.msrb.mxu3 %v12787_v56 }
 0x5c9   :  { %7173 = vmatpush.bf16.msrb.mxu0 %v12387_v52 }
 0x5ca   :  { %7187 = vmatpush.bf16.msrb.mxu1 %v12515_v12 }
 0x5cb   :  { %7201 = vmatpush.bf16.msrb.mxu2 %v12643_v24 }
 0x5cc   :  { %7215 = vmatpush.bf16.msrb.mxu3 %v12771_v60 }
 0x5cd   :  { %7174 = vmatpush.bf16.msrb.mxu0 %v12371_v0 }
 0x5ce   :  { %7188 = vmatpush.bf16.msrb.mxu1 %v12499_v31  ;;  %v6354_v31 = vperm.slane %v15572_v13, 3 }
 0x5cf   :  { %7202 = vmatpush.bf16.msrb.mxu2 %v12627_v55 }
 0x5d0   :  { %7216 = vmatpush.bf16.msrb.mxu3 %v12755_v29  ;;  %7175 = vmatmul.bf16.vlgmr.msrb.gmra.mxu0 %v15537_v46 }
 0x5d1   :  { %7189 = vmatmul.bf16.vlgmr.msrb.gmra.mxu1 %v15548_v38 }
 0x5d2   :  { %7203 = vmatmul.bf16.vlgmr.msrb.gmra.mxu2 %v15551_v15 }
 0x5d3   :  { %7217 = vmatmul.bf16.vlgmr.msrb.gmra.mxu3 %v15554_v49 }
 0x5ed   :  { %v7008_v39 = vpop.f32.mrf.mxu0 }
 0x5ee   :  { %v7009_v44 = vadd.f32 %v7008_v39, %v6351_v16  ;;  %v7022_v43 = vpop.f32.mrf.mxu1 }
 0x5f0   :  { %v7023_v47 = vadd.f32 %v7022_v43, %v7009_v44 }
 0x5f5   :  { %v7036_v19 = vpop.f32.mrf.mxu2  ;;  %v7010_v63 = vpop.f32.mrf.mxu0 }
 0x5f6   :  { %v7050_v21 = vpop.f32.mrf.mxu3  ;;  %v7037_v18 = vadd.f32 %v7036_v19, %v7023_v47  ;;  %v7011_v11 = vadd.f32 %v7010_v63, %v6351_v16  ;;  %v7024_v46 = vpop.f32.mrf.mxu1 }
 0x5f8   :  { %v7025_v22 = vadd.f32 %v7024_v46, %v7011_v11  ;;  %v7051_v38 = vadd.f32 %v7050_v21, %v7037_v18 }
 0x5fa   :  { %v7223_v49 = vmax.f32 %v7051_v38, 0.0 }
 0x5fd   :  { %v7038_v26 = vpop.f32.mrf.mxu2 }
 0x5fe   :  { %v7039_v15 = vadd.f32 %v7038_v26, %v7025_v22  ;;  %v7052_v41 = vpop.f32.mrf.mxu3 }
 0x600   :  { %v7053_v7 = vadd.f32 %v7052_v41, %v7039_v15 }
 0x602   :  { %v7227_v20 = vmax.f32 %v7053_v7, 0.0 }
 0x604   :  { %v15575_v28 = vpack.c.bf16 %v7227_v20, %v7223_v49 }
 0x60d   :  { %v7064_v33 = vpop.f32.mrf.mxu0 }
 0x60e   :  { %v7065_v50 = vadd.f32 %v7064_v33, %v6352_v30  ;;  %v7078_v34 = vpop.f32.mrf.mxu1 }
 0x610   :  { %v7079_v23 = vadd.f32 %v7078_v34, %v7065_v50 }
 0x615   :  { %v7092_v37 = vpop.f32.mrf.mxu2  ;;  %v7066_v54 = vpop.f32.mrf.mxu0 }
 0x616   :  { %v7106_v45 = vpop.f32.mrf.mxu3  ;;  %v7093_v25 = vadd.f32 %v7092_v37, %v7079_v23  ;;  %v7067_v62 = vadd.f32 %v7066_v54, %v6352_v30  ;;  %v7080_v9 = vpop.f32.mrf.mxu1 }
 0x618   :  { %v7081_v40 = vadd.f32 %v7080_v9, %v7067_v62  ;;  %v7107_v35 = vadd.f32 %v7106_v45, %v7093_v25 }
 0x61a   :  { %v7224_v48 = vmax.f32 %v7107_v35, 0.0 }
 0x61d   :  { %v7094_v32 = vpop.f32.mrf.mxu2 }
 0x61e   :  { %v7095_v42 = vadd.f32 %v7094_v32, %v7081_v40  ;;  %v7108_v1 = vpop.f32.mrf.mxu3 }
 0x620   :  { %v7109_v6 = vadd.f32 %v7108_v1, %v7095_v42 }
 0x622   :  { %v7228_v58 = vmax.f32 %v7109_v6, 0.0 }
 0x624   :  { %v15578_v51 = vpack.c.bf16 %v7228_v58, %v7224_v48 }
 0x62d   :  { %v7120_v56 = vpop.f32.mrf.mxu0 }
 0x62e   :  { %v7121_v10 = vadd.f32 %v7120_v56, %v6353_v53  ;;  %v7134_v57 = vpop.f32.mrf.mxu1 }
 0x630   :  { %v7135_v59 = vadd.f32 %v7134_v57, %v7121_v10 }
 0x635   :  { %v7148_v17 = vpop.f32.mrf.mxu2  ;;  %v7122_v12 = vpop.f32.mrf.mxu0 }
 0x636   :  { %v7162_v14 = vpop.f32.mrf.mxu3  ;;  %v7149_v52 = vadd.f32 %v7148_v17, %v7135_v59  ;;  %v7123_v24 = vadd.f32 %v7122_v12, %v6353_v53  ;;  %v7136_v61 = vpop.f32.mrf.mxu1 }
 0x638   :  { %v7137_v2 = vadd.f32 %v7136_v61, %v7123_v24  ;;  %v7163_v36 = vadd.f32 %v7162_v14, %v7149_v52 }
 0x63a   :  { %v7225_v3 = vmax.f32 %v7163_v36, 0.0 }
 0x63d   :  { %v7150_v60 = vpop.f32.mrf.mxu2 }
 0x63e   :  { %v7151_v4 = vadd.f32 %v7150_v60, %v7137_v2  ;;  %v7164_v5 = vpop.f32.mrf.mxu3 }
 0x640   :  { %v7165_v27 = vadd.f32 %v7164_v5, %v7151_v4 }
 0x642   :  { %v7229_v8 = vmax.f32 %v7165_v27, 0.0 }
 0x644   :  { %v15581_v0 = vpack.c.bf16 %v7229_v8, %v7225_v3 }
 0x64d   :  { %v7176_v55 = vpop.f32.mrf.mxu0 }
 0x64e   :  { %v7190_v29 = vpop.f32.mrf.mxu1  ;;  %v7177_v16 = vadd.f32 %v7176_v55, %v6354_v31 }
 0x650   :  { %v7191_v44 = vadd.f32 %v7190_v29, %v7177_v16 }
 0x655   :  { %v7204_v39 = vpop.f32.mrf.mxu2  ;;  %v7178_v47 = vpop.f32.mrf.mxu0 }
 0x656   :  { %v7218_v43 = vpop.f32.mrf.mxu3  ;;  %v7179_v19 = vadd.f32 %v7178_v47, %v6354_v31  ;;  %v7205_v21 = vadd.f32 %v7204_v39, %v7191_v44  ;;  %v7192_v18 = vpop.f32.mrf.mxu1 }
 0x658   :  { %v7193_v63 = vadd.f32 %v7192_v18, %v7179_v19  ;;  %v7219_v46 = vadd.f32 %v7218_v43, %v7205_v21 }
 0x65a   :  { %v7226_v15 = vmax.f32 %v7219_v46, 0.0 }
 0x65d   :  { %v7206_v11 = vpop.f32.mrf.mxu2 }
 0x65e   :  { %v7207_v22 = vadd.f32 %v7206_v11, %v7193_v63  ;;  %v7220_v38 = vpop.f32.mrf.mxu3 }
 0x660   :  { %v7221_v26 = vadd.f32 %v7220_v38, %v7207_v22 }
 0x662   :  { %v7230_v41 = vmax.f32 %v7221_v26, 0.0 }
 0x664   :  { %v15584_v49 = vpack.c.bf16 %v7230_v41, %v7226_v15 }
 0x665   :  { %15243 = dma.done.wait [#allocation8 + $0x2], 16384 }
 0x666   :  { %15244 = vsyncadd [#allocation8 + $0x2], 4294950912  ;;  %v12982_v13 = vld [vmem:[#allocation4 + $0xe0] sm:$0xf]  ;;  %v14768_v7 = vld [vmem:[#allocation4 + $0xec] sm:$0xf0] }
 0x667   :  { %v13110_v20 = vld [vmem:[#allocation4 + $0x1e0] sm:$0xf]  ;;  %v12983_v30 = vor.u32 %v14768_v7, %v12982_v13  ;;  %v14800_v33 = vld [vmem:[#allocation4 + $0x1ec] sm:$0xf0] }
 0x668   :  { %v13238_v50 = vld [vmem:[#allocation4 + $0x2e0] sm:$0xf]  ;;  %v14832_v34 = vld [vmem:[#allocation4 + $0x2ec] sm:$0xf0]  ;;  %v13111_v23 = vor.u32 %v14800_v33, %v13110_v20 }
 0x669   :  { %v13239_v37 = vor.u32 %v14832_v34, %v13238_v50  ;;  %v13366_v45 = vld [vmem:[#allocation4 + $0x3e0] sm:$0xf]  ;;  %v14864_v25 = vld [vmem:[#allocation4 + $0x3ec] sm:$0xf0]  ;;  %8015 = vmatpush.bf16.msra.mxu0 %v12983_v30 }
 0x66a   :  { %v12966_v54 = vld [vmem:[#allocation4 + $0xc0] sm:$0xf]  ;;  %v13367_v62 = vor.u32 %v14864_v25, %v13366_v45  ;;  %v14764_v9 = vld [vmem:[#allocation4 + $0xcc] sm:$0xf0]  ;;  %8029 = vmatpush.bf16.msra.mxu1 %v13111_v23 }
 0x66b   :  { %v13094_v40 = vld [vmem:[#allocation4 + $0x1c0] sm:$0xf]  ;;  %v14796_v35 = vld [vmem:[#allocation4 + $0x1cc] sm:$0xf0]  ;;  %8043 = vmatpush.bf16.msra.mxu2 %v13239_v37  ;;  %v12967_v32 = vor.u32 %v14764_v9, %v12966_v54 }
 0x66c   :  { %v13095_v42 = vor.u32 %v14796_v35, %v13094_v40  ;;  %v13222_v1 = vld [vmem:[#allocation4 + $0x2c0] sm:$0xf]  ;;  %v14828_v48 = vld [vmem:[#allocation4 + $0x2cc] sm:$0xf0]  ;;  %8057 = vmatpush.bf16.msra.mxu3 %v13367_v62 }
 0x66d   :  { %v13350_v6 = vld [vmem:[#allocation4 + $0x3c0] sm:$0xf]  ;;  %v13223_v58 = vor.u32 %v14828_v48, %v13222_v1  ;;  %v14860_v53 = vld [vmem:[#allocation4 + $0x3cc] sm:$0xf0]  ;;  %8016 = vmatpush.bf16.msra.mxu0 %v12967_v32 }
 0x66e   :  { %v12950_v56 = vld [vmem:[#allocation4 + $0xa0] sm:$0xf]  ;;  %v14760_v10 = vld [vmem:[#allocation4 + $0xac] sm:$0xf0]  ;;  %v13351_v57 = vor.u32 %v14860_v53, %v13350_v6  ;;  %8030 = vmatpush.bf16.msra.mxu1 %v13095_v42 }
 0x66f   :  { %v13078_v59 = vld [vmem:[#allocation4 + $0x1a0] sm:$0xf]  ;;  %v14792_v17 = vld [vmem:[#allocation4 + $0x1ac] sm:$0xf0]  ;;  %v12951_v52 = vor.u32 %v14760_v10, %v12950_v56  ;;  %8044 = vmatpush.bf16.msra.mxu2 %v13223_v58 }
 0x670   :  { %v13206_v14 = vld [vmem:[#allocation4 + $0x2a0] sm:$0xf]  ;;  %v14824_v12 = vld [vmem:[#allocation4 + $0x2ac] sm:$0xf0]  ;;  %v13079_v2 = vor.u32 %v14792_v17, %v13078_v59  ;;  %8058 = vmatpush.bf16.msra.mxu3 %v13351_v57 }
 0x671   :  { %v13334_v24 = vld [vmem:[#allocation4 + $0x3a0] sm:$0xf]  ;;  %v14856_v61 = vld [vmem:[#allocation4 + $0x3ac] sm:$0xf0]  ;;  %v13207_v36 = vor.u32 %v14824_v12, %v13206_v14  ;;  %8017 = vmatpush.bf16.msra.mxu0 %v12951_v52 }
 0x672   :  { %v12934_v60 = vld [vmem:[#allocation4 + $0x80] sm:$0xf]  ;;  %v14756_v4 = vld [vmem:[#allocation4 + $0x8c] sm:$0xf0]  ;;  %v13335_v3 = vor.u32 %v14856_v61, %v13334_v24  ;;  %8031 = vmatpush.bf16.msra.mxu1 %v13079_v2  ;;  %v14766_v61 = vld [vmem:[#allocation4 + $0xe4] sm:$0xf] }
 0x673   :  { %v13062_v5 = vld [vmem:[#allocation4 + $0x180] sm:$0xf]  ;;  %v14788_v27 = vld [vmem:[#allocation4 + $0x18c] sm:$0xf0]  ;;  %v12935_v16 = vor.u32 %v14756_v4, %v12934_v60  ;;  %8045 = vmatpush.bf16.msra.mxu2 %v13207_v36  ;;  %v12984_v2 = vld [vmem:[#allocation4 + $0xf0] sm:$0xf0] }
 0x674   :  { %v13190_v8 = vld [vmem:[#allocation4 + $0x280] sm:$0xf]  ;;  %v14820_v31 = vld [vmem:[#allocation4 + $0x28c] sm:$0xf0]  ;;  %v13063_v39 = vor.u32 %v14788_v27, %v13062_v5  ;;  %8059 = vmatpush.bf16.msra.mxu3 %v13335_v3  ;;  %v14798_v36 = vld [vmem:[#allocation4 + $0x1e4] sm:$0xf] }
 0x675   :  { %v13318_v55 = vld [vmem:[#allocation4 + $0x380] sm:$0xf]  ;;  %v14852_v29 = vld [vmem:[#allocation4 + $0x38c] sm:$0xf0]  ;;  %v13191_v44 = vor.u32 %v14820_v31, %v13190_v8  ;;  %8018 = vmatpush.bf16.msra.mxu0 %v12935_v16  ;;  %v13112_v4 = vld [vmem:[#allocation4 + $0x1f0] sm:$0xf0]  ;;  %v12987_v16 = vor.u32 %v14766_v61, %v12984_v2 }
 0x676   :  { %v12918_v43 = vld [vmem:[#allocation4 + $0x60] sm:$0xf]  ;;  %v14752_v47 = vld [vmem:[#allocation4 + $0x6c] sm:$0xf0]  ;;  %v13319_v21 = vor.u32 %v14852_v29, %v13318_v55  ;;  %8032 = vmatpush.bf16.msra.mxu1 %v13063_v39  ;;  %v14830_v5 = vld [vmem:[#allocation4 + $0x2e4] sm:$0xf]  ;;  %v13115_v39 = vor.u32 %v14798_v36, %v13112_v4 }
 0x677   :  { %v13046_v19 = vld [vmem:[#allocation4 + $0x160] sm:$0xf]  ;;  %v14784_v18 = vld [vmem:[#allocation4 + $0x16c] sm:$0xf0]  ;;  %v12919_v38 = vor.u32 %v14752_v47, %v12918_v43  ;;  %8046 = vmatpush.bf16.msra.mxu2 %v13191_v44  ;;  %v13240_v3 = vld [vmem:[#allocation4 + $0x2f0] sm:$0xf0] }
 0x678   :  { %v13174_v63 = vld [vmem:[#allocation4 + $0x260] sm:$0xf]  ;;  %v14816_v11 = vld [vmem:[#allocation4 + $0x26c] sm:$0xf0]  ;;  %v13047_v26 = vor.u32 %v14784_v18, %v13046_v19  ;;  %8060 = vmatpush.bf16.msra.mxu3 %v13319_v21  ;;  %v14862_v31 = vld [vmem:[#allocation4 + $0x3e4] sm:$0xf]  ;;  %v13243_v44 = vor.u32 %v14830_v5, %v13240_v3 }
 0x679   :  { %v13302_v46 = vld [vmem:[#allocation4 + $0x360] sm:$0xf]  ;;  %v14848_v22 = vld [vmem:[#allocation4 + $0x36c] sm:$0xf0]  ;;  %v13175_v15 = vor.u32 %v14816_v11, %v13174_v63  ;;  %8019 = vmatpush.bf16.msra.mxu0 %v12919_v38  ;;  %v13368_v55 = vld [vmem:[#allocation4 + $0x3f0] sm:$0xf0] }
 0x67a   :  { %v12902_v41 = vld [vmem:[#allocation4 + $0x40] sm:$0xf]  ;;  %v14748_v13 = vld [vmem:[#allocation4 + $0x4c] sm:$0xf0]  ;;  %v13303_v20 = vor.u32 %v14848_v22, %v13302_v46  ;;  %8033 = vmatpush.bf16.msra.mxu1 %v13047_v26  ;;  %v14762_v43 = vld [vmem:[#allocation4 + $0xc4] sm:$0xf]  ;;  %v13371_v21 = vor.u32 %v14862_v31, %v13368_v55 }
 0x67b   :  { %v13030_v7 = vld [vmem:[#allocation4 + $0x140] sm:$0xf]  ;;  %v14780_v30 = vld [vmem:[#allocation4 + $0x14c] sm:$0xf0]  ;;  %v12903_v37 = vor.u32 %v14748_v13, %v12902_v41  ;;  %8047 = vmatpush.bf16.msra.mxu2 %v13175_v15  ;;  %v12968_v47 = vld [vmem:[#allocation4 + $0xd0] sm:$0xf0] }
 0x67c   :  { %v13158_v33 = vld [vmem:[#allocation4 + $0x240] sm:$0xf]  ;;  %v14812_v50 = vld [vmem:[#allocation4 + $0x24c] sm:$0xf0]  ;;  %v13031_v45 = vor.u32 %v14780_v30, %v13030_v7  ;;  %8061 = vmatpush.bf16.msra.mxu3 %v13303_v20  ;;  %v14794_v19 = vld [vmem:[#allocation4 + $0x1c4] sm:$0xf]  ;;  %v12971_v38 = vor.u32 %v14762_v43, %v12968_v47 }
 0x67d   :  { %v13286_v34 = vld [vmem:[#allocation4 + $0x340] sm:$0xf]  ;;  %v14844_v23 = vld [vmem:[#allocation4 + $0x34c] sm:$0xf0]  ;;  %v13159_v25 = vor.u32 %v14812_v50, %v13158_v33  ;;  %8020 = vmatpush.bf16.msra.mxu0 %v12903_v37  ;;  %v13096_v18 = vld [vmem:[#allocation4 + $0x1d0] sm:$0xf0] }
 0x67e   :  { %v12886_v54 = vld [vmem:[#allocation4 + $0x20] sm:$0xf]  ;;  %v14744_v62 = vld [vmem:[#allocation4 + $0x2c] sm:$0xf0]  ;;  %v13287_v40 = vor.u32 %v14844_v23, %v13286_v34  ;;  %8034 = vmatpush.bf16.msra.mxu1 %v13031_v45  ;;  %v14826_v63 = vld [vmem:[#allocation4 + $0x2c4] sm:$0xf]  ;;  %v13099_v26 = vor.u32 %v14794_v19, %v13096_v18 }
 0x67f   :  { %v13014_v9 = vld [vmem:[#allocation4 + $0x120] sm:$0xf]  ;;  %v14776_v35 = vld [vmem:[#allocation4 + $0x12c] sm:$0xf0]  ;;  %v12887_v6 = vor.u32 %v14744_v62, %v12886_v54  ;;  %8048 = vmatpush.bf16.msra.mxu2 %v13159_v25  ;;  %v13224_v11 = vld [vmem:[#allocation4 + $0x2d0] sm:$0xf0] }
 0x680   :  { %v13142_v32 = vld [vmem:[#allocation4 + $0x220] sm:$0xf]  ;;  %v14808_v42 = vld [vmem:[#allocation4 + $0x22c] sm:$0xf0]  ;;  %v13015_v56 = vor.u32 %v14776_v35, %v13014_v9  ;;  %8062 = vmatpush.bf16.msra.mxu3 %v13287_v40  ;;  %v14858_v46 = vld [vmem:[#allocation4 + $0x3c4] sm:$0xf]  ;;  %v13227_v15 = vor.u32 %v14826_v63, %v13224_v11 }
 0x681   :  { %v13270_v1 = vld [vmem:[#allocation4 + $0x320] sm:$0xf]  ;;  %v14840_v48 = vld [vmem:[#allocation4 + $0x32c] sm:$0xf0]  ;;  %v13143_v10 = vor.u32 %v14808_v42, %v13142_v32  ;;  %8021 = vmatpush.bf16.msra.mxu0 %v12887_v6  ;;  %v13352_v22 = vld [vmem:[#allocation4 + $0x3d0] sm:$0xf0] }
 0x682   :  { %v12870_v58 = vld [vmem:[#allocation4] sm:$0xf]  ;;  %v14740_v53 = vld [vmem:[#allocation4 + $0xc] sm:$0xf0]  ;;  %v13271_v14 = vor.u32 %v14840_v48, %v13270_v1  ;;  %8035 = vmatpush.bf16.msra.mxu1 %v13015_v56  ;;  %v14758_v41 = vld [vmem:[#allocation4 + $0xa4] sm:$0xf]  ;;  %v13355_v20 = vor.u32 %v14858_v46, %v13352_v22 }
 0x683   :  { %v12998_v57 = vld [vmem:[#allocation4 + $0x100] sm:$0xf]  ;;  %v14772_v59 = vld [vmem:[#allocation4 + $0x10c] sm:$0xf0]  ;;  %v12871_v60 = vor.u32 %v14740_v53, %v12870_v58  ;;  %8049 = vmatpush.bf16.msra.mxu2 %v13143_v10  ;;  %v12952_v13 = vld [vmem:[#allocation4 + $0xb0] sm:$0xf0] }
 0x684   :  { %v13126_v17 = vld [vmem:[#allocation4 + $0x200] sm:$0xf]  ;;  %v14804_v52 = vld [vmem:[#allocation4 + $0x20c] sm:$0xf0]  ;;  %v12999_v27 = vor.u32 %v14772_v59, %v12998_v57  ;;  %8063 = vmatpush.bf16.msra.mxu3 %v13271_v14  ;;  %v14790_v7 = vld [vmem:[#allocation4 + $0x1a4] sm:$0xf]  ;;  %v12955_v37 = vor.u32 %v14758_v41, %v12952_v13 }
 0x685   :  { %v13254_v12 = vld [vmem:[#allocation4 + $0x300] sm:$0xf]  ;;  %v14836_v24 = vld [vmem:[#allocation4 + $0x30c] sm:$0xf0]  ;;  %v13127_v8 = vor.u32 %v14804_v52, %v13126_v17  ;;  %8022 = vmatpush.bf16.msra.mxu0 %v12871_v60  ;;  %v13080_v30 = vld [vmem:[#allocation4 + $0x1b0] sm:$0xf0] }
 0x686   :  { %v13255_v29 = vor.u32 %v14836_v24, %v13254_v12  ;;  %8036 = vmatpush.bf16.msra.mxu1 %v12999_v27  ;;  %v14822_v33 = vld [vmem:[#allocation4 + $0x2a4] sm:$0xf]  ;;  %v13208_v50 = vld [vmem:[#allocation4 + $0x2b0] sm:$0xf0]  ;;  %v13083_v45 = vor.u32 %v14790_v7, %v13080_v30 }
 0x687   :  { %8050 = vmatpush.bf16.msra.mxu2 %v13127_v8  ;;  %v14854_v34 = vld [vmem:[#allocation4 + $0x3a4] sm:$0xf]  ;;  %v13336_v23 = vld [vmem:[#allocation4 + $0x3b0] sm:$0xf0]  ;;  %v13211_v25 = vor.u32 %v14822_v33, %v13208_v50 }
 0x688   :  { %8064 = vmatpush.bf16.msra.mxu3 %v13255_v29  ;;  %8023 = vmatmul.bf16.vlgmr.msra.gmra.mxu0 %v15575_v28  ;;  %v14754_v54 = vld [vmem:[#allocation4 + $0x84] sm:$0xf]  ;;  %v12936_v62 = vld [vmem:[#allocation4 + $0x90] sm:$0xf0]  ;;  %v13339_v40 = vor.u32 %v14854_v34, %v13336_v23 }
 0x689   :  { %8071 = vmatpush.bf16.msrb.mxu0 %v12987_v16  ;;  %8037 = vmatmul.bf16.vlgmr.msra.gmra.mxu1 %v15578_v51  ;;  %v14786_v9 = vld [vmem:[#allocation4 + $0x184] sm:$0xf]  ;;  %v13064_v35 = vld [vmem:[#allocation4 + $0x190] sm:$0xf0]  ;;  %v12939_v6 = vor.u32 %v14754_v54, %v12936_v62  ;;  %v14801_v62 = vld [vmem:[#allocation4 + $0x1f4] sm:$0xf0] }
 0x68a   :  { %8085 = vmatpush.bf16.msrb.mxu1 %v13115_v39  ;;  %8051 = vmatmul.bf16.vlgmr.msra.gmra.mxu2 %v15581_v0  ;;  %v14818_v32 = vld [vmem:[#allocation4 + $0x284] sm:$0xf]  ;;  %v13192_v42 = vld [vmem:[#allocation4 + $0x290] sm:$0xf0]  ;;  %v13067_v58 = vor.u32 %v14786_v9, %v13064_v35  ;;  %v13246_v9 = vld [vmem:[#allocation4 + $0x2e8] sm:$0xf] }
 0x68b   :  { %8099 = vmatpush.bf16.msrb.mxu2 %v13243_v44  ;;  %8065 = vmatmul.bf16.vlgmr.msra.gmra.mxu3 %v15584_v49  ;;  %v14850_v1 = vld [vmem:[#allocation4 + $0x384] sm:$0xf]  ;;  %v13320_v48 = vld [vmem:[#allocation4 + $0x390] sm:$0xf0]  ;;  %v13195_v53 = vor.u32 %v14818_v32, %v13192_v42  ;;  %v13374_v42 = vld [vmem:[#allocation4 + $0x3e8] sm:$0xf] }
 0x68c   :  { %8113 = vmatpush.bf16.msrb.mxu3 %v13371_v21  ;;  %v14750_v56 = vld [vmem:[#allocation4 + $0x64] sm:$0xf]  ;;  %v12920_v10 = vld [vmem:[#allocation4 + $0x70] sm:$0xf0]  ;;  %v13323_v59 = vor.u32 %v14850_v1, %v13320_v48  ;;  %v14865_v1 = vld [vmem:[#allocation4 + $0x3f4] sm:$0xf0] }
 0x68d   :  { %8072 = vmatpush.bf16.msrb.mxu0 %v12971_v38  ;;  %v14782_v57 = vld [vmem:[#allocation4 + $0x164] sm:$0xf]  ;;  %v13048_v17 = vld [vmem:[#allocation4 + $0x170] sm:$0xf0]  ;;  %v12923_v61 = vor.u32 %v14750_v56, %v12920_v10  ;;  %v12974_v56 = vld [vmem:[#allocation4 + $0xc8] sm:$0xf] }
 0x68e   :  { %8086 = vmatpush.bf16.msrb.mxu1 %v13099_v26  ;;  %v14814_v14 = vld [vmem:[#allocation4 + $0x264] sm:$0xf]  ;;  %v13176_v52 = vld [vmem:[#allocation4 + $0x270] sm:$0xf0]  ;;  %v13051_v2 = vor.u32 %v14782_v57, %v13048_v17  ;;  %v14765_v10 = vld [vmem:[#allocation4 + $0xd4] sm:$0xf0] }
 0x68f   :  { %8100 = vmatpush.bf16.msrb.mxu2 %v13227_v15  ;;  %v14846_v12 = vld [vmem:[#allocation4 + $0x364] sm:$0xf]  ;;  %v13304_v24 = vld [vmem:[#allocation4 + $0x370] sm:$0xf0]  ;;  %v13179_v36 = vor.u32 %v14814_v14, %v13176_v52  ;;  %v13102_v57 = vld [vmem:[#allocation4 + $0x1c8] sm:$0xf] }
 0x690   :  { %8114 = vmatpush.bf16.msrb.mxu3 %v13355_v20  ;;  %v14746_v60 = vld [vmem:[#allocation4 + $0x44] sm:$0xf]  ;;  %v12904_v4 = vld [vmem:[#allocation4 + $0x50] sm:$0xf0]  ;;  %v13307_v3 = vor.u32 %v14846_v12, %v13304_v24  ;;  %v14797_v17 = vld [vmem:[#allocation4 + $0x1d4] sm:$0xf0] }
 0x691   :  { %8073 = vmatpush.bf16.msrb.mxu0 %v12955_v37  ;;  %v14778_v5 = vld [vmem:[#allocation4 + $0x144] sm:$0xf]  ;;  %v13032_v27 = vld [vmem:[#allocation4 + $0x150] sm:$0xf0]  ;;  %v12907_v16 = vor.u32 %v14746_v60, %v12904_v4  ;;  %v12990_v37 = vld [vmem:[#allocation4 + $0xe8] sm:$0xf] }
 0x692   :  { %8087 = vmatpush.bf16.msrb.mxu1 %v13083_v45  ;;  %v14810_v8 = vld [vmem:[#allocation4 + $0x244] sm:$0xf]  ;;  %v13160_v31 = vld [vmem:[#allocation4 + $0x250] sm:$0xf0]  ;;  %v13035_v39 = vor.u32 %v14778_v5, %v13032_v27  ;;  %v14769_v45 = vld [vmem:[#allocation4 + $0xf4] sm:$0xf0] }
 0x693   :  { %8101 = vmatpush.bf16.msrb.mxu2 %v13211_v25  ;;  %v14842_v55 = vld [vmem:[#allocation4 + $0x344] sm:$0xf]  ;;  %v13288_v29 = vld [vmem:[#allocation4 + $0x350] sm:$0xf0]  ;;  %v13163_v44 = vor.u32 %v14810_v8, %v13160_v31  ;;  %v13118_v25 = vld [vmem:[#allocation4 + $0x1e8] sm:$0xf] }
 0x694   :  { %8115 = vmatpush.bf16.msrb.mxu3 %v13339_v40  ;;  %v14742_v43 = vld [vmem:[#allocation4 + $0x24] sm:$0xf]  ;;  %v12888_v47 = vld [vmem:[#allocation4 + $0x30] sm:$0xf0]  ;;  %v13291_v21 = vor.u32 %v14842_v55, %v13288_v29  ;;  %v14833_v40 = vld [vmem:[#allocation4 + $0x2f4] sm:$0xf0] }
 0x695   :  { %8074 = vmatpush.bf16.msrb.mxu0 %v12939_v6  ;;  %v14774_v19 = vld [vmem:[#allocation4 + $0x124] sm:$0xf]  ;;  %v13016_v18 = vld [vmem:[#allocation4 + $0x130] sm:$0xf0]  ;;  %v12891_v38 = vor.u32 %v14742_v43, %v12888_v47  ;;  %v12991_v6 = vor.u32 %v14769_v45, %v12990_v37  ;;  %v13230_v14 = vld [vmem:[#allocation4 + $0x2c8] sm:$0xf] }
 0x696   :  { %8088 = vmatpush.bf16.msrb.mxu1 %v13067_v58  ;;  %v14806_v63 = vld [vmem:[#allocation4 + $0x224] sm:$0xf]  ;;  %v13144_v11 = vld [vmem:[#allocation4 + $0x230] sm:$0xf0]  ;;  %v13019_v41 = vor.u32 %v14774_v19, %v13016_v18  ;;  %v13119_v58 = vor.u32 %v14801_v62, %v13118_v25  ;;  %v14829_v52 = vld [vmem:[#allocation4 + $0x2d4] sm:$0xf0] }
 0x697   :  { %8102 = vmatpush.bf16.msrb.mxu2 %v13195_v53  ;;  %v14838_v46 = vld [vmem:[#allocation4 + $0x324] sm:$0xf]  ;;  %v13272_v22 = vld [vmem:[#allocation4 + $0x330] sm:$0xf0]  ;;  %v13147_v13 = vor.u32 %v14806_v63, %v13144_v11  ;;  %v13247_v53 = vor.u32 %v14833_v40, %v13246_v9  ;;  %v13358_v12 = vld [vmem:[#allocation4 + $0x3c8] sm:$0xf] }
 0x698   :  { %8116 = vmatpush.bf16.msrb.mxu3 %v13323_v59  ;;  %v14738_v26 = vld [vmem:[#allocation4 + $0x4] sm:$0xf]  ;;  %v12872_v15 = vld [vmem:[#allocation4 + $0x10] sm:$0xf0]  ;;  %v13275_v33 = vor.u32 %v14838_v46, %v13272_v22  ;;  %v13375_v59 = vor.u32 %v14865_v1, %v13374_v42  ;;  %v14861_v24 = vld [vmem:[#allocation4 + $0x3d4] sm:$0xf0] }
 0x699   :  { %8075 = vmatpush.bf16.msrb.mxu0 %v12923_v61  ;;  %v14770_v7 = vld [vmem:[#allocation4 + $0x104] sm:$0xf]  ;;  %v13000_v20 = vld [vmem:[#allocation4 + $0x110] sm:$0xf0]  ;;  %v12875_v54 = vor.u32 %v14738_v26, %v12872_v15  ;;  %v12975_v61 = vor.u32 %v14765_v10, %v12974_v56  ;;  %v12958_v60 = vld [vmem:[#allocation4 + $0xa8] sm:$0xf] }
 0x69a   :  { %8089 = vmatpush.bf16.msrb.mxu1 %v13051_v2  ;;  %v14802_v30 = vld [vmem:[#allocation4 + $0x204] sm:$0xf]  ;;  %v13128_v50 = vld [vmem:[#allocation4 + $0x210] sm:$0xf0]  ;;  %v13003_v35 = vor.u32 %v14770_v7, %v13000_v20  ;;  %v13103_v2 = vor.u32 %v14797_v17, %v13102_v57  ;;  %v14761_v4 = vld [vmem:[#allocation4 + $0xb4] sm:$0xf0] }
 0x69b   :  { %8103 = vmatpush.bf16.msrb.mxu2 %v13179_v36  ;;  %v14834_v34 = vld [vmem:[#allocation4 + $0x304] sm:$0xf]  ;;  %v13256_v23 = vld [vmem:[#allocation4 + $0x310] sm:$0xf0]  ;;  %v13131_v32 = vor.u32 %v14802_v30, %v13128_v50  ;;  %v13231_v36 = vor.u32 %v14829_v52, %v13230_v14  ;;  %v13086_v5 = vld [vmem:[#allocation4 + $0x1a8] sm:$0xf] }
 0x69c   :  { %8117 = vmatpush.bf16.msrb.mxu3 %v13307_v3  ;;  %v13259_v48 = vor.u32 %v14834_v34, %v13256_v23  ;;  %v13359_v3 = vor.u32 %v14861_v24, %v13358_v12  ;;  %v14793_v27 = vld [vmem:[#allocation4 + $0x1b4] sm:$0xf0]  ;;  %v13214_v8 = vld [vmem:[#allocation4 + $0x2a8] sm:$0xf] }
 0x69d   :  { %8076 = vmatpush.bf16.msrb.mxu0 %v12907_v16  ;;  %v14825_v31 = vld [vmem:[#allocation4 + $0x2b4] sm:$0xf0]  ;;  %v13342_v55 = vld [vmem:[#allocation4 + $0x3a8] sm:$0xf]  ;;  %v12959_v16 = vor.u32 %v14761_v4, %v12958_v60 }
 0x69e   :  { %8090 = vmatpush.bf16.msrb.mxu1 %v13035_v39  ;;  %v14857_v29 = vld [vmem:[#allocation4 + $0x3b4] sm:$0xf0]  ;;  %v13087_v39 = vor.u32 %v14793_v27, %v13086_v5  ;;  %v12942_v43 = vld [vmem:[#allocation4 + $0x88] sm:$0xf] }
 0x69f   :  { %8104 = vmatpush.bf16.msrb.mxu2 %v13163_v44  ;;  %v13215_v44 = vor.u32 %v14825_v31, %v13214_v8  ;;  %v14757_v47 = vld [vmem:[#allocation4 + $0x94] sm:$0xf0]  ;;  %v13070_v19 = vld [vmem:[#allocation4 + $0x188] sm:$0xf] }
 0x6a0   :  { %8118 = vmatpush.bf16.msrb.mxu3 %v13291_v21  ;;  %v13343_v21 = vor.u32 %v14857_v29, %v13342_v55  ;;  %v14789_v18 = vld [vmem:[#allocation4 + $0x194] sm:$0xf0]  ;;  %v13198_v63 = vld [vmem:[#allocation4 + $0x288] sm:$0xf] }
 0x6a1   :  { %8077 = vmatpush.bf16.msrb.mxu0 %v12891_v38  ;;  %v14821_v11 = vld [vmem:[#allocation4 + $0x294] sm:$0xf0]  ;;  %v13326_v46 = vld [vmem:[#allocation4 + $0x388] sm:$0xf]  ;;  %v12943_v38 = vor.u32 %v14757_v47, %v12942_v43  ;;  %v13071_v26 = vor.u32 %v14789_v18, %v13070_v19  ;;  %v13120_v47 = vld [vmem:[#allocation4 + $0x1f8] sm:$0xf0] }
 0x6a2   :  { %8091 = vmatpush.bf16.msrb.mxu1 %v13019_v41  ;;  %v14853_v22 = vld [vmem:[#allocation4 + $0x394] sm:$0xf0]  ;;  %v13199_v15 = vor.u32 %v14821_v11, %v13198_v63  ;;  %v12926_v41 = vld [vmem:[#allocation4 + $0x68] sm:$0xf]  ;;  %v14831_v19 = vld [vmem:[#allocation4 + $0x2ec] sm:$0xf] }
 0x6a3   :  { %8105 = vmatpush.bf16.msrb.mxu2 %v13147_v13  ;;  %v14753_v13 = vld [vmem:[#allocation4 + $0x74] sm:$0xf0]  ;;  %v13054_v7 = vld [vmem:[#allocation4 + $0x168] sm:$0xf]  ;;  %v13327_v20 = vor.u32 %v14853_v22, %v13326_v46  ;;  %v14863_v11 = vld [vmem:[#allocation4 + $0x3ec] sm:$0xf] }
 0x6a4   :  { %8119 = vmatpush.bf16.msrb.mxu3 %v13275_v33  ;;  %v14785_v30 = vld [vmem:[#allocation4 + $0x174] sm:$0xf0]  ;;  %v13182_v33 = vld [vmem:[#allocation4 + $0x268] sm:$0xf]  ;;  %v12927_v37 = vor.u32 %v14753_v13, %v12926_v41  ;;  %v13376_v46 = vld [vmem:[#allocation4 + $0x3f8] sm:$0xf0] }
 0x6a5   :  { %8078 = vmatpush.bf16.msrb.mxu0 %v12875_v54  ;;  %v14817_v50 = vld [vmem:[#allocation4 + $0x274] sm:$0xf0]  ;;  %v13310_v34 = vld [vmem:[#allocation4 + $0x368] sm:$0xf]  ;;  %v13055_v45 = vor.u32 %v14785_v30, %v13054_v7  ;;  %v14763_v41 = vld [vmem:[#allocation4 + $0xcc] sm:$0xf] }
 0x6a6   :  { %8092 = vmatpush.bf16.msrb.mxu1 %v13003_v35  ;;  %v14849_v23 = vld [vmem:[#allocation4 + $0x374] sm:$0xf0]  ;;  %v13183_v25 = vor.u32 %v14817_v50, %v13182_v33  ;;  %v12910_v54 = vld [vmem:[#allocation4 + $0x48] sm:$0xf]  ;;  %v12976_v13 = vld [vmem:[#allocation4 + $0xd8] sm:$0xf0] }
 0x6a7   :  { %8106 = vmatpush.bf16.msrb.mxu2 %v13131_v32  ;;  %v14749_v62 = vld [vmem:[#allocation4 + $0x54] sm:$0xf0]  ;;  %v13038_v9 = vld [vmem:[#allocation4 + $0x148] sm:$0xf]  ;;  %v13311_v40 = vor.u32 %v14849_v23, %v13310_v34  ;;  %v14795_v7 = vld [vmem:[#allocation4 + $0x1cc] sm:$0xf] }
 0x6a8   :  { %8120 = vmatpush.bf16.msrb.mxu3 %v13259_v48  ;;  %8079 = vmatmul.bf16.vlgmr.msrb.gmra.mxu0 %v15575_v28  ;;  %v14781_v35 = vld [vmem:[#allocation4 + $0x154] sm:$0xf0]  ;;  %v13166_v32 = vld [vmem:[#allocation4 + $0x248] sm:$0xf]  ;;  %v13104_v30 = vld [vmem:[#allocation4 + $0x1d8] sm:$0xf0] }
 0x6a9   :  { %8127 = vmatpush.bf16.msra.mxu0 %v12991_v6  ;;  %8093 = vmatmul.bf16.vlgmr.msrb.gmra.mxu1 %v15578_v51  ;;  %v14813_v42 = vld [vmem:[#allocation4 + $0x254] sm:$0xf0]  ;;  %v13294_v1 = vld [vmem:[#allocation4 + $0x348] sm:$0xf]  ;;  %v12911_v6 = vor.u32 %v14749_v62, %v12910_v54  ;;  %v14827_v33 = vld [vmem:[#allocation4 + $0x2cc] sm:$0xf] }
 0x6aa   :  { %8141 = vmatpush.bf16.msra.mxu1 %v13119_v58  ;;  %8107 = vmatmul.bf16.vlgmr.msrb.gmra.mxu2 %v15581_v0  ;;  %v14845_v48 = vld [vmem:[#allocation4 + $0x354] sm:$0xf0]  ;;  %v13039_v58 = vor.u32 %v14781_v35, %v13038_v9  ;;  %v12894_v56 = vld [vmem:[#allocation4 + $0x28] sm:$0xf]  ;;  %v13232_v50 = vld [vmem:[#allocation4 + $0x2d8] sm:$0xf0] }
 0x6ab   :  { %8155 = vmatpush.bf16.msra.mxu2 %v13247_v53  ;;  %8121 = vmatmul.bf16.vlgmr.msrb.gmra.mxu3 %v15584_v49  ;;  %v13167_v53 = vor.u32 %v14813_v42, %v13166_v32  ;;  %v14745_v10 = vld [vmem:[#allocation4 + $0x34] sm:$0xf0]  ;;  %v13022_v57 = vld [vmem:[#allocation4 + $0x128] sm:$0xf]  ;;  %v14859_v34 = vld [vmem:[#allocation4 + $0x3cc] sm:$0xf] }
 0x6ac   :  { %8169 = vmatpush.bf16.msra.mxu3 %v13375_v59  ;;  %v13295_v59 = vor.u32 %v14845_v48, %v13294_v1  ;;  %v14777_v17 = vld [vmem:[#allocation4 + $0x134] sm:$0xf0]  ;;  %v13150_v14 = vld [vmem:[#allocation4 + $0x228] sm:$0xf]  ;;  %v13360_v23 = vld [vmem:[#allocation4 + $0x3d8] sm:$0xf0] }
 0x6ad   :  { %8128 = vmatpush.bf16.msra.mxu0 %v12975_v61  ;;  %v14809_v52 = vld [vmem:[#allocation4 + $0x234] sm:$0xf0]  ;;  %v13278_v12 = vld [vmem:[#allocation4 + $0x328] sm:$0xf]  ;;  %v12895_v61 = vor.u32 %v14745_v10, %v12894_v56  ;;  %v13023_v60 = vor.u32 %v14777_v17, %v13022_v57  ;;  %v14759_v54 = vld [vmem:[#allocation4 + $0xac] sm:$0xf] }
 0x6ae   :  { %8142 = vmatpush.bf16.msra.mxu1 %v13103_v2  ;;  %v14841_v24 = vld [vmem:[#allocation4 + $0x334] sm:$0xf0]  ;;  %v12878_v2 = vld [vmem:[#allocation4 + $0x8] sm:$0xf]  ;;  %v13151_v4 = vor.u32 %v14809_v52, %v13150_v14  ;;  %v12960_v62 = vld [vmem:[#allocation4 + $0xb8] sm:$0xf0] }
 0x6af   :  { %8156 = vmatpush.bf16.msra.mxu2 %v13231_v36  ;;  %v14741_v36 = vld [vmem:[#allocation4 + $0x14] sm:$0xf0]  ;;  %v13006_v5 = vld [vmem:[#allocation4 + $0x108] sm:$0xf]  ;;  %v13279_v8 = vor.u32 %v14841_v24, %v13278_v12  ;;  %v14791_v9 = vld [vmem:[#allocation4 + $0x1ac] sm:$0xf] }
 0x6b0   :  { %8170 = vmatpush.bf16.msra.mxu3 %v13359_v3  ;;  %v14773_v3 = vld [vmem:[#allocation4 + $0x114] sm:$0xf0]  ;;  %v13134_v27 = vld [vmem:[#allocation4 + $0x208] sm:$0xf]  ;;  %v12879_v43 = vor.u32 %v14741_v36, %v12878_v2  ;;  %v13088_v35 = vld [vmem:[#allocation4 + $0x1b8] sm:$0xf0] }
 0x6b1   :  { %8129 = vmatpush.bf16.msra.mxu0 %v12959_v16  ;;  %v14805_v31 = vld [vmem:[#allocation4 + $0x214] sm:$0xf0]  ;;  %v13262_v55 = vld [vmem:[#allocation4 + $0x308] sm:$0xf]  ;;  %v14767_v16 = vld [vmem:[#allocation4 + $0xec] sm:$0xf]  ;;  %v13007_v18 = vor.u32 %v14773_v3, %v13006_v5 }
 0x6b2   :  { %8143 = vmatpush.bf16.msra.mxu1 %v13087_v39  ;;  %v14837_v29 = vld [vmem:[#allocation4 + $0x314] sm:$0xf0]  ;;  %v12992_v39 = vld [vmem:[#allocation4 + $0xf8] sm:$0xf0]  ;;  %v13135_v63 = vor.u32 %v14805_v31, %v13134_v27  ;;  %v14823_v32 = vld [vmem:[#allocation4 + $0x2ac] sm:$0xf] }
 0x6b3   :  { %8157 = vmatpush.bf16.msra.mxu2 %v13215_v44  ;;  %v14799_v44 = vld [vmem:[#allocation4 + $0x1ec] sm:$0xf]  ;;  %v13263_v22 = vor.u32 %v14837_v29, %v13262_v55  ;;  %v13216_v42 = vld [vmem:[#allocation4 + $0x2b8] sm:$0xf0] }
 0x6b4   :  { %8171 = vmatpush.bf16.msra.mxu3 %v13343_v21  ;;  %v13248_v21 = vld [vmem:[#allocation4 + $0x2f8] sm:$0xf0]  ;;  %v14855_v1 = vld [vmem:[#allocation4 + $0x3ac] sm:$0xf] }
 0x6b5   :  { %8130 = vmatpush.bf16.msra.mxu0 %v12943_v38  ;;  %v12995_v38 = vor.u32 %v14767_v16, %v12992_v39  ;;  %v13344_v48 = vld [vmem:[#allocation4 + $0x3b8] sm:$0xf0]  ;;  %v14755_v56 = vld [vmem:[#allocation4 + $0x8c] sm:$0xf] }
 0x6b6   :  { %8144 = vmatpush.bf16.msra.mxu1 %v13071_v26  ;;  %v13123_v26 = vor.u32 %v14799_v44, %v13120_v47  ;;  %v12944_v10 = vld [vmem:[#allocation4 + $0x98] sm:$0xf0]  ;;  %v14787_v57 = vld [vmem:[#allocation4 + $0x18c] sm:$0xf] }
 0x6b7   :  { %8158 = vmatpush.bf16.msra.mxu2 %v13199_v15  ;;  %v13251_v15 = vor.u32 %v14831_v19, %v13248_v21  ;;  %v13072_v17 = vld [vmem:[#allocation4 + $0x198] sm:$0xf0]  ;;  %v14819_v14 = vld [vmem:[#allocation4 + $0x28c] sm:$0xf] }
 0x6b8   :  { %8172 = vmatpush.bf16.msra.mxu3 %v13327_v20  ;;  %v13379_v20 = vor.u32 %v14863_v11, %v13376_v46  ;;  %v13200_v52 = vld [vmem:[#allocation4 + $0x298] sm:$0xf0]  ;;  %v14851_v12 = vld [vmem:[#allocation4 + $0x38c] sm:$0xf]  ;;  %v13075_v2 = vor.u32 %v14787_v57, %v13072_v17 }
 0x6b9   :  { %8131 = vmatpush.bf16.msra.mxu0 %v12927_v37  ;;  %v12979_v37 = vor.u32 %v14763_v41, %v12976_v13  ;;  %v13328_v24 = vld [vmem:[#allocation4 + $0x398] sm:$0xf0]  ;;  %v13203_v36 = vor.u32 %v14819_v14, %v13200_v52  ;;  %v14783_v5 = vld [vmem:[#allocation4 + $0x16c] sm:$0xf] }
 0x6ba   :  { %8145 = vmatpush.bf16.msra.mxu1 %v13055_v45  ;;  %v13107_v45 = vor.u32 %v14795_v7, %v13104_v30  ;;  %v13331_v3 = vor.u32 %v14851_v12, %v13328_v24  ;;  %v13056_v27 = vld [vmem:[#allocation4 + $0x178] sm:$0xf0]  ;;  %v14847_v55 = vld [vmem:[#allocation4 + $0x36c] sm:$0xf] }
 0x6bb   :  { %8159 = vmatpush.bf16.msra.mxu2 %v13183_v25  ;;  %v13235_v25 = vor.u32 %v14827_v33, %v13232_v50  ;;  %v13184_v31 = vld [vmem:[#allocation4 + $0x278] sm:$0xf0]  ;;  %v13059_v39 = vor.u32 %v14783_v5, %v13056_v27  ;;  %v14779_v19 = vld [vmem:[#allocation4 + $0x14c] sm:$0xf] }
 0x6bc   :  { %8173 = vmatpush.bf16.msra.mxu3 %v13311_v40  ;;  %v13363_v40 = vor.u32 %v14859_v34, %v13360_v23  ;;  %v13312_v29 = vld [vmem:[#allocation4 + $0x378] sm:$0xf0]  ;;  %v14843_v46 = vld [vmem:[#allocation4 + $0x34c] sm:$0xf] }
 0x6bd   :  { %8132 = vmatpush.bf16.msra.mxu0 %v12911_v6  ;;  %v12963_v6 = vor.u32 %v14759_v54, %v12960_v62  ;;  %v12912_v47 = vld [vmem:[#allocation4 + $0x58] sm:$0xf0]  ;;  %v13315_v21 = vor.u32 %v14847_v55, %v13312_v29  ;;  %v14743_v41 = vld [vmem:[#allocation4 + $0x2c] sm:$0xf] }
 0x6be   :  { %8146 = vmatpush.bf16.msra.mxu1 %v13039_v58  ;;  %v13091_v58 = vor.u32 %v14791_v9, %v13088_v35  ;;  %v13168_v11 = vld [vmem:[#allocation4 + $0x258] sm:$0xf0]  ;;  %v14775_v7 = vld [vmem:[#allocation4 + $0x12c] sm:$0xf] }
 0x6bf   :  { %8160 = vmatpush.bf16.msra.mxu2 %v13167_v53  ;;  %v13219_v53 = vor.u32 %v14823_v32, %v13216_v42  ;;  %v12896_v13 = vld [vmem:[#allocation4 + $0x38] sm:$0xf0]  ;;  %v14807_v33 = vld [vmem:[#allocation4 + $0x22c] sm:$0xf] }
 0x6c0   :  { %8174 = vmatpush.bf16.msra.mxu3 %v13295_v59  ;;  %v13347_v59 = vor.u32 %v14855_v1, %v13344_v48  ;;  %v13024_v30 = vld [vmem:[#allocation4 + $0x138] sm:$0xf0]  ;;  %v14839_v34 = vld [vmem:[#allocation4 + $0x32c] sm:$0xf] }
 0x6c1   :  { %8133 = vmatpush.bf16.msra.mxu0 %v12895_v61  ;;  %v12947_v61 = vor.u32 %v14755_v56, %v12944_v10  ;;  %v13152_v50 = vld [vmem:[#allocation4 + $0x238] sm:$0xf0]  ;;  %v14739_v54 = vld [vmem:[#allocation4 + $0xc] sm:$0xf]  ;;  %v15602_v10 = vld [vmem:[#allocation14 + $0x10] sm:$0xf] }
 0x6c2   :  { %8147 = vmatpush.bf16.msra.mxu1 %v13023_v60  ;;  %v14751_v60 = vld [vmem:[#allocation4 + $0x6c] sm:$0xf]  ;;  %v13280_v23 = vld [vmem:[#allocation4 + $0x338] sm:$0xf0]  ;;  %v7367_v57 = vperm.slane %v15602_v10, 0 }
 0x6c3   :  { %8161 = vmatpush.bf16.msra.mxu2 %v13151_v4  ;;  %v12928_v4 = vld [vmem:[#allocation4 + $0x78] sm:$0xf0]  ;;  %v14771_v9 = vld [vmem:[#allocation4 + $0x10c] sm:$0xf] }
 0x6c4   :  { %8175 = vmatpush.bf16.msra.mxu3 %v13279_v8  ;;  %v14815_v8 = vld [vmem:[#allocation4 + $0x26c] sm:$0xf]  ;;  %v12931_v16 = vor.u32 %v14751_v60, %v12928_v4  ;;  %v12880_v62 = vld [vmem:[#allocation4 + $0x18] sm:$0xf0] }
 0x6c5   :  { %8134 = vmatpush.bf16.msra.mxu0 %v12879_v43  ;;  %v13187_v44 = vor.u32 %v14815_v8, %v13184_v31  ;;  %v14747_v43 = vld [vmem:[#allocation4 + $0x4c] sm:$0xf]  ;;  %v13008_v35 = vld [vmem:[#allocation4 + $0x118] sm:$0xf0]  ;;  %v7368_v31 = vperm.slane %v15602_v10, 1 }
 0x6c6   :  { %8148 = vmatpush.bf16.msra.mxu1 %v13007_v18  ;;  %v13040_v18 = vld [vmem:[#allocation4 + $0x158] sm:$0xf0]  ;;  %v14803_v32 = vld [vmem:[#allocation4 + $0x20c] sm:$0xf] }
 0x6c7   :  { %8162 = vmatpush.bf16.msra.mxu2 %v13135_v63  ;;  %v14811_v63 = vld [vmem:[#allocation4 + $0x24c] sm:$0xf]  ;;  %v13136_v42 = vld [vmem:[#allocation4 + $0x218] sm:$0xf0] }
 0x6c8   :  { %8176 = vmatpush.bf16.msra.mxu3 %v13263_v22  ;;  %8135 = vmatmul.bf16.vlgmr.msra.gmra.mxu0 %v15575_v28  ;;  %v13296_v22 = vld [vmem:[#allocation4 + $0x358] sm:$0xf0]  ;;  %v14835_v1 = vld [vmem:[#allocation4 + $0x30c] sm:$0xf] }
 0x6c9   :  { %8183 = vmatpush.bf16.msrb.mxu0 %v12995_v38  ;;  %8149 = vmatmul.bf16.vlgmr.msra.gmra.mxu1 %v15578_v51  ;;  %v12915_v38 = vor.u32 %v14747_v43, %v12912_v47  ;;  %v13264_v48 = vld [vmem:[#allocation4 + $0x318] sm:$0xf0] }
 0x6ca   :  { %8197 = vmatpush.bf16.msrb.mxu1 %v13123_v26  ;;  %8163 = vmatmul.bf16.vlgmr.msra.gmra.mxu2 %v15581_v0  ;;  %v13043_v26 = vor.u32 %v14779_v19, %v13040_v18  ;;  %v13267_v56 = vor.u32 %v14835_v1, %v13264_v48 }
 0x6cb   :  { %8211 = vmatpush.bf16.msrb.mxu2 %v13251_v15  ;;  %8177 = vmatmul.bf16.vlgmr.msra.gmra.mxu3 %v15584_v49  ;;  %v13171_v15 = vor.u32 %v14811_v63, %v13168_v11 }
 0x6cc   :  { %8225 = vmatpush.bf16.msrb.mxu3 %v13379_v20  ;;  %v13299_v20 = vor.u32 %v14843_v46, %v13296_v22 }
 0x6cd   :  { %8184 = vmatpush.bf16.msrb.mxu0 %v12979_v37  ;;  %v12899_v37 = vor.u32 %v14743_v41, %v12896_v13 }
 0x6ce   :  { %8198 = vmatpush.bf16.msrb.mxu1 %v13107_v45  ;;  %v13027_v45 = vor.u32 %v14775_v7, %v13024_v30  ;;  %v7369_v7 = vperm.slane %v15602_v10, 2 }
 0x6cf   :  { %8212 = vmatpush.bf16.msrb.mxu2 %v13235_v25  ;;  %v13155_v25 = vor.u32 %v14807_v33, %v13152_v50 }
 0x6d0   :  { %8226 = vmatpush.bf16.msrb.mxu3 %v13363_v40  ;;  %v13283_v40 = vor.u32 %v14839_v34, %v13280_v23 }
 0x6d1   :  { %8185 = vmatpush.bf16.msrb.mxu0 %v12963_v6  ;;  %v12883_v6 = vor.u32 %v14739_v54, %v12880_v62 }
 0x6d2   :  { %8199 = vmatpush.bf16.msrb.mxu1 %v13091_v58  ;;  %v13011_v58 = vor.u32 %v14771_v9, %v13008_v35 }
 0x6d3   :  { %8213 = vmatpush.bf16.msrb.mxu2 %v13219_v53  ;;  %v13139_v53 = vor.u32 %v14803_v32, %v13136_v42 }
 0x6d4   :  { %8227 = vmatpush.bf16.msrb.mxu3 %v13347_v59 }
 0x6d5   :  { %8186 = vmatpush.bf16.msrb.mxu0 %v12947_v61 }
 0x6d6   :  { %8200 = vmatpush.bf16.msrb.mxu1 %v13075_v2 }
 0x6d7   :  { %8214 = vmatpush.bf16.msrb.mxu2 %v13203_v36 }
 0x6d8   :  { %8228 = vmatpush.bf16.msrb.mxu3 %v13331_v3 }
 0x6d9   :  { %8187 = vmatpush.bf16.msrb.mxu0 %v12931_v16 }
 0x6da   :  { %8201 = vmatpush.bf16.msrb.mxu1 %v13059_v39 }
 0x6db   :  { %8215 = vmatpush.bf16.msrb.mxu2 %v13187_v44 }
 0x6dc   :  { %8229 = vmatpush.bf16.msrb.mxu3 %v13315_v21 }
 0x6dd   :  { %8188 = vmatpush.bf16.msrb.mxu0 %v12915_v38 }
 0x6de   :  { %8202 = vmatpush.bf16.msrb.mxu1 %v13043_v26 }
 0x6df   :  { %8216 = vmatpush.bf16.msrb.mxu2 %v13171_v15 }
 0x6e0   :  { %8230 = vmatpush.bf16.msrb.mxu3 %v13299_v20 }
 0x6e1   :  { %8189 = vmatpush.bf16.msrb.mxu0 %v12899_v37 }
 0x6e2   :  { %8203 = vmatpush.bf16.msrb.mxu1 %v13027_v45 }
 0x6e3   :  { %8217 = vmatpush.bf16.msrb.mxu2 %v13155_v25 }
 0x6e4   :  { %8231 = vmatpush.bf16.msrb.mxu3 %v13283_v40 }
 0x6e5   :  { %8190 = vmatpush.bf16.msrb.mxu0 %v12883_v6 }
 0x6e6   :  { %8204 = vmatpush.bf16.msrb.mxu1 %v13011_v58  ;;  %v7370_v58 = vperm.slane %v15602_v10, 3 }
 0x6e7   :  { %8218 = vmatpush.bf16.msrb.mxu2 %v13139_v53 }
 0x6e8   :  { %8232 = vmatpush.bf16.msrb.mxu3 %v13267_v56  ;;  %8191 = vmatmul.bf16.vlgmr.msrb.gmra.mxu0 %v15575_v28 }
 0x6e9   :  { %8205 = vmatmul.bf16.vlgmr.msrb.gmra.mxu1 %v15578_v51 }
 0x6ea   :  { %8219 = vmatmul.bf16.vlgmr.msrb.gmra.mxu2 %v15581_v0 }
 0x6eb   :  { %8233 = vmatmul.bf16.vlgmr.msrb.gmra.mxu3 %v15584_v49 }
 0x705   :  { %v8024_v59 = vpop.f32.mrf.mxu0 }
 0x706   :  { %v8025_v17 = vadd.f32 %v8024_v59, %v7367_v57  ;;  %v8038_v14 = vpop.f32.mrf.mxu1 }
 0x708   :  { %v8039_v52 = vadd.f32 %v8038_v14, %v8025_v17 }
 0x70d   :  { %v8052_v12 = vpop.f32.mrf.mxu2  ;;  %v8026_v2 = vpop.f32.mrf.mxu0 }
 0x70e   :  { %v8066_v24 = vpop.f32.mrf.mxu3  ;;  %v8053_v61 = vadd.f32 %v8052_v12, %v8039_v52  ;;  %v8027_v36 = vadd.f32 %v8026_v2, %v7367_v57  ;;  %v8040_v28 = vpop.f32.mrf.mxu1 }
 0x710   :  { %v8041_v60 = vadd.f32 %v8040_v28, %v8027_v36  ;;  %v8067_v51 = vadd.f32 %v8066_v24, %v8053_v61 }
 0x712   :  { %v8239_v49 = vmax.f32 %v8067_v51, 0.0 }
 0x715   :  { %v8054_v4 = vpop.f32.mrf.mxu2 }
 0x716   :  { %v8055_v0 = vadd.f32 %v8054_v4, %v8041_v60  ;;  %v8068_v5 = vpop.f32.mrf.mxu3 }
 0x718   :  { %v8069_v3 = vadd.f32 %v8068_v5, %v8055_v0 }
 0x71a   :  { %v8243_v27 = vmax.f32 %v8069_v3, 0.0 }
 0x71c   :  { %v15605_v8 = vpack.c.bf16 %v8243_v27, %v8239_v49 }
 0x725   :  { %v8080_v55 = vpop.f32.mrf.mxu0 }
 0x726   :  { %v8081_v29 = vadd.f32 %v8080_v55, %v7368_v31  ;;  %v8094_v16 = vpop.f32.mrf.mxu1 }
 0x728   :  { %v8095_v39 = vadd.f32 %v8094_v16, %v8081_v29 }
 0x72d   :  { %v8108_v44 = vpop.f32.mrf.mxu2  ;;  %v8082_v19 = vpop.f32.mrf.mxu0 }
 0x72e   :  { %v8122_v43 = vpop.f32.mrf.mxu3  ;;  %v8109_v47 = vadd.f32 %v8108_v44, %v8095_v39  ;;  %v8083_v21 = vadd.f32 %v8082_v19, %v7368_v31  ;;  %v8096_v18 = vpop.f32.mrf.mxu1 }
 0x730   :  { %v8097_v63 = vadd.f32 %v8096_v18, %v8083_v21  ;;  %v8123_v11 = vadd.f32 %v8122_v43, %v8109_v47 }
 0x732   :  { %v8240_v26 = vmax.f32 %v8123_v11, 0.0 }
 0x735   :  { %v8110_v46 = vpop.f32.mrf.mxu2 }
 0x736   :  { %v8111_v22 = vadd.f32 %v8110_v46, %v8097_v63  ;;  %v8124_v38 = vpop.f32.mrf.mxu3 }
 0x738   :  { %v8125_v15 = vadd.f32 %v8124_v38, %v8111_v22 }
 0x73a   :  { %v8244_v41 = vmax.f32 %v8125_v15, 0.0 }
 0x73c   :  { %v15608_v13 = vpack.c.bf16 %v8244_v41, %v8240_v26 }
 0x745   :  { %v8136_v20 = vpop.f32.mrf.mxu0 }
 0x746   :  { %v8137_v30 = vadd.f32 %v8136_v20, %v7369_v7  ;;  %v8150_v33 = vpop.f32.mrf.mxu1 }
 0x748   :  { %v8151_v50 = vadd.f32 %v8150_v33, %v8137_v30 }
 0x74d   :  { %v8164_v34 = vpop.f32.mrf.mxu2  ;;  %v8138_v45 = vpop.f32.mrf.mxu0 }
 0x74e   :  { %v8178_v23 = vpop.f32.mrf.mxu3  ;;  %v8165_v37 = vadd.f32 %v8164_v34, %v8151_v50  ;;  %v8139_v25 = vadd.f32 %v8138_v45, %v7369_v7  ;;  %v8152_v54 = vpop.f32.mrf.mxu1 }
 0x750   :  { %v8153_v62 = vadd.f32 %v8152_v54, %v8139_v25  ;;  %v8179_v9 = vadd.f32 %v8178_v23, %v8165_v37 }
 0x752   :  { %v8241_v42 = vmax.f32 %v8179_v9, 0.0 }
 0x755   :  { %v8166_v40 = vpop.f32.mrf.mxu2 }
 0x756   :  { %v8167_v35 = vadd.f32 %v8166_v40, %v8153_v62  ;;  %v8180_v32 = vpop.f32.mrf.mxu3 }
 0x758   :  { %v8181_v1 = vadd.f32 %v8180_v32, %v8167_v35 }
 0x75a   :  { %v8245_v48 = vmax.f32 %v8181_v1, 0.0 }
 0x75c   :  { %v15611_v6 = vpack.c.bf16 %v8245_v48, %v8241_v42 }
 0x765   :  { %v8192_v53 = vpop.f32.mrf.mxu0 }
 0x766   :  { %v8206_v56 = vpop.f32.mrf.mxu1  ;;  %v8193_v57 = vadd.f32 %v8192_v53, %v7370_v58 }
 0x768   :  { %v8207_v17 = vadd.f32 %v8206_v56, %v8193_v57 }
 0x76d   :  { %v8220_v59 = vpop.f32.mrf.mxu2  ;;  %v8194_v52 = vpop.f32.mrf.mxu0 }
 0x76e   :  { %v8234_v14 = vpop.f32.mrf.mxu3  ;;  %v8195_v12 = vadd.f32 %v8194_v52, %v7370_v58  ;;  %v8221_v24 = vadd.f32 %v8220_v59, %v8207_v17  ;;  %v8208_v61 = vpop.f32.mrf.mxu1 }
 0x770   :  { %v8209_v2 = vadd.f32 %v8208_v61, %v8195_v12  ;;  %v8235_v28 = vadd.f32 %v8234_v14, %v8221_v24 }
 0x772   :  { %v8242_v0 = vmax.f32 %v8235_v28, 0.0 }
 0x775   :  { %v8222_v36 = vpop.f32.mrf.mxu2 }
 0x776   :  { %v8223_v60 = vadd.f32 %v8222_v36, %v8209_v2  ;;  %v8236_v51 = vpop.f32.mrf.mxu3 }
 0x778   :  { %v8237_v4 = vadd.f32 %v8236_v51, %v8223_v60 }
 0x77a   :  { %v8246_v5 = vmax.f32 %v8237_v4, 0.0 }
 0x77c   :  { %v15614_v49 = vpack.c.bf16 %v8246_v5, %v8242_v0 }
 0x77d   :  { %15245 = dma.done.wait [#allocation8 + $0x3], 8192 }
 0x77e   :  { %15246 = vsyncadd [#allocation8 + $0x3], 4294959104  ;;  %v13438_v10 = vld [vmem:[#allocation5 + $0x70] sm:$0xf]  ;;  %v14881_v3 = vld [vmem:[#allocation5 + $0x74] sm:$0xf0] }
 0x77f   :  { %v13502_v27 = vld [vmem:[#allocation5 + $0xf0] sm:$0xf]  ;;  %v13439_v31 = vor.u32 %v14881_v3, %v13438_v10  ;;  %v14897_v55 = vld [vmem:[#allocation5 + $0xf4] sm:$0xf0]  ;;  %v13430_v19 = vld [vmem:[#allocation5 + $0x60] sm:$0xf] }
 0x780   :  { %v13566_v29 = vld [vmem:[#allocation5 + $0x170] sm:$0xf]  ;;  %v14913_v16 = vld [vmem:[#allocation5 + $0x174] sm:$0xf0]  ;;  %v13503_v39 = vor.u32 %v14897_v55, %v13502_v27  ;;  %v14879_v18 = vld [vmem:[#allocation5 + $0x64] sm:$0xf0] }
 0x781   :  { %v13567_v44 = vor.u32 %v14913_v16, %v13566_v29  ;;  %v13630_v43 = vld [vmem:[#allocation5 + $0x1f0] sm:$0xf]  ;;  %v14929_v47 = vld [vmem:[#allocation5 + $0x1f4] sm:$0xf0]  ;;  %8644 = vmatpush.bf16.msra.mxu0 %v13439_v31  ;;  %v13494_v63 = vld [vmem:[#allocation5 + $0xe0] sm:$0xf]  ;;  %v13431_v46 = vor.u32 %v14879_v18, %v13430_v19 }
 0x782   :  { %v13631_v21 = vor.u32 %v14929_v47, %v13630_v43  ;;  %v14895_v11 = vld [vmem:[#allocation5 + $0xe4] sm:$0xf0]  ;;  %8658 = vmatpush.bf16.msra.mxu1 %v13503_v39  ;;  %v13558_v38 = vld [vmem:[#allocation5 + $0x160] sm:$0xf]  ;;  %v13422_v20 = vld [vmem:[#allocation5 + $0x50] sm:$0xf] }
 0x783   :  { %8672 = vmatpush.bf16.msra.mxu2 %v13567_v44  ;;  %v13495_v22 = vor.u32 %v14895_v11, %v13494_v63  ;;  %v14911_v26 = vld [vmem:[#allocation5 + $0x164] sm:$0xf0]  ;;  %v13622_v15 = vld [vmem:[#allocation5 + $0x1e0] sm:$0xf]  ;;  %v14877_v30 = vld [vmem:[#allocation5 + $0x54] sm:$0xf0] }
 0x784   :  { %8686 = vmatpush.bf16.msra.mxu3 %v13631_v21  ;;  %v13559_v41 = vor.u32 %v14911_v26, %v13558_v38  ;;  %v14927_v7 = vld [vmem:[#allocation5 + $0x1e4] sm:$0xf0]  ;;  %v13486_v50 = vld [vmem:[#allocation5 + $0xd0] sm:$0xf]  ;;  %v14893_v34 = vld [vmem:[#allocation5 + $0xd4] sm:$0xf0]  ;;  %v13423_v37 = vor.u32 %v14877_v30, %v13422_v20 }
 0x785   :  { %v13623_v33 = vor.u32 %v14927_v7, %v13622_v15  ;;  %v13550_v23 = vld [vmem:[#allocation5 + $0x150] sm:$0xf]  ;;  %8645 = vmatpush.bf16.msra.mxu0 %v13431_v46  ;;  %v14909_v45 = vld [vmem:[#allocation5 + $0x154] sm:$0xf0]  ;;  %v13487_v62 = vor.u32 %v14893_v34, %v13486_v50  ;;  %v13414_v40 = vld [vmem:[#allocation5 + $0x40] sm:$0xf] }
 0x786   :  { %v13614_v25 = vld [vmem:[#allocation5 + $0x1d0] sm:$0xf]  ;;  %v14925_v54 = vld [vmem:[#allocation5 + $0x1d4] sm:$0xf0]  ;;  %8659 = vmatpush.bf16.msra.mxu1 %v13495_v22  ;;  %v13551_v9 = vor.u32 %v14909_v45, %v13550_v23  ;;  %v14875_v35 = vld [vmem:[#allocation5 + $0x44] sm:$0xf0] }
 0x787   :  { %8673 = vmatpush.bf16.msra.mxu2 %v13559_v41  ;;  %v13478_v32 = vld [vmem:[#allocation5 + $0xc0] sm:$0xf]  ;;  %v13615_v42 = vor.u32 %v14925_v54, %v13614_v25  ;;  %v14891_v1 = vld [vmem:[#allocation5 + $0xc4] sm:$0xf0]  ;;  %v13415_v57 = vor.u32 %v14875_v35, %v13414_v40  ;;  %v13406_v14 = vld [vmem:[#allocation5 + $0x30] sm:$0xf] }
 0x788   :  { %8687 = vmatpush.bf16.msra.mxu3 %v13623_v33  ;;  %v13542_v48 = vld [vmem:[#allocation5 + $0x140] sm:$0xf]  ;;  %v14907_v58 = vld [vmem:[#allocation5 + $0x144] sm:$0xf0]  ;;  %v13479_v59 = vor.u32 %v14891_v1, %v13478_v32  ;;  %v14873_v52 = vld [vmem:[#allocation5 + $0x34] sm:$0xf0] }
 0x789   :  { %v13606_v53 = vld [vmem:[#allocation5 + $0x1c0] sm:$0xf]  ;;  %v14923_v56 = vld [vmem:[#allocation5 + $0x1c4] sm:$0xf0]  ;;  %8646 = vmatpush.bf16.msra.mxu0 %v13423_v37  ;;  %v13543_v17 = vor.u32 %v14907_v58, %v13542_v48  ;;  %v13470_v12 = vld [vmem:[#allocation5 + $0xb0] sm:$0xf]  ;;  %v13407_v51 = vor.u32 %v14873_v52, %v13406_v14 }
 0x78a   :  { %8660 = vmatpush.bf16.msra.mxu1 %v13487_v62  ;;  %v13607_v24 = vor.u32 %v14923_v56, %v13606_v53  ;;  %v14889_v61 = vld [vmem:[#allocation5 + $0xb4] sm:$0xf0]  ;;  %v13534_v2 = vld [vmem:[#allocation5 + $0x130] sm:$0xf]  ;;  %v13398_v5 = vld [vmem:[#allocation5 + $0x20] sm:$0xf] }
 0x78b   :  { %8674 = vmatpush.bf16.msra.mxu2 %v13551_v9  ;;  %v14905_v36 = vld [vmem:[#allocation5 + $0x134] sm:$0xf0]  ;;  %v13598_v28 = vld [vmem:[#allocation5 + $0x1b0] sm:$0xf]  ;;  %v13471_v4 = vor.u32 %v14889_v61, %v13470_v12  ;;  %v14871_v10 = vld [vmem:[#allocation5 + $0x24] sm:$0xf0] }
 0x78c   :  { %8688 = vmatpush.bf16.msra.mxu3 %v13615_v42  ;;  %v14921_v60 = vld [vmem:[#allocation5 + $0x1b4] sm:$0xf0]  ;;  %v13535_v0 = vor.u32 %v14905_v36, %v13534_v2  ;;  %v13462_v3 = vld [vmem:[#allocation5 + $0xa0] sm:$0xf]  ;;  %v14887_v31 = vld [vmem:[#allocation5 + $0xa4] sm:$0xf0]  ;;  %v13399_v44 = vor.u32 %v14871_v10, %v13398_v5 }
 0x78d   :  { %8647 = vmatpush.bf16.msra.mxu0 %v13415_v57  ;;  %v13599_v27 = vor.u32 %v14921_v60, %v13598_v28  ;;  %v13526_v55 = vld [vmem:[#allocation5 + $0x120] sm:$0xf]  ;;  %v14903_v29 = vld [vmem:[#allocation5 + $0x124] sm:$0xf0]  ;;  %v13463_v43 = vor.u32 %v14887_v31, %v13462_v3  ;;  %v13390_v19 = vld [vmem:[#allocation5 + $0x10] sm:$0xf] }
 0x78e   :  { %8661 = vmatpush.bf16.msra.mxu1 %v13479_v59  ;;  %v13590_v16 = vld [vmem:[#allocation5 + $0x1a0] sm:$0xf]  ;;  %v14919_v39 = vld [vmem:[#allocation5 + $0x1a4] sm:$0xf0]  ;;  %v13527_v47 = vor.u32 %v14903_v29, %v13526_v55  ;;  %v14869_v21 = vld [vmem:[#allocation5 + $0x14] sm:$0xf0] }
 0x78f   :  { %8675 = vmatpush.bf16.msra.mxu2 %v13543_v17  ;;  %v13454_v18 = vld [vmem:[#allocation5 + $0x90] sm:$0xf]  ;;  %v13591_v63 = vor.u32 %v14919_v39, %v13590_v16  ;;  %v14885_v11 = vld [vmem:[#allocation5 + $0x94] sm:$0xf0]  ;;  %v13391_v15 = vor.u32 %v14869_v21, %v13390_v19  ;;  %v13382_v41 = vld [vmem:[#allocation5] sm:$0xf] }
 0x790   :  { %8689 = vmatpush.bf16.msra.mxu3 %v13607_v24  ;;  %v13518_v46 = vld [vmem:[#allocation5 + $0x110] sm:$0xf]  ;;  %v14901_v22 = vld [vmem:[#allocation5 + $0x114] sm:$0xf0]  ;;  %v14867_v7 = vld [vmem:[#allocation5 + $0x4] sm:$0xf0]  ;;  %v13455_v20 = vor.u32 %v14885_v11, %v13454_v18 }
 0x791   :  { %8648 = vmatpush.bf16.msra.mxu0 %v13407_v51  ;;  %v13582_v38 = vld [vmem:[#allocation5 + $0x190] sm:$0xf]  ;;  %v14917_v26 = vld [vmem:[#allocation5 + $0x194] sm:$0xf0]  ;;  %v13519_v30 = vor.u32 %v14901_v22, %v13518_v46  ;;  %v13446_v33 = vld [vmem:[#allocation5 + $0x80] sm:$0xf]  ;;  %v13383_v40 = vor.u32 %v14867_v7, %v13382_v41 }
 0x792   :  { %8662 = vmatpush.bf16.msra.mxu1 %v13471_v4  ;;  %v14883_v50 = vld [vmem:[#allocation5 + $0x84] sm:$0xf0]  ;;  %v13510_v34 = vld [vmem:[#allocation5 + $0x100] sm:$0xf]  ;;  %v13583_v23 = vor.u32 %v14917_v26, %v13582_v38  ;;  %v14880_v54 = vld [vmem:[#allocation5 + $0x74] sm:$0xf] }
 0x793   :  { %8676 = vmatpush.bf16.msra.mxu2 %v13535_v0  ;;  %v14899_v37 = vld [vmem:[#allocation5 + $0x104] sm:$0xf0]  ;;  %v13574_v45 = vld [vmem:[#allocation5 + $0x180] sm:$0xf]  ;;  %v13440_v62 = vld [vmem:[#allocation5 + $0x78] sm:$0xf0]  ;;  %v13447_v1 = vor.u32 %v14883_v50, %v13446_v33 }
 0x794   :  { %8690 = vmatpush.bf16.msra.mxu3 %v13599_v27  ;;  %v14915_v25 = vld [vmem:[#allocation5 + $0x184] sm:$0xf0]  ;;  %v14896_v9 = vld [vmem:[#allocation5 + $0xf4] sm:$0xf]  ;;  %v13504_v35 = vld [vmem:[#allocation5 + $0xf8] sm:$0xf0]  ;;  %v13511_v48 = vor.u32 %v14899_v37, %v13510_v34  ;;  %v13443_v57 = vor.u32 %v14880_v54, %v13440_v62 }
 0x795   :  { %8649 = vmatpush.bf16.msra.mxu0 %v13399_v44  ;;  %v14912_v32 = vld [vmem:[#allocation5 + $0x174] sm:$0xf]  ;;  %v13568_v42 = vld [vmem:[#allocation5 + $0x178] sm:$0xf0]  ;;  %v13575_v56 = vor.u32 %v14915_v25, %v13574_v45  ;;  %v13507_v59 = vor.u32 %v14896_v9, %v13504_v35  ;;  %v14878_v14 = vld [vmem:[#allocation5 + $0x64] sm:$0xf] }
 0x796   :  { %8663 = vmatpush.bf16.msra.mxu1 %v13463_v43  ;;  %v14928_v58 = vld [vmem:[#allocation5 + $0x1f4] sm:$0xf]  ;;  %v13632_v53 = vld [vmem:[#allocation5 + $0x1f8] sm:$0xf0]  ;;  %v13571_v17 = vor.u32 %v14912_v32, %v13568_v42  ;;  %v13432_v52 = vld [vmem:[#allocation5 + $0x68] sm:$0xf0] }
 0x797   :  { %8677 = vmatpush.bf16.msra.mxu2 %v13527_v47  ;;  %v14894_v12 = vld [vmem:[#allocation5 + $0xe4] sm:$0xf]  ;;  %v13635_v24 = vor.u32 %v14928_v58, %v13632_v53  ;;  %v13496_v61 = vld [vmem:[#allocation5 + $0xe8] sm:$0xf0]  ;;  %v13435_v51 = vor.u32 %v14878_v14, %v13432_v52  ;;  %v14876_v5 = vld [vmem:[#allocation5 + $0x54] sm:$0xf] }
 0x798   :  { %8691 = vmatpush.bf16.msra.mxu3 %v13591_v63  ;;  %v14910_v2 = vld [vmem:[#allocation5 + $0x164] sm:$0xf]  ;;  %v13560_v36 = vld [vmem:[#allocation5 + $0x168] sm:$0xf0]  ;;  %v13499_v4 = vor.u32 %v14894_v12, %v13496_v61  ;;  %v13424_v10 = vld [vmem:[#allocation5 + $0x58] sm:$0xf0] }
 0x799   :  { %8650 = vmatpush.bf16.msra.mxu0 %v13391_v15  ;;  %v14926_v28 = vld [vmem:[#allocation5 + $0x1e4] sm:$0xf]  ;;  %v13624_v60 = vld [vmem:[#allocation5 + $0x1e8] sm:$0xf0]  ;;  %v13563_v0 = vor.u32 %v14910_v2, %v13560_v36  ;;  %v14892_v3 = vld [vmem:[#allocation5 + $0xd4] sm:$0xf]  ;;  %v13427_v44 = vor.u32 %v14876_v5, %v13424_v10 }
 0x79a   :  { %8664 = vmatpush.bf16.msra.mxu1 %v13455_v20  ;;  %v13627_v27 = vor.u32 %v14926_v28, %v13624_v60  ;;  %v13488_v31 = vld [vmem:[#allocation5 + $0xd8] sm:$0xf0]  ;;  %v14908_v55 = vld [vmem:[#allocation5 + $0x154] sm:$0xf]  ;;  %v14874_v19 = vld [vmem:[#allocation5 + $0x44] sm:$0xf] }
 0x79b   :  { %8678 = vmatpush.bf16.msra.mxu2 %v13519_v30  ;;  %v13552_v29 = vld [vmem:[#allocation5 + $0x158] sm:$0xf0]  ;;  %v14924_v16 = vld [vmem:[#allocation5 + $0x1d4] sm:$0xf]  ;;  %v13491_v43 = vor.u32 %v14892_v3, %v13488_v31  ;;  %v13416_v21 = vld [vmem:[#allocation5 + $0x48] sm:$0xf0] }
 0x79c   :  { %8692 = vmatpush.bf16.msra.mxu3 %v13583_v23  ;;  %v13616_v39 = vld [vmem:[#allocation5 + $0x1d8] sm:$0xf0]  ;;  %v13555_v47 = vor.u32 %v14908_v55, %v13552_v29  ;;  %v14890_v18 = vld [vmem:[#allocation5 + $0xc4] sm:$0xf]  ;;  %v13480_v11 = vld [vmem:[#allocation5 + $0xc8] sm:$0xf0]  ;;  %v13419_v15 = vor.u32 %v14874_v19, %v13416_v21 }
 0x79d   :  { %8651 = vmatpush.bf16.msra.mxu0 %v13383_v40  ;;  %v13619_v63 = vor.u32 %v14924_v16, %v13616_v39  ;;  %v14906_v46 = vld [vmem:[#allocation5 + $0x144] sm:$0xf]  ;;  %v13544_v22 = vld [vmem:[#allocation5 + $0x148] sm:$0xf0]  ;;  %v13483_v41 = vor.u32 %v14890_v18, %v13480_v11  ;;  %v14872_v20 = vld [vmem:[#allocation5 + $0x34] sm:$0xf] }
 0x79e   :  { %8665 = vmatpush.bf16.msra.mxu1 %v13447_v1  ;;  %v14922_v38 = vld [vmem:[#allocation5 + $0x1c4] sm:$0xf]  ;;  %v13608_v26 = vld [vmem:[#allocation5 + $0x1c8] sm:$0xf0]  ;;  %v13547_v7 = vor.u32 %v14906_v46, %v13544_v22  ;;  %v13408_v30 = vld [vmem:[#allocation5 + $0x38] sm:$0xf0] }
 0x79f   :  { %8679 = vmatpush.bf16.msra.mxu2 %v13511_v48  ;;  %v14888_v33 = vld [vmem:[#allocation5 + $0xb4] sm:$0xf]  ;;  %v13611_v50 = vor.u32 %v14922_v38, %v13608_v26  ;;  %v13472_v34 = vld [vmem:[#allocation5 + $0xb8] sm:$0xf0]  ;;  %v13411_v54 = vor.u32 %v14872_v20, %v13408_v30  ;;  %v14870_v40 = vld [vmem:[#allocation5 + $0x24] sm:$0xf] }
 0x7a0   :  { %8693 = vmatpush.bf16.msra.mxu3 %v13575_v56  ;;  %8652 = vmatmul.bf16.vlgmr.msra.gmra.mxu0 %v15605_v8  ;;  %v14904_v23 = vld [vmem:[#allocation5 + $0x134] sm:$0xf]  ;;  %v13536_v37 = vld [vmem:[#allocation5 + $0x138] sm:$0xf0]  ;;  %v13475_v62 = vor.u32 %v14888_v33, %v13472_v34  ;;  %v13400_v35 = vld [vmem:[#allocation5 + $0x28] sm:$0xf0] }
 0x7a1   :  { %8700 = vmatpush.bf16.msrb.mxu0 %v13443_v57  ;;  %8666 = vmatmul.bf16.vlgmr.msra.gmra.mxu1 %v15608_v13  ;;  %v14920_v45 = vld [vmem:[#allocation5 + $0x1b4] sm:$0xf]  ;;  %v13600_v25 = vld [vmem:[#allocation5 + $0x1b8] sm:$0xf0]  ;;  %v13539_v9 = vor.u32 %v14904_v23, %v13536_v37  ;;  %v14886_v32 = vld [vmem:[#allocation5 + $0xa4] sm:$0xf]  ;;  %v13403_v57 = vor.u32 %v14870_v40, %v13400_v35 }
 0x7a2   :  { %8714 = vmatpush.bf16.msrb.mxu1 %v13507_v59  ;;  %8680 = vmatmul.bf16.vlgmr.msra.gmra.mxu2 %v15611_v6  ;;  %v13603_v42 = vor.u32 %v14920_v45, %v13600_v25  ;;  %v13464_v1 = vld [vmem:[#allocation5 + $0xa8] sm:$0xf0]  ;;  %v14902_v48 = vld [vmem:[#allocation5 + $0x124] sm:$0xf]  ;;  %v14868_v14 = vld [vmem:[#allocation5 + $0x14] sm:$0xf] }
 0x7a3   :  { %8728 = vmatpush.bf16.msrb.mxu2 %v13571_v17  ;;  %8694 = vmatmul.bf16.vlgmr.msra.gmra.mxu3 %v15614_v49  ;;  %v13528_v58 = vld [vmem:[#allocation5 + $0x128] sm:$0xf0]  ;;  %v14918_v53 = vld [vmem:[#allocation5 + $0x1a4] sm:$0xf]  ;;  %v13467_v59 = vor.u32 %v14886_v32, %v13464_v1  ;;  %v13392_v52 = vld [vmem:[#allocation5 + $0x18] sm:$0xf0] }
 0x7a4   :  { %8742 = vmatpush.bf16.msrb.mxu3 %v13635_v24  ;;  %v13592_v56 = vld [vmem:[#allocation5 + $0x1a8] sm:$0xf0]  ;;  %v13531_v17 = vor.u32 %v14902_v48, %v13528_v58  ;;  %v14884_v12 = vld [vmem:[#allocation5 + $0x94] sm:$0xf]  ;;  %v13456_v61 = vld [vmem:[#allocation5 + $0x98] sm:$0xf0] }
 0x7a5   :  { %8701 = vmatpush.bf16.msrb.mxu0 %v13435_v51  ;;  %v13595_v24 = vor.u32 %v14918_v53, %v13592_v56  ;;  %v14900_v2 = vld [vmem:[#allocation5 + $0x114] sm:$0xf]  ;;  %v13520_v36 = vld [vmem:[#allocation5 + $0x118] sm:$0xf0]  ;;  %v13395_v51 = vor.u32 %v14868_v14, %v13392_v52  ;;  %v14866_v5 = vld [vmem:[#allocation5 + $0x4] sm:$0xf] }
 0x7a6   :  { %8715 = vmatpush.bf16.msrb.mxu1 %v13499_v4  ;;  %v14916_v28 = vld [vmem:[#allocation5 + $0x194] sm:$0xf]  ;;  %v13584_v60 = vld [vmem:[#allocation5 + $0x198] sm:$0xf0]  ;;  %v13459_v4 = vor.u32 %v14884_v12, %v13456_v61  ;;  %v13384_v10 = vld [vmem:[#allocation5 + $0x8] sm:$0xf0] }
 0x7a7   :  { %8729 = vmatpush.bf16.msrb.mxu2 %v13563_v0  ;;  %v13523_v0 = vor.u32 %v14900_v2, %v13520_v36  ;;  %v14882_v3 = vld [vmem:[#allocation5 + $0x84] sm:$0xf]  ;;  %v13448_v31 = vld [vmem:[#allocation5 + $0x88] sm:$0xf0]  ;;  %v8318_v21 = vld [vmem:[#allocation14 + $0x14] sm:$0x3] }
 0x7a8   :  { %8743 = vmatpush.bf16.msrb.mxu3 %v13627_v27  ;;  %v13587_v27 = vor.u32 %v14916_v28, %v13584_v60  ;;  %v14898_v55 = vld [vmem:[#allocation5 + $0x104] sm:$0xf]  ;;  %v13512_v29 = vld [vmem:[#allocation5 + $0x108] sm:$0xf0]  ;;  %v8320_v18 = vperm.slane %v8318_v21, 0  ;;  %v8321_v37 = vperm.slane %v8318_v21, 1 }
 0x7a9   :  { %8702 = vmatpush.bf16.msrb.mxu0 %v13427_v44  ;;  %v14914_v16 = vld [vmem:[#allocation5 + $0x184] sm:$0xf]  ;;  %v13576_v39 = vld [vmem:[#allocation5 + $0x188] sm:$0xf0]  ;;  %v13387_v44 = vor.u32 %v14866_v5, %v13384_v10 }
 0x7aa   :  { %8716 = vmatpush.bf16.msrb.mxu1 %v13491_v43  ;;  %v13451_v43 = vor.u32 %v14882_v3, %v13448_v31  ;;  %v13579_v19 = vor.u32 %v14914_v16, %v13576_v39 }
 0x7ab   :  { %8730 = vmatpush.bf16.msrb.mxu2 %v13555_v47  ;;  %v13515_v47 = vor.u32 %v14898_v55, %v13512_v29 }
 0x7ac   :  { %8744 = vmatpush.bf16.msrb.mxu3 %v13619_v63 }
 0x7ad   :  { %8703 = vmatpush.bf16.msrb.mxu0 %v13419_v15 }
 0x7ae   :  { %8717 = vmatpush.bf16.msrb.mxu1 %v13483_v41 }
 0x7af   :  { %8731 = vmatpush.bf16.msrb.mxu2 %v13547_v7 }
 0x7b0   :  { %8745 = vmatpush.bf16.msrb.mxu3 %v13611_v50 }
 0x7b1   :  { %8704 = vmatpush.bf16.msrb.mxu0 %v13411_v54 }
 0x7b2   :  { %8718 = vmatpush.bf16.msrb.mxu1 %v13475_v62 }
 0x7b3   :  { %8732 = vmatpush.bf16.msrb.mxu2 %v13539_v9 }
 0x7b4   :  { %8746 = vmatpush.bf16.msrb.mxu3 %v13603_v42 }
 0x7b5   :  { %8705 = vmatpush.bf16.msrb.mxu0 %v13403_v57 }
 0x7b6   :  { %8719 = vmatpush.bf16.msrb.mxu1 %v13467_v59 }
 0x7b7   :  { %8733 = vmatpush.bf16.msrb.mxu2 %v13531_v17 }
 0x7b8   :  { %8747 = vmatpush.bf16.msrb.mxu3 %v13595_v24 }
 0x7b9   :  { %8706 = vmatpush.bf16.msrb.mxu0 %v13395_v51 }
 0x7ba   :  { %8720 = vmatpush.bf16.msrb.mxu1 %v13459_v4 }
 0x7bb   :  { %8734 = vmatpush.bf16.msrb.mxu2 %v13523_v0 }
 0x7bc   :  { %8748 = vmatpush.bf16.msrb.mxu3 %v13587_v27 }
 0x7bd   :  { %8707 = vmatpush.bf16.msrb.mxu0 %v13387_v44 }
 0x7be   :  { %8721 = vmatpush.bf16.msrb.mxu1 %v13451_v43 }
 0x7bf   :  { %8735 = vmatpush.bf16.msrb.mxu2 %v13515_v47 }
 0x7c0   :  { %8749 = vmatpush.bf16.msrb.mxu3 %v13579_v19  ;;  %8708 = vmatmul.bf16.vlgmr.msrb.gmra.mxu0 %v15605_v8 }
 0x7c1   :  { %8722 = vmatmul.bf16.vlgmr.msrb.gmra.mxu1 %v15608_v13 }
 0x7c2   :  { %8736 = vmatmul.bf16.vlgmr.msrb.gmra.mxu2 %v15611_v6 }
 0x7c3   :  { %8750 = vmatmul.bf16.vlgmr.msrb.gmra.mxu3 %v15614_v49 }
 0x81d   :  { %v8653_v63 = vpop.f32.mrf.mxu0 }
 0x81e   :  { %v8654_v11 = vadd.f32 %v8653_v63, %v8320_v18  ;;  %v8667_v46 = vpop.f32.mrf.mxu1 }
 0x820   :  { %v8668_v22 = vadd.f32 %v8667_v46, %v8654_v11 }
 0x825   :  { %v8681_v38 = vpop.f32.mrf.mxu2  ;;  %v8655_v41 = vpop.f32.mrf.mxu0 }
 0x826   :  { %v8695_v26 = vpop.f32.mrf.mxu3  ;;  %v8682_v15 = vadd.f32 %v8681_v38, %v8668_v22  ;;  %v8656_v7 = vadd.f32 %v8655_v41, %v8320_v18  ;;  %v8669_v20 = vpop.f32.mrf.mxu1 }
 0x828   :  { %v8670_v30 = vadd.f32 %v8669_v20, %v8656_v7  ;;  %v8696_v8 = vadd.f32 %v8695_v26, %v8682_v15 }
 0x82a   :  { %v8756_v6 = vmax.f32 %v8696_v8, 0.0 }
 0x82d   :  { %v8683_v33 = vpop.f32.mrf.mxu2 }
 0x82e   :  { %v8684_v13 = vadd.f32 %v8683_v33, %v8670_v30  ;;  %v8697_v50 = vpop.f32.mrf.mxu3 }
 0x830   :  { %v8698_v34 = vadd.f32 %v8697_v50, %v8684_v13 }
 0x832   :  { %v8758_v49 = vmax.f32 %v8698_v34, 0.0 }
 0x834   :  { %v15624_v23 = vpack.c.bf16 %v8758_v49, %v8756_v6 }
 0x83d   :  { %v8709_v45 = vpop.f32.mrf.mxu0 }
 0x83e   :  { %v8723_v25 = vpop.f32.mrf.mxu1  ;;  %v8710_v54 = vadd.f32 %v8709_v45, %v8321_v37 }
 0x840   :  { %v8724_v9 = vadd.f32 %v8723_v25, %v8710_v54 }
 0x845   :  { %v8737_v62 = vpop.f32.mrf.mxu2  ;;  %v8711_v35 = vpop.f32.mrf.mxu0 }
 0x846   :  { %v8751_v40 = vpop.f32.mrf.mxu3  ;;  %v8712_v32 = vadd.f32 %v8711_v35, %v8321_v37  ;;  %v8738_v42 = vadd.f32 %v8737_v62, %v8724_v9  ;;  %v8725_v1 = vpop.f32.mrf.mxu1 }
 0x848   :  { %v8726_v48 = vadd.f32 %v8725_v1, %v8712_v32  ;;  %v8752_v53 = vadd.f32 %v8751_v40, %v8738_v42 }
 0x84a   :  { %v8757_v17 = vmax.f32 %v8752_v53, 0.0 }
 0x84d   :  { %v8739_v58 = vpop.f32.mrf.mxu2 }
 0x84e   :  { %v8740_v56 = vadd.f32 %v8739_v58, %v8726_v48  ;;  %v8753_v57 = vpop.f32.mrf.mxu3 }
 0x850   :  { %v8754_v59 = vadd.f32 %v8753_v57, %v8740_v56 }
 0x852   :  { %v8759_v14 = vmax.f32 %v8754_v59, 0.0 }
 0x854   :  { %v15626_v52 = vpack.c.bf16 %v8759_v14, %v8757_v17 }
 0x855   :  { %15247 = dma.done.wait [#allocation8 + $0x4], 4096 }
 0x856   :  { %15248 = vsyncadd [#allocation8 + $0x4], 4294963200  ;;  %v13694_v12 = vld [vmem:[#allocation6 + $0x70] sm:$0xf]  ;;  %v14945_v24 = vld [vmem:[#allocation6 + $0x74] sm:$0xf0] }
 0x857   :  { %v13758_v61 = vld [vmem:[#allocation6 + $0xf0] sm:$0xf]  ;;  %v13695_v2 = vor.u32 %v14945_v24, %v13694_v12  ;;  %v14961_v36 = vld [vmem:[#allocation6 + $0xf4] sm:$0xf0]  ;;  %v14944_v28 = vld [vmem:[#allocation6 + $0x74] sm:$0xf] }
 0x858   :  { %v13696_v60 = vld [vmem:[#allocation6 + $0x78] sm:$0xf0]  ;;  %v13759_v51 = vor.u32 %v14961_v36, %v13758_v61  ;;  %v14960_v0 = vld [vmem:[#allocation6 + $0xf4] sm:$0xf]  ;;  %v13686_v10 = vld [vmem:[#allocation6 + $0x60] sm:$0xf] }
 0x859   :  { %v13699_v4 = vor.u32 %v14944_v28, %v13696_v60  ;;  %v13760_v5 = vld [vmem:[#allocation6 + $0xf8] sm:$0xf0]  ;;  %8964 = vmatpush.bf16.msra.mxu0 %v13695_v2  ;;  %v14943_v27 = vld [vmem:[#allocation6 + $0x64] sm:$0xf0]  ;;  %v13750_v31 = vld [vmem:[#allocation6 + $0xe0] sm:$0xf] }
 0x85a   :  { %v13763_v3 = vor.u32 %v14960_v0, %v13760_v5  ;;  %v14959_v55 = vld [vmem:[#allocation6 + $0xe4] sm:$0xf0]  ;;  %8978 = vmatpush.bf16.msra.mxu1 %v13759_v51  ;;  %v13687_v29 = vor.u32 %v14943_v27, %v13686_v10  ;;  %v14942_v39 = vld [vmem:[#allocation6 + $0x64] sm:$0xf]  ;;  %v13688_v44 = vld [vmem:[#allocation6 + $0x68] sm:$0xf0] }
 0x85b   :  { %8992 = vmatpush.bf16.msra.mxu2 %v13699_v4  ;;  %v13751_v16 = vor.u32 %v14959_v55, %v13750_v31  ;;  %v14958_v43 = vld [vmem:[#allocation6 + $0xe4] sm:$0xf]  ;;  %v13691_v47 = vor.u32 %v14942_v39, %v13688_v44  ;;  %v13752_v19 = vld [vmem:[#allocation6 + $0xe8] sm:$0xf0]  ;;  %v13678_v21 = vld [vmem:[#allocation6 + $0x50] sm:$0xf] }
 0x85c   :  { %9006 = vmatpush.bf16.msra.mxu3 %v13763_v3  ;;  %v14941_v18 = vld [vmem:[#allocation6 + $0x54] sm:$0xf0]  ;;  %v13755_v63 = vor.u32 %v14958_v43, %v13752_v19  ;;  %v13742_v11 = vld [vmem:[#allocation6 + $0xd0] sm:$0xf]  ;;  %v14940_v22 = vld [vmem:[#allocation6 + $0x54] sm:$0xf] }
 0x85d   :  { %v14957_v46 = vld [vmem:[#allocation6 + $0xd4] sm:$0xf0]  ;;  %8965 = vmatpush.bf16.msra.mxu0 %v13687_v29  ;;  %v13679_v38 = vor.u32 %v14941_v18, %v13678_v21  ;;  %v13680_v26 = vld [vmem:[#allocation6 + $0x58] sm:$0xf0]  ;;  %v14956_v15 = vld [vmem:[#allocation6 + $0xd4] sm:$0xf] }
 0x85e   :  { %v13744_v41 = vld [vmem:[#allocation6 + $0xd8] sm:$0xf0]  ;;  %8979 = vmatpush.bf16.msra.mxu1 %v13751_v16  ;;  %v13743_v7 = vor.u32 %v14957_v46, %v13742_v11  ;;  %v13683_v20 = vor.u32 %v14940_v22, %v13680_v26  ;;  %v13670_v30 = vld [vmem:[#allocation6 + $0x40] sm:$0xf]  ;;  %v14939_v8 = vld [vmem:[#allocation6 + $0x44] sm:$0xf0] }
 0x85f   :  { %8993 = vmatpush.bf16.msra.mxu2 %v13691_v47  ;;  %v13734_v33 = vld [vmem:[#allocation6 + $0xc0] sm:$0xf]  ;;  %v13747_v13 = vor.u32 %v14956_v15, %v13744_v41  ;;  %v14955_v50 = vld [vmem:[#allocation6 + $0xc4] sm:$0xf0]  ;;  %v14938_v6 = vld [vmem:[#allocation6 + $0x44] sm:$0xf]  ;;  %v13671_v45 = vor.u32 %v14939_v8, %v13670_v30 }
 0x860   :  { %9007 = vmatpush.bf16.msra.mxu3 %v13755_v63  ;;  %v13672_v34 = vld [vmem:[#allocation6 + $0x48] sm:$0xf0]  ;;  %v14954_v49 = vld [vmem:[#allocation6 + $0xc4] sm:$0xf]  ;;  %v13735_v25 = vor.u32 %v14955_v50, %v13734_v33  ;;  %v13662_v62 = vld [vmem:[#allocation6 + $0x30] sm:$0xf] }
 0x861   :  { %v13736_v37 = vld [vmem:[#allocation6 + $0xc8] sm:$0xf0]  ;;  %8966 = vmatpush.bf16.msra.mxu0 %v13679_v38  ;;  %v13675_v54 = vor.u32 %v14938_v6, %v13672_v34  ;;  %v14937_v9 = vld [vmem:[#allocation6 + $0x34] sm:$0xf0]  ;;  %v13726_v40 = vld [vmem:[#allocation6 + $0xb0] sm:$0xf] }
 0x862   :  { %8980 = vmatpush.bf16.msra.mxu1 %v13743_v7  ;;  %v13739_v35 = vor.u32 %v14954_v49, %v13736_v37  ;;  %v14953_v32 = vld [vmem:[#allocation6 + $0xb4] sm:$0xf0]  ;;  %v14936_v42 = vld [vmem:[#allocation6 + $0x34] sm:$0xf]  ;;  %v13664_v1 = vld [vmem:[#allocation6 + $0x38] sm:$0xf0]  ;;  %v13663_v53 = vor.u32 %v14937_v9, %v13662_v62 }
 0x863   :  { %8994 = vmatpush.bf16.msra.mxu2 %v13683_v20  ;;  %v14952_v48 = vld [vmem:[#allocation6 + $0xb4] sm:$0xf]  ;;  %v13728_v58 = vld [vmem:[#allocation6 + $0xb8] sm:$0xf0]  ;;  %v13727_v56 = vor.u32 %v14953_v32, %v13726_v40  ;;  %v13667_v57 = vor.u32 %v14936_v42, %v13664_v1  ;;  %v13654_v59 = vld [vmem:[#allocation6 + $0x20] sm:$0xf] }
 0x864   :  { %9008 = vmatpush.bf16.msra.mxu3 %v13747_v13  ;;  %v14935_v17 = vld [vmem:[#allocation6 + $0x24] sm:$0xf0]  ;;  %v13718_v14 = vld [vmem:[#allocation6 + $0xa0] sm:$0xf]  ;;  %v13731_v12 = vor.u32 %v14952_v48, %v13728_v58  ;;  %v14934_v61 = vld [vmem:[#allocation6 + $0x24] sm:$0xf] }
 0x865   :  { %8967 = vmatpush.bf16.msra.mxu0 %v13671_v45  ;;  %v14951_v24 = vld [vmem:[#allocation6 + $0xa4] sm:$0xf0]  ;;  %v13656_v2 = vld [vmem:[#allocation6 + $0x28] sm:$0xf0]  ;;  %v14950_v36 = vld [vmem:[#allocation6 + $0xa4] sm:$0xf]  ;;  %v13655_v60 = vor.u32 %v14935_v17, %v13654_v59 }
 0x866   :  { %8981 = vmatpush.bf16.msra.mxu1 %v13735_v25  ;;  %v13720_v28 = vld [vmem:[#allocation6 + $0xa8] sm:$0xf0]  ;;  %v13719_v51 = vor.u32 %v14951_v24, %v13718_v14  ;;  %v13659_v4 = vor.u32 %v14934_v61, %v13656_v2  ;;  %v13646_v0 = vld [vmem:[#allocation6 + $0x10] sm:$0xf]  ;;  %v14933_v5 = vld [vmem:[#allocation6 + $0x14] sm:$0xf0] }
 0x867   :  { %8995 = vmatpush.bf16.msra.mxu2 %v13675_v54  ;;  %v13710_v10 = vld [vmem:[#allocation6 + $0x90] sm:$0xf]  ;;  %v13723_v3 = vor.u32 %v14950_v36, %v13720_v28  ;;  %v14949_v27 = vld [vmem:[#allocation6 + $0x94] sm:$0xf0]  ;;  %v14932_v31 = vld [vmem:[#allocation6 + $0x14] sm:$0xf]  ;;  %v13647_v39 = vor.u32 %v14933_v5, %v13646_v0 }
 0x868   :  { %9009 = vmatpush.bf16.msra.mxu3 %v13739_v35  ;;  %v13648_v55 = vld [vmem:[#allocation6 + $0x18] sm:$0xf0]  ;;  %v14948_v29 = vld [vmem:[#allocation6 + $0x94] sm:$0xf]  ;;  %v13711_v44 = vor.u32 %v14949_v27, %v13710_v10  ;;  %v13638_v47 = vld [vmem:[#allocation6] sm:$0xf] }
 0x869   :  { %8968 = vmatpush.bf16.msra.mxu0 %v13663_v53  ;;  %v13712_v16 = vld [vmem:[#allocation6 + $0x98] sm:$0xf0]  ;;  %v13651_v43 = vor.u32 %v14932_v31, %v13648_v55  ;;  %v14931_v19 = vld [vmem:[#allocation6 + $0x4] sm:$0xf0]  ;;  %v13702_v21 = vld [vmem:[#allocation6 + $0x80] sm:$0xf] }
 0x86a   :  { %8982 = vmatpush.bf16.msra.mxu1 %v13727_v56  ;;  %v13715_v18 = vor.u32 %v14948_v29, %v13712_v16  ;;  %v14947_v63 = vld [vmem:[#allocation6 + $0x84] sm:$0xf0]  ;;  %v14930_v11 = vld [vmem:[#allocation6 + $0x4] sm:$0xf]  ;;  %v13640_v46 = vld [vmem:[#allocation6 + $0x8] sm:$0xf0]  ;;  %v13639_v26 = vor.u32 %v14931_v19, %v13638_v47 }
 0x86b   :  { %8996 = vmatpush.bf16.msra.mxu2 %v13667_v57  ;;  %v14946_v22 = vld [vmem:[#allocation6 + $0x84] sm:$0xf]  ;;  %v13704_v38 = vld [vmem:[#allocation6 + $0x88] sm:$0xf0]  ;;  %v13703_v15 = vor.u32 %v14947_v63, %v13702_v21  ;;  %v13643_v41 = vor.u32 %v14930_v11, %v13640_v46  ;;  %v8798_v20 = vld [vmem:[#allocation14 + $0x16] sm:$0x3] }
 0x86c   :  { %9010 = vmatpush.bf16.msra.mxu3 %v13731_v12  ;;  %v13707_v7 = vor.u32 %v14946_v22, %v13704_v38  ;;  %v8800_v8 = vperm.slane %v8798_v20, 0  ;;  %v8801_v6 = vperm.slane %v8798_v20, 1 }
 0x86d   :  { %8969 = vmatpush.bf16.msra.mxu0 %v13655_v60 }
 0x86e   :  { %8983 = vmatpush.bf16.msra.mxu1 %v13719_v51 }
 0x86f   :  { %8997 = vmatpush.bf16.msra.mxu2 %v13659_v4 }
 0x870   :  { %9011 = vmatpush.bf16.msra.mxu3 %v13723_v3 }
 0x871   :  { %8970 = vmatpush.bf16.msra.mxu0 %v13647_v39 }
 0x872   :  { %8984 = vmatpush.bf16.msra.mxu1 %v13711_v44 }
 0x873   :  { %8998 = vmatpush.bf16.msra.mxu2 %v13651_v43 }
 0x874   :  { %9012 = vmatpush.bf16.msra.mxu3 %v13715_v18 }
 0x875   :  { %8971 = vmatpush.bf16.msra.mxu0 %v13639_v26 }
 0x876   :  { %8985 = vmatpush.bf16.msra.mxu1 %v13703_v15 }
 0x877   :  { %8999 = vmatpush.bf16.msra.mxu2 %v13643_v41 }
 0x878   :  { %9013 = vmatpush.bf16.msra.mxu3 %v13707_v7  ;;  %8972 = vmatmul.bf16.vlgmr.msra.gmra.mxu0 %v15624_v23 }
 0x879   :  { %8986 = vmatmul.bf16.vlgmr.msra.gmra.mxu1 %v15626_v52 }
 0x87a   :  { %9000 = vmatmul.bf16.vlgmr.msra.gmra.mxu2 %v15624_v23 }
 0x87b   :  { %9014 = vmatmul.bf16.vlgmr.msra.gmra.mxu3 %v15626_v52 }
 0x8f5   :  { %v8973_v30 = vpop.f32.mrf.mxu0 }
 0x8f6   :  { %v8987_v33 = vpop.f32.mrf.mxu1  ;;  %v8974_v13 = vadd.f32 %v8973_v30, %v8800_v8 }
 0x8f8   :  { %v8988_v37 = vadd.f32 %v8987_v33, %v8974_v13 }
 0x8fa   :  { %v9020_v9 = vmax.f32 %v8988_v37, 0.0 }
 0x8fd   :  { %v9001_v50 = vpop.f32.mrf.mxu2  ;;  %v8975_v49 = vpop.f32.mrf.mxu0 }
 0x8fe   :  { %v9015_v34 = vpop.f32.mrf.mxu3  ;;  %v8976_v45 = vadd.f32 %v8975_v49, %v8800_v8  ;;  %v8989_v25 = vpop.f32.mrf.mxu1  ;;  %v9002_v62 = vadd.f32 %v9001_v50, %v8801_v6 }
 0x900   :  { %v8990_v54 = vadd.f32 %v8989_v25, %v8976_v45  ;;  %v9016_v32 = vadd.f32 %v9015_v34, %v9002_v62 }
 0x902   :  { %v9022_v40 = vmax.f32 %v8990_v54, 0.0  ;;  %v9021_v48 = vmax.f32 %v9016_v32, 0.0 }
 0x904   :  { %v9024_v35 = vpack.c.bf16 %v9022_v40, %v9020_v9 }
 0x905   :  { %v9003_v23 = vpop.f32.mrf.mxu2 }
 0x906   :  { %v9004_v52 = vadd.f32 %v9003_v23, %v8801_v6  ;;  %v9017_v42 = vpop.f32.mrf.mxu3 }
 0x908   :  { %v9018_v1 = vadd.f32 %v9017_v42, %v9004_v52 }
 0x90a   :  { %v9023_v58 = vmax.f32 %v9018_v1, 0.0 }
 0x90c   :  { %v9025_v53 = vpack.c.bf16 %v9023_v58, %v9021_v48 }
 0x90d   :  { %15249 = dma.done.wait [#allocation8 + $0x5], 2048 }
 0x90e   :  { %15250 = vsyncadd [#allocation8 + $0x5], 4294965248  ;;  %v14969_v56 = vld [vmem:[#allocation7 + $0x38] sm:$0xff]  ;;  %v14968_v59 = vld [vmem:[#allocation7 + $0x30] sm:$0xff]  ;;  %s15264_s8 = smov [#allocation15]   ;;  %s9197_s27 = sshll.u32 %s15644_s9, 4  ;;  %s9198_s27 = int_to_ptr.hbm [resolvable:$true] %s9197_s27 }
 0x90f   :  { %v14977_v57 = vld [vmem:[#allocation7 + $0x78] sm:$0xff]  ;;  %9161 = vmatpush.bf16.msrb.mxu0 %v14969_v56  ;;  %v14976_v17 = vld [vmem:[#allocation7 + $0x70] sm:$0xff]  ;;  %v14967_v14 = vld [vmem:[#allocation7 + $0x28] sm:$0xff]  ;;  %s9195_s2 = sshll.u32 %s15264_s8, 4  ;;  %s15265_s28 = smov 128   ;;  %s9196_s2 = int_to_ptr.vmem [resolvable:$true] %s9195_s2 }
 0x910   :  { %9175 = vmatpush.bf16.msrb.mxu1 %v14977_v57  ;;  %v14975_v12 = vld [vmem:[#allocation7 + $0x68] sm:$0xff]  ;;  %v14966_v24 = vld [vmem:[#allocation7 + $0x20] sm:$0xff]  ;;  %v14965_v2 = vld [vmem:[#allocation7 + $0x18] sm:$0xff]  ;;  %s15266_s29 = smov 8  }
 0x911   :  { %v14974_v61 = vld [vmem:[#allocation7 + $0x60] sm:$0xff]  ;;  %v14973_v36 = vld [vmem:[#allocation7 + $0x58] sm:$0xff]  ;;  %v14964_v28 = vld [vmem:[#allocation7 + $0x10] sm:$0xff] }
 0x912   :  { %v14972_v60 = vld [vmem:[#allocation7 + $0x50] sm:$0xff]  ;;  %v14963_v51 = vld [vmem:[#allocation7 + $0x8] sm:$0xff]  ;;  %v14962_v0 = vld [vmem:[#allocation7] sm:$0xff] }
 0x913   :  { %9162 = vmatpush.bf16.msrb.mxu0 %v14968_v59  ;;  %v14971_v4 = vld [vmem:[#allocation7 + $0x48] sm:$0xff]  ;;  %v14970_v5 = vld [vmem:[#allocation7 + $0x40] sm:$0xff]  ;;  %v14994_v10 = vld [vmem:[#allocation14 + $0x18] ss:$0 sm:$0xff] }
 0x914   :  { %9176 = vmatpush.bf16.msrb.mxu1 %v14976_v17 }
 0x917   :  { %9163 = vmatpush.bf16.msrb.mxu0 %v14967_v14 }
 0x918   :  { %9177 = vmatpush.bf16.msrb.mxu1 %v14975_v12 }
 0x91b   :  { %9164 = vmatpush.bf16.msrb.mxu0 %v14966_v24 }
 0x91c   :  { %9178 = vmatpush.bf16.msrb.mxu1 %v14974_v61 }
 0x91f   :  { %9165 = vmatpush.bf16.msrb.mxu0 %v14965_v2 }
 0x920   :  { %9179 = vmatpush.bf16.msrb.mxu1 %v14973_v36 }
 0x923   :  { %9166 = vmatpush.bf16.msrb.mxu0 %v14964_v28 }
 0x924   :  { %9180 = vmatpush.bf16.msrb.mxu1 %v14972_v60 }
 0x927   :  { %9167 = vmatpush.bf16.msrb.mxu0 %v14963_v51 }
 0x928   :  { %9181 = vmatpush.bf16.msrb.mxu1 %v14971_v4 }
 0x92b   :  { %9168 = vmatpush.bf16.msrb.mxu0 %v14962_v0 }
 0x92c   :  { %9182 = vmatpush.bf16.msrb.mxu1 %v14970_v5 }
 0x92e   :  { %9169 = vmatmul.bf16.vlgmr.msrb.gmra.mxu0 %v9024_v35 }
 0x92f   :  { %9183 = vmatmul.bf16.vlgmr.msrb.gmra.mxu1 %v9025_v53 }
 0x9ab   :  { %v9170_v3 = vpop.f32.mrf.mxu0 }
 0x9ac   :  { %v9184_v27 = vpop.f32.mrf.mxu1  ;;  %v9171_v31 = vadd.f32 %v14994_v10, %v9170_v3 }
 0x9ae   :  { %v9185_v55 = vadd.f32 %v9184_v27, %v9171_v31 }
 0x9b0   :  { %9189 = vst [vmem:[#allocation15] sm:$0xff] %v9185_v55 }
 0x9b3   :  { %v9172_v29 = vpop.f32.mrf.mxu0 }
 0x9b4   :  { %v9173_v16 = vadd.f32 %v14994_v10, %v9172_v29  ;;  %v9186_v39 = vpop.f32.mrf.mxu1 }
 0x9b6   :  { %v9187_v44 = vadd.f32 %v9186_v39, %v9173_v16 }
 0x9b8   :  { %9190 = vst [vmem:[#allocation15 + $0x8] sm:$0xff] %v9187_v44 }
 0x9b9   :  { %9203 = dma.vmem_to_hbm [thread:$0]  %s9196_s2, 256, %s9198_s27, [#allocation11], %s15265_s28, %s15265_s28, %s15266_s29  }
 0x9ba   :  { %15251 = dma.done.wait [#allocation11], 256  }
 0x9bb   :  { %15252 = vsyncadd [#allocation11], 4294967040 }
 0x9bc   :  { %9208 = vsyncpa [#allocation10], 1 }
 0x9bd   :  { %9209 = vsyncpa [#allocation13], 1 }
 0x9be   :  { %9210 = vsyncpa [#allocation11], 1 }
 0x9bf   :  { %9211 = vsyncmov [#allocation8] }
 0x9c2   :  { %s9212_s30 = vpop.sfrf %9211 }
 0x9c3   :  { %p13828_p0 = scmp.ne.s32.totalorder %s9212_s30, 0 }
 0x9c5   :  { %9216 = shalt.err (%p13828_p0)  }
 0x9c6   :  { %9218 = vsyncmov [#allocation8 + $0x1] }
 0x9c9   :  { %s9219_s9 = vpop.sfrf %9218 }
 0x9ca   :  { %p13829_p1 = scmp.ne.s32.totalorder %s9219_s9, 0 }
 0x9cc   :  { %9223 = shalt.err (%p13829_p1)  }
 0x9cd   :  { %9225 = vsyncmov [#allocation8 + $0x2] }
 0x9d0   :  { %s9226_s10 = vpop.sfrf %9225 }
 0x9d1   :  { %p13830_p2 = scmp.ne.s32.totalorder %s9226_s10, 0 }
 0x9d3   :  { %9230 = shalt.err (%p13830_p2)  }
 0x9d4   :  { %9232 = vsyncmov [#allocation8 + $0x3] }
 0x9d7   :  { %s9233_s11 = vpop.sfrf %9232 }
 0x9d8   :  { %p13831_p3 = scmp.ne.s32.totalorder %s9233_s11, 0 }
 0x9da   :  { %9237 = shalt.err (%p13831_p3)  }
 0x9db   :  { %9239 = vsyncmov [#allocation8 + $0x4] }
 0x9de   :  { %s9240_s3 = vpop.sfrf %9239 }
 0x9df   :  { %p13832_p4 = scmp.ne.s32.totalorder %s9240_s3, 0 }
 0x9e1   :  { %9244 = shalt.err (%p13832_p4)  }
 0x9e2   :  { %9246 = vsyncmov [#allocation8 + $0x5] }
 0x9e5   :  { %s9247_s12 = vpop.sfrf %9246 }
 0x9e6   :  { %p13833_p5 = scmp.ne.s32.totalorder %s9247_s12, 0 }
 0x9e8   :  { %9251 = shalt.err (%p13833_p5)  }

</bundles_post_ra>
